<compile_context>
chip_gen: v5e
topology: v5e:2x2
jax: 0.10.0
libtpu: 0.0.40
codegen_flags: <defaults>
</compile_context>

<pallas_src>
import functools

import jax
import jax.numpy as jnp
from jax.experimental import pallas as pl
from jax.experimental.pallas import tpu as pltpu


def _round_up(x, m):
    return (x + m - 1) // m * m


_CONV_MAX_TK = 2048      # convs / small K: single full-extent K step
_FC_MAX_TK = 8192        # fc1: big K tiles on the HBM-bound weight stream
_VMEM_LIMIT = 48 * 1024 * 1024   # <= v7x per-TC VMEM, generous on v5e/v6e


def _pad_k(K, max_tk):
    """Padded K chosen at weight-prep time (consistent with fused_matmul)."""
    if K <= max_tk:
        return _round_up(K, 16)          # single full-extent K step
    nk = -(-K // max_tk)
    return _round_up(K, 128 * nk)        # tk = Kp//nk is a 128-multiple


# ----------------------------------------------------------------------------
# Pallas kernels: tiled matmul (bf16 MXU inputs, f32 accumulation) with fused
# scale/shift/ReLU epilogue.
# ----------------------------------------------------------------------------
def _fused_matmul_kernel_single(a_ref, w_ref, s_ref, b_ref, o_ref, *, relu):
    # Single K step: no accumulator scratch, no zero-init, direct store.
    y = jnp.dot(a_ref[...], w_ref[...], preferred_element_type=jnp.float32)
    y = y * s_ref[...] + b_ref[...]
    if relu:
        y = jnp.maximum(y, 0.0)
    o_ref[...] = y.astype(o_ref.dtype)


def _fused_matmul_kernel_multi(a_ref, w_ref, s_ref, b_ref, o_ref, acc_ref, *, relu):
    @pl.when(pl.program_id(2) == 0)
    def _():
        acc_ref[...] = jnp.zeros_like(acc_ref)

    acc_ref[...] += jnp.dot(a_ref[...], w_ref[...],
                            preferred_element_type=jnp.float32)

    @pl.when(pl.program_id(2) == pl.num_programs(2) - 1)
    def _():
        y = acc_ref[...] * s_ref[...] + b_ref[...]
        if relu:
            y = jnp.maximum(y, 0.0)
        o_ref[...] = y.astype(o_ref.dtype)


def fused_matmul(a, w, scale_row, shift_row, *, relu, out_dtype,
                 max_tk=_CONV_MAX_TK):
    """maybe_relu((a @ w) * scale + shift).

    a:          (M, K) activations (cast to bf16 here).
    w:          (Kp, Np) bf16 weight, K-padded at prep time (pad rows zero).
    scale_row:  (1, Np) f32;  shift_row: (1, Np) f32.
    """
    M, K = a.shape
    Kp, Np = w.shape
    assert Kp >= K
    assert Np < 128 or Np % 128 == 0
    assert scale_row.shape == (1, Np) and shift_row.shape == (1, Np)

    # N tiling: full-extent when N < 128 (exempt from the 128-lane rule ->
    # no pad / no depad copy of conv1's feature map); 512 for fc1 (2 parallel
    # N blocks for v7x's 2 TCs, halves A re-reads); else 256/128.
    if Np < 128:
        tn = Np
    elif Np % 512 == 0:
        tn = 512
    elif Np % 256 == 0:
        tn = 256
    else:
        tn = 128

    # K tiling: single full-extent K step whenever it fits the cap.
    if Kp <= max_tk:
        nk, tk = 1, Kp
    else:
        nk = -(-Kp // max_tk)
        tk = Kp // nk
        assert Kp % nk == 0 and tk % 128 == 0

    # M tiling: adaptive to the true M (fc layers run with tm=16 instead of a
    # 128-row zero pad); larger cap when the K side is tiny (conv1) so per-
    # grid-step overhead does not dominate.
    tm_cap = 1024 if Kp <= 256 else 256
    tm = min(tm_cap, max(16, _round_up(M, 16)))
    Mp = _round_up(M, tm)

    a_p = a.astype(jnp.bfloat16)
    if (Mp, Kp) != (M, K):
        a_p = jnp.pad(a_p, ((0, Mp - M), (0, Kp - K)))

    if nk == 1:
        grid = (Mp // tm, Np // tn)
        out = pl.pallas_call(
            functools.partial(_fused_matmul_kernel_single, relu=relu),
            out_shape=jax.ShapeDtypeStruct((Mp, Np), out_dtype),
            grid_spec=pltpu.PrefetchScalarGridSpec(
                num_scalar_prefetch=0,
                grid=grid,
                in_specs=[
                    pl.BlockSpec((tm, tk), lambda i, j: (i, 0)),
                    pl.BlockSpec((tk, tn), lambda i, j: (0, j)),
                    pl.BlockSpec((1, tn), lambda i, j: (0, j)),
                    pl.BlockSpec((1, tn), lambda i, j: (0, j)),
                ],
                out_specs=pl.BlockSpec((tm, tn), lambda i, j: (i, j)),
            ),
            compiler_params=pltpu.CompilerParams(
                dimension_semantics=("parallel", "parallel"),
                vmem_limit_bytes=_VMEM_LIMIT,
            ),
        )(a_p, w, scale_row, shift_row)
    else:
        # Long HBM-bound weight stream (fc1): deepen the weight pipeline.
        if nk >= 4:
            w_spec = pl.BlockSpec((tk, tn), lambda i, j, k: (k, j),
                                  pipeline_mode=pl.Buffered(3))
        else:
            w_spec = pl.BlockSpec((tk, tn), lambda i, j, k: (k, j))
        grid = (Mp // tm, Np // tn, nk)
        out = pl.pallas_call(
            functools.partial(_fused_matmul_kernel_multi, relu=relu),
            out_shape=jax.ShapeDtypeStruct((Mp, Np), out_dtype),
            grid_spec=pltpu.PrefetchScalarGridSpec(
                num_scalar_prefetch=0,
                grid=grid,
                in_specs=[
                    pl.BlockSpec((tm, tk), lambda i, j, k: (i, k)),
                    w_spec,
                    pl.BlockSpec((1, tn), lambda i, j, k: (0, j)),
                    pl.BlockSpec((1, tn), lambda i, j, k: (0, j)),
                ],
                out_specs=pl.BlockSpec((tm, tn), lambda i, j, k: (i, j)),
                scratch_shapes=[pltpu.VMEM((tm, tn), jnp.float32)],
            ),
            compiler_params=pltpu.CompilerParams(
                dimension_semantics=("parallel", "parallel", "arbitrary"),
                vmem_limit_bytes=_VMEM_LIMIT,
            ),
        )(a_p, w, scale_row, shift_row)

    if Mp != M:
        out = out[:M]
    return out


# ----------------------------------------------------------------------------
# Conv (im2col glue, bf16) + fused BN/ReLU via the Pallas matmul
# ----------------------------------------------------------------------------
def im2col(x, ksize, stride, pad):
    # x: NHWC
    N, H, W, C = x.shape
    xp = jnp.pad(x, ((0, 0), (pad, pad), (pad, pad), (0, 0)))
    Ho = (H + 2 * pad - ksize) // stride + 1
    Wo = (W + 2 * pad - ksize) // stride + 1
    cols = []
    for kh in range(ksize):
        for kw in range(ksize):
            cols.append(xp[:, kh:kh + (Ho - 1) * stride + 1:stride,
                           kw:kw + (Wo - 1) * stride + 1:stride, :])
    patches = jnp.concatenate(cols, axis=-1)          # (N, Ho, Wo, k*k*C)
    return patches.reshape(N * Ho * Wo, ksize * ksize * C), Ho, Wo


def conv_bn_relu(x, w2d, scale_row, shift_row, *, stride, ksize=3, pad=1):
    # x: NHWC bf16, w2d: (Kp, Cout) bf16 (K-padded at prep), scale/shift: (1,Cout) f32.
    n = x.shape[0]
    a, Ho, Wo = im2col(x, ksize, stride, pad)
    y = fused_matmul(a, w2d, scale_row, shift_row, relu=True,
                     out_dtype=jnp.bfloat16, max_tk=_CONV_MAX_TK)
    return y.reshape(n, Ho, Wo, w2d.shape[1])


# ----------------------------------------------------------------------------
# Parameters (PyTorch-like f32 dict) + one-time prep for the Pallas path
# ----------------------------------------------------------------------------
def init_params(key, H, W):
    ks = iter(jax.random.split(key, 19))

    def conv(kh, kw, cin, cout, s):
        return jax.random.normal(next(ks), (kh, kw, cin, cout), jnp.float32) * s

    def vec(n, s):
        return jax.random.normal(next(ks), (n,), jnp.float32) * s

    fc1_in = 256 * (H // 4) * (W // 4)
    p = {}
    for i, (cin, cout) in enumerate(((3, 64), (64, 128), (128, 256)), start=1):
        p[f"w{i}"] = conv(3, 3, cin, cout, 0.05)
        p[f"b{i}"] = vec(cout, 0.01)
        p[f"g{i}"] = 1.0 + vec(cout, 0.1)
        p[f"be{i}"] = vec(cout, 0.05)
        p[f"m{i}"] = vec(cout, 0.05)
        p[f"v{i}"] = jnp.ones((cout,), jnp.float32)
    p["fc1_w"] = jax.random.normal(next(ks), (fc1_in, 1024), jnp.float32) * 0.02
    p["fc1_b"] = vec(1024, 0.01)
    p["fc2_w"] = jax.random.normal(next(ks), (1024, 42), jnp.float32) * 0.02
    p["fc2_b"] = vec(42, 0.01)
    return p


def prepare_params(p, H, W, eps=1e-5):
    """One-time weight prep (call once, outside the jitted hot path):
       * conv weights -> 2-D GEMM form, K-padded, bf16
       * BN folded into per-channel (scale, shift) rows, f32
       * fc1 weight rows permuted NCHW-flatten -> NHWC-flatten order so the
         forward needs no transpose before fc1; fc weights in bf16.
    """
    q = {}
    for i in (1, 2, 3):
        w = p[f"w{i}"]
        kh, kw, cin, cout = w.shape
        K = kh * kw * cin
        Kp = _pad_k(K, _CONV_MAX_TK)
        w2 = w.reshape(K, cout)
        if Kp != K:
            w2 = jnp.pad(w2, ((0, Kp - K), (0, 0)))
        q[f"w{i}"] = w2.astype(jnp.bfloat16)
        inv = p[f"g{i}"] / jnp.sqrt(p[f"v{i}"] + eps)
        q[f"s{i}"] = inv.reshape(1, cout).astype(jnp.float32)
        q[f"sh{i}"] = ((p[f"b{i}"] - p[f"m{i}"]) * inv
                       + p[f"be{i}"]).reshape(1, cout).astype(jnp.float32)

    Ho, Wo = H // 4, W // 4
    K = Ho * Wo * 256
    fc1 = p["fc1_w"].reshape(256, Ho, Wo, 1024).transpose(1, 2, 0, 3).reshape(K, 1024)
    Kp = _pad_k(K, _FC_MAX_TK)
    if Kp != K:
        fc1 = jnp.pad(fc1, ((0, Kp - K), (0, 0)))
    q["fc1_w"] = fc1.astype(jnp.bfloat16)
    q["fc1_s"] = jnp.ones((1, 1024), jnp.float32)
    q["fc1_b"] = p["fc1_b"].reshape(1, 1024).astype(jnp.float32)
    q["fc2_w"] = p["fc2_w"].astype(jnp.bfloat16)
    q["fc2_b"] = p["fc2_b"].reshape(1, 42).astype(jnp.float32)
    return q


# ----------------------------------------------------------------------------
# Full network (Pallas path)
# ----------------------------------------------------------------------------
def selecsls_forward(x_nchw, q):
    # input NCHW -> NHWC bf16; the PyTorch NCHW flatten before fc1 is folded
    # into fc1's pre-permuted weight, so a plain NHWC reshape suffices here.
    x = jnp.transpose(x_nchw, (0, 2, 3, 1)).astype(jnp.bfloat16)
    x = conv_bn_relu(x, q["w1"], q["s1"], q["sh1"], stride=1)
    x = conv_bn_relu(x, q["w2"], q["s2"], q["sh2"], stride=2)
    x = conv_bn_relu(x, q["w3"], q["s3"], q["sh3"], stride=2)
    n = x.shape[0]
    xf = x.reshape(n, -1)                              # NHWC flatten
    h = fused_matmul(xf, q["fc1_w"], q["fc1_s"], q["fc1_b"],
                     relu=True, out_dtype=jnp.bfloat16, max_tk=_FC_MAX_TK)
    # fc2 (<= B x 1024 x 42): plain dot per the perf review -- its compute is
    # microseconds; a Pallas launch plus pad/depad would cost more than it saves.
    out = jnp.dot(h, q["fc2_w"], preferred_element_type=jnp.float32) + q["fc2_b"]
    return out.reshape(-1, 3, 14)


# ----------------------------------------------------------------------------
# Pure-JAX f32 reference (same semantics, no Pallas) for a sanity check
# ----------------------------------------------------------------------------
def _ref_conv_bn_relu(x, w, b, gamma, beta, mean, var, *, stride, eps=1e-5):
    n = x.shape[0]
    kh, kw, cin, cout = w.shape
    a, Ho, Wo = im2col(x, kh, stride, 1)
    y = a @ w.reshape(kh * kw * cin, cout)
    inv = gamma / jnp.sqrt(var + eps)
    y = y * inv + (b - mean) * inv + beta
    return jnp.maximum(y, 0.0).reshape(n, Ho, Wo, cout)


def reference_forward(x_nchw, p):
    x = jnp.transpose(x_nchw, (0, 2, 3, 1)).astype(jnp.float32)
    x = _ref_conv_bn_relu(x, p["w1"], p["b1"], p["g1"], p["be1"], p["m1"], p["v1"], stride=1)
    x = _ref_conv_bn_relu(x, p["w2"], p["b2"], p["g2"], p["be2"], p["m2"], p["v2"], stride=2)
    x = _ref_conv_bn_relu(x, p["w3"], p["b3"], p["g3"], p["be3"], p["m3"], p["v3"], stride=2)
    n = x.shape[0]
    xf = jnp.transpose(x, (0, 3, 1, 2)).reshape(n, -1)   # NCHW flatten (PyTorch order)
    h = jnp.maximum(xf @ p["fc1_w"] + p["fc1_b"], 0.0)
    out = h @ p["fc2_w"] + p["fc2_b"]
    return out.reshape(-1, 3, 14)


if __name__ == "__main__":
    key = jax.random.PRNGKey(0)
    k_x, k_p = jax.random.split(key)

    B, C, H, W = 2, 3, 16, 16
    x = jax.random.normal(k_x, (B, C, H, W), jnp.float32)
    params = init_params(k_p, H, W)
    prepared = prepare_params(params, H, W)   # one-time weight prep, outside jit

    fwd = jax.jit(selecsls_forward)
    out = jax.block_until_ready(fwd(x, prepared))

    assert out.shape == (B, 3, 14), out.shape
    assert bool(jnp.all(jnp.isfinite(out)))
    ref = reference_forward(x, params)
    err = float(jnp.max(jnp.abs(out - ref)))
    # bf16 matmul inputs / activations with f32 accumulation vs. a pure-f32 ref.
    assert jnp.allclose(out, ref, rtol=3e-2, atol=3e-2), err

    print("KERNEL_OK")
</pallas_src>

<mosaic_0001>
module attributes {stable_mosaic.version = 11 : i64} {
  func.func @_fused_matmul_kernel_single(%arg0: i32, %arg1: i32, %arg2: memref<512x32xbf16, #tpu.memory_space<vmem>>, %arg3: memref<32x64xbf16, #tpu.memory_space<vmem>>, %arg4: memref<1x64xf32, #tpu.memory_space<vmem>>, %arg5: memref<1x64xf32, #tpu.memory_space<vmem>>, %arg6: memref<512x64xbf16, #tpu.memory_space<vmem>>) attributes {dimension_semantics = [#tpu.dimension_semantics<parallel>, #tpu.dimension_semantics<parallel>], iteration_bounds = array<i64: 1, 1>, scalar_prefetch = 0 : i64, scratch_operands = 0 : i64, tpu.core_type = #tpu.core_type<tc>, window_params = [{transform_indices = @transform_0, window_bounds = array<i64: 512, 32>}, {transform_indices = @transform_1, window_bounds = array<i64: 32, 64>}, {transform_indices = @transform_2, window_bounds = array<i64: 1, 64>}, {transform_indices = @transform_3, window_bounds = array<i64: 1, 64>}, {transform_indices = @transform_4, window_bounds = array<i64: 512, 64>}]} {
    %c0 = arith.constant 0 : index
    %c0_0 = arith.constant 0 : index
    %0 = vector.load %arg2[%c0, %c0_0] : memref<512x32xbf16, #tpu.memory_space<vmem>>, vector<512x32xbf16>
    %c0_1 = arith.constant 0 : index
    %c0_2 = arith.constant 0 : index
    %1 = vector.load %arg3[%c0_1, %c0_2] : memref<32x64xbf16, #tpu.memory_space<vmem>>, vector<32x64xbf16>
    %cst = arith.constant dense<0.000000e+00> : vector<512x64xf32>
    %2 = tpu.matmul %0, %1, %cst {dimension_numbers = #tpu.dot_dimension_numbers<[1], [0], [0], [1], [0, 0, 1, 1], [], []>} : vector<512x32xbf16>, vector<32x64xbf16>, vector<512x64xf32> -> vector<512x64xf32>
    %c0_3 = arith.constant 0 : index
    %c0_4 = arith.constant 0 : index
    %3 = vector.load %arg4[%c0_3, %c0_4] : memref<1x64xf32, #tpu.memory_space<vmem>>, vector<1x64xf32>
    %4 = vector.broadcast %3 : vector<1x64xf32> to vector<512x64xf32>
    %5 = arith.mulf %2, %4 : vector<512x64xf32>
    %c0_5 = arith.constant 0 : index
    %c0_6 = arith.constant 0 : index
    %6 = vector.load %arg5[%c0_5, %c0_6] : memref<1x64xf32, #tpu.memory_space<vmem>>, vector<1x64xf32>
    %7 = vector.broadcast %6 : vector<1x64xf32> to vector<512x64xf32>
    %8 = arith.addf %5, %7 : vector<512x64xf32>
    %cst_7 = arith.constant 0.000000e+00 : f32
    %9 = vector.broadcast %cst_7 : f32 to vector<512x64xf32>
    %10 = arith.maximumf %8, %9 : vector<512x64xf32>
    %11 = arith.truncf %10 : vector<512x64xf32> to vector<512x64xbf16>
    %c0_8 = arith.constant 0 : index
    %c0_9 = arith.constant 0 : index
    %12 = vector.load %arg6[%c0_8, %c0_9] : memref<512x64xbf16, #tpu.memory_space<vmem>>, vector<512x64xbf16>
    tpu.vector_store %arg6[%c0_8, %c0_9], %11 {strides = array<i32>} : memref<512x64xbf16, #tpu.memory_space<vmem>>, vector<512x64xbf16>,
    return
  }
  func.func @transform_0(%arg0: i32, %arg1: i32) -> (i32, i32) {
    %c0_i32 = arith.constant 0 : i32
    %c0_i32_0 = arith.constant 0 : i32
    return %arg0, %c0_i32 : i32, i32
  }
  func.func @transform_1(%arg0: i32, %arg1: i32) -> (i32, i32) {
    %c0_i32 = arith.constant 0 : i32
    %c0_i32_0 = arith.constant 0 : i32
    return %c0_i32, %arg1 : i32, i32
  }
  func.func @transform_2(%arg0: i32, %arg1: i32) -> (i32, i32) {
    %c0_i32 = arith.constant 0 : i32
    %c0_i32_0 = arith.constant 0 : i32
    return %c0_i32, %arg1 : i32, i32
  }
  func.func @transform_3(%arg0: i32, %arg1: i32) -> (i32, i32) {
    %c0_i32 = arith.constant 0 : i32
    %c0_i32_0 = arith.constant 0 : i32
    return %c0_i32, %arg1 : i32, i32
  }
  func.func @transform_4(%arg0: i32, %arg1: i32) -> (i32, i32) {
    %c0_i32 = arith.constant 0 : i32
    return %arg0, %arg1 : i32, i32
  }
}

module attributes {stable_mosaic.version = 11 : i64} {
  func.func @_fused_matmul_kernel_single(%arg0: i32, %arg1: i32, %arg2: memref<128x576xbf16, #tpu.memory_space<vmem>>, %arg3: memref<576x128xbf16, #tpu.memory_space<vmem>>, %arg4: memref<1x128xf32, #tpu.memory_space<vmem>>, %arg5: memref<1x128xf32, #tpu.memory_space<vmem>>, %arg6: memref<128x128xbf16, #tpu.memory_space<vmem>>) attributes {dimension_semantics = [#tpu.dimension_semantics<parallel>, #tpu.dimension_semantics<parallel>], iteration_bounds = array<i64: 1, 1>, scalar_prefetch = 0 : i64, scratch_operands = 0 : i64, tpu.core_type = #tpu.core_type<tc>, window_params = [{transform_indices = @transform_0, window_bounds = array<i64: 128, 576>}, {transform_indices = @transform_1, window_bounds = array<i64: 576, 128>}, {transform_indices = @transform_2, window_bounds = array<i64: 1, 128>}, {transform_indices = @transform_3, window_bounds = array<i64: 1, 128>}, {transform_indices = @transform_4, window_bounds = array<i64: 128, 128>}]} {
    %c0 = arith.constant 0 : index
    %c0_0 = arith.constant 0 : index
    %0 = vector.load %arg2[%c0, %c0_0] : memref<128x576xbf16, #tpu.memory_space<vmem>>, vector<128x576xbf16>
    %c0_1 = arith.constant 0 : index
    %c0_2 = arith.constant 0 : index
    %1 = vector.load %arg3[%c0_1, %c0_2] : memref<576x128xbf16, #tpu.memory_space<vmem>>, vector<576x128xbf16>
    %cst = arith.constant dense<0.000000e+00> : vector<128x128xf32>
    %2 = tpu.matmul %0, %1, %cst {dimension_numbers = #tpu.dot_dimension_numbers<[1], [0], [0], [1], [0, 0, 1, 1], [], []>} : vector<128x576xbf16>, vector<576x128xbf16>, vector<128x128xf32> -> vector<128x128xf32>
    %c0_3 = arith.constant 0 : index
    %c0_4 = arith.constant 0 : index
    %3 = vector.load %arg4[%c0_3, %c0_4] : memref<1x128xf32, #tpu.memory_space<vmem>>, vector<1x128xf32>
    %4 = vector.broadcast %3 : vector<1x128xf32> to vector<128x128xf32>
    %5 = arith.mulf %2, %4 : vector<128x128xf32>
    %c0_5 = arith.constant 0 : index
    %c0_6 = arith.constant 0 : index
    %6 = vector.load %arg5[%c0_5, %c0_6] : memref<1x128xf32, #tpu.memory_space<vmem>>, vector<1x128xf32>
    %7 = vector.broadcast %6 : vector<1x128xf32> to vector<128x128xf32>
    %8 = arith.addf %5, %7 : vector<128x128xf32>
    %cst_7 = arith.constant 0.000000e+00 : f32
    %9 = vector.broadcast %cst_7 : f32 to vector<128x128xf32>
    %10 = arith.maximumf %8, %9 : vector<128x128xf32>
    %11 = arith.truncf %10 : vector<128x128xf32> to vector<128x128xbf16>
    %c0_8 = arith.constant 0 : index
    %c0_9 = arith.constant 0 : index
    %12 = vector.load %arg6[%c0_8, %c0_9] : memref<128x128xbf16, #tpu.memory_space<vmem>>, vector<128x128xbf16>
    tpu.vector_store %arg6[%c0_8, %c0_9], %11 {strides = array<i32>} : memref<128x128xbf16, #tpu.memory_space<vmem>>, vector<128x128xbf16>,
    return
  }
  func.func @transform_0(%arg0: i32, %arg1: i32) -> (i32, i32) {
    %c0_i32 = arith.constant 0 : i32
    %c0_i32_0 = arith.constant 0 : i32
    return %arg0, %c0_i32 : i32, i32
  }
  func.func @transform_1(%arg0: i32, %arg1: i32) -> (i32, i32) {
    %c0_i32 = arith.constant 0 : i32
    %c0_i32_0 = arith.constant 0 : i32
    return %c0_i32, %arg1 : i32, i32
  }
  func.func @transform_2(%arg0: i32, %arg1: i32) -> (i32, i32) {
    %c0_i32 = arith.constant 0 : i32
    %c0_i32_0 = arith.constant 0 : i32
    return %c0_i32, %arg1 : i32, i32
  }
  func.func @transform_3(%arg0: i32, %arg1: i32) -> (i32, i32) {
    %c0_i32 = arith.constant 0 : i32
    %c0_i32_0 = arith.constant 0 : i32
    return %c0_i32, %arg1 : i32, i32
  }
  func.func @transform_4(%arg0: i32, %arg1: i32) -> (i32, i32) {
    %c0_i32 = arith.constant 0 : i32
    return %arg0, %arg1 : i32, i32
  }
}

module attributes {stable_mosaic.version = 11 : i64} {
  func.func @_fused_matmul_kernel_single(%arg0: i32, %arg1: i32, %arg2: memref<32x1152xbf16, #tpu.memory_space<vmem>>, %arg3: memref<1152x256xbf16, #tpu.memory_space<vmem>>, %arg4: memref<1x256xf32, #tpu.memory_space<vmem>>, %arg5: memref<1x256xf32, #tpu.memory_space<vmem>>, %arg6: memref<32x256xbf16, #tpu.memory_space<vmem>>) attributes {dimension_semantics = [#tpu.dimension_semantics<parallel>, #tpu.dimension_semantics<parallel>], iteration_bounds = array<i64: 1, 1>, scalar_prefetch = 0 : i64, scratch_operands = 0 : i64, tpu.core_type = #tpu.core_type<tc>, window_params = [{transform_indices = @transform_0, window_bounds = array<i64: 32, 1152>}, {transform_indices = @transform_1, window_bounds = array<i64: 1152, 256>}, {transform_indices = @transform_2, window_bounds = array<i64: 1, 256>}, {transform_indices = @transform_3, window_bounds = array<i64: 1, 256>}, {transform_indices = @transform_4, window_bounds = array<i64: 32, 256>}]} {
    %c0 = arith.constant 0 : index
    %c0_0 = arith.constant 0 : index
    %0 = vector.load %arg2[%c0, %c0_0] : memref<32x1152xbf16, #tpu.memory_space<vmem>>, vector<32x1152xbf16>
    %c0_1 = arith.constant 0 : index
    %c0_2 = arith.constant 0 : index
    %1 = vector.load %arg3[%c0_1, %c0_2] : memref<1152x256xbf16, #tpu.memory_space<vmem>>, vector<1152x256xbf16>
    %cst = arith.constant dense<0.000000e+00> : vector<32x256xf32>
    %2 = tpu.matmul %0, %1, %cst {dimension_numbers = #tpu.dot_dimension_numbers<[1], [0], [0], [1], [0, 0, 1, 1], [], []>} : vector<32x1152xbf16>, vector<1152x256xbf16>, vector<32x256xf32> -> vector<32x256xf32>
    %c0_3 = arith.constant 0 : index
    %c0_4 = arith.constant 0 : index
    %3 = vector.load %arg4[%c0_3, %c0_4] : memref<1x256xf32, #tpu.memory_space<vmem>>, vector<1x256xf32>
    %4 = vector.broadcast %3 : vector<1x256xf32> to vector<32x256xf32>
    %5 = arith.mulf %2, %4 : vector<32x256xf32>
    %c0_5 = arith.constant 0 : index
    %c0_6 = arith.constant 0 : index
    %6 = vector.load %arg5[%c0_5, %c0_6] : memref<1x256xf32, #tpu.memory_space<vmem>>, vector<1x256xf32>
    %7 = vector.broadcast %6 : vector<1x256xf32> to vector<32x256xf32>
    %8 = arith.addf %5, %7 : vector<32x256xf32>
    %cst_7 = arith.constant 0.000000e+00 : f32
    %9 = vector.broadcast %cst_7 : f32 to vector<32x256xf32>
    %10 = arith.maximumf %8, %9 : vector<32x256xf32>
    %11 = arith.truncf %10 : vector<32x256xf32> to vector<32x256xbf16>
    %c0_8 = arith.constant 0 : index
    %c0_9 = arith.constant 0 : index
    %12 = vector.load %arg6[%c0_8, %c0_9] : memref<32x256xbf16, #tpu.memory_space<vmem>>, vector<32x256xbf16>
    tpu.vector_store %arg6[%c0_8, %c0_9], %11 {strides = array<i32>} : memref<32x256xbf16, #tpu.memory_space<vmem>>, vector<32x256xbf16>,
    return
  }
  func.func @transform_0(%arg0: i32, %arg1: i32) -> (i32, i32) {
    %c0_i32 = arith.constant 0 : i32
    %c0_i32_0 = arith.constant 0 : i32
    return %arg0, %c0_i32 : i32, i32
  }
  func.func @transform_1(%arg0: i32, %arg1: i32) -> (i32, i32) {
    %c0_i32 = arith.constant 0 : i32
    %c0_i32_0 = arith.constant 0 : i32
    return %c0_i32, %arg1 : i32, i32
  }
  func.func @transform_2(%arg0: i32, %arg1: i32) -> (i32, i32) {
    %c0_i32 = arith.constant 0 : i32
    %c0_i32_0 = arith.constant 0 : i32
    return %c0_i32, %arg1 : i32, i32
  }
  func.func @transform_3(%arg0: i32, %arg1: i32) -> (i32, i32) {
    %c0_i32 = arith.constant 0 : i32
    %c0_i32_0 = arith.constant 0 : i32
    return %c0_i32, %arg1 : i32, i32
  }
  func.func @transform_4(%arg0: i32, %arg1: i32) -> (i32, i32) {
    %c0_i32 = arith.constant 0 : i32
    return %arg0, %arg1 : i32, i32
  }
}

module attributes {stable_mosaic.version = 11 : i64} {
  func.func @_fused_matmul_kernel_single(%arg0: i32, %arg1: i32, %arg2: memref<16x4096xbf16, #tpu.memory_space<vmem>>, %arg3: memref<4096x512xbf16, #tpu.memory_space<vmem>>, %arg4: memref<1x512xf32, #tpu.memory_space<vmem>>, %arg5: memref<1x512xf32, #tpu.memory_space<vmem>>, %arg6: memref<16x512xbf16, #tpu.memory_space<vmem>>) attributes {dimension_semantics = [#tpu.dimension_semantics<parallel>, #tpu.dimension_semantics<parallel>], iteration_bounds = array<i64: 1, 2>, scalar_prefetch = 0 : i64, scratch_operands = 0 : i64, tpu.core_type = #tpu.core_type<tc>, window_params = [{transform_indices = @transform_0, window_bounds = array<i64: 16, 4096>}, {transform_indices = @transform_1, window_bounds = array<i64: 4096, 512>}, {transform_indices = @transform_2, window_bounds = array<i64: 1, 512>}, {transform_indices = @transform_3, window_bounds = array<i64: 1, 512>}, {transform_indices = @transform_4, window_bounds = array<i64: 16, 512>}]} {
    %c0 = arith.constant 0 : index
    %c0_0 = arith.constant 0 : index
    %0 = vector.load %arg2[%c0, %c0_0] : memref<16x4096xbf16, #tpu.memory_space<vmem>>, vector<16x4096xbf16>
    %c0_1 = arith.constant 0 : index
    %c0_2 = arith.constant 0 : index
    %1 = vector.load %arg3[%c0_1, %c0_2] : memref<4096x512xbf16, #tpu.memory_space<vmem>>, vector<4096x512xbf16>
    %cst = arith.constant dense<0.000000e+00> : vector<16x512xf32>
    %2 = tpu.matmul %0, %1, %cst {dimension_numbers = #tpu.dot_dimension_numbers<[1], [0], [0], [1], [0, 0, 1, 1], [], []>} : vector<16x4096xbf16>, vector<4096x512xbf16>, vector<16x512xf32> -> vector<16x512xf32>
    %c0_3 = arith.constant 0 : index
    %c0_4 = arith.constant 0 : index
    %3 = vector.load %arg4[%c0_3, %c0_4] : memref<1x512xf32, #tpu.memory_space<vmem>>, vector<1x512xf32>
    %4 = vector.broadcast %3 : vector<1x512xf32> to vector<16x512xf32>
    %5 = arith.mulf %2, %4 : vector<16x512xf32>
    %c0_5 = arith.constant 0 : index
    %c0_6 = arith.constant 0 : index
    %6 = vector.load %arg5[%c0_5, %c0_6] : memref<1x512xf32, #tpu.memory_space<vmem>>, vector<1x512xf32>
    %7 = vector.broadcast %6 : vector<1x512xf32> to vector<16x512xf32>
    %8 = arith.addf %5, %7 : vector<16x512xf32>
    %cst_7 = arith.constant 0.000000e+00 : f32
    %9 = vector.broadcast %cst_7 : f32 to vector<16x512xf32>
    %10 = arith.maximumf %8, %9 : vector<16x512xf32>
    %11 = arith.truncf %10 : vector<16x512xf32> to vector<16x512xbf16>
    %c0_8 = arith.constant 0 : index
    %c0_9 = arith.constant 0 : index
    %12 = vector.load %arg6[%c0_8, %c0_9] : memref<16x512xbf16, #tpu.memory_space<vmem>>, vector<16x512xbf16>
    tpu.vector_store %arg6[%c0_8, %c0_9], %11 {strides = array<i32>} : memref<16x512xbf16, #tpu.memory_space<vmem>>, vector<16x512xbf16>,
    return
  }
  func.func @transform_0(%arg0: i32, %arg1: i32) -> (i32, i32) {
    %c0_i32 = arith.constant 0 : i32
    %c0_i32_0 = arith.constant 0 : i32
    return %arg0, %c0_i32 : i32, i32
  }
  func.func @transform_1(%arg0: i32, %arg1: i32) -> (i32, i32) {
    %c0_i32 = arith.constant 0 : i32
    %c0_i32_0 = arith.constant 0 : i32
    return %c0_i32, %arg1 : i32, i32
  }
  func.func @transform_2(%arg0: i32, %arg1: i32) -> (i32, i32) {
    %c0_i32 = arith.constant 0 : i32
    %c0_i32_0 = arith.constant 0 : i32
    return %c0_i32, %arg1 : i32, i32
  }
  func.func @transform_3(%arg0: i32, %arg1: i32) -> (i32, i32) {
    %c0_i32 = arith.constant 0 : i32
    %c0_i32_0 = arith.constant 0 : i32
    return %c0_i32, %arg1 : i32, i32
  }
  func.func @transform_4(%arg0: i32, %arg1: i32) -> (i32, i32) {
    %c0_i32 = arith.constant 0 : i32
    return %arg0, %arg1 : i32, i32
  }
}

</mosaic_0001>

<bundles_post_ra>
// kernel: selecsls_forward.4
= control target key start
LH: loop header
LB: loop body
LE: loop exit
PB: predicated region body
PF: predicated region fallthrough
CT: control target
= control target key end

     0   :  { %9 = vsyncpa [#allocation3], 0  ;;  %s1748_s0 = inlined_call_operand.vmem [shape: bf16[512,32], index: 0, kind: input, shape index: {}]   ;;  %s1749_s1 = inlined_call_operand.hbm [shape: bf16[32,64], index: 1, kind: input, shape index: {}]   ;;  %s1750_s2 = inlined_call_operand.hbm [shape: f32[1,64], index: 2, kind: input, shape index: {}]   ;;  %s1751_s3 = inlined_call_operand.hbm [shape: f32[1,64], index: 3, kind: input, shape index: {}]   ;;  %s1752_s4 = inlined_call_operand.vmem [shape: bf16[512,64], index: 4, kind: output, shape index: {}]  }
   0x1   :  { %10 = vsyncpa [#allocation5], 0  ;;  %s31_s17 = sshll.u32 %s1750_s2, 4  ;;  %s1193_s18 = smov [#allocation4]   ;;  %s32_s17 = int_to_ptr.hbm [resolvable:$true] %s31_s17 }
   0x2   :  { %s33_s19 = sshll.u32 %s1193_s18, 4  ;;  %s17_s22 = sshll.u32 %s1749_s1, 4  ;;  %s34_s19 = int_to_ptr.vmem [resolvable:$true] %s33_s19  ;;  %s18_s22 = int_to_ptr.hbm [resolvable:$true] %s17_s22 }
   0x3   :  { %36 = dma.hbm_to_vmem [thread:$0]  %s32_s17, 16, %s34_s19, [#allocation5]  }
   0x4   :  { %s1194_s23 = smov [#allocation2]   ;;  %s1195_s25 = smov 64  }
   0x5   :  { %s19_s24 = sshll.u32 %s1194_s23, 4  ;;  %s1196_s26 = smov 4   ;;  %s20_s24 = int_to_ptr.vmem [resolvable:$true] %s19_s24 }
   0x6   :  { %25 = dma.hbm_to_vmem [thread:$0]  %s18_s22, 256, %s20_s24, [#allocation3], %s1195_s25, %s1195_s25, %s1196_s26  }
   0x7   :  { %s42_s2 = sshll.u32 %s1751_s3, 4  ;;  %s1197_s29 = smov [#allocation6]   ;;  %s43_s2 = int_to_ptr.hbm [resolvable:$true] %s42_s2 }
   0x8   :  { %s44_s30 = sshll.u32 %s1197_s29, 4  ;;  %s45_s30 = int_to_ptr.vmem [resolvable:$true] %s44_s30 }
   0x9   :  { %47 = dma.hbm_to_vmem [thread:$0]  %s43_s2, 16, %s45_s30, [#allocation5]  }
   0xa   :  { %1189 = dma.done.wait [#allocation3], 256  }
   0xb   :  { %1190 = vsyncadd [#allocation3], 4294967040 }
   0xc   :  { %1191 = dma.done.wait [#allocation5], 32  }
   0xd   :  { %1192 = vsyncadd [#allocation5], 4294967264  ;;  %v1103_v0 = vld [vmem:[#allocation2 + $0x8] sm:$0xff]  ;;  %v1102_v1 = vld [vmem:[#allocation2] sm:$0xff]  ;;  %vm301_vm0 = vcmask 261120   ;;  %vm831_vm1 = vcmask 519168  }
   0xe   :  { %404 = vmatpush.bf16.msra.mxu0 %v1103_v0  ;;  %1104 = vmatpush.bf16.msra.mxu1 %v1103_v0  ;;  %v1070_v2 = vld [vmem:[%s1748_s0] sm:$0xff]  ;;  %v1071_v6 = vld [vmem:[%s1748_s0 + $0x8] sm:$0xff]  ;;  %v1072_v10 = vld [vmem:[%s1748_s0 + $0x10] sm:$0xff] }
   0xf   :  { %1105 = vmatpush.bf16.msra.mxu2 %v1103_v0  ;;  %1106 = vmatpush.bf16.msra.mxu3 %v1103_v0  ;;  %v1078_v3 = vld [vmem:[%s1748_s0 + $0x40] sm:$0xff]  ;;  %v1079_v7 = vld [vmem:[%s1748_s0 + $0x48] sm:$0xff]  ;;  %v1080_v11 = vld [vmem:[%s1748_s0 + $0x50] sm:$0xff] }
  0x10   :  { %v1086_v4 = vld [vmem:[%s1748_s0 + $0x80] sm:$0xff]  ;;  %v1087_v8 = vld [vmem:[%s1748_s0 + $0x88] sm:$0xff]  ;;  %v1088_v12 = vld [vmem:[%s1748_s0 + $0x90] sm:$0xff] }
  0x11   :  { %v1094_v5 = vld [vmem:[%s1748_s0 + $0xc0] sm:$0xff]  ;;  %v1095_v9 = vld [vmem:[%s1748_s0 + $0xc8] sm:$0xff]  ;;  %v1096_v13 = vld [vmem:[%s1748_s0 + $0xd0] sm:$0xff] }
  0x12   :  { %405 = vmatpush.bf16.msra.mxu0 %v1102_v1  ;;  %1107 = vmatpush.bf16.msra.mxu1 %v1102_v1  ;;  %v1073_v14 = vld [vmem:[%s1748_s0 + $0x18] sm:$0xff]  ;;  %v1074_v18 = vld [vmem:[%s1748_s0 + $0x20] sm:$0xff]  ;;  %v1075_v22 = vld [vmem:[%s1748_s0 + $0x28] sm:$0xff] }
  0x13   :  { %1108 = vmatpush.bf16.msra.mxu2 %v1102_v1  ;;  %1109 = vmatpush.bf16.msra.mxu3 %v1102_v1  ;;  %v1081_v15 = vld [vmem:[%s1748_s0 + $0x58] sm:$0xff]  ;;  %v1082_v19 = vld [vmem:[%s1748_s0 + $0x60] sm:$0xff]  ;;  %v1083_v23 = vld [vmem:[%s1748_s0 + $0x68] sm:$0xff] }
  0x14   :  { %v1089_v16 = vld [vmem:[%s1748_s0 + $0x98] sm:$0xff]  ;;  %v1090_v20 = vld [vmem:[%s1748_s0 + $0xa0] sm:$0xff]  ;;  %v1091_v24 = vld [vmem:[%s1748_s0 + $0xa8] sm:$0xff] }
  0x15   :  { %1038 = vmatmul.msk.bf16.vlgmr.msra.gmra.mxu0 %vm301_vm0, %v1070_v2  ;;  %1046 = vmatmul.msk.bf16.vlgmr.msra.gmra.mxu1 %vm301_vm0, %v1078_v3  ;;  %v1097_v17 = vld [vmem:[%s1748_s0 + $0xd8] sm:$0xff]  ;;  %v1098_v21 = vld [vmem:[%s1748_s0 + $0xe0] sm:$0xff]  ;;  %v1099_v25 = vld [vmem:[%s1748_s0 + $0xe8] sm:$0xff] }
  0x16   :  { %1054 = vmatmul.msk.bf16.vlgmr.msra.gmra.mxu2 %vm301_vm0, %v1086_v4  ;;  %1062 = vmatmul.msk.bf16.vlgmr.msra.gmra.mxu3 %vm301_vm0, %v1094_v5  ;;  %v1076_v26 = vld [vmem:[%s1748_s0 + $0x30] sm:$0xff]  ;;  %v1077_v30 = vld [vmem:[%s1748_s0 + $0x38] sm:$0xff] }
  0x17   :  { %v1084_v27 = vld [vmem:[%s1748_s0 + $0x70] sm:$0xff]  ;;  %v1085_v31 = vld [vmem:[%s1748_s0 + $0x78] sm:$0xff] }
  0x18   :  { %v1092_v28 = vld [vmem:[%s1748_s0 + $0xb0] sm:$0xff]  ;;  %v1093_v32 = vld [vmem:[%s1748_s0 + $0xb8] sm:$0xff] }
  0x19   :  { %v1100_v29 = vld [vmem:[%s1748_s0 + $0xf0] sm:$0xff]  ;;  %v1101_v33 = vld [vmem:[%s1748_s0 + $0xf8] sm:$0xff] }
  0x1a   :  { %v1360_v34 = vld [vmem:[#allocation4] ss:$0 sm:$0xff]  ;;  %v1362_v35 = vld [vmem:[#allocation6] ss:$0 sm:$0xff] }
  0x25   :  { %1039 = vmatmul.msk.bf16.gmra.mxu0 %vm301_vm0, %v1071_v6  ;;  %1047 = vmatmul.msk.bf16.gmra.mxu1 %vm301_vm0, %v1079_v7 }
  0x26   :  { %1055 = vmatmul.msk.bf16.gmra.mxu2 %vm301_vm0, %v1087_v8  ;;  %1063 = vmatmul.msk.bf16.gmra.mxu3 %vm301_vm0, %v1095_v9 }
  0x35   :  { %1040 = vmatmul.msk.bf16.gmra.mxu0 %vm301_vm0, %v1072_v10  ;;  %1048 = vmatmul.msk.bf16.gmra.mxu1 %vm301_vm0, %v1080_v11 }
  0x36   :  { %1056 = vmatmul.msk.bf16.gmra.mxu2 %vm301_vm0, %v1088_v12  ;;  %1064 = vmatmul.msk.bf16.gmra.mxu3 %vm301_vm0, %v1096_v13 }
  0x45   :  { %1041 = vmatmul.msk.bf16.gmra.mxu0 %vm301_vm0, %v1073_v14  ;;  %1049 = vmatmul.msk.bf16.gmra.mxu1 %vm301_vm0, %v1081_v15 }
  0x46   :  { %1057 = vmatmul.msk.bf16.gmra.mxu2 %vm301_vm0, %v1089_v16  ;;  %1065 = vmatmul.msk.bf16.gmra.mxu3 %vm301_vm0, %v1097_v17 }
  0x55   :  { %1042 = vmatmul.msk.bf16.gmra.mxu0 %vm301_vm0, %v1074_v18  ;;  %1050 = vmatmul.msk.bf16.gmra.mxu1 %vm301_vm0, %v1082_v19 }
  0x56   :  { %1058 = vmatmul.msk.bf16.gmra.mxu2 %vm301_vm0, %v1090_v20  ;;  %1066 = vmatmul.msk.bf16.gmra.mxu3 %vm301_vm0, %v1098_v21 }
  0x65   :  { %1043 = vmatmul.msk.bf16.gmra.mxu0 %vm301_vm0, %v1075_v22  ;;  %1051 = vmatmul.msk.bf16.gmra.mxu1 %vm301_vm0, %v1083_v23 }
  0x66   :  { %1059 = vmatmul.msk.bf16.gmra.mxu2 %vm301_vm0, %v1091_v24  ;;  %1067 = vmatmul.msk.bf16.gmra.mxu3 %vm301_vm0, %v1099_v25 }
  0x75   :  { %1044 = vmatmul.msk.bf16.gmra.mxu0 %vm301_vm0, %v1076_v26  ;;  %1052 = vmatmul.msk.bf16.gmra.mxu1 %vm301_vm0, %v1084_v27 }
  0x76   :  { %1060 = vmatmul.msk.bf16.gmra.mxu2 %vm301_vm0, %v1092_v28  ;;  %1068 = vmatmul.msk.bf16.gmra.mxu3 %vm301_vm0, %v1100_v29 }
  0x85   :  { %1045 = vmatmul.msk.bf16.gmra.mxu0 %vm301_vm0, %v1077_v30  ;;  %1053 = vmatmul.msk.bf16.gmra.mxu1 %vm301_vm0, %v1085_v31 }
  0x86   :  { %1061 = vmatmul.msk.bf16.gmra.mxu2 %vm301_vm0, %v1093_v32  ;;  %1069 = vmatmul.msk.bf16.gmra.mxu3 %vm301_vm0, %v1101_v33 }
  0x92   :  { %v407_v36 = vpop.f32.mrf.mxu0  ;;  %v447_v37 = vpop.f32.mrf.mxu1 }
  0x93   :  { %v571_v38 = vmul.f32 %v1360_v34, %v407_v36  ;;  %v587_v39 = vmul.f32 %v1360_v34, %v447_v37 }
  0x95   :  { %v639_v40 = vadd.f32 %v1362_v35, %v571_v38  ;;  %v655_v41 = vadd.f32 %v1362_v35, %v587_v39 }
  0x97   :  { %v703_v42 = vmax.f32 %v639_v40, 0.0  ;;  %v719_v43 = vmax.f32 %v655_v41, 0.0 }
  0x99   :  { %v767_v44 = vpack.c.bf16 %v703_v42, %v703_v42  ;;  %v783_v45 = vpack.c.bf16 %v719_v43, %v719_v43  ;;  %v487_v46 = vpop.f32.mrf.mxu2  ;;  %v527_v47 = vpop.f32.mrf.mxu3 }
  0x9a   :  { %v603_v48 = vmul.f32 %v1360_v34, %v487_v46  ;;  %v619_v49 = vmul.f32 %v1360_v34, %v527_v47  ;;  %v409_v50 = vpop.f32.mrf.mxu0  ;;  %v449_v51 = vpop.f32.mrf.mxu1 }
  0x9b   :  { %832 = vst.msk [vmem:[%s1752_s4] sm:$0xf] %vm831_vm1, %v767_v44  ;;  %v572_v52 = vmul.f32 %v1360_v34, %v409_v50  ;;  %v588_v53 = vmul.f32 %v1360_v34, %v449_v51 }
  0x9c   :  { %848 = vst.msk [vmem:[%s1752_s4 + $0x40] sm:$0xf] %vm831_vm1, %v783_v45  ;;  %v671_v54 = vadd.f32 %v1362_v35, %v603_v48  ;;  %v687_v55 = vadd.f32 %v1362_v35, %v619_v49 }
  0x9d   :  { %v640_v56 = vadd.f32 %v1362_v35, %v572_v52  ;;  %v656_v57 = vadd.f32 %v1362_v35, %v588_v53 }
  0x9e   :  { %v735_v58 = vmax.f32 %v671_v54, 0.0  ;;  %v751_v59 = vmax.f32 %v687_v55, 0.0 }
  0x9f   :  { %v704_v60 = vmax.f32 %v640_v56, 0.0  ;;  %v720_v61 = vmax.f32 %v656_v57, 0.0 }
  0xa0   :  { %v799_v62 = vpack.c.bf16 %v735_v58, %v735_v58  ;;  %v815_v63 = vpack.c.bf16 %v751_v59, %v751_v59 }
  0xa1   :  { %v768_v0 = vpack.c.bf16 %v704_v60, %v704_v60  ;;  %v784_v1 = vpack.c.bf16 %v720_v61, %v720_v61  ;;  %v489_v2 = vpop.f32.mrf.mxu2  ;;  %v529_v3 = vpop.f32.mrf.mxu3 }
  0xa2   :  { %864 = vst.msk [vmem:[%s1752_s4 + $0x80] sm:$0xf] %vm831_vm1, %v799_v62  ;;  %v604_v4 = vmul.f32 %v1360_v34, %v489_v2  ;;  %v620_v5 = vmul.f32 %v1360_v34, %v529_v3  ;;  %v412_v6 = vpop.f32.mrf.mxu0  ;;  %v452_v7 = vpop.f32.mrf.mxu1 }
  0xa3   :  { %880 = vst.msk [vmem:[%s1752_s4 + $0xc0] sm:$0xf] %vm831_vm1, %v815_v63  ;;  %v573_v8 = vmul.f32 %v1360_v34, %v412_v6  ;;  %v589_v9 = vmul.f32 %v1360_v34, %v452_v7 }
  0xa4   :  { %833 = vst.msk [vmem:[%s1752_s4 + $0x4] sm:$0xf] %vm831_vm1, %v768_v0  ;;  %v672_v10 = vadd.f32 %v1362_v35, %v604_v4  ;;  %v688_v11 = vadd.f32 %v1362_v35, %v620_v5 }
  0xa5   :  { %849 = vst.msk [vmem:[%s1752_s4 + $0x44] sm:$0xf] %vm831_vm1, %v784_v1  ;;  %v641_v12 = vadd.f32 %v1362_v35, %v573_v8  ;;  %v657_v13 = vadd.f32 %v1362_v35, %v589_v9 }
  0xa6   :  { %v736_v14 = vmax.f32 %v672_v10, 0.0  ;;  %v752_v15 = vmax.f32 %v688_v11, 0.0 }
  0xa7   :  { %v705_v16 = vmax.f32 %v641_v12, 0.0  ;;  %v721_v17 = vmax.f32 %v657_v13, 0.0 }
  0xa8   :  { %v800_v18 = vpack.c.bf16 %v736_v14, %v736_v14  ;;  %v816_v19 = vpack.c.bf16 %v752_v15, %v752_v15 }
  0xa9   :  { %v769_v20 = vpack.c.bf16 %v705_v16, %v705_v16  ;;  %v785_v21 = vpack.c.bf16 %v721_v17, %v721_v17  ;;  %v492_v22 = vpop.f32.mrf.mxu2  ;;  %v532_v23 = vpop.f32.mrf.mxu3 }
  0xaa   :  { %865 = vst.msk [vmem:[%s1752_s4 + $0x84] sm:$0xf] %vm831_vm1, %v800_v18  ;;  %v605_v24 = vmul.f32 %v1360_v34, %v492_v22  ;;  %v621_v25 = vmul.f32 %v1360_v34, %v532_v23  ;;  %v414_v26 = vpop.f32.mrf.mxu0  ;;  %v454_v27 = vpop.f32.mrf.mxu1 }
  0xab   :  { %881 = vst.msk [vmem:[%s1752_s4 + $0xc4] sm:$0xf] %vm831_vm1, %v816_v19  ;;  %v574_v28 = vmul.f32 %v1360_v34, %v414_v26  ;;  %v590_v29 = vmul.f32 %v1360_v34, %v454_v27 }
  0xac   :  { %834 = vst.msk [vmem:[%s1752_s4 + $0x8] sm:$0xf] %vm831_vm1, %v769_v20  ;;  %v673_v30 = vadd.f32 %v1362_v35, %v605_v24  ;;  %v689_v31 = vadd.f32 %v1362_v35, %v621_v25 }
  0xad   :  { %850 = vst.msk [vmem:[%s1752_s4 + $0x48] sm:$0xf] %vm831_vm1, %v785_v21  ;;  %v642_v32 = vadd.f32 %v1362_v35, %v574_v28  ;;  %v658_v33 = vadd.f32 %v1362_v35, %v590_v29 }
  0xae   :  { %v737_v36 = vmax.f32 %v673_v30, 0.0  ;;  %v753_v37 = vmax.f32 %v689_v31, 0.0 }
  0xaf   :  { %v706_v38 = vmax.f32 %v642_v32, 0.0  ;;  %v722_v39 = vmax.f32 %v658_v33, 0.0 }
  0xb0   :  { %v801_v40 = vpack.c.bf16 %v737_v36, %v737_v36  ;;  %v817_v41 = vpack.c.bf16 %v753_v37, %v753_v37 }
  0xb1   :  { %v770_v42 = vpack.c.bf16 %v706_v38, %v706_v38  ;;  %v786_v43 = vpack.c.bf16 %v722_v39, %v722_v39  ;;  %v494_v44 = vpop.f32.mrf.mxu2  ;;  %v534_v45 = vpop.f32.mrf.mxu3 }
  0xb2   :  { %866 = vst.msk [vmem:[%s1752_s4 + $0x88] sm:$0xf] %vm831_vm1, %v801_v40  ;;  %v606_v46 = vmul.f32 %v1360_v34, %v494_v44  ;;  %v622_v47 = vmul.f32 %v1360_v34, %v534_v45  ;;  %v417_v48 = vpop.f32.mrf.mxu0  ;;  %v457_v49 = vpop.f32.mrf.mxu1 }
  0xb3   :  { %882 = vst.msk [vmem:[%s1752_s4 + $0xc8] sm:$0xf] %vm831_vm1, %v817_v41  ;;  %v575_v50 = vmul.f32 %v1360_v34, %v417_v48  ;;  %v591_v51 = vmul.f32 %v1360_v34, %v457_v49 }
  0xb4   :  { %835 = vst.msk [vmem:[%s1752_s4 + $0xc] sm:$0xf] %vm831_vm1, %v770_v42  ;;  %v674_v52 = vadd.f32 %v1362_v35, %v606_v46  ;;  %v690_v53 = vadd.f32 %v1362_v35, %v622_v47 }
  0xb5   :  { %851 = vst.msk [vmem:[%s1752_s4 + $0x4c] sm:$0xf] %vm831_vm1, %v786_v43  ;;  %v643_v54 = vadd.f32 %v1362_v35, %v575_v50  ;;  %v659_v55 = vadd.f32 %v1362_v35, %v591_v51 }
  0xb6   :  { %v738_v56 = vmax.f32 %v674_v52, 0.0  ;;  %v754_v57 = vmax.f32 %v690_v53, 0.0 }
  0xb7   :  { %v707_v58 = vmax.f32 %v643_v54, 0.0  ;;  %v723_v59 = vmax.f32 %v659_v55, 0.0 }
  0xb8   :  { %v802_v60 = vpack.c.bf16 %v738_v56, %v738_v56  ;;  %v818_v61 = vpack.c.bf16 %v754_v57, %v754_v57 }
  0xb9   :  { %v771_v62 = vpack.c.bf16 %v707_v58, %v707_v58  ;;  %v787_v63 = vpack.c.bf16 %v723_v59, %v723_v59  ;;  %v497_v0 = vpop.f32.mrf.mxu2  ;;  %v537_v1 = vpop.f32.mrf.mxu3 }
  0xba   :  { %867 = vst.msk [vmem:[%s1752_s4 + $0x8c] sm:$0xf] %vm831_vm1, %v802_v60  ;;  %v607_v2 = vmul.f32 %v1360_v34, %v497_v0  ;;  %v623_v3 = vmul.f32 %v1360_v34, %v537_v1  ;;  %v419_v4 = vpop.f32.mrf.mxu0  ;;  %v459_v5 = vpop.f32.mrf.mxu1 }
  0xbb   :  { %883 = vst.msk [vmem:[%s1752_s4 + $0xcc] sm:$0xf] %vm831_vm1, %v818_v61  ;;  %v576_v6 = vmul.f32 %v1360_v34, %v419_v4  ;;  %v592_v7 = vmul.f32 %v1360_v34, %v459_v5 }
  0xbc   :  { %836 = vst.msk [vmem:[%s1752_s4 + $0x10] sm:$0xf] %vm831_vm1, %v771_v62  ;;  %v675_v8 = vadd.f32 %v1362_v35, %v607_v2  ;;  %v691_v9 = vadd.f32 %v1362_v35, %v623_v3 }
  0xbd   :  { %852 = vst.msk [vmem:[%s1752_s4 + $0x50] sm:$0xf] %vm831_vm1, %v787_v63  ;;  %v644_v10 = vadd.f32 %v1362_v35, %v576_v6  ;;  %v660_v11 = vadd.f32 %v1362_v35, %v592_v7 }
  0xbe   :  { %v739_v12 = vmax.f32 %v675_v8, 0.0  ;;  %v755_v13 = vmax.f32 %v691_v9, 0.0 }
  0xbf   :  { %v708_v14 = vmax.f32 %v644_v10, 0.0  ;;  %v724_v15 = vmax.f32 %v660_v11, 0.0 }
  0xc0   :  { %v803_v16 = vpack.c.bf16 %v739_v12, %v739_v12  ;;  %v819_v17 = vpack.c.bf16 %v755_v13, %v755_v13 }
  0xc1   :  { %v772_v18 = vpack.c.bf16 %v708_v14, %v708_v14  ;;  %v788_v19 = vpack.c.bf16 %v724_v15, %v724_v15  ;;  %v499_v20 = vpop.f32.mrf.mxu2  ;;  %v539_v21 = vpop.f32.mrf.mxu3 }
  0xc2   :  { %868 = vst.msk [vmem:[%s1752_s4 + $0x90] sm:$0xf] %vm831_vm1, %v803_v16  ;;  %v608_v22 = vmul.f32 %v1360_v34, %v499_v20  ;;  %v624_v23 = vmul.f32 %v1360_v34, %v539_v21  ;;  %v422_v24 = vpop.f32.mrf.mxu0  ;;  %v462_v25 = vpop.f32.mrf.mxu1 }
  0xc3   :  { %884 = vst.msk [vmem:[%s1752_s4 + $0xd0] sm:$0xf] %vm831_vm1, %v819_v17  ;;  %v577_v26 = vmul.f32 %v1360_v34, %v422_v24  ;;  %v593_v27 = vmul.f32 %v1360_v34, %v462_v25 }
  0xc4   :  { %837 = vst.msk [vmem:[%s1752_s4 + $0x14] sm:$0xf] %vm831_vm1, %v772_v18  ;;  %v676_v28 = vadd.f32 %v1362_v35, %v608_v22  ;;  %v692_v29 = vadd.f32 %v1362_v35, %v624_v23 }
  0xc5   :  { %853 = vst.msk [vmem:[%s1752_s4 + $0x54] sm:$0xf] %vm831_vm1, %v788_v19  ;;  %v645_v30 = vadd.f32 %v1362_v35, %v577_v26  ;;  %v661_v31 = vadd.f32 %v1362_v35, %v593_v27 }
  0xc6   :  { %v740_v32 = vmax.f32 %v676_v28, 0.0  ;;  %v756_v33 = vmax.f32 %v692_v29, 0.0 }
  0xc7   :  { %v709_v36 = vmax.f32 %v645_v30, 0.0  ;;  %v725_v37 = vmax.f32 %v661_v31, 0.0 }
  0xc8   :  { %v804_v38 = vpack.c.bf16 %v740_v32, %v740_v32  ;;  %v820_v39 = vpack.c.bf16 %v756_v33, %v756_v33 }
  0xc9   :  { %v773_v40 = vpack.c.bf16 %v709_v36, %v709_v36  ;;  %v789_v41 = vpack.c.bf16 %v725_v37, %v725_v37  ;;  %v502_v42 = vpop.f32.mrf.mxu2  ;;  %v542_v43 = vpop.f32.mrf.mxu3 }
  0xca   :  { %869 = vst.msk [vmem:[%s1752_s4 + $0x94] sm:$0xf] %vm831_vm1, %v804_v38  ;;  %v609_v44 = vmul.f32 %v1360_v34, %v502_v42  ;;  %v625_v45 = vmul.f32 %v1360_v34, %v542_v43  ;;  %v424_v46 = vpop.f32.mrf.mxu0  ;;  %v464_v47 = vpop.f32.mrf.mxu1 }
  0xcb   :  { %885 = vst.msk [vmem:[%s1752_s4 + $0xd4] sm:$0xf] %vm831_vm1, %v820_v39  ;;  %v578_v48 = vmul.f32 %v1360_v34, %v424_v46  ;;  %v594_v49 = vmul.f32 %v1360_v34, %v464_v47 }
  0xcc   :  { %838 = vst.msk [vmem:[%s1752_s4 + $0x18] sm:$0xf] %vm831_vm1, %v773_v40  ;;  %v677_v50 = vadd.f32 %v1362_v35, %v609_v44  ;;  %v693_v51 = vadd.f32 %v1362_v35, %v625_v45 }
  0xcd   :  { %854 = vst.msk [vmem:[%s1752_s4 + $0x58] sm:$0xf] %vm831_vm1, %v789_v41  ;;  %v646_v52 = vadd.f32 %v1362_v35, %v578_v48  ;;  %v662_v53 = vadd.f32 %v1362_v35, %v594_v49 }
  0xce   :  { %v741_v54 = vmax.f32 %v677_v50, 0.0  ;;  %v757_v55 = vmax.f32 %v693_v51, 0.0 }
  0xcf   :  { %v710_v56 = vmax.f32 %v646_v52, 0.0  ;;  %v726_v57 = vmax.f32 %v662_v53, 0.0 }
  0xd0   :  { %v805_v58 = vpack.c.bf16 %v741_v54, %v741_v54  ;;  %v821_v59 = vpack.c.bf16 %v757_v55, %v757_v55 }
  0xd1   :  { %v774_v60 = vpack.c.bf16 %v710_v56, %v710_v56  ;;  %v790_v61 = vpack.c.bf16 %v726_v57, %v726_v57  ;;  %v504_v62 = vpop.f32.mrf.mxu2  ;;  %v544_v63 = vpop.f32.mrf.mxu3 }
  0xd2   :  { %870 = vst.msk [vmem:[%s1752_s4 + $0x98] sm:$0xf] %vm831_vm1, %v805_v58  ;;  %v610_v0 = vmul.f32 %v1360_v34, %v504_v62  ;;  %v626_v1 = vmul.f32 %v1360_v34, %v544_v63  ;;  %v427_v2 = vpop.f32.mrf.mxu0  ;;  %v467_v3 = vpop.f32.mrf.mxu1 }
  0xd3   :  { %886 = vst.msk [vmem:[%s1752_s4 + $0xd8] sm:$0xf] %vm831_vm1, %v821_v59  ;;  %v579_v4 = vmul.f32 %v1360_v34, %v427_v2  ;;  %v595_v5 = vmul.f32 %v1360_v34, %v467_v3 }
  0xd4   :  { %839 = vst.msk [vmem:[%s1752_s4 + $0x1c] sm:$0xf] %vm831_vm1, %v774_v60  ;;  %v678_v6 = vadd.f32 %v1362_v35, %v610_v0  ;;  %v694_v7 = vadd.f32 %v1362_v35, %v626_v1 }
  0xd5   :  { %855 = vst.msk [vmem:[%s1752_s4 + $0x5c] sm:$0xf] %vm831_vm1, %v790_v61  ;;  %v647_v8 = vadd.f32 %v1362_v35, %v579_v4  ;;  %v663_v9 = vadd.f32 %v1362_v35, %v595_v5 }
  0xd6   :  { %v742_v10 = vmax.f32 %v678_v6, 0.0  ;;  %v758_v11 = vmax.f32 %v694_v7, 0.0 }
  0xd7   :  { %v711_v12 = vmax.f32 %v647_v8, 0.0  ;;  %v727_v13 = vmax.f32 %v663_v9, 0.0 }
  0xd8   :  { %v806_v14 = vpack.c.bf16 %v742_v10, %v742_v10  ;;  %v822_v15 = vpack.c.bf16 %v758_v11, %v758_v11 }
  0xd9   :  { %v775_v16 = vpack.c.bf16 %v711_v12, %v711_v12  ;;  %v791_v17 = vpack.c.bf16 %v727_v13, %v727_v13  ;;  %v507_v18 = vpop.f32.mrf.mxu2  ;;  %v547_v19 = vpop.f32.mrf.mxu3 }
  0xda   :  { %871 = vst.msk [vmem:[%s1752_s4 + $0x9c] sm:$0xf] %vm831_vm1, %v806_v14  ;;  %v611_v20 = vmul.f32 %v1360_v34, %v507_v18  ;;  %v627_v21 = vmul.f32 %v1360_v34, %v547_v19  ;;  %v429_v22 = vpop.f32.mrf.mxu0  ;;  %v469_v23 = vpop.f32.mrf.mxu1 }
  0xdb   :  { %887 = vst.msk [vmem:[%s1752_s4 + $0xdc] sm:$0xf] %vm831_vm1, %v822_v15  ;;  %v580_v24 = vmul.f32 %v1360_v34, %v429_v22  ;;  %v596_v25 = vmul.f32 %v1360_v34, %v469_v23 }
  0xdc   :  { %840 = vst.msk [vmem:[%s1752_s4 + $0x20] sm:$0xf] %vm831_vm1, %v775_v16  ;;  %v679_v26 = vadd.f32 %v1362_v35, %v611_v20  ;;  %v695_v27 = vadd.f32 %v1362_v35, %v627_v21 }
  0xdd   :  { %856 = vst.msk [vmem:[%s1752_s4 + $0x60] sm:$0xf] %vm831_vm1, %v791_v17  ;;  %v648_v28 = vadd.f32 %v1362_v35, %v580_v24  ;;  %v664_v29 = vadd.f32 %v1362_v35, %v596_v25 }
  0xde   :  { %v743_v30 = vmax.f32 %v679_v26, 0.0  ;;  %v759_v31 = vmax.f32 %v695_v27, 0.0 }
  0xdf   :  { %v712_v32 = vmax.f32 %v648_v28, 0.0  ;;  %v728_v33 = vmax.f32 %v664_v29, 0.0 }
  0xe0   :  { %v807_v36 = vpack.c.bf16 %v743_v30, %v743_v30  ;;  %v823_v37 = vpack.c.bf16 %v759_v31, %v759_v31 }
  0xe1   :  { %v776_v38 = vpack.c.bf16 %v712_v32, %v712_v32  ;;  %v792_v39 = vpack.c.bf16 %v728_v33, %v728_v33  ;;  %v509_v40 = vpop.f32.mrf.mxu2  ;;  %v549_v41 = vpop.f32.mrf.mxu3 }
  0xe2   :  { %872 = vst.msk [vmem:[%s1752_s4 + $0xa0] sm:$0xf] %vm831_vm1, %v807_v36  ;;  %v612_v42 = vmul.f32 %v1360_v34, %v509_v40  ;;  %v628_v43 = vmul.f32 %v1360_v34, %v549_v41  ;;  %v432_v44 = vpop.f32.mrf.mxu0  ;;  %v472_v45 = vpop.f32.mrf.mxu1 }
  0xe3   :  { %888 = vst.msk [vmem:[%s1752_s4 + $0xe0] sm:$0xf] %vm831_vm1, %v823_v37  ;;  %v581_v46 = vmul.f32 %v1360_v34, %v432_v44  ;;  %v597_v47 = vmul.f32 %v1360_v34, %v472_v45 }
  0xe4   :  { %841 = vst.msk [vmem:[%s1752_s4 + $0x24] sm:$0xf] %vm831_vm1, %v776_v38  ;;  %v680_v48 = vadd.f32 %v1362_v35, %v612_v42  ;;  %v696_v49 = vadd.f32 %v1362_v35, %v628_v43 }
  0xe5   :  { %857 = vst.msk [vmem:[%s1752_s4 + $0x64] sm:$0xf] %vm831_vm1, %v792_v39  ;;  %v649_v50 = vadd.f32 %v1362_v35, %v581_v46  ;;  %v665_v51 = vadd.f32 %v1362_v35, %v597_v47 }
  0xe6   :  { %v744_v52 = vmax.f32 %v680_v48, 0.0  ;;  %v760_v53 = vmax.f32 %v696_v49, 0.0 }
  0xe7   :  { %v713_v54 = vmax.f32 %v649_v50, 0.0  ;;  %v729_v55 = vmax.f32 %v665_v51, 0.0 }
  0xe8   :  { %v808_v56 = vpack.c.bf16 %v744_v52, %v744_v52  ;;  %v824_v57 = vpack.c.bf16 %v760_v53, %v760_v53 }
  0xe9   :  { %v777_v58 = vpack.c.bf16 %v713_v54, %v713_v54  ;;  %v793_v59 = vpack.c.bf16 %v729_v55, %v729_v55  ;;  %v512_v60 = vpop.f32.mrf.mxu2  ;;  %v552_v61 = vpop.f32.mrf.mxu3 }
  0xea   :  { %873 = vst.msk [vmem:[%s1752_s4 + $0xa4] sm:$0xf] %vm831_vm1, %v808_v56  ;;  %v613_v62 = vmul.f32 %v1360_v34, %v512_v60  ;;  %v629_v63 = vmul.f32 %v1360_v34, %v552_v61  ;;  %v434_v0 = vpop.f32.mrf.mxu0  ;;  %v474_v1 = vpop.f32.mrf.mxu1 }
  0xeb   :  { %889 = vst.msk [vmem:[%s1752_s4 + $0xe4] sm:$0xf] %vm831_vm1, %v824_v57  ;;  %v582_v2 = vmul.f32 %v1360_v34, %v434_v0  ;;  %v598_v3 = vmul.f32 %v1360_v34, %v474_v1 }
  0xec   :  { %842 = vst.msk [vmem:[%s1752_s4 + $0x28] sm:$0xf] %vm831_vm1, %v777_v58  ;;  %v681_v4 = vadd.f32 %v1362_v35, %v613_v62  ;;  %v697_v5 = vadd.f32 %v1362_v35, %v629_v63 }
  0xed   :  { %858 = vst.msk [vmem:[%s1752_s4 + $0x68] sm:$0xf] %vm831_vm1, %v793_v59  ;;  %v650_v6 = vadd.f32 %v1362_v35, %v582_v2  ;;  %v666_v7 = vadd.f32 %v1362_v35, %v598_v3 }
  0xee   :  { %v745_v8 = vmax.f32 %v681_v4, 0.0  ;;  %v761_v9 = vmax.f32 %v697_v5, 0.0 }
  0xef   :  { %v714_v10 = vmax.f32 %v650_v6, 0.0  ;;  %v730_v11 = vmax.f32 %v666_v7, 0.0 }
  0xf0   :  { %v809_v12 = vpack.c.bf16 %v745_v8, %v745_v8  ;;  %v825_v13 = vpack.c.bf16 %v761_v9, %v761_v9 }
  0xf1   :  { %v778_v14 = vpack.c.bf16 %v714_v10, %v714_v10  ;;  %v794_v15 = vpack.c.bf16 %v730_v11, %v730_v11  ;;  %v514_v16 = vpop.f32.mrf.mxu2  ;;  %v554_v17 = vpop.f32.mrf.mxu3 }
  0xf2   :  { %874 = vst.msk [vmem:[%s1752_s4 + $0xa8] sm:$0xf] %vm831_vm1, %v809_v12  ;;  %v614_v18 = vmul.f32 %v1360_v34, %v514_v16  ;;  %v630_v19 = vmul.f32 %v1360_v34, %v554_v17  ;;  %v437_v20 = vpop.f32.mrf.mxu0  ;;  %v477_v21 = vpop.f32.mrf.mxu1 }
  0xf3   :  { %890 = vst.msk [vmem:[%s1752_s4 + $0xe8] sm:$0xf] %vm831_vm1, %v825_v13  ;;  %v583_v22 = vmul.f32 %v1360_v34, %v437_v20  ;;  %v599_v23 = vmul.f32 %v1360_v34, %v477_v21 }
  0xf4   :  { %843 = vst.msk [vmem:[%s1752_s4 + $0x2c] sm:$0xf] %vm831_vm1, %v778_v14  ;;  %v682_v24 = vadd.f32 %v1362_v35, %v614_v18  ;;  %v698_v25 = vadd.f32 %v1362_v35, %v630_v19 }
  0xf5   :  { %859 = vst.msk [vmem:[%s1752_s4 + $0x6c] sm:$0xf] %vm831_vm1, %v794_v15  ;;  %v651_v26 = vadd.f32 %v1362_v35, %v583_v22  ;;  %v667_v27 = vadd.f32 %v1362_v35, %v599_v23 }
  0xf6   :  { %v746_v28 = vmax.f32 %v682_v24, 0.0  ;;  %v762_v29 = vmax.f32 %v698_v25, 0.0 }
  0xf7   :  { %v715_v30 = vmax.f32 %v651_v26, 0.0  ;;  %v731_v31 = vmax.f32 %v667_v27, 0.0 }
  0xf8   :  { %v810_v32 = vpack.c.bf16 %v746_v28, %v746_v28  ;;  %v826_v33 = vpack.c.bf16 %v762_v29, %v762_v29 }
  0xf9   :  { %v779_v36 = vpack.c.bf16 %v715_v30, %v715_v30  ;;  %v795_v37 = vpack.c.bf16 %v731_v31, %v731_v31  ;;  %v517_v38 = vpop.f32.mrf.mxu2  ;;  %v557_v39 = vpop.f32.mrf.mxu3 }
  0xfa   :  { %875 = vst.msk [vmem:[%s1752_s4 + $0xac] sm:$0xf] %vm831_vm1, %v810_v32  ;;  %v615_v40 = vmul.f32 %v1360_v34, %v517_v38  ;;  %v631_v41 = vmul.f32 %v1360_v34, %v557_v39  ;;  %v439_v42 = vpop.f32.mrf.mxu0  ;;  %v479_v43 = vpop.f32.mrf.mxu1 }
  0xfb   :  { %891 = vst.msk [vmem:[%s1752_s4 + $0xec] sm:$0xf] %vm831_vm1, %v826_v33  ;;  %v584_v44 = vmul.f32 %v1360_v34, %v439_v42  ;;  %v600_v45 = vmul.f32 %v1360_v34, %v479_v43 }
  0xfc   :  { %844 = vst.msk [vmem:[%s1752_s4 + $0x30] sm:$0xf] %vm831_vm1, %v779_v36  ;;  %v683_v46 = vadd.f32 %v1362_v35, %v615_v40  ;;  %v699_v47 = vadd.f32 %v1362_v35, %v631_v41 }
  0xfd   :  { %860 = vst.msk [vmem:[%s1752_s4 + $0x70] sm:$0xf] %vm831_vm1, %v795_v37  ;;  %v652_v48 = vadd.f32 %v1362_v35, %v584_v44  ;;  %v668_v49 = vadd.f32 %v1362_v35, %v600_v45 }
  0xfe   :  { %v747_v50 = vmax.f32 %v683_v46, 0.0  ;;  %v763_v51 = vmax.f32 %v699_v47, 0.0 }
  0xff   :  { %v716_v52 = vmax.f32 %v652_v48, 0.0  ;;  %v732_v53 = vmax.f32 %v668_v49, 0.0 }
 0x100   :  { %v811_v54 = vpack.c.bf16 %v747_v50, %v747_v50  ;;  %v827_v55 = vpack.c.bf16 %v763_v51, %v763_v51 }
 0x101   :  { %v780_v56 = vpack.c.bf16 %v716_v52, %v716_v52  ;;  %v796_v57 = vpack.c.bf16 %v732_v53, %v732_v53  ;;  %v519_v58 = vpop.f32.mrf.mxu2  ;;  %v559_v59 = vpop.f32.mrf.mxu3 }
 0x102   :  { %876 = vst.msk [vmem:[%s1752_s4 + $0xb0] sm:$0xf] %vm831_vm1, %v811_v54  ;;  %v616_v60 = vmul.f32 %v1360_v34, %v519_v58  ;;  %v632_v61 = vmul.f32 %v1360_v34, %v559_v59  ;;  %v442_v62 = vpop.f32.mrf.mxu0  ;;  %v482_v63 = vpop.f32.mrf.mxu1 }
 0x103   :  { %892 = vst.msk [vmem:[%s1752_s4 + $0xf0] sm:$0xf] %vm831_vm1, %v827_v55  ;;  %v585_v0 = vmul.f32 %v1360_v34, %v442_v62  ;;  %v601_v1 = vmul.f32 %v1360_v34, %v482_v63 }
 0x104   :  { %845 = vst.msk [vmem:[%s1752_s4 + $0x34] sm:$0xf] %vm831_vm1, %v780_v56  ;;  %v684_v2 = vadd.f32 %v1362_v35, %v616_v60  ;;  %v700_v3 = vadd.f32 %v1362_v35, %v632_v61 }
 0x105   :  { %861 = vst.msk [vmem:[%s1752_s4 + $0x74] sm:$0xf] %vm831_vm1, %v796_v57  ;;  %v653_v4 = vadd.f32 %v1362_v35, %v585_v0  ;;  %v669_v5 = vadd.f32 %v1362_v35, %v601_v1 }
 0x106   :  { %v748_v6 = vmax.f32 %v684_v2, 0.0  ;;  %v764_v7 = vmax.f32 %v700_v3, 0.0 }
 0x107   :  { %v717_v8 = vmax.f32 %v653_v4, 0.0  ;;  %v733_v9 = vmax.f32 %v669_v5, 0.0 }
 0x108   :  { %v812_v10 = vpack.c.bf16 %v748_v6, %v748_v6  ;;  %v828_v11 = vpack.c.bf16 %v764_v7, %v764_v7 }
 0x109   :  { %v781_v12 = vpack.c.bf16 %v717_v8, %v717_v8  ;;  %v797_v13 = vpack.c.bf16 %v733_v9, %v733_v9  ;;  %v522_v14 = vpop.f32.mrf.mxu2  ;;  %v562_v15 = vpop.f32.mrf.mxu3 }
 0x10a   :  { %877 = vst.msk [vmem:[%s1752_s4 + $0xb4] sm:$0xf] %vm831_vm1, %v812_v10  ;;  %v617_v16 = vmul.f32 %v1360_v34, %v522_v14  ;;  %v633_v17 = vmul.f32 %v1360_v34, %v562_v15  ;;  %v444_v18 = vpop.f32.mrf.mxu0  ;;  %v484_v19 = vpop.f32.mrf.mxu1 }
 0x10b   :  { %893 = vst.msk [vmem:[%s1752_s4 + $0xf4] sm:$0xf] %vm831_vm1, %v828_v11  ;;  %v586_v20 = vmul.f32 %v1360_v34, %v444_v18  ;;  %v602_v21 = vmul.f32 %v1360_v34, %v484_v19 }
 0x10c   :  { %846 = vst.msk [vmem:[%s1752_s4 + $0x38] sm:$0xf] %vm831_vm1, %v781_v12  ;;  %v685_v22 = vadd.f32 %v1362_v35, %v617_v16  ;;  %v701_v23 = vadd.f32 %v1362_v35, %v633_v17 }
 0x10d   :  { %862 = vst.msk [vmem:[%s1752_s4 + $0x78] sm:$0xf] %vm831_vm1, %v797_v13  ;;  %v654_v24 = vadd.f32 %v1362_v35, %v586_v20  ;;  %v670_v25 = vadd.f32 %v1362_v35, %v602_v21 }
 0x10e   :  { %v749_v26 = vmax.f32 %v685_v22, 0.0  ;;  %v765_v27 = vmax.f32 %v701_v23, 0.0 }
 0x10f   :  { %v718_v28 = vmax.f32 %v654_v24, 0.0  ;;  %v734_v29 = vmax.f32 %v670_v25, 0.0 }
 0x110   :  { %v813_v30 = vpack.c.bf16 %v749_v26, %v749_v26  ;;  %v829_v31 = vpack.c.bf16 %v765_v27, %v765_v27 }
 0x111   :  { %v782_v32 = vpack.c.bf16 %v718_v28, %v718_v28  ;;  %v798_v33 = vpack.c.bf16 %v734_v29, %v734_v29  ;;  %v524_v36 = vpop.f32.mrf.mxu2  ;;  %v564_v37 = vpop.f32.mrf.mxu3 }
 0x112   :  { %878 = vst.msk [vmem:[%s1752_s4 + $0xb8] sm:$0xf] %vm831_vm1, %v813_v30  ;;  %v618_v38 = vmul.f32 %v1360_v34, %v524_v36  ;;  %v634_v39 = vmul.f32 %v1360_v34, %v564_v37 }
 0x113   :  { %894 = vst.msk [vmem:[%s1752_s4 + $0xf8] sm:$0xf] %vm831_vm1, %v829_v31 }
 0x114   :  { %847 = vst.msk [vmem:[%s1752_s4 + $0x3c] sm:$0xf] %vm831_vm1, %v782_v32  ;;  %v686_v40 = vadd.f32 %v1362_v35, %v618_v38  ;;  %v702_v41 = vadd.f32 %v1362_v35, %v634_v39 }
 0x115   :  { %863 = vst.msk [vmem:[%s1752_s4 + $0x7c] sm:$0xf] %vm831_vm1, %v798_v33 }
 0x116   :  { %v750_v34 = vmax.f32 %v686_v40, 0.0  ;;  %v766_v42 = vmax.f32 %v702_v41, 0.0 }
 0x118   :  { %v814_v43 = vpack.c.bf16 %v750_v34, %v750_v34  ;;  %v830_v44 = vpack.c.bf16 %v766_v42, %v766_v42 }
 0x11a   :  { %879 = vst.msk [vmem:[%s1752_s4 + $0xbc] sm:$0xf] %vm831_vm1, %v814_v43 }
 0x11b   :  { %895 = vst.msk [vmem:[%s1752_s4 + $0xfc] sm:$0xf] %vm831_vm1, %v830_v44 }
 0x11c   :  { %900 = vsyncpa [#allocation3], 1 }
 0x11d   :  { %901 = vsyncpa [#allocation5], 1 }

// kernel: selecsls_forward.5
= control target key start
LH: loop header
LB: loop body
LE: loop exit
PB: predicated region body
PF: predicated region fallthrough
CT: control target
= control target key end

     0   :  { %9 = vsyncpa [#allocation3], 0  ;;  %s1886_s0 = inlined_call_operand.vmem [shape: bf16[128,576], index: 0, kind: input, shape index: {}]   ;;  %s1887_s1 = inlined_call_operand.hbm [shape: bf16[576,128], index: 1, kind: input, shape index: {}]   ;;  %s1888_s2 = inlined_call_operand.hbm [shape: f32[1,128], index: 2, kind: input, shape index: {}]   ;;  %s1889_s3 = inlined_call_operand.hbm [shape: f32[1,128], index: 3, kind: input, shape index: {}]   ;;  %s1890_s4 = inlined_call_operand.vmem [shape: bf16[128,128], index: 4, kind: output, shape index: {}]  }
   0x1   :  { %10 = vsyncpa [#allocation5], 0  ;;  %s31_s17 = sshll.u32 %s1888_s2, 4  ;;  %s1503_s18 = smov [#allocation4]   ;;  %s32_s17 = int_to_ptr.hbm [resolvable:$true] %s31_s17 }
   0x2   :  { %s33_s19 = sshll.u32 %s1503_s18, 4  ;;  %s17_s22 = sshll.u32 %s1887_s1, 4  ;;  %s34_s19 = int_to_ptr.vmem [resolvable:$true] %s33_s19  ;;  %s18_s22 = int_to_ptr.hbm [resolvable:$true] %s17_s22 }
   0x3   :  { %36 = dma.hbm_to_vmem [thread:$0]  %s32_s17, 16, %s34_s19, [#allocation5]  }
   0x4   :  { %s1504_s23 = smov [#allocation2]   ;;  %s1505_s25 = smov 64  }
   0x5   :  { %s19_s24 = sshll.u32 %s1504_s23, 4  ;;  %s1506_s26 = smov 4   ;;  %s20_s24 = int_to_ptr.vmem [resolvable:$true] %s19_s24 }
   0x6   :  { %25 = dma.hbm_to_vmem [thread:$0]  %s18_s22, 4608, %s20_s24, [#allocation3], %s1505_s25, %s1505_s25, %s1506_s26  }
   0x7   :  { %s42_s2 = sshll.u32 %s1889_s3, 4  ;;  %s1507_s29 = smov [#allocation6]   ;;  %s43_s2 = int_to_ptr.hbm [resolvable:$true] %s42_s2 }
   0x8   :  { %s44_s30 = sshll.u32 %s1507_s29, 4  ;;  %s45_s30 = int_to_ptr.vmem [resolvable:$true] %s44_s30 }
   0x9   :  { %47 = dma.hbm_to_vmem [thread:$0]  %s43_s2, 16, %s45_s30, [#allocation5]  }
   0xa   :  { %1499 = dma.done.wait [#allocation3], 4608  }
   0xb   :  { %1500 = vsyncadd [#allocation3], 4294962688 }
   0xc   :  { %1501 = dma.done.wait [#allocation5], 32  }
   0xd   :  { %1502 = vsyncadd [#allocation5], 4294967264  ;;  %v1320_v0 = vld [vmem:[#allocation2 + $0x38] sm:$0xff]  ;;  %v1319_v1 = vld [vmem:[#allocation2 + $0x30] sm:$0xff]  ;;  %vm597_vm0 = vcmask 523264  }
   0xe   :  { %1396 = vmatpush.bf16.msra.mxu1 %v1320_v0  ;;  %1397 = vmatpush.bf16.msra.mxu2 %v1320_v0  ;;  %v1318_v2 = vld [vmem:[#allocation2 + $0x28] sm:$0xff]  ;;  %v1317_v3 = vld [vmem:[#allocation2 + $0x20] sm:$0xff]  ;;  %v1316_v4 = vld [vmem:[#allocation2 + $0x18] sm:$0xff] }
   0xf   :  { %1398 = vmatpush.bf16.msra.mxu3 %v1320_v0  ;;  %622 = vmatpush.bf16.msra.mxu0 %v1320_v0  ;;  %v1315_v5 = vld [vmem:[#allocation2 + $0x10] sm:$0xff]  ;;  %v1314_v6 = vld [vmem:[#allocation2 + $0x8] sm:$0xff]  ;;  %v1313_v7 = vld [vmem:[#allocation2] sm:$0xff] }
  0x10   :  { %v1003_v8 = vld [vmem:[%s1886_s0 + $0x50] sm:$0xf]  ;;  %v1285_v9 = vld [vmem:[%s1886_s0 + $0x60] sm:$0xf0]  ;;  %v1043_v10 = vld [vmem:[%s1886_s0 + $0xa0] sm:$0xf] }
  0x11   :  { %v1295_v11 = vld [vmem:[%s1886_s0 + $0xb0] sm:$0xf0]  ;;  %v1083_v12 = vld [vmem:[%s1886_s0 + $0xf0] sm:$0xf]  ;;  %v1305_v13 = vld [vmem:[%s1886_s0 + $0x100] sm:$0xf0]  ;;  %v1004_v18 = vor.u32 %v1285_v9, %v1003_v8 }
  0x12   :  { %1399 = vmatpush.bf16.msra.mxu1 %v1319_v1  ;;  %1400 = vmatpush.bf16.msra.mxu2 %v1319_v1  ;;  %v963_v14 = vld [vmem:[%s1886_s0] sm:$0xf]  ;;  %v1275_v15 = vld [vmem:[%s1886_s0 + $0x10] sm:$0xf0]  ;;  %v1336_v16 = vld [vmem:[#allocation2 + $0xb8] sm:$0xff]  ;;  %v1044_v19 = vor.u32 %v1295_v11, %v1043_v10  ;;  %v1084_v20 = vor.u32 %v1305_v13, %v1083_v12 }
  0x13   :  { %1401 = vmatpush.bf16.msra.mxu3 %v1319_v1  ;;  %623 = vmatpush.bf16.msra.mxu0 %v1319_v1  ;;  %v1328_v17 = vld [vmem:[#allocation2 + $0x78] sm:$0xff]  ;;  %v964_v21 = vor.u32 %v1275_v15, %v963_v14  ;;  %v1335_v24 = vld [vmem:[#allocation2 + $0xb0] sm:$0xff]  ;;  %v1334_v28 = vld [vmem:[#allocation2 + $0xa8] sm:$0xff] }
  0x14   :  { %v1344_v22 = vld [vmem:[#allocation2 + $0xf8] sm:$0xff]  ;;  %v1327_v25 = vld [vmem:[#allocation2 + $0x70] sm:$0xff]  ;;  %v1326_v29 = vld [vmem:[#allocation2 + $0x68] sm:$0xff] }
  0x15   :  { %v1348_v23 = vld [vmem:[#allocation2 + $0x118] sm:$0xff]  ;;  %v1343_v26 = vld [vmem:[#allocation2 + $0xf0] sm:$0xff]  ;;  %v1342_v30 = vld [vmem:[#allocation2 + $0xe8] sm:$0xff] }
  0x16   :  { %1402 = vmatpush.bf16.msra.mxu1 %v1318_v2  ;;  %1403 = vmatpush.bf16.msra.mxu2 %v1318_v2  ;;  %v1347_v27 = vld [vmem:[#allocation2 + $0x110] sm:$0xff]  ;;  %v1346_v31 = vld [vmem:[#allocation2 + $0x108] sm:$0xff]  ;;  %v1333_v32 = vld [vmem:[#allocation2 + $0xa0] sm:$0xff] }
  0x17   :  { %1404 = vmatpush.bf16.msra.mxu3 %v1318_v2  ;;  %624 = vmatpush.bf16.msra.mxu0 %v1318_v2  ;;  %v1325_v33 = vld [vmem:[#allocation2 + $0x60] sm:$0xff]  ;;  %v1023_v35 = vld [vmem:[%s1886_s0 + $0x78] sm:$0xf]  ;;  %v1290_v36 = vld [vmem:[%s1886_s0 + $0x88] sm:$0xf0] }
  0x18   :  { %v1341_v34 = vld [vmem:[#allocation2 + $0xe0] sm:$0xff]  ;;  %v1063_v37 = vld [vmem:[%s1886_s0 + $0xc8] sm:$0xf]  ;;  %v1300_v38 = vld [vmem:[%s1886_s0 + $0xd8] sm:$0xf0]  ;;  %v1024_v46 = vor.u32 %v1290_v36, %v1023_v35 }
  0x19   :  { %v1103_v39 = vld [vmem:[%s1886_s0 + $0x118] sm:$0xf]  ;;  %v1310_v40 = vld [vmem:[%s1886_s0 + $0x128] sm:$0xf0]  ;;  %v983_v41 = vld [vmem:[%s1886_s0 + $0x28] sm:$0xf]  ;;  %v1064_v47 = vor.u32 %v1300_v38, %v1063_v37 }
  0x1a   :  { %1405 = vmatpush.bf16.msra.mxu1 %v1317_v3  ;;  %1406 = vmatpush.bf16.msra.mxu2 %v1317_v3  ;;  %v1280_v42 = vld [vmem:[%s1886_s0 + $0x38] sm:$0xf0]  ;;  %v1345_v43 = vld [vmem:[#allocation2 + $0x100] sm:$0xff]  ;;  %v1104_v48 = vor.u32 %v1310_v40, %v1103_v39  ;;  %v1331_v51 = vld [vmem:[#allocation2 + $0x90] sm:$0xff] }
  0x1b   :  { %1407 = vmatpush.bf16.msra.mxu3 %v1317_v3  ;;  %625 = vmatpush.bf16.msra.mxu0 %v1317_v3  ;;  %v1332_v44 = vld [vmem:[#allocation2 + $0x98] sm:$0xff]  ;;  %v984_v49 = vor.u32 %v1280_v42, %v983_v41  ;;  %v1323_v52 = vld [vmem:[#allocation2 + $0x50] sm:$0xff]  ;;  %v1330_v54 = vld [vmem:[#allocation2 + $0x88] sm:$0xff] }
  0x1c   :  { %v1324_v45 = vld [vmem:[#allocation2 + $0x58] sm:$0xff]  ;;  %v1339_v53 = vld [vmem:[#allocation2 + $0xd0] sm:$0xff]  ;;  %v1322_v55 = vld [vmem:[#allocation2 + $0x48] sm:$0xff] }
  0x1d   :  { %v1340_v50 = vld [vmem:[#allocation2 + $0xd8] sm:$0xff]  ;;  %v1338_v56 = vld [vmem:[#allocation2 + $0xc8] sm:$0xff]  ;;  %v1329_v57 = vld [vmem:[#allocation2 + $0x80] sm:$0xff] }
  0x1e   :  { %1408 = vmatpush.bf16.msra.mxu1 %v1316_v4  ;;  %1409 = vmatpush.bf16.msra.mxu2 %v1316_v4  ;;  %v1321_v58 = vld [vmem:[#allocation2 + $0x40] sm:$0xff]  ;;  %v965_v61 = vld [vmem:[%s1886_s0 + $0x14] sm:$0xf0]  ;;  %v971_v62 = vld [vmem:[%s1886_s0 + $0x8] sm:$0xf] }
  0x1f   :  { %1410 = vmatpush.bf16.msra.mxu3 %v1316_v4  ;;  %626 = vmatpush.bf16.msra.mxu0 %v1316_v4  ;;  %v1337_v59 = vld [vmem:[#allocation2 + $0xc0] sm:$0xff]  ;;  %v1276_v63 = vld [vmem:[%s1886_s0 + $0x18] sm:$0xf0]  ;;  %v1274_v0 = vld [vmem:[%s1886_s0 + $0xc] sm:$0xf] }
  0x20   :  { %v1273_v60 = vld [vmem:[%s1886_s0 + $0x4] sm:$0xf]  ;;  %v973_v1 = vld [vmem:[%s1886_s0 + $0x1c] sm:$0xf0]  ;;  %v979_v2 = vld [vmem:[%s1886_s0 + $0x10] sm:$0xf] }
  0x21   :  { %v1277_v3 = vld [vmem:[%s1886_s0 + $0x20] sm:$0xf0]  ;;  %v968_v4 = vor.u32 %v1273_v60, %v965_v61  ;;  %v1278_v8 = vld [vmem:[%s1886_s0 + $0x2c] sm:$0xf]  ;;  %v985_v9 = vld [vmem:[%s1886_s0 + $0x3c] sm:$0xf0] }
  0x22   :  { %1411 = vmatpush.bf16.msra.mxu1 %v1315_v5  ;;  %1412 = vmatpush.bf16.msra.mxu2 %v1315_v5  ;;  %v991_v10 = vld [vmem:[%s1886_s0 + $0x30] sm:$0xf]  ;;  %v1281_v11 = vld [vmem:[%s1886_s0 + $0x40] sm:$0xf0]  ;;  %v1279_v12 = vld [vmem:[%s1886_s0 + $0x34] sm:$0xf] }
  0x23   :  { %1413 = vmatpush.bf16.msra.mxu3 %v1315_v5  ;;  %627 = vmatpush.bf16.msra.mxu0 %v1315_v5  ;;  %v972_v5 = vor.u32 %v1276_v63, %v971_v62  ;;  %v993_v13 = vld [vmem:[%s1886_s0 + $0x44] sm:$0xf0]  ;;  %v999_v14 = vld [vmem:[%s1886_s0 + $0x38] sm:$0xf]  ;;  %v1282_v15 = vld [vmem:[%s1886_s0 + $0x48] sm:$0xf0] }
  0x24   :  { %v1291_v35 = vld [vmem:[%s1886_s0 + $0x90] sm:$0xf0]  ;;  %v1289_v36 = vld [vmem:[%s1886_s0 + $0x84] sm:$0xf]  ;;  %v1033_v37 = vld [vmem:[%s1886_s0 + $0x94] sm:$0xf0] }
  0x25   :  { %v1039_v38 = vld [vmem:[%s1886_s0 + $0x88] sm:$0xf]  ;;  %v1292_v39 = vld [vmem:[%s1886_s0 + $0x98] sm:$0xf0]  ;;  %v1036_v42 = vor.u32 %v1289_v36, %v1033_v37  ;;  %v1299_v60 = vld [vmem:[%s1886_s0 + $0xd4] sm:$0xf] }
  0x26   :  { %1414 = vmatpush.bf16.msra.mxu1 %v1314_v6  ;;  %1415 = vmatpush.bf16.msra.mxu2 %v1314_v6  ;;  %v1073_v61 = vld [vmem:[%s1886_s0 + $0xe4] sm:$0xf0]  ;;  %v1079_v62 = vld [vmem:[%s1886_s0 + $0xd8] sm:$0xf]  ;;  %v1302_v63 = vld [vmem:[%s1886_s0 + $0xe8] sm:$0xf0] }
  0x27   :  { %1416 = vmatpush.bf16.msra.mxu3 %v1314_v6  ;;  %628 = vmatpush.bf16.msra.mxu0 %v1314_v6  ;;  %v976_v6 = vor.u32 %v1274_v0, %v973_v1 }
  0x2a   :  { %1417 = vmatpush.bf16.msra.mxu1 %v1313_v7  ;;  %1418 = vmatpush.bf16.msra.mxu2 %v1313_v7 }
  0x2b   :  { %1419 = vmatpush.bf16.msra.mxu3 %v1313_v7  ;;  %629 = vmatpush.bf16.msra.mxu0 %v1313_v7  ;;  %v980_v7 = vor.u32 %v1277_v3, %v979_v2  ;;  %v1076_v2 = vor.u32 %v1299_v60, %v1073_v61  ;;  %v1080_v3 = vor.u32 %v1302_v63, %v1079_v62  ;;  %v1817_v61 = vld [vmem:[#allocation6] ss:$0 sm:$0xff] }
  0x2d   :  { %640 = vmatmul.bf16.vlgmr.msra.gmra.mxu1 %v1004_v18  ;;  %650 = vmatmul.bf16.vlgmr.msra.gmra.mxu2 %v1044_v19  ;;  %v996_v18 = vor.u32 %v1279_v12, %v993_v13  ;;  %v1000_v19 = vor.u32 %v1282_v15, %v999_v14 }
  0x2e   :  { %720 = vmatpush.bf16.msrb.mxu2 %v1336_v16  ;;  %671 = vmatpush.bf16.msrb.mxu1 %v1328_v17  ;;  %v988_v16 = vor.u32 %v1278_v8, %v985_v9  ;;  %v992_v17 = vor.u32 %v1281_v11, %v991_v10  ;;  %v1304_v8 = vld [vmem:[%s1886_s0 + $0xfc] sm:$0xf]  ;;  %v1093_v9 = vld [vmem:[%s1886_s0 + $0x10c] sm:$0xf0]  ;;  %v1099_v10 = vld [vmem:[%s1886_s0 + $0x100] sm:$0xf] }
  0x2f   :  { %660 = vmatmul.bf16.vlgmr.msra.gmra.mxu3 %v1084_v20  ;;  %630 = vmatmul.bf16.vlgmr.msra.gmra.mxu0 %v964_v21  ;;  %v1283_v20 = vld [vmem:[%s1886_s0 + $0x54] sm:$0xf]  ;;  %v1005_v21 = vld [vmem:[%s1886_s0 + $0x64] sm:$0xf0]  ;;  %v1096_v15 = vor.u32 %v1304_v8, %v1093_v9 }
  0x30   :  { %769 = vmatpush.bf16.msrb.mxu3 %v1344_v22  ;;  %822 = vmatpush.bf16.msrb.mxu0 %v1348_v23  ;;  %v1011_v22 = vld [vmem:[%s1886_s0 + $0x58] sm:$0xf]  ;;  %v1286_v23 = vld [vmem:[%s1886_s0 + $0x68] sm:$0xf0]  ;;  %v1307_v11 = vld [vmem:[%s1886_s0 + $0x110] sm:$0xf0] }
  0x32   :  { %721 = vmatpush.bf16.msrb.mxu2 %v1335_v24  ;;  %672 = vmatpush.bf16.msrb.mxu1 %v1327_v25  ;;  %v1284_v24 = vld [vmem:[%s1886_s0 + $0x5c] sm:$0xf]  ;;  %v1013_v25 = vld [vmem:[%s1886_s0 + $0x6c] sm:$0xf0] }
  0x34   :  { %770 = vmatpush.bf16.msrb.mxu3 %v1343_v26  ;;  %823 = vmatpush.bf16.msrb.mxu0 %v1347_v27  ;;  %v1019_v26 = vld [vmem:[%s1886_s0 + $0x60] sm:$0xf]  ;;  %v1287_v27 = vld [vmem:[%s1886_s0 + $0x70] sm:$0xf0] }
  0x36   :  { %722 = vmatpush.bf16.msrb.mxu2 %v1334_v28  ;;  %673 = vmatpush.bf16.msrb.mxu1 %v1326_v29  ;;  %v1008_v28 = vor.u32 %v1283_v20, %v1005_v21  ;;  %v1012_v29 = vor.u32 %v1286_v23, %v1011_v22  ;;  %v1308_v22 = vld [vmem:[%s1886_s0 + $0x11c] sm:$0xf]  ;;  %v1105_v23 = vld [vmem:[%s1886_s0 + $0x12c] sm:$0xf0] }
  0x38   :  { %771 = vmatpush.bf16.msrb.mxu3 %v1342_v30  ;;  %824 = vmatpush.bf16.msrb.mxu0 %v1346_v31  ;;  %v1016_v30 = vor.u32 %v1284_v24, %v1013_v25  ;;  %v1020_v31 = vor.u32 %v1287_v27, %v1019_v26  ;;  %v1111_v24 = vld [vmem:[%s1886_s0 + $0x120] sm:$0xf]  ;;  %v1311_v25 = vld [vmem:[%s1886_s0 + $0x130] sm:$0xf0]  ;;  %v1309_v26 = vld [vmem:[%s1886_s0 + $0x124] sm:$0xf] }
  0x39   :  { %v1113_v27 = vld [vmem:[%s1886_s0 + $0x134] sm:$0xf0] }
  0x3a   :  { %723 = vmatpush.bf16.msrb.mxu2 %v1333_v32  ;;  %674 = vmatpush.bf16.msrb.mxu1 %v1325_v33  ;;  %v1288_v32 = vld [vmem:[%s1886_s0 + $0x7c] sm:$0xf]  ;;  %v1025_v33 = vld [vmem:[%s1886_s0 + $0x8c] sm:$0xf0] }
  0x3b   :  { %v1028_v40 = vor.u32 %v1288_v32, %v1025_v33  ;;  %v1108_v32 = vor.u32 %v1308_v22, %v1105_v23  ;;  %v1112_v33 = vor.u32 %v1311_v25, %v1111_v24 }
  0x3c   :  { %772 = vmatpush.bf16.msrb.mxu3 %v1341_v34  ;;  %825 = vmatpush.bf16.msrb.mxu0 %v1345_v43  ;;  %v1031_v34 = vld [vmem:[%s1886_s0 + $0x80] sm:$0xf]  ;;  %v1040_v43 = vor.u32 %v1292_v39, %v1039_v38 }
  0x3d   :  { %645 = vmatmul.bf16.gmra.mxu1 %v1024_v46  ;;  %655 = vmatmul.bf16.gmra.mxu2 %v1064_v47  ;;  %v1032_v41 = vor.u32 %v1291_v35, %v1031_v34  ;;  %v1051_v46 = vld [vmem:[%s1886_s0 + $0xa8] sm:$0xf]  ;;  %v1296_v47 = vld [vmem:[%s1886_s0 + $0xb8] sm:$0xf0]  ;;  %v1116_v35 = vor.u32 %v1309_v26, %v1113_v27 }
  0x3e   :  { %724 = vmatpush.bf16.msrb.mxu2 %v1332_v44  ;;  %675 = vmatpush.bf16.msrb.mxu1 %v1324_v45  ;;  %v1293_v44 = vld [vmem:[%s1886_s0 + $0xa4] sm:$0xf]  ;;  %v1045_v45 = vld [vmem:[%s1886_s0 + $0xb4] sm:$0xf0] }
  0x3f   :  { %665 = vmatmul.bf16.gmra.mxu3 %v1104_v48  ;;  %635 = vmatmul.bf16.gmra.mxu0 %v984_v49  ;;  %v1294_v48 = vld [vmem:[%s1886_s0 + $0xac] sm:$0xf]  ;;  %v1053_v49 = vld [vmem:[%s1886_s0 + $0xbc] sm:$0xf0] }
  0x40   :  { %773 = vmatpush.bf16.msrb.mxu3 %v1340_v50  ;;  %v1059_v50 = vld [vmem:[%s1886_s0 + $0xb0] sm:$0xf] }
  0x42   :  { %725 = vmatpush.bf16.msrb.mxu2 %v1331_v51  ;;  %676 = vmatpush.bf16.msrb.mxu1 %v1323_v52  ;;  %v1297_v51 = vld [vmem:[%s1886_s0 + $0xc0] sm:$0xf0]  ;;  %v1048_v52 = vor.u32 %v1293_v44, %v1045_v45 }
  0x44   :  { %774 = vmatpush.bf16.msrb.mxu3 %v1339_v53  ;;  %v1052_v53 = vor.u32 %v1296_v47, %v1051_v46 }
  0x46   :  { %726 = vmatpush.bf16.msrb.mxu2 %v1330_v54  ;;  %677 = vmatpush.bf16.msrb.mxu1 %v1322_v55  ;;  %v1056_v54 = vor.u32 %v1294_v48, %v1053_v49  ;;  %v1060_v55 = vor.u32 %v1297_v51, %v1059_v50 }
  0x48   :  { %775 = vmatpush.bf16.msrb.mxu3 %v1338_v56  ;;  %v1298_v56 = vld [vmem:[%s1886_s0 + $0xcc] sm:$0xf] }
  0x4a   :  { %727 = vmatpush.bf16.msrb.mxu2 %v1329_v57  ;;  %678 = vmatpush.bf16.msrb.mxu1 %v1321_v58  ;;  %v1065_v57 = vld [vmem:[%s1886_s0 + $0xdc] sm:$0xf0]  ;;  %v1071_v58 = vld [vmem:[%s1886_s0 + $0xd0] sm:$0xf] }
  0x4b   :  { %v1068_v0 = vor.u32 %v1298_v56, %v1065_v57 }
  0x4c   :  { %776 = vmatpush.bf16.msrb.mxu3 %v1337_v59  ;;  %v1301_v59 = vld [vmem:[%s1886_s0 + $0xe0] sm:$0xf0] }
  0x4d   :  { %679 = vmatmul.bf16.vlgmr.msrb.gmra.mxu1 %v968_v4  ;;  %728 = vmatmul.bf16.vlgmr.msrb.gmra.mxu2 %v972_v5  ;;  %v1072_v1 = vor.u32 %v1301_v59, %v1071_v58  ;;  %v1303_v4 = vld [vmem:[%s1886_s0 + $0xf4] sm:$0xf]  ;;  %v1085_v5 = vld [vmem:[%s1886_s0 + $0x104] sm:$0xf0] }
  0x4e   :  { %v1088_v12 = vor.u32 %v1303_v4, %v1085_v5 }
  0x4f   :  { %777 = vmatmul.bf16.vlgmr.msrb.gmra.mxu3 %v976_v6  ;;  %1265 = vmatmul.msk.bf16.vlgmr.msrb.gmra.mxu0 %vm597_vm0, %v980_v7  ;;  %v1091_v6 = vld [vmem:[%s1886_s0 + $0xf8] sm:$0xf]  ;;  %v1306_v7 = vld [vmem:[%s1886_s0 + $0x108] sm:$0xf0] }
  0x50   :  { %v1092_v13 = vor.u32 %v1306_v7, %v1091_v6 }
  0x5d   :  { %684 = vmatmul.bf16.gmra.mxu1 %v988_v16  ;;  %733 = vmatmul.bf16.gmra.mxu2 %v992_v17  ;;  %v1100_v16 = vor.u32 %v1307_v11, %v1099_v10 }
  0x5f   :  { %782 = vmatmul.bf16.gmra.mxu3 %v996_v18  ;;  %1266 = vmatmul.msk.bf16.gmra.mxu0 %vm597_vm0, %v1000_v19 }
  0x6d   :  { %689 = vmatmul.bf16.gmra.mxu1 %v1008_v28  ;;  %738 = vmatmul.bf16.gmra.mxu2 %v1012_v29  ;;  %v1119_v28 = vld [vmem:[%s1886_s0 + $0x128] sm:$0xf]  ;;  %v1312_v29 = vld [vmem:[%s1886_s0 + $0x138] sm:$0xf0] }
  0x6e   :  { %v1120_v36 = vor.u32 %v1312_v29, %v1119_v28 }
  0x6f   :  { %787 = vmatmul.bf16.gmra.mxu3 %v1016_v30  ;;  %1267 = vmatmul.msk.bf16.gmra.mxu0 %vm597_vm0, %v1020_v31 }
  0x7d   :  { %694 = vmatmul.bf16.gmra.mxu1 %v1028_v40  ;;  %743 = vmatmul.bf16.gmra.mxu2 %v1032_v41 }
  0x7f   :  { %792 = vmatmul.bf16.gmra.mxu3 %v1036_v42  ;;  %1268 = vmatmul.msk.bf16.gmra.mxu0 %vm597_vm0, %v1040_v43 }
  0x8d   :  { %699 = vmatmul.bf16.gmra.mxu1 %v1048_v52  ;;  %748 = vmatmul.bf16.gmra.mxu2 %v1052_v53 }
  0x8f   :  { %797 = vmatmul.bf16.gmra.mxu3 %v1056_v54  ;;  %1269 = vmatmul.msk.bf16.gmra.mxu0 %vm597_vm0, %v1060_v55  ;;  %v1814_v54 = vld [vmem:[#allocation4] ss:$0 sm:$0xff] }
  0x9d   :  { %704 = vmatmul.bf16.gmra.mxu1 %v1068_v0  ;;  %753 = vmatmul.bf16.gmra.mxu2 %v1072_v1 }
  0x9f   :  { %802 = vmatmul.bf16.gmra.mxu3 %v1076_v2  ;;  %1270 = vmatmul.msk.bf16.gmra.mxu0 %vm597_vm0, %v1080_v3 }
  0xaa   :  { %v1764_v14 = vpop.f32.mrf.mxu1 }
  0xac   :  { %v631_v17 = vpop.f32.mrf.mxu0 }
  0xad   :  { %709 = vmatmul.bf16.gmra.mxu1 %v1088_v12  ;;  %758 = vmatmul.bf16.gmra.mxu2 %v1092_v13 }
  0xaf   :  { %807 = vmatmul.bf16.gmra.mxu3 %v1096_v15  ;;  %1271 = vmatmul.msk.bf16.gmra.mxu0 %vm597_vm0, %v1100_v16 }
  0xb0   :  { %v1767_v18 = vpop.f32.mrf.mxu2 }
  0xb2   :  { %v1769_v19 = vpop.f32.mrf.mxu3  ;;  %v1771_v20 = vpop.f32.mrf.mxu1 }
  0xb4   :  { %v633_v21 = vpop.f32.mrf.mxu0 }
  0xb8   :  { %v1797_v30 = vpop.f32.mrf.mxu2 }
  0xba   :  { %v1799_v31 = vpop.f32.mrf.mxu3  ;;  %v1801_v34 = vpop.f32.mrf.mxu1 }
  0xbc   :  { %v636_v37 = vpop.f32.mrf.mxu0 }
  0xbd   :  { %714 = vmatmul.bf16.gmra.mxu1 %v1108_v32  ;;  %763 = vmatmul.bf16.gmra.mxu2 %v1112_v33 }
  0xbf   :  { %812 = vmatmul.bf16.gmra.mxu3 %v1116_v35  ;;  %1272 = vmatmul.msk.bf16.gmra.mxu0 %vm597_vm0, %v1120_v36 }
  0xc0   :  { %v1804_v38 = vpop.f32.mrf.mxu2 }
  0xc2   :  { %v1806_v39 = vpop.f32.mrf.mxu3  ;;  %v1808_v40 = vpop.f32.mrf.mxu1 }
  0xc4   :  { %v638_v41 = vpop.f32.mrf.mxu0 }
  0xc8   :  { %v1810_v42 = vpop.f32.mrf.mxu2 }
  0xca   :  { %v1812_v43 = vpop.f32.mrf.mxu3  ;;  %v680_v44 = vpop.f32.mrf.mxu1 }
  0xcb   :  { %v681_v46 = vadd.f32 %v680_v44, %v631_v17 }
  0xcc   :  { %v827_v45 = vpop.f32.mrf.mxu0 }
  0xd0   :  { %v729_v47 = vpop.f32.mrf.mxu2 }
  0xd1   :  { %v730_v48 = vadd.f32 %v729_v47, %v681_v46 }
  0xd2   :  { %v778_v49 = vpop.f32.mrf.mxu3  ;;  %v682_v50 = vpop.f32.mrf.mxu1 }
  0xd3   :  { %v779_v51 = vadd.f32 %v778_v49, %v730_v48  ;;  %v683_v55 = vadd.f32 %v682_v50, %v633_v21 }
  0xd4   :  { %v829_v52 = vpop.f32.mrf.mxu0 }
  0xd5   :  { %v828_v53 = vadd.f32 %v827_v45, %v779_v51 }
  0xd7   :  { %v871_v60 = vmul.f32 %v1814_v54, %v828_v53 }
  0xd8   :  { %v731_v56 = vpop.f32.mrf.mxu2 }
  0xd9   :  { %v732_v57 = vadd.f32 %v731_v56, %v683_v55  ;;  %v891_v1 = vadd.f32 %v1817_v61, %v871_v60 }
  0xda   :  { %v780_v58 = vpop.f32.mrf.mxu3  ;;  %v685_v59 = vpop.f32.mrf.mxu1 }
  0xdb   :  { %v781_v62 = vadd.f32 %v780_v58, %v732_v57  ;;  %v686_v3 = vadd.f32 %v685_v59, %v636_v37  ;;  %v907_v9 = vmax.f32 %v891_v1, 0.0 }
  0xdc   :  { %v832_v63 = vpop.f32.mrf.mxu0 }
  0xdd   :  { %v830_v0 = vadd.f32 %v829_v52, %v781_v62 }
  0xdf   :  { %v872_v2 = vmul.f32 %v1814_v54, %v830_v0 }
  0xe0   :  { %v734_v4 = vpop.f32.mrf.mxu2 }
  0xe1   :  { %v892_v5 = vadd.f32 %v1817_v61, %v872_v2  ;;  %v735_v6 = vadd.f32 %v734_v4, %v686_v3 }
  0xe2   :  { %v783_v7 = vpop.f32.mrf.mxu3  ;;  %v687_v8 = vpop.f32.mrf.mxu1 }
  0xe3   :  { %v908_v10 = vmax.f32 %v892_v5, 0.0  ;;  %v784_v11 = vadd.f32 %v783_v7, %v735_v6  ;;  %v688_v16 = vadd.f32 %v687_v8, %v638_v41 }
  0xe4   :  { %v834_v12 = vpop.f32.mrf.mxu0 }
  0xe5   :  { %v1352_v13 = vpack.c.bf16 %v908_v10, %v907_v9  ;;  %v833_v15 = vadd.f32 %v832_v63, %v784_v11 }
  0xe7   :  { %1353 = vst [vmem:[%s1890_s4] sm:$0xff] %v1352_v13   ;;  %v873_v24 = vmul.f32 %v1814_v54, %v833_v15 }
  0xe8   :  { %v736_v17 = vpop.f32.mrf.mxu2 }
  0xe9   :  { %v737_v21 = vadd.f32 %v736_v17, %v688_v16  ;;  %v893_v28 = vadd.f32 %v1817_v61, %v873_v24 }
  0xea   :  { %v785_v22 = vpop.f32.mrf.mxu3  ;;  %v690_v23 = vpop.f32.mrf.mxu1 }
  0xeb   :  { %v786_v25 = vadd.f32 %v785_v22, %v737_v21  ;;  %v691_v32 = vadd.f32 %v690_v23, %v1764_v14  ;;  %v909_v44 = vmax.f32 %v893_v28, 0.0 }
  0xec   :  { %v837_v26 = vpop.f32.mrf.mxu0 }
  0xed   :  { %v835_v27 = vadd.f32 %v834_v12, %v786_v25 }
  0xef   :  { %v874_v29 = vmul.f32 %v1814_v54, %v835_v27 }
  0xf0   :  { %v739_v33 = vpop.f32.mrf.mxu2 }
  0xf1   :  { %v894_v35 = vadd.f32 %v1817_v61, %v874_v29  ;;  %v740_v36 = vadd.f32 %v739_v33, %v691_v32 }
  0xf2   :  { %v788_v37 = vpop.f32.mrf.mxu3  ;;  %v692_v41 = vpop.f32.mrf.mxu1 }
  0xf3   :  { %v910_v45 = vmax.f32 %v894_v35, 0.0  ;;  %v789_v46 = vadd.f32 %v788_v37, %v740_v36  ;;  %v693_v50 = vadd.f32 %v692_v41, %v1771_v20 }
  0xf4   :  { %v839_v47 = vpop.f32.mrf.mxu0 }
  0xf5   :  { %v1357_v48 = vpack.c.bf16 %v910_v45, %v909_v44  ;;  %v838_v49 = vadd.f32 %v837_v26, %v789_v46 }
  0xf7   :  { %1389 = vst [vmem:[%s1890_s4 + $0x8] sm:$0xff] %v1357_v48   ;;  %v875_v55 = vmul.f32 %v1814_v54, %v838_v49 }
  0xf8   :  { %v741_v51 = vpop.f32.mrf.mxu2 }
  0xf9   :  { %v742_v14 = vadd.f32 %v741_v51, %v693_v50  ;;  %v895_v59 = vadd.f32 %v1817_v61, %v875_v55 }
  0xfa   :  { %v790_v52 = vpop.f32.mrf.mxu3  ;;  %v695_v53 = vpop.f32.mrf.mxu1 }
  0xfb   :  { %v791_v56 = vadd.f32 %v790_v52, %v742_v14  ;;  %v696_v62 = vadd.f32 %v695_v53, %v1801_v34  ;;  %v911_v3 = vmax.f32 %v895_v59, 0.0 }
  0xfc   :  { %v842_v57 = vpop.f32.mrf.mxu0 }
  0xfd   :  { %v840_v58 = vadd.f32 %v839_v47, %v791_v56 }
  0xff   :  { %v876_v60 = vmul.f32 %v1814_v54, %v840_v58 }
 0x100   :  { %v744_v63 = vpop.f32.mrf.mxu2 }
 0x101   :  { %v896_v0 = vadd.f32 %v1817_v61, %v876_v60  ;;  %v745_v1 = vadd.f32 %v744_v63, %v696_v62 }
 0x102   :  { %v793_v20 = vpop.f32.mrf.mxu3  ;;  %v697_v2 = vpop.f32.mrf.mxu1 }
 0x103   :  { %v912_v4 = vmax.f32 %v896_v0, 0.0  ;;  %v794_v5 = vadd.f32 %v793_v20, %v745_v1  ;;  %v698_v9 = vadd.f32 %v697_v2, %v1808_v40 }
 0x104   :  { %v844_v6 = vpop.f32.mrf.mxu0 }
 0x105   :  { %v1362_v7 = vpack.c.bf16 %v912_v4, %v911_v3  ;;  %v843_v8 = vadd.f32 %v842_v57, %v794_v5 }
 0x107   :  { %1390 = vst [vmem:[%s1890_s4 + $0x10] sm:$0xff] %v1362_v7   ;;  %v877_v13 = vmul.f32 %v1814_v54, %v843_v8 }
 0x108   :  { %v746_v10 = vpop.f32.mrf.mxu2 }
 0x109   :  { %v747_v34 = vadd.f32 %v746_v10, %v698_v9  ;;  %v897_v21 = vadd.f32 %v1817_v61, %v877_v13 }
 0x10a   :  { %v795_v11 = vpop.f32.mrf.mxu3  ;;  %v700_v12 = vpop.f32.mrf.mxu1 }
 0x10b   :  { %v796_v15 = vadd.f32 %v795_v11, %v747_v34  ;;  %v701_v23 = vadd.f32 %v700_v12, %v1767_v18  ;;  %v913_v28 = vmax.f32 %v897_v21, 0.0 }
 0x10c   :  { %v847_v16 = vpop.f32.mrf.mxu0 }
 0x10d   :  { %v845_v17 = vadd.f32 %v844_v6, %v796_v15 }
 0x10f   :  { %v878_v22 = vmul.f32 %v1814_v54, %v845_v17 }
 0x110   :  { %v749_v24 = vpop.f32.mrf.mxu2 }
 0x111   :  { %v898_v25 = vadd.f32 %v1817_v61, %v878_v22  ;;  %v750_v26 = vadd.f32 %v749_v24, %v701_v23 }
 0x112   :  { %v798_v40 = vpop.f32.mrf.mxu3  ;;  %v702_v27 = vpop.f32.mrf.mxu1 }
 0x113   :  { %v914_v29 = vmax.f32 %v898_v25, 0.0  ;;  %v799_v32 = vadd.f32 %v798_v40, %v750_v26  ;;  %v703_v37 = vadd.f32 %v702_v27, %v1797_v30 }
 0x114   :  { %v849_v33 = vpop.f32.mrf.mxu0 }
 0x115   :  { %v1367_v35 = vpack.c.bf16 %v914_v29, %v913_v28  ;;  %v848_v36 = vadd.f32 %v847_v16, %v799_v32 }
 0x117   :  { %1391 = vst [vmem:[%s1890_s4 + $0x18] sm:$0xff] %v1367_v35   ;;  %v879_v46 = vmul.f32 %v1814_v54, %v848_v36 }
 0x118   :  { %v751_v41 = vpop.f32.mrf.mxu2 }
 0x119   :  { %v752_v18 = vadd.f32 %v751_v41, %v703_v37  ;;  %v899_v50 = vadd.f32 %v1817_v61, %v879_v46 }
 0x11a   :  { %v800_v44 = vpop.f32.mrf.mxu3  ;;  %v705_v45 = vpop.f32.mrf.mxu1 }
 0x11b   :  { %v801_v47 = vadd.f32 %v800_v44, %v752_v18  ;;  %v706_v14 = vadd.f32 %v705_v45, %v1804_v38  ;;  %v915_v57 = vmax.f32 %v899_v50, 0.0 }
 0x11c   :  { %v852_v48 = vpop.f32.mrf.mxu0 }
 0x11d   :  { %v850_v49 = vadd.f32 %v849_v33, %v801_v47 }
 0x11f   :  { %v880_v51 = vmul.f32 %v1814_v54, %v850_v49 }
 0x120   :  { %v754_v52 = vpop.f32.mrf.mxu2 }
 0x121   :  { %v900_v53 = vadd.f32 %v1817_v61, %v880_v51  ;;  %v755_v55 = vadd.f32 %v754_v52, %v706_v14 }
 0x122   :  { %v803_v30 = vpop.f32.mrf.mxu3  ;;  %v707_v56 = vpop.f32.mrf.mxu1 }
 0x123   :  { %v916_v58 = vmax.f32 %v900_v53, 0.0  ;;  %v804_v59 = vadd.f32 %v803_v30, %v755_v55  ;;  %v708_v0 = vadd.f32 %v707_v56, %v1810_v42 }
 0x124   :  { %v854_v60 = vpop.f32.mrf.mxu0 }
 0x125   :  { %v1372_v62 = vpack.c.bf16 %v916_v58, %v915_v57  ;;  %v853_v63 = vadd.f32 %v852_v48, %v804_v59 }
 0x127   :  { %1392 = vst [vmem:[%s1890_s4 + $0x20] sm:$0xff] %v1372_v62   ;;  %v881_v3 = vmul.f32 %v1814_v54, %v853_v63 }
 0x128   :  { %v756_v1 = vpop.f32.mrf.mxu2 }
 0x129   :  { %v757_v38 = vadd.f32 %v756_v1, %v708_v0  ;;  %v901_v7 = vadd.f32 %v1817_v61, %v881_v3 }
 0x12a   :  { %v805_v20 = vpop.f32.mrf.mxu3  ;;  %v710_v2 = vpop.f32.mrf.mxu1 }
 0x12b   :  { %v806_v4 = vadd.f32 %v805_v20, %v757_v38  ;;  %v711_v9 = vadd.f32 %v710_v2, %v1769_v19  ;;  %v917_v13 = vmax.f32 %v901_v7, 0.0 }
 0x12c   :  { %v857_v6 = vpop.f32.mrf.mxu0 }
 0x12d   :  { %v855_v5 = vadd.f32 %v854_v60, %v806_v4 }
 0x12f   :  { %v882_v8 = vmul.f32 %v1814_v54, %v855_v5 }
 0x130   :  { %v759_v10 = vpop.f32.mrf.mxu2 }
 0x131   :  { %v902_v34 = vadd.f32 %v1817_v61, %v882_v8  ;;  %v760_v11 = vadd.f32 %v759_v10, %v711_v9 }
 0x132   :  { %v808_v42 = vpop.f32.mrf.mxu3  ;;  %v712_v12 = vpop.f32.mrf.mxu1 }
 0x133   :  { %v918_v15 = vmax.f32 %v902_v34, 0.0  ;;  %v809_v16 = vadd.f32 %v808_v42, %v760_v11  ;;  %v713_v22 = vadd.f32 %v712_v12, %v1799_v31 }
 0x134   :  { %v859_v23 = vpop.f32.mrf.mxu0 }
 0x135   :  { %v1377_v17 = vpack.c.bf16 %v918_v15, %v917_v13  ;;  %v858_v21 = vadd.f32 %v857_v6, %v809_v16 }
 0x137   :  { %1393 = vst [vmem:[%s1890_s4 + $0x28] sm:$0xff] %v1377_v17   ;;  %v883_v40 = vmul.f32 %v1814_v54, %v858_v21 }
 0x138   :  { %v761_v24 = vpop.f32.mrf.mxu2 }
 0x139   :  { %v762_v19 = vadd.f32 %v761_v24, %v713_v22  ;;  %v903_v29 = vadd.f32 %v1817_v61, %v883_v40 }
 0x13a   :  { %v810_v25 = vpop.f32.mrf.mxu3  ;;  %v715_v26 = vpop.f32.mrf.mxu1 }
 0x13b   :  { %v811_v27 = vadd.f32 %v810_v25, %v762_v19  ;;  %v716_v33 = vadd.f32 %v715_v26, %v1806_v39  ;;  %v919_v18 = vmax.f32 %v903_v29, 0.0 }
 0x13c   :  { %v862_v41 = vpop.f32.mrf.mxu0 }
 0x13d   :  { %v860_v28 = vadd.f32 %v859_v23, %v811_v27 }
 0x13f   :  { %v884_v32 = vmul.f32 %v1814_v54, %v860_v28 }
 0x140   :  { %v764_v35 = vpop.f32.mrf.mxu2 }
 0x141   :  { %v904_v36 = vadd.f32 %v1817_v61, %v884_v32  ;;  %v765_v37 = vadd.f32 %v764_v35, %v716_v33 }
 0x142   :  { %v813_v31 = vpop.f32.mrf.mxu3  ;;  %v717_v46 = vpop.f32.mrf.mxu1 }
 0x143   :  { %v920_v44 = vmax.f32 %v904_v36, 0.0  ;;  %v814_v45 = vadd.f32 %v813_v31, %v765_v37  ;;  %v718_v49 = vadd.f32 %v717_v46, %v1812_v43 }
 0x144   :  { %v864_v53 = vpop.f32.mrf.mxu0 }
 0x145   :  { %v1382_v47 = vpack.c.bf16 %v920_v44, %v919_v18  ;;  %v863_v48 = vadd.f32 %v862_v41, %v814_v45 }
 0x147   :  { %1394 = vst [vmem:[%s1890_s4 + $0x30] sm:$0xff] %v1382_v47   ;;  %v885_v14 = vmul.f32 %v1814_v54, %v863_v48 }
 0x148   :  { %v766_v50 = vpop.f32.mrf.mxu2 }
 0x149   :  { %v767_v39 = vadd.f32 %v766_v50, %v718_v49  ;;  %v905_v30 = vadd.f32 %v1817_v61, %v885_v14 }
 0x14a   :  { %v815_v51 = vpop.f32.mrf.mxu3 }
 0x14b   :  { %v816_v52 = vadd.f32 %v815_v51, %v767_v39  ;;  %v921_v58 = vmax.f32 %v905_v30, 0.0 }
 0x14d   :  { %v865_v55 = vadd.f32 %v864_v53, %v816_v52 }
 0x14f   :  { %v886_v56 = vmul.f32 %v1814_v54, %v865_v55 }
 0x151   :  { %v906_v57 = vadd.f32 %v1817_v61, %v886_v56 }
 0x153   :  { %v922_v59 = vmax.f32 %v906_v57, 0.0 }
 0x155   :  { %v1387_v60 = vpack.c.bf16 %v922_v59, %v921_v58 }
 0x157   :  { %1395 = vst [vmem:[%s1890_s4 + $0x38] sm:$0xff] %v1387_v60  }
 0x158   :  { %959 = vsyncpa [#allocation3], 1 }
 0x159   :  { %960 = vsyncpa [#allocation5], 1 }

// kernel: selecsls_forward.6
= control target key start
LH: loop header
LB: loop body
LE: loop exit
PB: predicated region body
PF: predicated region fallthrough
CT: control target
= control target key end

     0   :  { %9 = vsyncpa [#allocation3], 0  ;;  %s2578_s0 = inlined_call_operand.vmem [shape: bf16[32,1152], index: 0, kind: input, shape index: {}]   ;;  %s2579_s1 = inlined_call_operand.hbm [shape: bf16[1152,256], index: 1, kind: input, shape index: {}]   ;;  %s2580_s2 = inlined_call_operand.hbm [shape: f32[1,256], index: 2, kind: input, shape index: {}]   ;;  %s2581_s3 = inlined_call_operand.hbm [shape: f32[1,256], index: 3, kind: input, shape index: {}]   ;;  %s2582_s4 = inlined_call_operand.vmem [shape: bf16[32,256], index: 4, kind: output, shape index: {}]  }
   0x1   :  { %10 = vsyncpa [#allocation5], 0  ;;  %s31_s17 = sshll.u32 %s2580_s2, 4  ;;  %s2335_s18 = smov [#allocation4]   ;;  %s32_s17 = int_to_ptr.hbm [resolvable:$true] %s31_s17 }
   0x2   :  { %s33_s19 = sshll.u32 %s2335_s18, 4  ;;  %s17_s22 = sshll.u32 %s2579_s1, 4  ;;  %s34_s19 = int_to_ptr.vmem [resolvable:$true] %s33_s19  ;;  %s18_s22 = int_to_ptr.hbm [resolvable:$true] %s17_s22 }
   0x3   :  { %36 = dma.hbm_to_vmem [thread:$0]  %s32_s17, 32, %s34_s19, [#allocation5]  }
   0x4   :  { %s2336_s23 = smov [#allocation2]   ;;  %s2337_s25 = smov 128  }
   0x5   :  { %s19_s24 = sshll.u32 %s2336_s23, 4  ;;  %s2338_s26 = smov 8   ;;  %s20_s24 = int_to_ptr.vmem [resolvable:$true] %s19_s24 }
   0x6   :  { %25 = dma.hbm_to_vmem [thread:$0]  %s18_s22, 18432, %s20_s24, [#allocation3], %s2337_s25, %s2337_s25, %s2338_s26  }
   0x7   :  { %s42_s2 = sshll.u32 %s2581_s3, 4  ;;  %s2339_s29 = smov [#allocation6]   ;;  %s43_s2 = int_to_ptr.hbm [resolvable:$true] %s42_s2 }
   0x8   :  { %s44_s30 = sshll.u32 %s2339_s29, 4  ;;  %s45_s30 = int_to_ptr.vmem [resolvable:$true] %s44_s30 }
   0x9   :  { %47 = dma.hbm_to_vmem [thread:$0]  %s43_s2, 32, %s45_s30, [#allocation5]  }
   0xa   :  { %2331 = dma.done.wait [#allocation3], 18432  }
   0xb   :  { %2332 = vsyncadd [#allocation3], 4294948864 }
   0xc   :  { %2333 = dma.done.wait [#allocation5], 64  }
   0xd   :  { %2334 = vsyncadd [#allocation5], 4294967232  ;;  %v1558_v0 = vld [vmem:[#allocation2 + $0x70] sm:$0xf]  ;;  %v2109_v1 = vld [vmem:[#allocation2 + $0x74] sm:$0xf0] }
   0xe   :  { %v1622_v2 = vld [vmem:[#allocation2 + $0xf0] sm:$0xf]  ;;  %v1559_v3 = vor.u32 %v2109_v1, %v1558_v0  ;;  %v2125_v4 = vld [vmem:[#allocation2 + $0xf4] sm:$0xf0]  ;;  %v1550_v11 = vld [vmem:[#allocation2 + $0x60] sm:$0xf] }
   0xf   :  { %v1686_v5 = vld [vmem:[#allocation2 + $0x170] sm:$0xf]  ;;  %v2141_v6 = vld [vmem:[#allocation2 + $0x174] sm:$0xf0]  ;;  %v1623_v7 = vor.u32 %v2125_v4, %v1622_v2  ;;  %v2107_v13 = vld [vmem:[#allocation2 + $0x64] sm:$0xf0] }
  0x10   :  { %v1687_v8 = vor.u32 %v2141_v6, %v1686_v5  ;;  %v1750_v9 = vld [vmem:[#allocation2 + $0x1f0] sm:$0xf]  ;;  %v2157_v10 = vld [vmem:[#allocation2 + $0x1f4] sm:$0xf0]  ;;  %1036 = vmatpush.bf16.msra.mxu0 %v1559_v3  ;;  %v1614_v14 = vld [vmem:[#allocation2 + $0xe0] sm:$0xf]  ;;  %v1551_v16 = vor.u32 %v2107_v13, %v1550_v11 }
  0x11   :  { %v1751_v12 = vor.u32 %v2157_v10, %v1750_v9  ;;  %v2123_v15 = vld [vmem:[#allocation2 + $0xe4] sm:$0xf0]  ;;  %1055 = vmatpush.bf16.msra.mxu1 %v1623_v7  ;;  %v1678_v18 = vld [vmem:[#allocation2 + $0x160] sm:$0xf]  ;;  %v1542_v23 = vld [vmem:[#allocation2 + $0x50] sm:$0xf] }
  0x12   :  { %1074 = vmatpush.bf16.msra.mxu2 %v1687_v8  ;;  %v1615_v17 = vor.u32 %v2123_v15, %v1614_v14  ;;  %v2139_v19 = vld [vmem:[#allocation2 + $0x164] sm:$0xf0]  ;;  %v1742_v20 = vld [vmem:[#allocation2 + $0x1e0] sm:$0xf]  ;;  %v2105_v24 = vld [vmem:[#allocation2 + $0x54] sm:$0xf0] }
  0x13   :  { %1093 = vmatpush.bf16.msra.mxu3 %v1751_v12  ;;  %v1679_v21 = vor.u32 %v2139_v19, %v1678_v18  ;;  %v2155_v22 = vld [vmem:[#allocation2 + $0x1e4] sm:$0xf0]  ;;  %v1606_v26 = vld [vmem:[#allocation2 + $0xd0] sm:$0xf]  ;;  %v2121_v27 = vld [vmem:[#allocation2 + $0xd4] sm:$0xf0]  ;;  %v1543_v29 = vor.u32 %v2105_v24, %v1542_v23 }
  0x14   :  { %v1743_v25 = vor.u32 %v2155_v22, %v1742_v20  ;;  %v1670_v28 = vld [vmem:[#allocation2 + $0x150] sm:$0xf]  ;;  %1037 = vmatpush.bf16.msra.mxu0 %v1551_v16  ;;  %v2137_v30 = vld [vmem:[#allocation2 + $0x154] sm:$0xf0]  ;;  %v1607_v33 = vor.u32 %v2121_v27, %v1606_v26  ;;  %v1534_v35 = vld [vmem:[#allocation2 + $0x40] sm:$0xf] }
  0x15   :  { %v1734_v31 = vld [vmem:[#allocation2 + $0x1d0] sm:$0xf]  ;;  %v2153_v32 = vld [vmem:[#allocation2 + $0x1d4] sm:$0xf0]  ;;  %1056 = vmatpush.bf16.msra.mxu1 %v1615_v17  ;;  %v1671_v34 = vor.u32 %v2137_v30, %v1670_v28  ;;  %v2103_v36 = vld [vmem:[#allocation2 + $0x44] sm:$0xf0] }
  0x16   :  { %1075 = vmatpush.bf16.msra.mxu2 %v1679_v21  ;;  %v1598_v37 = vld [vmem:[#allocation2 + $0xc0] sm:$0xf]  ;;  %v1735_v38 = vor.u32 %v2153_v32, %v1734_v31  ;;  %v2119_v39 = vld [vmem:[#allocation2 + $0xc4] sm:$0xf0]  ;;  %v1535_v44 = vor.u32 %v2103_v36, %v1534_v35  ;;  %v1526_v47 = vld [vmem:[#allocation2 + $0x30] sm:$0xf] }
  0x17   :  { %1094 = vmatpush.bf16.msra.mxu3 %v1743_v25  ;;  %v1662_v40 = vld [vmem:[#allocation2 + $0x140] sm:$0xf]  ;;  %v2135_v41 = vld [vmem:[#allocation2 + $0x144] sm:$0xf0]  ;;  %v1599_v45 = vor.u32 %v2119_v39, %v1598_v37  ;;  %v2101_v48 = vld [vmem:[#allocation2 + $0x34] sm:$0xf0] }
  0x18   :  { %v1726_v42 = vld [vmem:[#allocation2 + $0x1c0] sm:$0xf]  ;;  %v2151_v43 = vld [vmem:[#allocation2 + $0x1c4] sm:$0xf0]  ;;  %1038 = vmatpush.bf16.msra.mxu0 %v1543_v29  ;;  %v1663_v46 = vor.u32 %v2135_v41, %v1662_v40  ;;  %v1590_v49 = vld [vmem:[#allocation2 + $0xb0] sm:$0xf]  ;;  %v1527_v56 = vor.u32 %v2101_v48, %v1526_v47 }
  0x19   :  { %1057 = vmatpush.bf16.msra.mxu1 %v1607_v33  ;;  %v1727_v50 = vor.u32 %v2151_v43, %v1726_v42  ;;  %v2117_v51 = vld [vmem:[#allocation2 + $0xb4] sm:$0xf0]  ;;  %v1654_v52 = vld [vmem:[#allocation2 + $0x130] sm:$0xf]  ;;  %v1518_v59 = vld [vmem:[#allocation2 + $0x20] sm:$0xf] }
  0x1a   :  { %1076 = vmatpush.bf16.msra.mxu2 %v1671_v34  ;;  %v2133_v53 = vld [vmem:[#allocation2 + $0x134] sm:$0xf0]  ;;  %v1718_v54 = vld [vmem:[#allocation2 + $0x1b0] sm:$0xf]  ;;  %v1591_v57 = vor.u32 %v2117_v51, %v1590_v49  ;;  %v2099_v60 = vld [vmem:[#allocation2 + $0x24] sm:$0xf0] }
  0x1b   :  { %1095 = vmatpush.bf16.msra.mxu3 %v1735_v38  ;;  %v2149_v55 = vld [vmem:[#allocation2 + $0x1b4] sm:$0xf0]  ;;  %v1655_v58 = vor.u32 %v2133_v53, %v1654_v52  ;;  %v1582_v61 = vld [vmem:[#allocation2 + $0xa0] sm:$0xf]  ;;  %v2115_v63 = vld [vmem:[#allocation2 + $0xa4] sm:$0xf0]  ;;  %v1519_v4 = vor.u32 %v2099_v60, %v1518_v59 }
  0x1c   :  { %1039 = vmatpush.bf16.msra.mxu0 %v1535_v44  ;;  %v1719_v62 = vor.u32 %v2149_v55, %v1718_v54  ;;  %v1646_v0 = vld [vmem:[#allocation2 + $0x120] sm:$0xf]  ;;  %v2131_v1 = vld [vmem:[#allocation2 + $0x124] sm:$0xf0]  ;;  %v1583_v5 = vor.u32 %v2115_v63, %v1582_v61  ;;  %v1510_v7 = vld [vmem:[#allocation2 + $0x10] sm:$0xf] }
  0x1d   :  { %1058 = vmatpush.bf16.msra.mxu1 %v1599_v45  ;;  %v1710_v2 = vld [vmem:[#allocation2 + $0x1a0] sm:$0xf]  ;;  %v2147_v3 = vld [vmem:[#allocation2 + $0x1a4] sm:$0xf0]  ;;  %v1647_v6 = vor.u32 %v2131_v1, %v1646_v0  ;;  %v2097_v8 = vld [vmem:[#allocation2 + $0x14] sm:$0xf0] }
  0x1e   :  { %1077 = vmatpush.bf16.msra.mxu2 %v1663_v46  ;;  %v1574_v9 = vld [vmem:[#allocation2 + $0x90] sm:$0xf]  ;;  %v1711_v10 = vor.u32 %v2147_v3, %v1710_v2  ;;  %v2113_v11 = vld [vmem:[#allocation2 + $0x94] sm:$0xf0]  ;;  %v1502_v16 = vld [vmem:[#allocation2] sm:$0xf]  ;;  %v1511_v17 = vor.u32 %v2097_v8, %v1510_v7 }
  0x1f   :  { %1096 = vmatpush.bf16.msra.mxu3 %v1727_v50  ;;  %v1638_v12 = vld [vmem:[#allocation2 + $0x110] sm:$0xf]  ;;  %v2129_v13 = vld [vmem:[#allocation2 + $0x114] sm:$0xf0]  ;;  %v2095_v18 = vld [vmem:[#allocation2 + $0x4] sm:$0xf0]  ;;  %v1575_v21 = vor.u32 %v2113_v11, %v1574_v9 }
  0x20   :  { %1040 = vmatpush.bf16.msra.mxu0 %v1527_v56  ;;  %v1702_v14 = vld [vmem:[#allocation2 + $0x190] sm:$0xf]  ;;  %v2145_v15 = vld [vmem:[#allocation2 + $0x194] sm:$0xf0]  ;;  %v1566_v19 = vld [vmem:[#allocation2 + $0x80] sm:$0xf]  ;;  %v1639_v22 = vor.u32 %v2129_v13, %v1638_v12  ;;  %v1503_v34 = vor.u32 %v2095_v18, %v1502_v16 }
  0x21   :  { %1059 = vmatpush.bf16.msra.mxu1 %v1591_v57  ;;  %v2111_v20 = vld [vmem:[#allocation2 + $0x84] sm:$0xf0]  ;;  %v1630_v23 = vld [vmem:[#allocation2 + $0x100] sm:$0xf]  ;;  %v1703_v26 = vor.u32 %v2145_v15, %v1702_v14  ;;  %v2080_v29 = vld [vmem:[%s2578_s0 + $0x20] sm:$0xf0] }
  0x22   :  { %1078 = vmatpush.bf16.msra.mxu2 %v1655_v58  ;;  %v2127_v24 = vld [vmem:[#allocation2 + $0x104] sm:$0xf0]  ;;  %v1694_v25 = vld [vmem:[#allocation2 + $0x180] sm:$0xf]  ;;  %v2076_v30 = vld [vmem:[%s2578_s0 + $0x4] sm:$0xf]  ;;  %v1567_v38 = vor.u32 %v2111_v20, %v1566_v19 }
  0x23   :  { %1097 = vmatpush.bf16.msra.mxu3 %v1719_v62  ;;  %v2143_v27 = vld [vmem:[#allocation2 + $0x184] sm:$0xf0]  ;;  %v1430_v28 = vld [vmem:[%s2578_s0] sm:$0xf]  ;;  %v1942_v32 = vld [vmem:[#allocation2 + $0x370] sm:$0xf]  ;;  %v1631_v39 = vor.u32 %v2127_v24, %v1630_v23 }
  0x24   :  { %1041 = vmatpush.bf16.msra.mxu0 %v1519_v4  ;;  %v1432_v31 = vld [vmem:[%s2578_s0 + $0x24] sm:$0xf0]  ;;  %v2205_v33 = vld [vmem:[#allocation2 + $0x374] sm:$0xf0]  ;;  %v1878_v36 = vld [vmem:[#allocation2 + $0x2f0] sm:$0xf]  ;;  %v1695_v43 = vor.u32 %v2143_v27, %v1694_v25  ;;  %v2398_v48 = vor.u32 %v2080_v29, %v1430_v28 }
  0x25   :  { %1060 = vmatpush.bf16.msra.mxu1 %v1583_v5  ;;  %v1438_v35 = vld [vmem:[%s2578_s0 + $0x8] sm:$0xf]  ;;  %v2189_v37 = vld [vmem:[#allocation2 + $0x2f4] sm:$0xf0]  ;;  %v2081_v40 = vld [vmem:[%s2578_s0 + $0x28] sm:$0xf0]  ;;  %v1943_v44 = vor.u32 %v2205_v33, %v1942_v32  ;;  %v2400_v53 = vor.u32 %v2076_v30, %v1432_v31 }
  0x26   :  { %1079 = vmatpush.bf16.msra.mxu2 %v1647_v6  ;;  %v2077_v41 = vld [vmem:[%s2578_s0 + $0xc] sm:$0xf]  ;;  %v1440_v42 = vld [vmem:[%s2578_s0 + $0x2c] sm:$0xf0]  ;;  %v2173_v46 = vld [vmem:[#allocation2 + $0x274] sm:$0xf0]  ;;  %v1879_v49 = vor.u32 %v2189_v37, %v1878_v36  ;;  %v2402_v54 = vor.u32 %v2081_v40, %v1438_v35 }
  0x27   :  { %1098 = vmatpush.bf16.msra.mxu3 %v1711_v10  ;;  %v1814_v45 = vld [vmem:[#allocation2 + $0x270] sm:$0xf]  ;;  %v2221_v50 = vld [vmem:[#allocation2 + $0x3f4] sm:$0xf0]  ;;  %v1934_v51 = vld [vmem:[#allocation2 + $0x360] sm:$0xf]  ;;  %v2404_v57 = vor.u32 %v2077_v41, %v1440_v42 }
  0x28   :  { %1042 = vmatpush.bf16.msra.mxu0 %v1511_v17  ;;  %v2006_v47 = vld [vmem:[#allocation2 + $0x3f0] sm:$0xf]  ;;  %v2203_v52 = vld [vmem:[#allocation2 + $0x364] sm:$0xf0]  ;;  %v1870_v55 = vld [vmem:[#allocation2 + $0x2e0] sm:$0xf]  ;;  %v1815_v58 = vor.u32 %v2173_v46, %v1814_v45 }
  0x29   :  { %1061 = vmatpush.bf16.msra.mxu1 %v1575_v21  ;;  %v2187_v56 = vld [vmem:[#allocation2 + $0x2e4] sm:$0xf0]  ;;  %v2007_v59 = vor.u32 %v2221_v50, %v2006_v47  ;;  %v1935_v60 = vor.u32 %v2203_v52, %v1934_v51  ;;  %v1806_v61 = vld [vmem:[#allocation2 + $0x260] sm:$0xf]  ;;  %v1926_v2 = vld [vmem:[#allocation2 + $0x350] sm:$0xf] }
  0x2a   :  { %1080 = vmatpush.bf16.msra.mxu2 %v1639_v22  ;;  %v2171_v62 = vld [vmem:[#allocation2 + $0x264] sm:$0xf0]  ;;  %v1998_v63 = vld [vmem:[#allocation2 + $0x3e0] sm:$0xf]  ;;  %v1871_v0 = vor.u32 %v2187_v56, %v1870_v55  ;;  %v2201_v3 = vld [vmem:[#allocation2 + $0x354] sm:$0xf0] }
  0x2b   :  { %1099 = vmatpush.bf16.msra.mxu3 %v1703_v26  ;;  %v2219_v1 = vld [vmem:[#allocation2 + $0x3e4] sm:$0xf0]  ;;  %v1862_v4 = vld [vmem:[#allocation2 + $0x2d0] sm:$0xf]  ;;  %v2185_v5 = vld [vmem:[#allocation2 + $0x2d4] sm:$0xf0]  ;;  %v1807_v6 = vor.u32 %v2171_v62, %v1806_v61  ;;  %v1927_v8 = vor.u32 %v2201_v3, %v1926_v2 }
  0x2c   :  { %1043 = vmatpush.bf16.msra.mxu0 %v1503_v34  ;;  %v1999_v7 = vor.u32 %v2219_v1, %v1998_v63  ;;  %v1798_v9 = vld [vmem:[#allocation2 + $0x250] sm:$0xf]  ;;  %v2169_v10 = vld [vmem:[#allocation2 + $0x254] sm:$0xf0]  ;;  %v1863_v12 = vor.u32 %v2185_v5, %v1862_v4  ;;  %v1918_v14 = vld [vmem:[#allocation2 + $0x340] sm:$0xf] }
  0x2d   :  { %1062 = vmatpush.bf16.msra.mxu1 %v1567_v38  ;;  %v1990_v11 = vld [vmem:[#allocation2 + $0x3d0] sm:$0xf]  ;;  %v2217_v13 = vld [vmem:[#allocation2 + $0x3d4] sm:$0xf0]  ;;  %v2199_v15 = vld [vmem:[#allocation2 + $0x344] sm:$0xf0]  ;;  %v1799_v18 = vor.u32 %v2169_v10, %v1798_v9 }
  0x2e   :  { %1081 = vmatpush.bf16.msra.mxu2 %v1631_v39  ;;  %v1854_v16 = vld [vmem:[#allocation2 + $0x2c0] sm:$0xf]  ;;  %v2183_v17 = vld [vmem:[#allocation2 + $0x2c4] sm:$0xf0]  ;;  %v1991_v22 = vor.u32 %v2217_v13, %v1990_v11  ;;  %v1919_v23 = vor.u32 %v2199_v15, %v1918_v14  ;;  %v2089_v26 = vld [vmem:[%s2578_s0 + $0x68] sm:$0xf0] }
  0x2f   :  { %1100 = vmatpush.bf16.msra.mxu3 %v1695_v43  ;;  %1044 = vmatmul.bf16.vlgmr.msra.gmra.mxu0 %v2398_v48  ;;  %v1790_v19 = vld [vmem:[#allocation2 + $0x240] sm:$0xf]  ;;  %v2167_v20 = vld [vmem:[#allocation2 + $0x244] sm:$0xf0]  ;;  %v1855_v27 = vor.u32 %v2183_v17, %v1854_v16  ;;  %v2085_v28 = vld [vmem:[%s2578_s0 + $0x4c] sm:$0xf] }
  0x30   :  { %1063 = vmatmul.bf16.vlgmr.msra.gmra.mxu1 %v2400_v53  ;;  %1112 = vmatpush.bf16.msrb.mxu0 %v1815_v58  ;;  %v1982_v21 = vld [vmem:[#allocation2 + $0x3c0] sm:$0xf]  ;;  %v2215_v24 = vld [vmem:[#allocation2 + $0x3c4] sm:$0xf0]  ;;  %v1468_v29 = vld [vmem:[%s2578_s0 + $0x6c] sm:$0xf0]  ;;  %v1791_v35 = vor.u32 %v2167_v20, %v1790_v19 }
  0x31   :  { %1131 = vmatpush.bf16.msrb.mxu1 %v1879_v49  ;;  %1082 = vmatmul.bf16.vlgmr.msra.gmra.mxu2 %v2402_v54  ;;  %v1466_v25 = vld [vmem:[%s2578_s0 + $0x48] sm:$0xf]  ;;  %v1910_v30 = vld [vmem:[#allocation2 + $0x330] sm:$0xf]  ;;  %v2197_v31 = vld [vmem:[#allocation2 + $0x334] sm:$0xf0]  ;;  %v1983_v39 = vor.u32 %v2215_v24, %v1982_v21  ;;  %v2436_v50 = vor.u32 %v2085_v28, %v1468_v29 }
  0x32   :  { %1150 = vmatpush.bf16.msrb.mxu2 %v1943_v44  ;;  %1101 = vmatmul.bf16.vlgmr.msra.gmra.mxu3 %v2404_v57  ;;  %v1474_v32 = vld [vmem:[%s2578_s0 + $0x50] sm:$0xf]  ;;  %v2181_v34 = vld [vmem:[#allocation2 + $0x2b4] sm:$0xf0]  ;;  %v2090_v36 = vld [vmem:[%s2578_s0 + $0x70] sm:$0xf0]  ;;  %v1911_v40 = vor.u32 %v2197_v31, %v1910_v30  ;;  %v2434_v44 = vor.u32 %v2089_v26, %v1466_v25 }
  0x33   :  { %1169 = vmatpush.bf16.msrb.mxu3 %v2007_v59  ;;  %v1846_v33 = vld [vmem:[#allocation2 + $0x2b0] sm:$0xf]  ;;  %v2086_v37 = vld [vmem:[%s2578_s0 + $0x54] sm:$0xf]  ;;  %v1476_v38 = vld [vmem:[%s2578_s0 + $0x74] sm:$0xf0]  ;;  %v2438_v51 = vor.u32 %v2090_v36, %v1474_v32 }
  0x34   :  { %1113 = vmatpush.bf16.msrb.mxu0 %v1807_v6  ;;  %v1782_v41 = vld [vmem:[#allocation2 + $0x230] sm:$0xf]  ;;  %v2165_v42 = vld [vmem:[#allocation2 + $0x234] sm:$0xf0]  ;;  %v1847_v45 = vor.u32 %v2181_v34, %v1846_v33  ;;  %v1902_v47 = vld [vmem:[#allocation2 + $0x320] sm:$0xf]  ;;  %v2440_v56 = vor.u32 %v2086_v37, %v1476_v38 }
  0x35   :  { %1132 = vmatpush.bf16.msrb.mxu1 %v1871_v0  ;;  %v1974_v43 = vld [vmem:[#allocation2 + $0x3b0] sm:$0xf]  ;;  %v2213_v46 = vld [vmem:[#allocation2 + $0x3b4] sm:$0xf0]  ;;  %v2195_v49 = vld [vmem:[#allocation2 + $0x324] sm:$0xf0]  ;;  %v1783_v58 = vor.u32 %v2165_v42, %v1782_v41 }
  0x36   :  { %1151 = vmatpush.bf16.msrb.mxu2 %v1935_v60  ;;  %v1838_v52 = vld [vmem:[#allocation2 + $0x2a0] sm:$0xf]  ;;  %v2179_v55 = vld [vmem:[#allocation2 + $0x2a4] sm:$0xf0]  ;;  %v1975_v59 = vor.u32 %v2213_v46, %v1974_v43  ;;  %v1903_v60 = vor.u32 %v2195_v49, %v1902_v47  ;;  %v1894_v2 = vld [vmem:[#allocation2 + $0x310] sm:$0xf] }
  0x37   :  { %1170 = vmatpush.bf16.msrb.mxu3 %v1999_v7  ;;  %v1774_v61 = vld [vmem:[#allocation2 + $0x220] sm:$0xf]  ;;  %v2163_v62 = vld [vmem:[#allocation2 + $0x224] sm:$0xf0]  ;;  %v1839_v0 = vor.u32 %v2179_v55, %v1838_v52  ;;  %v2193_v3 = vld [vmem:[#allocation2 + $0x314] sm:$0xf0] }
  0x38   :  { %1114 = vmatpush.bf16.msrb.mxu0 %v1799_v18  ;;  %v1966_v63 = vld [vmem:[#allocation2 + $0x3a0] sm:$0xf]  ;;  %v2211_v1 = vld [vmem:[#allocation2 + $0x3a4] sm:$0xf0]  ;;  %v1830_v4 = vld [vmem:[#allocation2 + $0x290] sm:$0xf]  ;;  %v1775_v6 = vor.u32 %v2163_v62, %v1774_v61  ;;  %v1895_v9 = vor.u32 %v2193_v3, %v1894_v2 }
  0x39   :  { %1133 = vmatpush.bf16.msrb.mxu1 %v1863_v12  ;;  %v2177_v5 = vld [vmem:[#allocation2 + $0x294] sm:$0xf0]  ;;  %v1766_v7 = vld [vmem:[#allocation2 + $0x210] sm:$0xf]  ;;  %v1886_v14 = vld [vmem:[#allocation2 + $0x300] sm:$0xf] }
  0x3a   :  { %1152 = vmatpush.bf16.msrb.mxu2 %v1927_v8  ;;  %v1967_v8 = vor.u32 %v2211_v1, %v1966_v63  ;;  %v2161_v10 = vld [vmem:[#allocation2 + $0x214] sm:$0xf0]  ;;  %v1958_v11 = vld [vmem:[#allocation2 + $0x390] sm:$0xf]  ;;  %v1831_v13 = vor.u32 %v2177_v5, %v1830_v4  ;;  %v2191_v15 = vld [vmem:[#allocation2 + $0x304] sm:$0xf0] }
  0x3b   :  { %1171 = vmatpush.bf16.msrb.mxu3 %v1991_v22  ;;  %v2209_v12 = vld [vmem:[#allocation2 + $0x394] sm:$0xf0]  ;;  %v1822_v16 = vld [vmem:[#allocation2 + $0x280] sm:$0xf]  ;;  %v2175_v17 = vld [vmem:[#allocation2 + $0x284] sm:$0xf0]  ;;  %v1767_v20 = vor.u32 %v2161_v10, %v1766_v7  ;;  %v1887_v25 = vor.u32 %v2191_v15, %v1886_v14 }
  0x3c   :  { %1115 = vmatpush.bf16.msrb.mxu0 %v1791_v35  ;;  %v2124_v18 = vld [vmem:[#allocation2 + $0xf4] sm:$0xf]  ;;  %v1624_v19 = vld [vmem:[#allocation2 + $0xf8] sm:$0xf0]  ;;  %v1758_v21 = vld [vmem:[#allocation2 + $0x200] sm:$0xf]  ;;  %v1959_v24 = vor.u32 %v2209_v12, %v1958_v11  ;;  %v1823_v29 = vor.u32 %v2175_v17, %v1822_v16 }
  0x3d   :  { %1134 = vmatpush.bf16.msrb.mxu1 %v1855_v27  ;;  %v2108_v22 = vld [vmem:[#allocation2 + $0x74] sm:$0xf]  ;;  %v2159_v26 = vld [vmem:[#allocation2 + $0x204] sm:$0xf0]  ;;  %v1950_v27 = vld [vmem:[#allocation2 + $0x380] sm:$0xf]  ;;  %v1627_v34 = vor.u32 %v2124_v18, %v1624_v19 }
  0x3e   :  { %1153 = vmatpush.bf16.msrb.mxu2 %v1919_v23  ;;  %v1560_v23 = vld [vmem:[#allocation2 + $0x78] sm:$0xf0]  ;;  %v2207_v28 = vld [vmem:[#allocation2 + $0x384] sm:$0xf0]  ;;  %v1446_v30 = vld [vmem:[%s2578_s0 + $0x10] sm:$0xf]  ;;  %v1759_v42 = vor.u32 %v2159_v26, %v1758_v21 }
  0x3f   :  { %1172 = vmatpush.bf16.msrb.mxu3 %v1983_v39  ;;  %1049 = vmatmul.bf16.gmra.mxu0 %v2434_v44  ;;  %v2082_v31 = vld [vmem:[%s2578_s0 + $0x30] sm:$0xf0]  ;;  %v1448_v33 = vld [vmem:[%s2578_s0 + $0x34] sm:$0xf0]  ;;  %v2070_v35 = vld [vmem:[#allocation2 + $0x470] sm:$0xf]  ;;  %v1563_v38 = vor.u32 %v2108_v22, %v1560_v23  ;;  %v1951_v47 = vor.u32 %v2207_v28, %v1950_v27 }
  0x40   :  { %1068 = vmatmul.bf16.gmra.mxu1 %v2436_v50  ;;  %1116 = vmatpush.bf16.msrb.mxu0 %v1783_v58  ;;  %v2078_v32 = vld [vmem:[%s2578_s0 + $0x14] sm:$0xf]  ;;  %v2237_v36 = vld [vmem:[#allocation2 + $0x474] sm:$0xf0]  ;;  %v1688_v39 = vld [vmem:[#allocation2 + $0x178] sm:$0xf0] }
  0x41   :  { %1135 = vmatpush.bf16.msrb.mxu1 %v1847_v45  ;;  %1087 = vmatmul.bf16.gmra.mxu2 %v2438_v51  ;;  %v2140_v37 = vld [vmem:[#allocation2 + $0x174] sm:$0xf]  ;;  %v1616_v41 = vld [vmem:[#allocation2 + $0xe8] sm:$0xf0]  ;;  %v1454_v43 = vld [vmem:[%s2578_s0 + $0x18] sm:$0xf]  ;;  %v2071_v52 = vor.u32 %v2237_v36, %v2070_v35  ;;  %v2472_v1 = vor.u32 %v2078_v32, %v1448_v33 }
  0x42   :  { %1154 = vmatpush.bf16.msrb.mxu2 %v1911_v40  ;;  %1106 = vmatmul.bf16.gmra.mxu3 %v2440_v56  ;;  %v2122_v40 = vld [vmem:[#allocation2 + $0xe4] sm:$0xf]  ;;  %v2083_v45 = vld [vmem:[%s2578_s0 + $0x38] sm:$0xf0]  ;;  %v1456_v49 = vld [vmem:[%s2578_s0 + $0x3c] sm:$0xf0] }
  0x43   :  { %1173 = vmatpush.bf16.msrb.mxu3 %v1975_v59  ;;  %v2079_v46 = vld [vmem:[%s2578_s0 + $0x1c] sm:$0xf]  ;;  %v2062_v55 = vld [vmem:[#allocation2 + $0x460] sm:$0xf]  ;;  %v2235_v58 = vld [vmem:[#allocation2 + $0x464] sm:$0xf0]  ;;  %v1691_v59 = vor.u32 %v2140_v37, %v1688_v39  ;;  %v2474_v5 = vor.u32 %v2083_v45, %v1454_v43 }
  0x44   :  { %1117 = vmatpush.bf16.msrb.mxu0 %v1775_v6  ;;  %v2106_v61 = vld [vmem:[#allocation2 + $0x64] sm:$0xf]  ;;  %v1552_v62 = vld [vmem:[#allocation2 + $0x68] sm:$0xf0]  ;;  %v2120_v3 = vld [vmem:[#allocation2 + $0xd4] sm:$0xf]  ;;  %v2476_v6 = vor.u32 %v2079_v46, %v1456_v49  ;;  %v2063_v7 = vor.u32 %v2235_v58, %v2062_v55 }
  0x45   :  { %1136 = vmatpush.bf16.msrb.mxu1 %v1839_v0  ;;  %v2138_v63 = vld [vmem:[#allocation2 + $0x164] sm:$0xf]  ;;  %v2470_v0 = vor.u32 %v2082_v31, %v1446_v30  ;;  %v1680_v2 = vld [vmem:[#allocation2 + $0x168] sm:$0xf0]  ;;  %v1608_v4 = vld [vmem:[#allocation2 + $0xd8] sm:$0xf0] }
  0x46   :  { %1155 = vmatpush.bf16.msrb.mxu2 %v1903_v60  ;;  %v1619_v60 = vor.u32 %v2122_v40, %v1616_v41  ;;  %v2233_v10 = vld [vmem:[#allocation2 + $0x454] sm:$0xf0]  ;;  %v1683_v11 = vor.u32 %v2138_v63, %v1680_v2  ;;  %v1611_v12 = vor.u32 %v2120_v3, %v1608_v4  ;;  %v1544_v14 = vld [vmem:[#allocation2 + $0x58] sm:$0xf0]  ;;  %v2136_v15 = vld [vmem:[#allocation2 + $0x154] sm:$0xf] }
  0x47   :  { %1174 = vmatpush.bf16.msrb.mxu3 %v1967_v8  ;;  %v1555_v8 = vor.u32 %v2106_v61, %v1552_v62  ;;  %v1672_v16 = vld [vmem:[#allocation2 + $0x158] sm:$0xf0]  ;;  %v2118_v17 = vld [vmem:[#allocation2 + $0xc4] sm:$0xf]  ;;  %v1600_v18 = vld [vmem:[#allocation2 + $0xc8] sm:$0xf0] }
  0x48   :  { %1118 = vmatpush.bf16.msrb.mxu0 %v1767_v20  ;;  %v2046_v21 = vld [vmem:[#allocation2 + $0x440] sm:$0xf]  ;;  %v2231_v22 = vld [vmem:[#allocation2 + $0x444] sm:$0xf0]  ;;  %v1675_v23 = vor.u32 %v2136_v15, %v1672_v16  ;;  %v1536_v26 = vld [vmem:[#allocation2 + $0x48] sm:$0xf0] }
  0x49   :  { %1137 = vmatpush.bf16.msrb.mxu1 %v1831_v13  ;;  %v2104_v13 = vld [vmem:[#allocation2 + $0x54] sm:$0xf]  ;;  %v2134_v27 = vld [vmem:[#allocation2 + $0x144] sm:$0xf]  ;;  %v1664_v28 = vld [vmem:[#allocation2 + $0x148] sm:$0xf0]  ;;  %v2047_v31 = vor.u32 %v2231_v22, %v2046_v21 }
  0x4a   :  { %1156 = vmatpush.bf16.msrb.mxu2 %v1895_v9  ;;  %v2054_v9 = vld [vmem:[#allocation2 + $0x450] sm:$0xf]  ;;  %v1547_v20 = vor.u32 %v2104_v13, %v1544_v14  ;;  %v1592_v30 = vld [vmem:[#allocation2 + $0xb8] sm:$0xf0]  ;;  %v1667_v35 = vor.u32 %v2134_v27, %v1664_v28  ;;  %v1482_v36 = vld [vmem:[%s2578_s0 + $0x58] sm:$0xf] }
  0x4b   :  { %1175 = vmatpush.bf16.msrb.mxu3 %v1959_v24  ;;  %v2055_v19 = vor.u32 %v2233_v10, %v2054_v9  ;;  %v1603_v24 = vor.u32 %v2118_v17, %v1600_v18  ;;  %v2038_v33 = vld [vmem:[#allocation2 + $0x430] sm:$0xf]  ;;  %v2091_v37 = vld [vmem:[%s2578_s0 + $0x78] sm:$0xf0]  ;;  %v1484_v39 = vld [vmem:[%s2578_s0 + $0x7c] sm:$0xf0] }
  0x4c   :  { %1119 = vmatpush.bf16.msrb.mxu0 %v1759_v42  ;;  %v2100_v41 = vld [vmem:[#allocation2 + $0x34] sm:$0xf]  ;;  %v1528_v42 = vld [vmem:[#allocation2 + $0x38] sm:$0xf0]  ;;  %v2114_v46 = vld [vmem:[#allocation2 + $0xa4] sm:$0xf] }
  0x4d   :  { %1138 = vmatpush.bf16.msrb.mxu1 %v1823_v29  ;;  %v2116_v29 = vld [vmem:[#allocation2 + $0xb4] sm:$0xf]  ;;  %v1656_v45 = vld [vmem:[#allocation2 + $0x138] sm:$0xf0]  ;;  %v1490_v49 = vld [vmem:[%s2578_s0 + $0x60] sm:$0xf] }
  0x4e   :  { %1157 = vmatpush.bf16.msrb.mxu2 %v1887_v25  ;;  %v2102_v25 = vld [vmem:[#allocation2 + $0x44] sm:$0xf]  ;;  %v1595_v40 = vor.u32 %v2116_v29, %v1592_v30  ;;  %v2132_v43 = vld [vmem:[#allocation2 + $0x134] sm:$0xf]  ;;  %v1492_v58 = vld [vmem:[%s2578_s0 + $0x84] sm:$0xf0] }
  0x4f   :  { %1176 = vmatpush.bf16.msrb.mxu3 %v1951_v47  ;;  %1120 = vmatmul.bf16.vlgmr.msrb.gmra.mxu0 %v2470_v0  ;;  %v1539_v32 = vor.u32 %v2102_v25, %v1536_v26  ;;  %v1584_v47 = vld [vmem:[#allocation2 + $0xa8] sm:$0xf0]  ;;  %v2088_v55 = vld [vmem:[%s2578_s0 + $0x64] sm:$0xf]  ;;  %v2030_v61 = vld [vmem:[#allocation2 + $0x420] sm:$0xf]  ;;  %v1659_v63 = vor.u32 %v2132_v43, %v1656_v45 }
  0x50   :  { %1188 = vmatpush.bf16.msra.mxu0 %v2071_v52  ;;  %1139 = vmatmul.bf16.vlgmr.msrb.gmra.mxu1 %v2472_v1  ;;  %v2092_v52 = vld [vmem:[%s2578_s0 + $0x80] sm:$0xf0]  ;;  %v2227_v62 = vld [vmem:[#allocation2 + $0x424] sm:$0xf0]  ;;  %v1587_v2 = vor.u32 %v2114_v46, %v1584_v47  ;;  %v1520_v4 = vld [vmem:[#allocation2 + $0x28] sm:$0xf0]  ;;  %v2512_v14 = vor.u32 %v2088_v55, %v1492_v58 }
  0x51   :  { %1207 = vmatpush.bf16.msra.mxu1 %v1563_v38  ;;  %1158 = vmatmul.bf16.vlgmr.msrb.gmra.mxu2 %v2474_v5  ;;  %v2087_v38 = vld [vmem:[%s2578_s0 + $0x5c] sm:$0xf]  ;;  %v2098_v3 = vld [vmem:[#allocation2 + $0x24] sm:$0xf]  ;;  %v1648_v10 = vld [vmem:[#allocation2 + $0x128] sm:$0xf0]  ;;  %v2510_v13 = vor.u32 %v2092_v52, %v1490_v49  ;;  %v2031_v15 = vor.u32 %v2227_v62, %v2030_v61 }
  0x52   :  { %1226 = vmatpush.bf16.msra.mxu2 %v1627_v34  ;;  %1177 = vmatmul.bf16.vlgmr.msrb.gmra.mxu3 %v2476_v6  ;;  %v2229_v34 = vld [vmem:[#allocation2 + $0x434] sm:$0xf0]  ;;  %v2508_v9 = vor.u32 %v2087_v38, %v1484_v39  ;;  %v1523_v16 = vor.u32 %v2098_v3, %v1520_v4  ;;  %v2022_v17 = vld [vmem:[#allocation2 + $0x410] sm:$0xf]  ;;  %v2096_v21 = vld [vmem:[#allocation2 + $0x14] sm:$0xf] }
  0x53   :  { %1245 = vmatpush.bf16.msra.mxu3 %v1691_v59  ;;  %v2039_v59 = vor.u32 %v2229_v34, %v2038_v33  ;;  %v2225_v18 = vld [vmem:[#allocation2 + $0x414] sm:$0xf0]  ;;  %v1512_v22 = vld [vmem:[#allocation2 + $0x18] sm:$0xf0]  ;;  %v2110_v25 = vld [vmem:[#allocation2 + $0x84] sm:$0xf] }
  0x54   :  { %1189 = vmatpush.bf16.msra.mxu0 %v2063_v7  ;;  %v2130_v7 = vld [vmem:[#allocation2 + $0x124] sm:$0xf]  ;;  %v1568_v26 = vld [vmem:[#allocation2 + $0x88] sm:$0xf0]  ;;  %v2188_v27 = vld [vmem:[#allocation2 + $0x2f4] sm:$0xf]  ;;  %v2023_v29 = vor.u32 %v2225_v18, %v2022_v17  ;;  %v1515_v30 = vor.u32 %v2096_v21, %v1512_v22 }
  0x55   :  { %1208 = vmatpush.bf16.msra.mxu1 %v1555_v8  ;;  %v2506_v8 = vor.u32 %v2091_v37, %v1482_v36  ;;  %v1880_v28 = vld [vmem:[#allocation2 + $0x2f8] sm:$0xf0]  ;;  %v2094_v33 = vld [vmem:[#allocation2 + $0x4] sm:$0xf]  ;;  %v1504_v36 = vld [vmem:[#allocation2 + $0x8] sm:$0xf0] }
  0x56   :  { %1227 = vmatpush.bf16.msra.mxu2 %v1619_v60  ;;  %v1531_v60 = vor.u32 %v2100_v41, %v1528_v42  ;;  %v2126_v37 = vld [vmem:[#allocation2 + $0x104] sm:$0xf]  ;;  %v1632_v38 = vld [vmem:[#allocation2 + $0x108] sm:$0xf0]  ;;  %v1883_v39 = vor.u32 %v2188_v27, %v1880_v28  ;;  %v1752_v41 = vld [vmem:[#allocation2 + $0x1f8] sm:$0xf0]  ;;  %v1507_v49 = vor.u32 %v2094_v33, %v1504_v36 }
  0x57   :  { %1246 = vmatpush.bf16.msra.mxu3 %v1683_v11  ;;  %v2112_v11 = vld [vmem:[#allocation2 + $0x94] sm:$0xf]  ;;  %v1816_v43 = vld [vmem:[#allocation2 + $0x278] sm:$0xf0]  ;;  %v2186_v52 = vld [vmem:[#allocation2 + $0x2e4] sm:$0xf]  ;;  %v1635_v58 = vor.u32 %v2126_v37, %v1632_v38 }
  0x58   :  { %1190 = vmatpush.bf16.msra.mxu0 %v2055_v19  ;;  %v1651_v19 = vor.u32 %v2130_v7, %v1648_v10  ;;  %v2172_v42 = vld [vmem:[#allocation2 + $0x274] sm:$0xf]  ;;  %v1944_v46 = vld [vmem:[#allocation2 + $0x378] sm:$0xf0]  ;;  %v1872_v55 = vld [vmem:[#allocation2 + $0x2e8] sm:$0xf0] }
  0x59   :  { %1209 = vmatpush.bf16.msra.mxu1 %v1547_v20  ;;  %v2204_v45 = vld [vmem:[#allocation2 + $0x374] sm:$0xf]  ;;  %v2154_v62 = vld [vmem:[#allocation2 + $0x1e4] sm:$0xf]  ;;  %v1875_v4 = vor.u32 %v2186_v52, %v1872_v55  ;;  %v1808_v10 = vld [vmem:[#allocation2 + $0x268] sm:$0xf0] }
  0x5a   :  { %1228 = vmatpush.bf16.msra.mxu2 %v1611_v12  ;;  %v1576_v12 = vld [vmem:[#allocation2 + $0x98] sm:$0xf0]  ;;  %v1947_v61 = vor.u32 %v2204_v45, %v1944_v46  ;;  %v2084_v3 = vld [vmem:[%s2578_s0 + $0x40] sm:$0xf0]  ;;  %v2200_v27 = vld [vmem:[#allocation2 + $0x354] sm:$0xf] }
  0x5b   :  { %1247 = vmatpush.bf16.msra.mxu3 %v1675_v23  ;;  %v1579_v20 = vor.u32 %v2112_v11, %v1576_v12  ;;  %v2128_v23 = vld [vmem:[#allocation2 + $0x114] sm:$0xf]  ;;  %v2170_v7 = vld [vmem:[#allocation2 + $0x264] sm:$0xf]  ;;  %v1864_v18 = vld [vmem:[#allocation2 + $0x2d8] sm:$0xf0] }
  0x5c   :  { %1191 = vmatpush.bf16.msra.mxu0 %v2047_v31  ;;  %v2014_v31 = vld [vmem:[#allocation2 + $0x400] sm:$0xf]  ;;  %v2202_v12 = vld [vmem:[#allocation2 + $0x364] sm:$0xf]  ;;  %v1811_v21 = vor.u32 %v2170_v7, %v1808_v10  ;;  %v1928_v28 = vld [vmem:[#allocation2 + $0x358] sm:$0xf0] }
  0x5d   :  { %1210 = vmatpush.bf16.msra.mxu1 %v1539_v32  ;;  %v2223_v32 = vld [vmem:[#allocation2 + $0x404] sm:$0xf0]  ;;  %v1792_v36 = vld [vmem:[#allocation2 + $0x248] sm:$0xf0]  ;;  %v2164_v45 = vld [vmem:[#allocation2 + $0x234] sm:$0xf] }
  0x5e   :  { %1229 = vmatpush.bf16.msra.mxu2 %v1603_v24  ;;  %v1640_v24 = vld [vmem:[#allocation2 + $0x118] sm:$0xf0]  ;;  %v2015_v47 = vor.u32 %v2223_v32, %v2014_v31  ;;  %v2150_v31 = vld [vmem:[#allocation2 + $0x1c4] sm:$0xf]  ;;  %v1728_v32 = vld [vmem:[#allocation2 + $0x1c8] sm:$0xf0] }
  0x5f   :  { %1248 = vmatpush.bf16.msra.mxu3 %v1667_v35  ;;  %1125 = vmatmul.bf16.gmra.mxu0 %v2506_v8  ;;  %v1643_v34 = vor.u32 %v2128_v23, %v1640_v24  ;;  %v1571_v35 = vor.u32 %v2110_v25, %v1568_v26  ;;  %v2168_v23 = vld [vmem:[#allocation2 + $0x254] sm:$0xf]  ;;  %v1800_v24 = vld [vmem:[#allocation2 + $0x258] sm:$0xf0]  ;;  %v1731_v38 = vor.u32 %v2150_v31, %v1728_v32  ;;  %v1776_v7 = vld [vmem:[#allocation2 + $0x228] sm:$0xf0] }
  0x60   :  { %1192 = vmatpush.bf16.msra.mxu0 %v2039_v59  ;;  %1144 = vmatmul.bf16.gmra.mxu1 %v2508_v9  ;;  %v1803_v33 = vor.u32 %v2168_v23, %v1800_v24  ;;  %v1784_v46 = vld [vmem:[#allocation2 + $0x238] sm:$0xf0]  ;;  %v2196_v52 = vld [vmem:[#allocation2 + $0x334] sm:$0xf]  ;;  %v1824_v31 = vld [vmem:[#allocation2 + $0x288] sm:$0xf0] }
  0x61   :  { %1211 = vmatpush.bf16.msra.mxu1 %v1531_v60  ;;  %1163 = vmatmul.bf16.gmra.mxu2 %v2510_v13  ;;  %v1819_v60 = vor.u32 %v2172_v42, %v1816_v43  ;;  %v2148_v42 = vld [vmem:[#allocation2 + $0x1b4] sm:$0xf]  ;;  %v1720_v43 = vld [vmem:[#allocation2 + $0x1b8] sm:$0xf0]  ;;  %v2142_v32 = vld [vmem:[#allocation2 + $0x184] sm:$0xf] }
  0x62   :  { %1230 = vmatpush.bf16.msra.mxu2 %v1595_v40  ;;  %1182 = vmatmul.bf16.gmra.mxu3 %v2512_v14  ;;  %v2156_v40 = vld [vmem:[#allocation2 + $0x1f4] sm:$0xf]  ;;  %v1912_v55 = vld [vmem:[#allocation2 + $0x338] sm:$0xf0] }
  0x63   :  { %1249 = vmatpush.bf16.msra.mxu3 %v1659_v63  ;;  %v1755_v59 = vor.u32 %v2156_v40, %v1752_v41  ;;  %v1744_v63 = vld [vmem:[#allocation2 + $0x1e8] sm:$0xf0]  ;;  %v1848_v41 = vld [vmem:[#allocation2 + $0x2b8] sm:$0xf0]  ;;  %v2160_v24 = vld [vmem:[#allocation2 + $0x214] sm:$0xf] }
  0x64   :  { %1193 = vmatpush.bf16.msra.mxu0 %v2031_v15  ;;  %v1747_v11 = vor.u32 %v2154_v62, %v1744_v63  ;;  %v1936_v15 = vld [vmem:[#allocation2 + $0x368] sm:$0xf0]  ;;  %v1498_v62 = vld [vmem:[%s2578_s0 + $0x68] sm:$0xf] }
  0x65   :  { %1212 = vmatpush.bf16.msra.mxu1 %v1523_v16  ;;  %v2184_v16 = vld [vmem:[#allocation2 + $0x2d4] sm:$0xf]  ;;  %v1939_v22 = vor.u32 %v2202_v12, %v1936_v15  ;;  %v1920_v40 = vld [vmem:[#allocation2 + $0x348] sm:$0xf0]  ;;  %v2194_v12 = vld [vmem:[#allocation2 + $0x324] sm:$0xf] }
  0x66   :  { %1231 = vmatpush.bf16.msra.mxu2 %v1587_v2  ;;  %v1462_v2 = vld [vmem:[%s2578_s0 + $0x20] sm:$0xf]  ;;  %v1867_v25 = vor.u32 %v2184_v16, %v1864_v18  ;;  %v2093_v63 = vld [vmem:[%s2578_s0 + $0x88] sm:$0xf0]  ;;  %v2176_v16 = vld [vmem:[#allocation2 + $0x294] sm:$0xf] }
  0x67   :  { %1250 = vmatpush.bf16.msra.mxu3 %v1651_v19  ;;  %v2524_v17 = vor.u32 %v2084_v3, %v1462_v2  ;;  %v2152_v19 = vld [vmem:[#allocation2 + $0x1d4] sm:$0xf]  ;;  %v1787_v2 = vor.u32 %v2164_v45, %v1784_v46  ;;  %v1915_v3 = vor.u32 %v2196_v52, %v1912_v55  ;;  %v1904_v15 = vld [vmem:[#allocation2 + $0x328] sm:$0xf0]  ;;  %v2536_v18 = vor.u32 %v2093_v63, %v1498_v62 }
  0x68   :  { %1194 = vmatpush.bf16.msra.mxu0 %v2023_v29  ;;  %v2182_v29 = vld [vmem:[#allocation2 + $0x2c4] sm:$0xf]  ;;  %v1907_v23 = vor.u32 %v2194_v12, %v1904_v15  ;;  %v2064_v52 = vld [vmem:[#allocation2 + $0x468] sm:$0xf0]  ;;  %v2212_v12 = vld [vmem:[#allocation2 + $0x3b4] sm:$0xf] }
  0x69   :  { %1213 = vmatpush.bf16.msra.mxu1 %v1515_v30  ;;  %v1856_v30 = vld [vmem:[#allocation2 + $0x2c8] sm:$0xf0]  ;;  %v1976_v15 = vld [vmem:[#allocation2 + $0x3b8] sm:$0xf0] }
  0x6a   :  { %1232 = vmatpush.bf16.msra.mxu2 %v1579_v20  ;;  %v1736_v20 = vld [vmem:[#allocation2 + $0x1d8] sm:$0xf0]  ;;  %v1859_v37 = vor.u32 %v2182_v29, %v1856_v30  ;;  %v2174_v30 = vld [vmem:[#allocation2 + $0x284] sm:$0xf] }
  0x6b   :  { %1251 = vmatpush.bf16.msra.mxu3 %v1643_v34  ;;  %v1739_v26 = vor.u32 %v2152_v19, %v1736_v20  ;;  %v1931_v34 = vor.u32 %v2200_v27, %v1928_v28  ;;  %v1832_v19 = vld [vmem:[#allocation2 + $0x298] sm:$0xf0]  ;;  %v2144_v20 = vld [vmem:[#allocation2 + $0x194] sm:$0xf] }
  0x6c   :  { %1195 = vmatpush.bf16.msra.mxu0 %v2015_v47  ;;  %v2192_v28 = vld [vmem:[#allocation2 + $0x314] sm:$0xf]  ;;  %v1896_v29 = vld [vmem:[#allocation2 + $0x318] sm:$0xf0] }
  0x6d   :  { %1214 = vmatpush.bf16.msra.mxu1 %v1507_v49  ;;  %v1723_v49 = vor.u32 %v2148_v42, %v1720_v43  ;;  %v2236_v43 = vld [vmem:[#allocation2 + $0x474] sm:$0xf] }
  0x6e   :  { %1233 = vmatpush.bf16.msra.mxu2 %v1571_v35  ;;  %v2166_v35 = vld [vmem:[#allocation2 + $0x244] sm:$0xf] }
  0x6f   :  { %1252 = vmatpush.bf16.msra.mxu3 %v1635_v58  ;;  %1196 = vmatmul.bf16.vlgmr.msra.gmra.mxu0 %v2524_v17  ;;  %v2178_v58 = vld [vmem:[#allocation2 + $0x2a4] sm:$0xf] }
  0x70   :  { %1264 = vmatpush.bf16.msrb.mxu0 %v1755_v59  ;;  %1215 = vmatmul.bf16.vlgmr.msra.gmra.mxu1 %v2398_v48  ;;  %v2180_v48 = vld [vmem:[#allocation2 + $0x2b4] sm:$0xf]  ;;  %v1840_v59 = vld [vmem:[#allocation2 + $0x2a8] sm:$0xf0] }
  0x71   :  { %1283 = vmatpush.bf16.msrb.mxu1 %v1819_v60  ;;  %1234 = vmatmul.bf16.vlgmr.msra.gmra.mxu2 %v2400_v53  ;;  %v1795_v53 = vor.u32 %v2166_v35, %v1792_v36  ;;  %v1851_v47 = vor.u32 %v2180_v48, %v1848_v41  ;;  %v2146_v60 = vld [vmem:[#allocation2 + $0x1a4] sm:$0xf]  ;;  %v1843_v10 = vor.u32 %v2178_v58, %v1840_v59  ;;  %v2008_v35 = vld [vmem:[#allocation2 + $0x3f8] sm:$0xf0]  ;;  %v1760_v48 = vld [vmem:[#allocation2 + $0x208] sm:$0xf0] }
  0x72   :  { %1302 = vmatpush.bf16.msrb.mxu2 %v1883_v39  ;;  %1253 = vmatmul.bf16.vlgmr.msra.gmra.mxu3 %v2402_v54  ;;  %v2198_v39 = vld [vmem:[#allocation2 + $0x344] sm:$0xf]  ;;  %v1888_v41 = vld [vmem:[#allocation2 + $0x308] sm:$0xf0]  ;;  %v2216_v58 = vld [vmem:[#allocation2 + $0x3d4] sm:$0xf] }
  0x73   :  { %1321 = vmatpush.bf16.msrb.mxu3 %v1947_v61  ;;  %v1923_v54 = vor.u32 %v2198_v39, %v1920_v40  ;;  %v1712_v61 = vld [vmem:[#allocation2 + $0x1a8] sm:$0xf0]  ;;  %v1827_v39 = vor.u32 %v2174_v30, %v1824_v31  ;;  %v1992_v59 = vld [vmem:[#allocation2 + $0x3d8] sm:$0xf0]  ;;  %v2206_v30 = vld [vmem:[#allocation2 + $0x384] sm:$0xf] }
  0x74   :  { %1265 = vmatpush.bf16.msrb.mxu0 %v1747_v11  ;;  %v1715_v11 = vor.u32 %v2146_v60, %v1712_v61  ;;  %v2232_v60 = vld [vmem:[#allocation2 + $0x454] sm:$0xf]  ;;  %v2056_v61 = vld [vmem:[#allocation2 + $0x458] sm:$0xf0]  ;;  %v1995_v62 = vor.u32 %v2216_v58, %v1992_v59  ;;  %v1952_v31 = vld [vmem:[#allocation2 + $0x388] sm:$0xf0] }
  0x75   :  { %1284 = vmatpush.bf16.msrb.mxu1 %v1811_v21  ;;  %v1704_v21 = vld [vmem:[#allocation2 + $0x198] sm:$0xf0]  ;;  %v2059_v63 = vor.u32 %v2232_v60, %v2056_v61 }
  0x76   :  { %1303 = vmatpush.bf16.msrb.mxu2 %v1875_v4  ;;  %v2162_v4 = vld [vmem:[#allocation2 + $0x224] sm:$0xf]  ;;  %v1707_v27 = vor.u32 %v2144_v20, %v1704_v21 }
  0x77   :  { %1322 = vmatpush.bf16.msrb.mxu3 %v1939_v22  ;;  %v1779_v22 = vor.u32 %v2162_v4, %v1776_v7  ;;  %v2230_v4 = vld [vmem:[#allocation2 + $0x444] sm:$0xf]  ;;  %v2048_v7 = vld [vmem:[#allocation2 + $0x448] sm:$0xf0] }
  0x78   :  { %1266 = vmatpush.bf16.msrb.mxu0 %v1739_v26  ;;  %v1835_v26 = vor.u32 %v2176_v16, %v1832_v19  ;;  %v2228_v16 = vld [vmem:[#allocation2 + $0x434] sm:$0xf]  ;;  %v2040_v19 = vld [vmem:[#allocation2 + $0x438] sm:$0xf0]  ;;  %v2210_v20 = vld [vmem:[#allocation2 + $0x3a4] sm:$0xf] }
  0x79   :  { %1285 = vmatpush.bf16.msrb.mxu1 %v1803_v33  ;;  %v1696_v33 = vld [vmem:[#allocation2 + $0x188] sm:$0xf0]  ;;  %v2226_v21 = vld [vmem:[#allocation2 + $0x424] sm:$0xf] }
  0x7a   :  { %1304 = vmatpush.bf16.msrb.mxu2 %v1867_v25  ;;  %v1768_v25 = vld [vmem:[#allocation2 + $0x218] sm:$0xf0]  ;;  %v1699_v40 = vor.u32 %v2142_v32, %v1696_v33  ;;  %v2222_v32 = vld [vmem:[#allocation2 + $0x404] sm:$0xf]  ;;  %v2016_v33 = vld [vmem:[#allocation2 + $0x408] sm:$0xf0] }
  0x7b   :  { %1323 = vmatpush.bf16.msrb.mxu3 %v1931_v34  ;;  %v2220_v34 = vld [vmem:[#allocation2 + $0x3f4] sm:$0xf]  ;;  %v1771_v36 = vor.u32 %v2160_v24, %v1768_v25  ;;  %v1960_v25 = vld [vmem:[#allocation2 + $0x398] sm:$0xf0] }
  0x7c   :  { %1267 = vmatpush.bf16.msrb.mxu0 %v1731_v38  ;;  %v2158_v38 = vld [vmem:[#allocation2 + $0x204] sm:$0xf]  ;;  %v2011_v42 = vor.u32 %v2220_v34, %v2008_v35  ;;  %v2208_v24 = vld [vmem:[#allocation2 + $0x394] sm:$0xf]  ;;  %v1955_v34 = vor.u32 %v2206_v30, %v1952_v31  ;;  %v2019_v35 = vor.u32 %v2222_v32, %v2016_v33 }
  0x7d   :  { %1286 = vmatpush.bf16.msrb.mxu1 %v1795_v53  ;;  %v2072_v53 = vld [vmem:[#allocation2 + $0x478] sm:$0xf0] }
  0x7e   :  { %1305 = vmatpush.bf16.msrb.mxu2 %v1859_v37  ;;  %v1899_v37 = vor.u32 %v2192_v28, %v1896_v29  ;;  %v2075_v46 = vor.u32 %v2236_v43, %v2072_v53  ;;  %v1963_v28 = vor.u32 %v2208_v24, %v1960_v25 }
  0x7f   :  { %1324 = vmatpush.bf16.msrb.mxu3 %v1923_v54  ;;  %1201 = vmatmul.bf16.gmra.mxu0 %v2536_v18  ;;  %v2000_v54 = vld [vmem:[#allocation2 + $0x3e8] sm:$0xf0] }
  0x80   :  { %1268 = vmatpush.bf16.msrb.mxu0 %v1723_v49  ;;  %1220 = vmatmul.bf16.gmra.mxu1 %v2434_v44  ;;  %v2190_v44 = vld [vmem:[#allocation2 + $0x304] sm:$0xf] }
  0x81   :  { %1287 = vmatpush.bf16.msrb.mxu1 %v1787_v2  ;;  %1239 = vmatmul.bf16.gmra.mxu2 %v2436_v50  ;;  %v2218_v50 = vld [vmem:[#allocation2 + $0x3e4] sm:$0xf]  ;;  %v1891_v45 = vor.u32 %v2190_v44, %v1888_v41 }
  0x82   :  { %1306 = vmatpush.bf16.msrb.mxu2 %v1851_v47  ;;  %1258 = vmatmul.bf16.gmra.mxu3 %v2438_v51  ;;  %v1763_v51 = vor.u32 %v2158_v38, %v1760_v48  ;;  %v2003_v47 = vor.u32 %v2218_v50, %v2000_v54  ;;  %v2234_v49 = vld [vmem:[#allocation2 + $0x464] sm:$0xf] }
  0x83   :  { %1325 = vmatpush.bf16.msrb.mxu3 %v1915_v3  ;;  %v2067_v55 = vor.u32 %v2234_v49, %v2064_v52  ;;  %v2214_v2 = vld [vmem:[#allocation2 + $0x3c4] sm:$0xf]  ;;  %v1984_v3 = vld [vmem:[#allocation2 + $0x3c8] sm:$0xf0] }
  0x84   :  { %1269 = vmatpush.bf16.msrb.mxu0 %v1715_v11  ;;  %v2051_v11 = vor.u32 %v2230_v4, %v2048_v7 }
  0x85   :  { %1288 = vmatpush.bf16.msrb.mxu1 %v1779_v22 }
  0x86   :  { %1307 = vmatpush.bf16.msrb.mxu2 %v1843_v10  ;;  %v1987_v10 = vor.u32 %v2214_v2, %v1984_v3 }
  0x87   :  { %1326 = vmatpush.bf16.msrb.mxu3 %v1907_v23 }
  0x88   :  { %1270 = vmatpush.bf16.msrb.mxu0 %v1707_v27  ;;  %v2024_v27 = vld [vmem:[#allocation2 + $0x418] sm:$0xf0] }
  0x89   :  { %1289 = vmatpush.bf16.msrb.mxu1 %v1771_v36 }
  0x8a   :  { %1308 = vmatpush.bf16.msrb.mxu2 %v1835_v26  ;;  %v2224_v26 = vld [vmem:[#allocation2 + $0x414] sm:$0xf] }
  0x8b   :  { %1327 = vmatpush.bf16.msrb.mxu3 %v1899_v37  ;;  %v2027_v29 = vor.u32 %v2224_v26, %v2024_v27 }
  0x8c   :  { %1271 = vmatpush.bf16.msrb.mxu0 %v1699_v40 }
  0x8d   :  { %1290 = vmatpush.bf16.msrb.mxu1 %v1763_v51 }
  0x8e   :  { %1309 = vmatpush.bf16.msrb.mxu2 %v1827_v39 }
  0x8f   :  { %1328 = vmatpush.bf16.msrb.mxu3 %v1891_v45  ;;  %1272 = vmatmul.bf16.vlgmr.msrb.gmra.mxu0 %v2404_v57  ;;  %v1979_v57 = vor.u32 %v2212_v12, %v1976_v15 }
  0x90   :  { %1340 = vmatpush.bf16.msra.mxu0 %v2011_v42  ;;  %1291 = vmatmul.bf16.vlgmr.msrb.gmra.mxu1 %v2470_v0  ;;  %v2043_v0 = vor.u32 %v2228_v16, %v2040_v19 }
  0x91   :  { %1359 = vmatpush.bf16.msra.mxu1 %v2075_v46  ;;  %1310 = vmatmul.bf16.vlgmr.msrb.gmra.mxu2 %v2472_v1  ;;  %v1968_v1 = vld [vmem:[#allocation2 + $0x3a8] sm:$0xf0] }
  0x92   :  { %2238 = vmatpush.bf16.msra.mxu2 %v2011_v42  ;;  %1329 = vmatmul.bf16.vlgmr.msrb.gmra.mxu3 %v2474_v5  ;;  %v2032_v5 = vld [vmem:[#allocation2 + $0x428] sm:$0xf0]  ;;  %v1971_v22 = vor.u32 %v2210_v20, %v1968_v1 }
  0x93   :  { %2246 = vmatpush.bf16.msra.mxu3 %v2075_v46  ;;  %v2035_v23 = vor.u32 %v2226_v21, %v2032_v5 }
  0x94   :  { %1341 = vmatpush.bf16.msra.mxu0 %v2003_v47 }
  0x95   :  { %1360 = vmatpush.bf16.msra.mxu1 %v2067_v55 }
  0x96   :  { %2239 = vmatpush.bf16.msra.mxu2 %v2003_v47 }
  0x97   :  { %2247 = vmatpush.bf16.msra.mxu3 %v2067_v55 }
  0x98   :  { %1342 = vmatpush.bf16.msra.mxu0 %v1995_v62 }
  0x99   :  { %1361 = vmatpush.bf16.msra.mxu1 %v2059_v63 }
  0x9a   :  { %2240 = vmatpush.bf16.msra.mxu2 %v1995_v62 }
  0x9b   :  { %2248 = vmatpush.bf16.msra.mxu3 %v2059_v63 }
  0x9c   :  { %1343 = vmatpush.bf16.msra.mxu0 %v1987_v10 }
  0x9d   :  { %1362 = vmatpush.bf16.msra.mxu1 %v2051_v11 }
  0x9e   :  { %2241 = vmatpush.bf16.msra.mxu2 %v1987_v10 }
  0x9f   :  { %2249 = vmatpush.bf16.msra.mxu3 %v2051_v11  ;;  %1277 = vmatmul.bf16.gmra.mxu0 %v2440_v56 }
  0xa0   :  { %1344 = vmatpush.bf16.msra.mxu0 %v1979_v57  ;;  %1296 = vmatmul.bf16.gmra.mxu1 %v2506_v8 }
  0xa1   :  { %1363 = vmatpush.bf16.msra.mxu1 %v2043_v0  ;;  %1315 = vmatmul.bf16.gmra.mxu2 %v2508_v9 }
  0xa2   :  { %2242 = vmatpush.bf16.msra.mxu2 %v1979_v57  ;;  %1334 = vmatmul.bf16.gmra.mxu3 %v2510_v13 }
  0xa3   :  { %2250 = vmatpush.bf16.msra.mxu3 %v2043_v0 }
  0xa4   :  { %1345 = vmatpush.bf16.msra.mxu0 %v1971_v22 }
  0xa5   :  { %1364 = vmatpush.bf16.msra.mxu1 %v2035_v23 }
  0xa6   :  { %2243 = vmatpush.bf16.msra.mxu2 %v1971_v22 }
  0xa7   :  { %2251 = vmatpush.bf16.msra.mxu3 %v2035_v23 }
  0xa8   :  { %1346 = vmatpush.bf16.msra.mxu0 %v1963_v28 }
  0xa9   :  { %1365 = vmatpush.bf16.msra.mxu1 %v2027_v29 }
  0xaa   :  { %2244 = vmatpush.bf16.msra.mxu2 %v1963_v28 }
  0xab   :  { %2252 = vmatpush.bf16.msra.mxu3 %v2027_v29 }
  0xac   :  { %1347 = vmatpush.bf16.msra.mxu0 %v1955_v34  ;;  %v1045_v36 = vpop.f32.mrf.mxu0 }
  0xad   :  { %1366 = vmatpush.bf16.msra.mxu1 %v2019_v35  ;;  %v1064_v56 = vpop.f32.mrf.mxu1 }
  0xae   :  { %2245 = vmatpush.bf16.msra.mxu2 %v1955_v34  ;;  %v1065_v37 = vadd.f32 %v1064_v56, %v1045_v36 }
  0xaf   :  { %2253 = vmatpush.bf16.msra.mxu3 %v2019_v35  ;;  %1348 = vmatmul.bf16.vlgmr.msra.gmra.mxu0 %v2476_v6 }
  0xb0   :  { %1367 = vmatmul.bf16.vlgmr.msra.gmra.mxu1 %v2524_v17 }
  0xb1   :  { %1353 = vmatmul.bf16.vlgmr.msra.gmra.mxu2 %v2512_v14 }
  0xb2   :  { %1372 = vmatmul.bf16.vlgmr.msra.gmra.mxu3 %v2536_v18 }
  0xb4   :  { %v1083_v8 = vpop.f32.mrf.mxu2  ;;  %v1047_v38 = vpop.f32.mrf.mxu0 }
  0xb5   :  { %v1084_v9 = vadd.f32 %v1083_v8, %v1065_v37  ;;  %v1102_v13 = vpop.f32.mrf.mxu3  ;;  %v1066_v39 = vpop.f32.mrf.mxu1 }
  0xb6   :  { %v1067_v48 = vadd.f32 %v1066_v39, %v1047_v38 }
  0xb7   :  { %v1103_v40 = vadd.f32 %v1102_v13, %v1084_v9 }
  0xbc   :  { %v1085_v44 = vpop.f32.mrf.mxu2  ;;  %v1050_v43 = vpop.f32.mrf.mxu0 }
  0xbd   :  { %v1086_v41 = vadd.f32 %v1085_v44, %v1067_v48  ;;  %v1104_v42 = vpop.f32.mrf.mxu3  ;;  %v1069_v53 = vpop.f32.mrf.mxu1 }
  0xbe   :  { %v1070_v6 = vadd.f32 %v1069_v53, %v1050_v43 }
  0xbf   :  { %v1105_v50 = vadd.f32 %v1104_v42, %v1086_v41 }
  0xc4   :  { %v1088_v54 = vpop.f32.mrf.mxu2  ;;  %v1052_v14 = vpop.f32.mrf.mxu0 }
  0xc5   :  { %v1089_v17 = vadd.f32 %v1088_v54, %v1070_v6  ;;  %v1107_v51 = vpop.f32.mrf.mxu3  ;;  %v1071_v45 = vpop.f32.mrf.mxu1 }
  0xc6   :  { %v1072_v46 = vadd.f32 %v1071_v45, %v1052_v14 }
  0xc7   :  { %v1108_v18 = vadd.f32 %v1107_v51, %v1089_v17 }
  0xcc   :  { %v1090_v47 = vpop.f32.mrf.mxu2  ;;  %v1121_v55 = vpop.f32.mrf.mxu0 }
  0xcd   :  { %v1091_v49 = vadd.f32 %v1090_v47, %v1072_v46  ;;  %v1109_v52 = vpop.f32.mrf.mxu3  ;;  %v1140_v58 = vpop.f32.mrf.mxu1  ;;  %v1122_v60 = vadd.f32 %v1121_v55, %v1103_v40 }
  0xcf   :  { %v1110_v59 = vadd.f32 %v1109_v52, %v1091_v49  ;;  %v1141_v61 = vadd.f32 %v1140_v58, %v1122_v60 }
  0xd4   :  { %v1159_v62 = vpop.f32.mrf.mxu2  ;;  %v1123_v3 = vpop.f32.mrf.mxu0 }
  0xd5   :  { %v1178_v63 = vpop.f32.mrf.mxu3  ;;  %v1160_v2 = vadd.f32 %v1159_v62, %v1141_v61  ;;  %v1142_v4 = vpop.f32.mrf.mxu1  ;;  %v1124_v7 = vadd.f32 %v1123_v3, %v1105_v50 }
  0xd7   :  { %v1179_v10 = vadd.f32 %v1178_v63, %v1160_v2  ;;  %v1143_v11 = vadd.f32 %v1142_v4, %v1124_v7  ;;  %v1378_v2 = vld [vmem:[#allocation4] sm:$0x3] }
  0xdc   :  { %v1161_v12 = vpop.f32.mrf.mxu2  ;;  %v1126_v19 = vpop.f32.mrf.mxu0 }
  0xdd   :  { %v1180_v15 = vpop.f32.mrf.mxu3  ;;  %v1162_v16 = vadd.f32 %v1161_v12, %v1143_v11  ;;  %v1145_v57 = vpop.f32.mrf.mxu1  ;;  %v1127_v0 = vadd.f32 %v1126_v19, %v1108_v18  ;;  %v1380_v11 = vperm.slane %v1378_v2, 0  ;;  %v1392_v12 = vld [vmem:[#allocation6] sm:$0x3] }
  0xdf   :  { %v1181_v20 = vadd.f32 %v1180_v15, %v1162_v16  ;;  %v1146_v1 = vadd.f32 %v1145_v57, %v1127_v0 }
  0xe4   :  { %v1164_v21 = vpop.f32.mrf.mxu2  ;;  %v1128_v23 = vpop.f32.mrf.mxu0 }
  0xe5   :  { %v1183_v5 = vpop.f32.mrf.mxu3  ;;  %v1165_v22 = vadd.f32 %v1164_v21, %v1146_v1  ;;  %v1147_v24 = vpop.f32.mrf.mxu1  ;;  %v1129_v25 = vadd.f32 %v1128_v23, %v1110_v59 }
  0xe7   :  { %v2554_v26 = vadd.f32 %v1183_v5, %v1165_v22  ;;  %v1148_v27 = vadd.f32 %v1147_v24, %v1129_v25  ;;  %v1381_v25 = vperm.slane %v1378_v2, 1 }
  0xec   :  { %v1166_v28 = vpop.f32.mrf.mxu2  ;;  %v1197_v31 = vpop.f32.mrf.mxu0 }
  0xed   :  { %v1185_v29 = vpop.f32.mrf.mxu3  ;;  %v1167_v30 = vadd.f32 %v1166_v28, %v1148_v27  ;;  %v1216_v32 = vpop.f32.mrf.mxu1  ;;  %v1198_v33 = vadd.f32 %v1197_v31, %v1179_v10  ;;  %v1395_v31 = vperm.slane %v1392_v12, 1 }
  0xef   :  { %v2556_v34 = vadd.f32 %v1185_v29, %v1167_v30  ;;  %v1384_v22 = vmul.f32 %v1380_v11, %v1198_v33 }
  0xf4   :  { %v1235_v35 = vpop.f32.mrf.mxu2  ;;  %v1199_v56 = vpop.f32.mrf.mxu0 }
  0xf5   :  { %v1254_v36 = vpop.f32.mrf.mxu3  ;;  %v1218_v37 = vpop.f32.mrf.mxu1  ;;  %v2558_v8 = vadd.f32 %v1199_v56, %v1181_v20  ;;  %v1236_v14 = vadd.f32 %v1235_v35, %v1216_v32  ;;  %v1394_v20 = vperm.slane %v1392_v12, 0 }
  0xf7   :  { %v1255_v49 = vadd.f32 %v1254_v36, %v1236_v14  ;;  %v1398_v36 = vadd.f32 %v1394_v20, %v1384_v22 }
  0xfc   :  { %v1237_v9 = vpop.f32.mrf.mxu2  ;;  %v1202_v38 = vpop.f32.mrf.mxu0 }
  0xfd   :  { %v1256_v13 = vpop.f32.mrf.mxu3  ;;  %v1221_v39 = vpop.f32.mrf.mxu1  ;;  %v1238_v58 = vadd.f32 %v1237_v9, %v1218_v37  ;;  %v1203_v32 = vadd.f32 %v1202_v38, %v2554_v26 }
  0xff   :  { %v1257_v4 = vadd.f32 %v1256_v13, %v1238_v58 }
 0x104   :  { %v1240_v40 = vpop.f32.mrf.mxu2  ;;  %v2560_v44 = vpop.f32.mrf.mxu0 }
 0x105   :  { %v1259_v48 = vpop.f32.mrf.mxu3  ;;  %v1223_v41 = vpop.f32.mrf.mxu1  ;;  %v1241_v55 = vadd.f32 %v1240_v40, %v1221_v39 }
 0x107   :  { %v1260_v3 = vadd.f32 %v1259_v48, %v1241_v55  ;;  %v1388_v48 = vmul.f32 %v1380_v11, %v1203_v32 }
 0x109   :  { %v1402_v14 = vadd.f32 %v1394_v20, %v1388_v48 }
 0x10b   :  { %v1410_v58 = vmax.f32 %v1402_v14, 0.0 }
 0x10c   :  { %v1242_v42 = vpop.f32.mrf.mxu2  ;;  %v1273_v53 = vpop.f32.mrf.mxu0 }
 0x10d   :  { %v1261_v43 = vpop.f32.mrf.mxu3  ;;  %v1292_v50 = vpop.f32.mrf.mxu1  ;;  %v1274_v52 = vadd.f32 %v1273_v53, %v1255_v49  ;;  %v1243_v16 = vadd.f32 %v1242_v42, %v1223_v41  ;;  %v1406_v53 = vmax.f32 %v1398_v36, 0.0 }
 0x10f   :  { %v1293_v63 = vadd.f32 %v1292_v50, %v1274_v52  ;;  %v1262_v27 = vadd.f32 %v1261_v43, %v1243_v16  ;;  %v1386_v43 = vmul.f32 %v1380_v11, %v2558_v8 }
 0x114   :  { %v1311_v6 = vpop.f32.mrf.mxu2  ;;  %v1275_v17 = vpop.f32.mrf.mxu0 }
 0x115   :  { %v1330_v54 = vpop.f32.mrf.mxu3  ;;  %v1294_v51 = vpop.f32.mrf.mxu1  ;;  %v1312_v7 = vadd.f32 %v1311_v6, %v1293_v63  ;;  %v1276_v15 = vadd.f32 %v1275_v17, %v1257_v4 }
 0x117   :  { %v1331_v19 = vadd.f32 %v1330_v54, %v1312_v7  ;;  %v1295_v23 = vadd.f32 %v1294_v51, %v1276_v15 }
 0x11c   :  { %v1313_v45 = vpop.f32.mrf.mxu2  ;;  %v1278_v46 = vpop.f32.mrf.mxu0 }
 0x11d   :  { %v1332_v18 = vpop.f32.mrf.mxu3  ;;  %v1297_v47 = vpop.f32.mrf.mxu1  ;;  %v1279_v10 = vadd.f32 %v1278_v46, %v1260_v3  ;;  %v1314_v29 = vadd.f32 %v1313_v45, %v1295_v23  ;;  %v1205_v45 = vadd.f32 %v2560_v44, %v2556_v34  ;;  %v1400_v46 = vadd.f32 %v1394_v20, %v1386_v43 }
 0x11f   :  { %v1298_v1 = vadd.f32 %v1297_v47, %v1279_v10  ;;  %v1333_v9 = vadd.f32 %v1332_v18, %v1314_v29 }
 0x124   :  { %v1316_v59 = vpop.f32.mrf.mxu2  ;;  %v1280_v61 = vpop.f32.mrf.mxu0 }
 0x125   :  { %v1335_v60 = vpop.f32.mrf.mxu3  ;;  %v1299_v62 = vpop.f32.mrf.mxu1  ;;  %v1317_v28 = vadd.f32 %v1316_v59, %v1298_v1  ;;  %v1281_v35 = vadd.f32 %v1280_v61, %v1262_v27  ;;  %v1390_v59 = vmul.f32 %v1380_v11, %v1205_v45 }
 0x127   :  { %v1336_v37 = vadd.f32 %v1335_v60, %v1317_v28  ;;  %v1300_v33 = vadd.f32 %v1299_v62, %v1281_v35  ;;  %v1408_v62 = vmax.f32 %v1400_v46, 0.0  ;;  %v1404_v4 = vadd.f32 %v1394_v20, %v1390_v59 }
 0x129   :  { %v1412_v11 = vmax.f32 %v1404_v4, 0.0 }
 0x12c   :  { %v1318_v57 = vpop.f32.mrf.mxu2  ;;  %v1349_v21 = vpop.f32.mrf.mxu0 }
 0x12d   :  { %v1337_v0 = vpop.f32.mrf.mxu3  ;;  %v1368_v5 = vpop.f32.mrf.mxu1  ;;  %v1350_v24 = vadd.f32 %v1349_v21, %v1331_v19  ;;  %v1319_v54 = vadd.f32 %v1318_v57, %v1300_v33 }
 0x12f   :  { %v1369_v30 = vadd.f32 %v1368_v5, %v1350_v24  ;;  %v1338_v49 = vadd.f32 %v1337_v0, %v1319_v54 }
 0x131   :  { %v1385_v56 = vmul.f32 %v1381_v25, %v1369_v30 }
 0x133   :  { %v1399_v13 = vadd.f32 %v1395_v31, %v1385_v56 }
 0x134   :  { %v1354_v39 = vpop.f32.mrf.mxu2  ;;  %v1351_v42 = vpop.f32.mrf.mxu0 }
 0x135   :  { %v1373_v40 = vpop.f32.mrf.mxu3  ;;  %v1355_v41 = vadd.f32 %v1354_v39, %v1336_v37  ;;  %v1407_v50 = vmax.f32 %v1399_v13, 0.0  ;;  %v1352_v6 = vadd.f32 %v1351_v42, %v1333_v9  ;;  %v1370_v26 = vpop.f32.mrf.mxu1 }
 0x137   :  { %v1374_v17 = vadd.f32 %v1373_v40, %v1355_v41  ;;  %v1414_v38 = vpack.c.bf16 %v1407_v50, %v1406_v53  ;;  %v1371_v51 = vadd.f32 %v1370_v26, %v1352_v6 }
 0x139   :  { %v1389_v18 = vmul.f32 %v1381_v25, %v1374_v17  ;;  %1418 = vst [vmem:[%s2582_s4] sm:$0xff] %v1414_v38  ;;  %v1387_v47 = vmul.f32 %v1381_v25, %v1371_v51 }
 0x13b   :  { %v1403_v8 = vadd.f32 %v1395_v31, %v1389_v18  ;;  %v1401_v52 = vadd.f32 %v1395_v31, %v1387_v47 }
 0x13c   :  { %v1356_v55 = vpop.f32.mrf.mxu2 }
 0x13d   :  { %v1411_v60 = vmax.f32 %v1403_v8, 0.0  ;;  %v1357_v61 = vadd.f32 %v1356_v55, %v1338_v49  ;;  %v1409_v63 = vmax.f32 %v1401_v52, 0.0  ;;  %v1375_v2 = vpop.f32.mrf.mxu3 }
 0x13f   :  { %v1416_v3 = vpack.c.bf16 %v1411_v60, %v1410_v58  ;;  %v1376_v34 = vadd.f32 %v1375_v2, %v1357_v61  ;;  %v1415_v44 = vpack.c.bf16 %v1409_v63, %v1408_v62 }
 0x141   :  { %1420 = vst [vmem:[%s2582_s4 + $0x10] sm:$0xff] %v1416_v3  ;;  %v1391_v7 = vmul.f32 %v1381_v25, %v1376_v34 }
 0x142   :  { %1419 = vst [vmem:[%s2582_s4 + $0x8] sm:$0xff] %v1415_v44 }
 0x143   :  { %v1405_v10 = vadd.f32 %v1395_v31, %v1391_v7 }
 0x145   :  { %v1413_v12 = vmax.f32 %v1405_v10, 0.0 }
 0x147   :  { %v1417_v15 = vpack.c.bf16 %v1413_v12, %v1412_v11 }
 0x149   :  { %1421 = vst [vmem:[%s2582_s4 + $0x18] sm:$0xff] %v1417_v15 }
 0x14a   :  { %1426 = vsyncpa [#allocation3], 1 }
 0x14b   :  { %1427 = vsyncpa [#allocation5], 1 }

// kernel: selecsls_forward.7
= control target key start
LH: loop header
LB: loop body
LE: loop exit
PB: predicated region body
PF: predicated region fallthrough
CT: control target
= control target key end

     0   :  { %s17192_s0 = inlined_call_operand.vmem [shape: bf16[16,4096], index: 0, kind: input, shape index: {}]   ;;  %s17193_s1 = inlined_call_operand.hbm [shape: bf16[4096,1024], index: 1, kind: input, shape index: {}]   ;;  %s17194_s2 = inlined_call_operand.hbm [shape: f32[1,1024], index: 2, kind: input, shape index: {}]   ;;  %s17195_s3 = inlined_call_operand.hbm [shape: f32[1,1024], index: 3, kind: input, shape index: {}]   ;;  %s17196_s4 = inlined_call_operand.vmem [shape: bf16[16,1024], index: 4, kind: output, shape index: {}]  }
   0x1   :  { %17236 = sst [smem:[#allocation59_spill]] %s17194_s2 }
   0x2   :  { %9 = vsyncpa [#allocation3], 0 }
   0x3   :  { %11 = vsyncpa [#allocation3 + $0x1], 0 }
   0x4   :  { %12 = vsyncpa [#allocation5], 0 }
   0x5   :  { %14 = vsyncpa [#allocation5 + $0x1], 0  ;;  %s14228_s15 = smov 0   ;;  %s14230_s16 = smov 0  }
   0x6   :  { %s14232_s17 = smov 0   ;;  %s14234_s18 = smov 0  }
   0x7   :  { %s14236_s19 = smov 0   ;;  %s14238_s20 = smov 0  }
   0x8 LB: > { %s14257_s21 = sadd.s32 4294967295, %s14198_s20   ;;  %s29_s22 = sadd.s32 1, %s14194_s19  ;;  %s14198_s20 = sphi %s14238_s20, %s20_s20   ;;  %s14194_s19 = sphi %s14236_s19, %s17345_s19   ;;  %s14190_s18 = sphi %s14234_s18, %s17344_s18   ;;  %s14186_s17 = sphi %s14232_s17, %s17343_s17   ;;  %s14182_s16 = sphi %s14230_s16, %s17342_s16   ;;  %s14178_s15 = sphi %s14228_s15, %s17341_s15  }
   0x9   : > { %p30_p0 = scmp.ge.s32.totalorder %s29_s22, 2  ;;  %s65_s23 = sadd.s32 1, %s14186_s17 }
   0xa   : > { %p72_p1 = scmp.ne.s32.totalorder %s14186_s17, %s14182_s16  ;;  %p73_p2 = scmp.eq.s32.totalorder %s14198_s20, 0 }
   0xb   : > { %s17347_s22 = smov (%p30_p0, %s29_s22), 0  ;;  %p78_p4 = scmp.ne.s32.totalorder %s14182_s16, %s14178_s15 }
   0xc   : > { %17237 = sst [smem:[#allocation10_spill]] %s17347_s22  ;;  %p14266_p3 = por %p73_p2, %p72_p1 }
   0xd   : > { %s62_s25 = ssub.s32 %s14194_s19, %s17347_s22  ;;  %p79_p5 = scmp.eq.s32.totalorder %s14257_s21, 0 }
   0xe   : > { %p63_p6 = scmp.eq.s32.totalorder %s62_s25, 0  ;;  %p156_p7 = scmp.eq.s32.totalorder %s14257_s21, 1 }
   0xf   : > { %p14275_p8 = por %p79_p5, %p78_p4  ;;  %p14000_p10 = scmp.lt.s32.totalorder %s14198_s20, 2 }
  0x10   : > { %s14280_s27 = scalar_select %p63_p6, %s14186_s17, %s65_s23  }
  0x11   : > { %p14282_p9 = por %p156_p7, %p72_p1  ;;  %s14288_s29 = sand.u32 1, %s14186_s17  }
  0x12   : > { %17240 = sst [smem:[#allocation11_spill]] %s14280_s27  ;;  %s214_s30 = sand.u32 1, %s14198_s20  }
  0x13   : > { %s8685_s5 = sshll.u32 %s14288_s29, 13  ;;  %p14294_p11 = pnand %p14000_p10, %p14266_p3 }
  0x14   : > { %s196_s7 = scalar_lea.vmem [#allocation2], %s8685_s5  ;;  %s8688_s9 = sshll.u32 %s14288_s29, 2 }
  0x15   : > { %s204_s8 = sshll.u32 %s196_s7, 4  ;;  %s8689_s10 = sshll.u32 %s14194_s19, 2  ;;  %s205_s8 = int_to_ptr.vmem [resolvable:$true] %s204_s8 }
  0x16   : > { %s17243_s2 = sld [smem:[#allocation59_spill]]  ;;  %s218_s15 = scalar_lea.vmem [#allocation4], %s8688_s9 }
  0x17   : > { %s226_s23 = sshll.u32 %s218_s15, 4  ;;  %s215_s24 = scalar_lea.sflag [#allocation5], %s214_s30  ;;  %s227_s23 = int_to_ptr.vmem [resolvable:$true] %s226_s23 }
  0x18   : > { %s241_s7 = scalar_lea.hbm %s17195_s3, %s8689_s10  ;;  %p8692_p12 = scmp.ge.s32.totalorder %s14198_s20, 1 }
  0x19   : > { %p250_p13 = scmp.lt.s32.totalorder %s14198_s20, 3  ;;  %s12926_s22 = sshll.u32 %s14194_s19, 4 }
  0x1a   : > { %s201_s15 = scalar_lea.hbm %s17193_s1, %s12926_s22  ;;  %s193_s30 = scalar_lea.sflag [#allocation3], %s14288_s29 }
  0x1b   : > { %p14311_p0 = pnand %p8692_p12, %p250_p13  ;;  %s14202_s27 = smov 16  }
  0x1c   : > { %s222_s13 = scalar_lea.hbm %s17243_s2, %s8689_s10  ;;  %s202_s2 = sshll.u32 %s201_s15, 4  ;;  %s203_s2 = int_to_ptr.hbm [resolvable:$true] %s202_s2 }
  0x1d   : > { %s224_s14 = sshll.u32 %s222_s13, 4  ;;  %s243_s10 = sshll.u32 %s241_s7, 4  ;;  %s225_s14 = int_to_ptr.hbm [resolvable:$true] %s224_s14  ;;  %s244_s10 = int_to_ptr.hbm [resolvable:$true] %s243_s10 }
  0x1e   : > { %13996 = dma.hbm_to_vmem [thread:$0]  (!%p14294_p11), %s225_s14, 64, %s227_s23, %s215_s24  }
  0x1f   : > { %s14200_s14 = smov 512   ;;  %s14201_s23 = smov 256  }
  0x20   : > { %13993 = dma.hbm_to_vmem [thread:$0]  (!%p14294_p11), %s203_s2, 131072, %s205_s8, %s193_s30, %s14200_s14, %s14201_s23, %s14202_s27  }
  0x21   : > { %s237_s25 = scalar_lea.vmem [#allocation6], %s8688_s9  ;;  %254 = sbr.rel (%p14311_p0) target bundleno = 1242 (0x4da), region = 36 }
  0x22   : > { %s245_s5 = sshll.u32 %s237_s25, 4  ;;  %s246_s5 = int_to_ptr.vmem [resolvable:$true] %s245_s5 }
  0x23   : > { %13999 = dma.hbm_to_vmem [thread:$0]  (!%p14294_p11), %s244_s10, 64, %s246_s5, %s215_s24  }
  0x26   : > { %s14326_s22 = sand.u32 1, %s14182_s16  }
  0x27   : > { %s8693_s29 = sshll.u32 %s14326_s22, 13  ;;  %s257_s12 = scalar_lea.sflag [#allocation3], %s14326_s22 }
  0x28   : > { %s14330_s13 = scalar_lea.vmem [#allocation2], %s8693_s29 }
  0x29   : > { %14169 = dma.done.wait (%p14275_p8), %s257_s12, 131072  }
  0x2a   : > { %14171 = vsyncadd (%p14275_p8), %s257_s12, 4294836224  ;;  %s266_s2 = sand.u32 1, %s14257_s21   ;;  %s8694_s27 = sshll.u32 %s14326_s22, 2 }
  0x2b   : > { %s267_s6 = scalar_lea.sflag [#allocation5], %s266_s2  ;;  %s14340_s8 = scalar_lea.vmem [#allocation4], %s8694_s27 }
  0x2c   : > { %14173 = dma.done.wait (%p14275_p8), %s267_s6, 128  }
  0x2d   : > { %14175 = vsyncadd (%p14275_p8), %s267_s6, 4294967168  ;;  %v8939_v0 = vld [vmem:[%s14330_s13 + $0xe0] sm:$0xf]  ;;  %v12989_v1 = vld [vmem:[%s14330_s13 + $0xec] sm:$0xf0]  ;;  %s16253_s23 = scalar_lea.vmem [#allocation6], %s8694_s27 }
  0x2e   : > { %v9067_v2 = vld [vmem:[%s14330_s13 + $0x1e0] sm:$0xf]  ;;  %v8940_v3 = vor.u32 %v12989_v1, %v8939_v0  ;;  %v13021_v4 = vld [vmem:[%s14330_s13 + $0x1ec] sm:$0xf0]  ;;  %s8696_s27 = sshll.u32 %s14326_s22, 5  ;;  %s13983_s22 = sshll.u32 (%p14282_p9), %s14190_s18, 4 }
  0x2f   : > { %v9195_v5 = vld [vmem:[%s14330_s13 + $0x2e0] sm:$0xf]  ;;  %v13053_v6 = vld [vmem:[%s14330_s13 + $0x2ec] sm:$0xf0]  ;;  %v9068_v7 = vor.u32 %v13021_v4, %v9067_v2  ;;  %s16336_s10 = scalar_lea.vmem [#allocation7], %s8696_s27  ;;  %s8525_s25 = scalar_lea.vmem (%p14282_p9), %s17196_s4, %s13983_s22 }
  0x30   : > { %v9196_v8 = vor.u32 %v13053_v6, %v9195_v5  ;;  %v9323_v9 = vld [vmem:[%s14330_s13 + $0x3e0] sm:$0xf]  ;;  %v13085_v10 = vld [vmem:[%s14330_s13 + $0x3ec] sm:$0xf0]  ;;  %6669 = vmatpush.bf16.msra.mxu0 %v8940_v3 }
  0x31   : > { %v8923_v11 = vld [vmem:[%s14330_s13 + $0xc0] sm:$0xf]  ;;  %v9324_v12 = vor.u32 %v13085_v10, %v9323_v9  ;;  %v12985_v13 = vld [vmem:[%s14330_s13 + $0xcc] sm:$0xf0]  ;;  %6683 = vmatpush.bf16.msra.mxu1 %v9068_v7 }
  0x32   : > { %v9051_v14 = vld [vmem:[%s14330_s13 + $0x1c0] sm:$0xf]  ;;  %v13017_v15 = vld [vmem:[%s14330_s13 + $0x1cc] sm:$0xf0]  ;;  %6697 = vmatpush.bf16.msra.mxu2 %v9196_v8  ;;  %v8924_v16 = vor.u32 %v12985_v13, %v8923_v11 }
  0x33   : > { %v9052_v17 = vor.u32 %v13017_v15, %v9051_v14  ;;  %v9179_v18 = vld [vmem:[%s14330_s13 + $0x2c0] sm:$0xf]  ;;  %v13049_v19 = vld [vmem:[%s14330_s13 + $0x2cc] sm:$0xf0]  ;;  %6711 = vmatpush.bf16.msra.mxu3 %v9324_v12 }
  0x34   : > { %v9307_v20 = vld [vmem:[%s14330_s13 + $0x3c0] sm:$0xf]  ;;  %v9180_v21 = vor.u32 %v13049_v19, %v9179_v18  ;;  %v13081_v22 = vld [vmem:[%s14330_s13 + $0x3cc] sm:$0xf0]  ;;  %6670 = vmatpush.bf16.msra.mxu0 %v8924_v16 }
  0x35   : > { %v8907_v23 = vld [vmem:[%s14330_s13 + $0xa0] sm:$0xf]  ;;  %v12981_v24 = vld [vmem:[%s14330_s13 + $0xac] sm:$0xf0]  ;;  %v9308_v25 = vor.u32 %v13081_v22, %v9307_v20  ;;  %6684 = vmatpush.bf16.msra.mxu1 %v9052_v17 }
  0x36   : > { %v9035_v26 = vld [vmem:[%s14330_s13 + $0x1a0] sm:$0xf]  ;;  %v13013_v27 = vld [vmem:[%s14330_s13 + $0x1ac] sm:$0xf0]  ;;  %v8908_v29 = vor.u32 %v12981_v24, %v8907_v23  ;;  %6698 = vmatpush.bf16.msra.mxu2 %v9180_v21 }
  0x37   : > { %v9163_v28 = vld [vmem:[%s14330_s13 + $0x2a0] sm:$0xf]  ;;  %v13045_v30 = vld [vmem:[%s14330_s13 + $0x2ac] sm:$0xf0]  ;;  %v9036_v33 = vor.u32 %v13013_v27, %v9035_v26  ;;  %6712 = vmatpush.bf16.msra.mxu3 %v9308_v25 }
  0x38   : > { %v9291_v31 = vld [vmem:[%s14330_s13 + $0x3a0] sm:$0xf]  ;;  %v13077_v32 = vld [vmem:[%s14330_s13 + $0x3ac] sm:$0xf0]  ;;  %v9164_v34 = vor.u32 %v13045_v30, %v9163_v28  ;;  %6671 = vmatpush.bf16.msra.mxu0 %v8908_v29 }
  0x39   : > { %v8891_v35 = vld [vmem:[%s14330_s13 + $0x80] sm:$0xf]  ;;  %v12977_v36 = vld [vmem:[%s14330_s13 + $0x8c] sm:$0xf0]  ;;  %v9292_v38 = vor.u32 %v13077_v32, %v9291_v31  ;;  %6685 = vmatpush.bf16.msra.mxu1 %v9036_v33 }
  0x3a   : > { %v9019_v37 = vld [vmem:[%s14330_s13 + $0x180] sm:$0xf]  ;;  %v13009_v39 = vld [vmem:[%s14330_s13 + $0x18c] sm:$0xf0]  ;;  %v8892_v44 = vor.u32 %v12977_v36, %v8891_v35  ;;  %6699 = vmatpush.bf16.msra.mxu2 %v9164_v34 }
  0x3b   : > { %v9147_v40 = vld [vmem:[%s14330_s13 + $0x280] sm:$0xf]  ;;  %v13041_v41 = vld [vmem:[%s14330_s13 + $0x28c] sm:$0xf0]  ;;  %v9020_v45 = vor.u32 %v13009_v39, %v9019_v37  ;;  %6713 = vmatpush.bf16.msra.mxu3 %v9292_v38 }
  0x3c   : > { %v9275_v42 = vld [vmem:[%s14330_s13 + $0x380] sm:$0xf]  ;;  %v13073_v43 = vld [vmem:[%s14330_s13 + $0x38c] sm:$0xf0]  ;;  %v9148_v46 = vor.u32 %v13041_v41, %v9147_v40  ;;  %6672 = vmatpush.bf16.msra.mxu0 %v8892_v44 }
  0x3d   : > { %v8875_v47 = vld [vmem:[%s14330_s13 + $0x60] sm:$0xf]  ;;  %v12973_v48 = vld [vmem:[%s14330_s13 + $0x6c] sm:$0xf0]  ;;  %v9276_v50 = vor.u32 %v13073_v43, %v9275_v42  ;;  %6686 = vmatpush.bf16.msra.mxu1 %v9020_v45 }
  0x3e   : > { %v9003_v49 = vld [vmem:[%s14330_s13 + $0x160] sm:$0xf]  ;;  %v13005_v51 = vld [vmem:[%s14330_s13 + $0x16c] sm:$0xf0]  ;;  %v8876_v56 = vor.u32 %v12973_v48, %v8875_v47  ;;  %6700 = vmatpush.bf16.msra.mxu2 %v9148_v46 }
  0x3f   : > { %v9131_v52 = vld [vmem:[%s14330_s13 + $0x260] sm:$0xf]  ;;  %v13037_v53 = vld [vmem:[%s14330_s13 + $0x26c] sm:$0xf0]  ;;  %v9004_v57 = vor.u32 %v13005_v51, %v9003_v49  ;;  %6714 = vmatpush.bf16.msra.mxu3 %v9276_v50 }
  0x40   : > { %v9259_v54 = vld [vmem:[%s14330_s13 + $0x360] sm:$0xf]  ;;  %v13069_v55 = vld [vmem:[%s14330_s13 + $0x36c] sm:$0xf0]  ;;  %v9132_v58 = vor.u32 %v13037_v53, %v9131_v52  ;;  %6673 = vmatpush.bf16.msra.mxu0 %v8876_v56 }
  0x41   : > { %v8859_v59 = vld [vmem:[%s14330_s13 + $0x40] sm:$0xf]  ;;  %v12969_v60 = vld [vmem:[%s14330_s13 + $0x4c] sm:$0xf0]  ;;  %v9260_v62 = vor.u32 %v13069_v55, %v9259_v54  ;;  %6687 = vmatpush.bf16.msra.mxu1 %v9004_v57  ;;  %v8707_v54 = vld [vmem:[%s17192_s0 + $0x8] sm:$0xf] }
  0x42   : > { %v8987_v61 = vld [vmem:[%s14330_s13 + $0x140] sm:$0xf]  ;;  %v13001_v63 = vld [vmem:[%s14330_s13 + $0x14c] sm:$0xf0]  ;;  %v8860_v4 = vor.u32 %v12969_v60, %v8859_v59  ;;  %6701 = vmatpush.bf16.msra.mxu2 %v9132_v58  ;;  %v12944_v59 = vld [vmem:[%s17192_s0 + $0x84] sm:$0xf0] }
  0x43   : > { %v9115_v0 = vld [vmem:[%s14330_s13 + $0x240] sm:$0xf]  ;;  %v13033_v1 = vld [vmem:[%s14330_s13 + $0x24c] sm:$0xf0]  ;;  %v8988_v5 = vor.u32 %v13001_v63, %v8987_v61  ;;  %6715 = vmatpush.bf16.msra.mxu3 %v9260_v62 }
  0x44   : > { %v9243_v2 = vld [vmem:[%s14330_s13 + $0x340] sm:$0xf]  ;;  %v13065_v3 = vld [vmem:[%s14330_s13 + $0x34c] sm:$0xf0]  ;;  %v9116_v6 = vor.u32 %v13033_v1, %v9115_v0  ;;  %6674 = vmatpush.bf16.msra.mxu0 %v8860_v4  ;;  %v14445_v1 = vor.u32 %v12944_v59, %v8707_v54 }
  0x45   : > { %v8843_v7 = vld [vmem:[%s14330_s13 + $0x20] sm:$0xf]  ;;  %v12965_v8 = vld [vmem:[%s14330_s13 + $0x2c] sm:$0xf0]  ;;  %v9244_v10 = vor.u32 %v13065_v3, %v9243_v2  ;;  %6688 = vmatpush.bf16.msra.mxu1 %v8988_v5 }
  0x46   : > { %v8971_v9 = vld [vmem:[%s14330_s13 + $0x120] sm:$0xf]  ;;  %v12997_v11 = vld [vmem:[%s14330_s13 + $0x12c] sm:$0xf0]  ;;  %v8844_v16 = vor.u32 %v12965_v8, %v8843_v7  ;;  %6702 = vmatpush.bf16.msra.mxu2 %v9116_v6  ;;  %17246 = vst [vmem:[#allocation13_spill] sm:$0xff] %v14445_v1 }
  0x47   : > { %v9099_v12 = vld [vmem:[%s14330_s13 + $0x220] sm:$0xf]  ;;  %v13029_v13 = vld [vmem:[%s14330_s13 + $0x22c] sm:$0xf0]  ;;  %v8972_v19 = vor.u32 %v12997_v11, %v8971_v9  ;;  %6716 = vmatpush.bf16.msra.mxu3 %v9244_v10  ;;  %v12927_v6 = vld [vmem:[%s17192_s0 + $0x4] sm:$0xf] }
  0x48   : > { %v9227_v14 = vld [vmem:[%s14330_s13 + $0x320] sm:$0xf]  ;;  %v13061_v15 = vld [vmem:[%s14330_s13 + $0x32c] sm:$0xf0]  ;;  %v9100_v20 = vor.u32 %v13029_v13, %v9099_v12  ;;  %6675 = vmatpush.bf16.msra.mxu0 %v8844_v16  ;;  %v8701_v7 = vld [vmem:[%s17192_s0 + $0x80] sm:$0xf0] }
  0x49   : > { %v8827_v17 = vld [vmem:[%s14330_s13] sm:$0xf]  ;;  %v12961_v18 = vld [vmem:[%s14330_s13 + $0xc] sm:$0xf0]  ;;  %v9228_v24 = vor.u32 %v13061_v15, %v9227_v14  ;;  %6689 = vmatpush.bf16.msra.mxu1 %v8972_v19  ;;  %v12928_v8 = vld [vmem:[%s17192_s0 + $0xc] sm:$0xf]  ;;  %v14461_v10 = vor.u32 %v12927_v6, %v8701_v7 }
  0x4a   : > { %v8955_v21 = vld [vmem:[%s14330_s13 + $0x100] sm:$0xf]  ;;  %v12993_v22 = vld [vmem:[%s14330_s13 + $0x10c] sm:$0xf0]  ;;  %v8828_v31 = vor.u32 %v12961_v18, %v8827_v17  ;;  %6703 = vmatpush.bf16.msra.mxu2 %v9100_v20  ;;  %v8709_v11 = vld [vmem:[%s17192_s0 + $0x88] sm:$0xf0] }
  0x4b   : > { %v9083_v23 = vld [vmem:[%s14330_s13 + $0x200] sm:$0xf]  ;;  %v13025_v25 = vld [vmem:[%s14330_s13 + $0x20c] sm:$0xf0]  ;;  %v8956_v35 = vor.u32 %v12993_v22, %v8955_v21  ;;  %6717 = vmatpush.bf16.msra.mxu3 %v9228_v24  ;;  %17247 = vst [vmem:[#allocation14_spill] sm:$0xff] %v14461_v10  ;;  %v14469_v17 = vor.u32 %v12928_v8, %v8709_v11 }
  0x4c   : > { %v9211_v26 = vld [vmem:[%s14330_s13 + $0x300] sm:$0xf]  ;;  %v13057_v27 = vld [vmem:[%s14330_s13 + $0x30c] sm:$0xf0]  ;;  %v9084_v36 = vor.u32 %v13025_v25, %v9083_v23  ;;  %6676 = vmatpush.bf16.msra.mxu0 %v8828_v31 }
  0x4d   : > { %v9451_v28 = vld [vmem:[%s14330_s13 + $0x4e0] sm:$0xf]  ;;  %v13117_v29 = vld [vmem:[%s14330_s13 + $0x4ec] sm:$0xf0]  ;;  %v9212_v39 = vor.u32 %v13057_v27, %v9211_v26  ;;  %6690 = vmatpush.bf16.msra.mxu1 %v8956_v35  ;;  %17248 = vst [vmem:[#allocation15_spill] sm:$0xff] %v14469_v17 }
  0x4e   : > { %v9579_v30 = vld [vmem:[%s14330_s13 + $0x5e0] sm:$0xf]  ;;  %v13149_v32 = vld [vmem:[%s14330_s13 + $0x5ec] sm:$0xf0]  ;;  %v9452_v40 = vor.u32 %v13117_v29, %v9451_v28  ;;  %6704 = vmatpush.bf16.msra.mxu2 %v9084_v36 }
  0x4f   : > { %v9707_v33 = vld [vmem:[%s14330_s13 + $0x6e0] sm:$0xf]  ;;  %v13181_v34 = vld [vmem:[%s14330_s13 + $0x6ec] sm:$0xf0]  ;;  %v9580_v43 = vor.u32 %v13149_v32, %v9579_v30  ;;  %6718 = vmatpush.bf16.msra.mxu3 %v9212_v39 }
  0x50   : > { %v9835_v37 = vld [vmem:[%s14330_s13 + $0x7e0] sm:$0xf]  ;;  %v13213_v38 = vld [vmem:[%s14330_s13 + $0x7ec] sm:$0xf0]  ;;  %v9708_v44 = vor.u32 %v13181_v34, %v9707_v33  ;;  %6725 = vmatpush.bf16.msrb.mxu0 %v9452_v40  ;;  %6691 = vmatmul.bf16.vlgmr.msra.gmra.mxu1 %v14461_v10 }
  0x51   : > { %v9435_v41 = vld [vmem:[%s14330_s13 + $0x4c0] sm:$0xf]  ;;  %v13113_v42 = vld [vmem:[%s14330_s13 + $0x4cc] sm:$0xf0]  ;;  %v9836_v48 = vor.u32 %v13213_v38, %v9835_v37  ;;  %6739 = vmatpush.bf16.msrb.mxu1 %v9580_v43  ;;  %6705 = vmatmul.bf16.vlgmr.msra.gmra.mxu2 %v14445_v1 }
  0x52   : > { %v9563_v45 = vld [vmem:[%s14330_s13 + $0x5c0] sm:$0xf]  ;;  %v13145_v46 = vld [vmem:[%s14330_s13 + $0x5cc] sm:$0xf0]  ;;  %v9436_v55 = vor.u32 %v13113_v42, %v9435_v41  ;;  %6753 = vmatpush.bf16.msrb.mxu2 %v9708_v44  ;;  %6719 = vmatmul.bf16.vlgmr.msra.gmra.mxu3 %v14469_v17 }
  0x53   : > { %v9691_v47 = vld [vmem:[%s14330_s13 + $0x6c0] sm:$0xf]  ;;  %v13177_v49 = vld [vmem:[%s14330_s13 + $0x6cc] sm:$0xf0]  ;;  %v9564_v60 = vor.u32 %v13145_v46, %v9563_v45  ;;  %6767 = vmatpush.bf16.msrb.mxu3 %v9836_v48 }
  0x54   : > { %v9819_v50 = vld [vmem:[%s14330_s13 + $0x7c0] sm:$0xf]  ;;  %v13209_v51 = vld [vmem:[%s14330_s13 + $0x7cc] sm:$0xf0]  ;;  %v9692_v61 = vor.u32 %v13177_v49, %v9691_v47  ;;  %6726 = vmatpush.bf16.msrb.mxu0 %v9436_v55 }
  0x55   : > { %v8699_v52 = vld [vmem:[%s17192_s0] sm:$0xf]  ;;  %v13109_v57 = vld [vmem:[%s14330_s13 + $0x4ac] sm:$0xf0]  ;;  %v9820_v2 = vor.u32 %v13209_v51, %v9819_v50  ;;  %6740 = vmatpush.bf16.msrb.mxu1 %v9564_v60 }
  0x56   : > { %v12943_v53 = vld [vmem:[%s17192_s0 + $0x7c] sm:$0xf0]  ;;  %v13141_v63 = vld [vmem:[%s14330_s13 + $0x5ac] sm:$0xf0]  ;;  %6754 = vmatpush.bf16.msrb.mxu2 %v9692_v61 }
  0x57   : > { %v9419_v56 = vld [vmem:[%s14330_s13 + $0x4a0] sm:$0xf]  ;;  %v14437_v58 = vor.u32 %v12943_v53, %v8699_v52  ;;  %v13173_v3 = vld [vmem:[%s14330_s13 + $0x6ac] sm:$0xf0]  ;;  %6768 = vmatpush.bf16.msrb.mxu3 %v9820_v2 }
  0x58   : > { %v9547_v62 = vld [vmem:[%s14330_s13 + $0x5a0] sm:$0xf]  ;;  %v13205_v5 = vld [vmem:[%s14330_s13 + $0x7ac] sm:$0xf0]  ;;  %v9420_v9 = vor.u32 %v13109_v57, %v9419_v56 }
  0x59   : > { %17245 = vst [vmem:[#allocation12_spill] sm:$0xff] %v14437_v58  ;;  %v9675_v0 = vld [vmem:[%s14330_s13 + $0x6a0] sm:$0xf]  ;;  %6677 = vmatmul.bf16.vlgmr.msra.gmra.mxu0 %v14437_v58  ;;  %v9548_v12 = vor.u32 %v13141_v63, %v9547_v62  ;;  %v13105_v15 = vld [vmem:[%s14330_s13 + $0x48c] sm:$0xf0] }
  0x5a   : > { %v9803_v4 = vld [vmem:[%s14330_s13 + $0x7a0] sm:$0xf]  ;;  %v9676_v13 = vor.u32 %v13173_v3, %v9675_v0  ;;  %v13137_v19 = vld [vmem:[%s14330_s13 + $0x58c] sm:$0xf0]  ;;  %6727 = vmatpush.bf16.msrb.mxu0 %v9420_v9 }
  0x5b   : > { %v9403_v14 = vld [vmem:[%s14330_s13 + $0x480] sm:$0xf]  ;;  %v9804_v18 = vor.u32 %v13205_v5, %v9803_v4  ;;  %v13169_v21 = vld [vmem:[%s14330_s13 + $0x68c] sm:$0xf0]  ;;  %6741 = vmatpush.bf16.msrb.mxu1 %v9548_v12 }
  0x5c   : > { %v9531_v16 = vld [vmem:[%s14330_s13 + $0x580] sm:$0xf]  ;;  %v13201_v23 = vld [vmem:[%s14330_s13 + $0x78c] sm:$0xf0]  ;;  %v9404_v24 = vor.u32 %v13105_v15, %v9403_v14  ;;  %6755 = vmatpush.bf16.msrb.mxu2 %v9676_v13 }
  0x5d   : > { %v9659_v20 = vld [vmem:[%s14330_s13 + $0x680] sm:$0xf]  ;;  %v9532_v25 = vor.u32 %v13137_v19, %v9531_v16  ;;  %v13101_v28 = vld [vmem:[%s14330_s13 + $0x46c] sm:$0xf0]  ;;  %6769 = vmatpush.bf16.msrb.mxu3 %v9804_v18 }
  0x5e   : > { %v9787_v22 = vld [vmem:[%s14330_s13 + $0x780] sm:$0xf]  ;;  %v9660_v26 = vor.u32 %v13169_v21, %v9659_v20  ;;  %v13133_v31 = vld [vmem:[%s14330_s13 + $0x56c] sm:$0xf0]  ;;  %6728 = vmatpush.bf16.msrb.mxu0 %v9404_v24 }
  0x5f   : > { %v9387_v27 = vld [vmem:[%s14330_s13 + $0x460] sm:$0xf]  ;;  %v9788_v30 = vor.u32 %v13201_v23, %v9787_v22  ;;  %v13165_v33 = vld [vmem:[%s14330_s13 + $0x66c] sm:$0xf0]  ;;  %6742 = vmatpush.bf16.msrb.mxu1 %v9532_v25  ;;  %v8723_v25 = vld [vmem:[%s17192_s0 + $0x18] sm:$0xf] }
  0x60   : > { %v9515_v29 = vld [vmem:[%s14330_s13 + $0x560] sm:$0xf]  ;;  %v13197_v35 = vld [vmem:[%s14330_s13 + $0x76c] sm:$0xf0]  ;;  %v9388_v36 = vor.u32 %v13101_v28, %v9387_v27  ;;  %6756 = vmatpush.bf16.msrb.mxu2 %v9660_v26  ;;  %v12946_v26 = vld [vmem:[%s17192_s0 + $0x94] sm:$0xf0] }
  0x61   : > { %v9643_v32 = vld [vmem:[%s14330_s13 + $0x660] sm:$0xf]  ;;  %v9516_v37 = vor.u32 %v13133_v31, %v9515_v29  ;;  %v13097_v40 = vld [vmem:[%s14330_s13 + $0x44c] sm:$0xf0]  ;;  %6770 = vmatpush.bf16.msrb.mxu3 %v9788_v30  ;;  %v12929_v27 = vld [vmem:[%s17192_s0 + $0x14] sm:$0xf] }
  0x62   : > { %v9771_v34 = vld [vmem:[%s14330_s13 + $0x760] sm:$0xf]  ;;  %v9644_v38 = vor.u32 %v13165_v33, %v9643_v32  ;;  %v13129_v43 = vld [vmem:[%s14330_s13 + $0x54c] sm:$0xf0]  ;;  %6729 = vmatpush.bf16.msrb.mxu0 %v9388_v36  ;;  %v8717_v30 = vld [vmem:[%s17192_s0 + $0x90] sm:$0xf0] }
  0x63   : > { %v9371_v39 = vld [vmem:[%s14330_s13 + $0x440] sm:$0xf]  ;;  %v9772_v42 = vor.u32 %v13197_v35, %v9771_v34  ;;  %v13161_v45 = vld [vmem:[%s14330_s13 + $0x64c] sm:$0xf0]  ;;  %6743 = vmatpush.bf16.msrb.mxu1 %v9516_v37  ;;  %v12930_v31 = vld [vmem:[%s17192_s0 + $0x1c] sm:$0xf] }
  0x64   : > { %v9499_v41 = vld [vmem:[%s14330_s13 + $0x540] sm:$0xf]  ;;  %v13193_v47 = vld [vmem:[%s14330_s13 + $0x74c] sm:$0xf0]  ;;  %v9372_v48 = vor.u32 %v13097_v40, %v9371_v39  ;;  %6757 = vmatpush.bf16.msrb.mxu2 %v9644_v38  ;;  %v8725_v32 = vld [vmem:[%s17192_s0 + $0x98] sm:$0xf0] }
  0x65   : > { %v9627_v44 = vld [vmem:[%s14330_s13 + $0x640] sm:$0xf]  ;;  %v9500_v50 = vor.u32 %v13129_v43, %v9499_v41  ;;  %v13093_v52 = vld [vmem:[%s14330_s13 + $0x42c] sm:$0xf0]  ;;  %6771 = vmatpush.bf16.msrb.mxu3 %v9772_v42  ;;  %v14550_v43 = vor.u32 %v12946_v26, %v8723_v25 }
  0x66   : > { %v9755_v46 = vld [vmem:[%s14330_s13 + $0x740] sm:$0xf]  ;;  %v9628_v51 = vor.u32 %v13161_v45, %v9627_v44  ;;  %v13125_v54 = vld [vmem:[%s14330_s13 + $0x52c] sm:$0xf0]  ;;  %6730 = vmatpush.bf16.msrb.mxu0 %v9372_v48  ;;  %v14552_v44 = vor.u32 %v12929_v27, %v8717_v30 }
  0x67   : > { %v9355_v49 = vld [vmem:[%s14330_s13 + $0x420] sm:$0xf]  ;;  %v9756_v55 = vor.u32 %v13193_v47, %v9755_v46  ;;  %v13157_v57 = vld [vmem:[%s14330_s13 + $0x62c] sm:$0xf0]  ;;  %6744 = vmatpush.bf16.msrb.mxu1 %v9500_v50  ;;  %v14556_v47 = vor.u32 %v12930_v31, %v8725_v32 }
  0x68   : > { %v9483_v53 = vld [vmem:[%s14330_s13 + $0x520] sm:$0xf]  ;;  %v13189_v60 = vld [vmem:[%s14330_s13 + $0x72c] sm:$0xf0]  ;;  %v9356_v63 = vor.u32 %v13093_v52, %v9355_v49  ;;  %6758 = vmatpush.bf16.msrb.mxu2 %v9628_v51 }
  0x69   : > { %v9611_v56 = vld [vmem:[%s14330_s13 + $0x620] sm:$0xf]  ;;  %v13089_v62 = vld [vmem:[%s14330_s13 + $0x40c] sm:$0xf0]  ;;  %v9484_v5 = vor.u32 %v13125_v54, %v9483_v53  ;;  %6772 = vmatpush.bf16.msrb.mxu3 %v9756_v55 }
  0x6a   : > { %v9739_v59 = vld [vmem:[%s14330_s13 + $0x720] sm:$0xf]  ;;  %v13121_v2 = vld [vmem:[%s14330_s13 + $0x50c] sm:$0xf0]  ;;  %v9612_v6 = vor.u32 %v13157_v57, %v9611_v56  ;;  %6731 = vmatpush.bf16.msrb.mxu0 %v9356_v63 }
  0x6b   : > { %v9339_v61 = vld [vmem:[%s14330_s13 + $0x400] sm:$0xf]  ;;  %v13153_v4 = vld [vmem:[%s14330_s13 + $0x60c] sm:$0xf0]  ;;  %v9740_v11 = vor.u32 %v13189_v60, %v9739_v59  ;;  %6745 = vmatpush.bf16.msrb.mxu1 %v9484_v5 }
  0x6c   : > { %v9467_v0 = vld [vmem:[%s14330_s13 + $0x500] sm:$0xf]  ;;  %v13185_v8 = vld [vmem:[%s14330_s13 + $0x70c] sm:$0xf0]  ;;  %v9340_v19 = vor.u32 %v13089_v62, %v9339_v61  ;;  %6759 = vmatpush.bf16.msrb.mxu2 %v9612_v6 }
  0x6d   : > { %v9595_v3 = vld [vmem:[%s14330_s13 + $0x600] sm:$0xf]  ;;  %v13245_v12 = vld [vmem:[%s14330_s13 + $0x8ec] sm:$0xf0]  ;;  %v9468_v23 = vor.u32 %v13121_v2, %v9467_v0  ;;  %6773 = vmatpush.bf16.msrb.mxu3 %v9740_v11 }
  0x6e   : > { %v9723_v7 = vld [vmem:[%s14330_s13 + $0x700] sm:$0xf]  ;;  %v13277_v14 = vld [vmem:[%s14330_s13 + $0x9ec] sm:$0xf0]  ;;  %v9596_v24 = vor.u32 %v13153_v4, %v9595_v3  ;;  %6732 = vmatpush.bf16.msrb.mxu0 %v9340_v19 }
  0x6f   : > { %v9963_v9 = vld [vmem:[%s14330_s13 + $0x8e0] sm:$0xf]  ;;  %v13309_v16 = vld [vmem:[%s14330_s13 + $0xaec] sm:$0xf0]  ;;  %v9724_v28 = vor.u32 %v13185_v8, %v9723_v7  ;;  %6746 = vmatpush.bf16.msrb.mxu1 %v9468_v23 }
  0x70   : > { %v10091_v13 = vld [vmem:[%s14330_s13 + $0x9e0] sm:$0xf]  ;;  %v13341_v20 = vld [vmem:[%s14330_s13 + $0xbec] sm:$0xf0]  ;;  %v9964_v29 = vor.u32 %v13245_v12, %v9963_v9  ;;  %6760 = vmatpush.bf16.msrb.mxu2 %v9596_v24 }
  0x71   : > { %v10219_v15 = vld [vmem:[%s14330_s13 + $0xae0] sm:$0xf]  ;;  %v8715_v21 = vld [vmem:[%s17192_s0 + $0x10] sm:$0xf]  ;;  %v10092_v33 = vor.u32 %v13277_v14, %v10091_v13  ;;  %6774 = vmatpush.bf16.msrb.mxu3 %v9724_v28 }
  0x72   : > { %v10347_v18 = vld [vmem:[%s14330_s13 + $0xbe0] sm:$0xf]  ;;  %v12945_v22 = vld [vmem:[%s17192_s0 + $0x8c] sm:$0xf0]  ;;  %v10220_v34 = vor.u32 %v13309_v16, %v10219_v15  ;;  %6781 = vmatpush.bf16.msra.mxu0 %v9964_v29  ;;  %6747 = vmatmul.bf16.vlgmr.msrb.gmra.mxu1 %v14552_v44 }
  0x73   : > { %v9947_v35 = vld [vmem:[%s14330_s13 + $0x8c0] sm:$0xf]  ;;  %v13241_v36 = vld [vmem:[%s14330_s13 + $0x8cc] sm:$0xf0]  ;;  %v10348_v38 = vor.u32 %v13341_v20, %v10347_v18  ;;  %v14545_v39 = vor.u32 %v12945_v22, %v8715_v21  ;;  %6795 = vmatpush.bf16.msra.mxu1 %v10092_v33  ;;  %6761 = vmatmul.bf16.vlgmr.msrb.gmra.mxu2 %v14550_v43 }
  0x74   : > { %v10075_v37 = vld [vmem:[%s14330_s13 + $0x9c0] sm:$0xf]  ;;  %v13273_v40 = vld [vmem:[%s14330_s13 + $0x9cc] sm:$0xf0]  ;;  %v9948_v48 = vor.u32 %v13241_v36, %v9947_v35  ;;  %6809 = vmatpush.bf16.msra.mxu2 %v10220_v34  ;;  %6775 = vmatmul.bf16.vlgmr.msrb.gmra.mxu3 %v14556_v47 }
  0x75   : > { %v10203_v41 = vld [vmem:[%s14330_s13 + $0xac0] sm:$0xf]  ;;  %v13305_v42 = vld [vmem:[%s14330_s13 + $0xacc] sm:$0xf0]  ;;  %v10076_v49 = vor.u32 %v13273_v40, %v10075_v37  ;;  %6823 = vmatpush.bf16.msra.mxu3 %v10348_v38  ;;  %6733 = vmatmul.bf16.vlgmr.msrb.gmra.mxu0 %v14545_v39 }
  0x76   : > { %v10331_v45 = vld [vmem:[%s14330_s13 + $0xbc0] sm:$0xf]  ;;  %v13337_v46 = vld [vmem:[%s14330_s13 + $0xbcc] sm:$0xf0]  ;;  %v10204_v50 = vor.u32 %v13305_v42, %v10203_v41  ;;  %6782 = vmatpush.bf16.msra.mxu0 %v9948_v48 }
  0x77   : > { %v9931_v51 = vld [vmem:[%s14330_s13 + $0x8a0] sm:$0xf]  ;;  %v13237_v52 = vld [vmem:[%s14330_s13 + $0x8ac] sm:$0xf0]  ;;  %v10332_v54 = vor.u32 %v13337_v46, %v10331_v45  ;;  %6796 = vmatpush.bf16.msra.mxu1 %v10076_v49 }
  0x78   : > { %v10059_v53 = vld [vmem:[%s14330_s13 + $0x9a0] sm:$0xf]  ;;  %v13269_v55 = vld [vmem:[%s14330_s13 + $0x9ac] sm:$0xf0]  ;;  %v9932_v61 = vor.u32 %v13237_v52, %v9931_v51  ;;  %6810 = vmatpush.bf16.msra.mxu2 %v10204_v50 }
  0x79   : > { %v10187_v56 = vld [vmem:[%s14330_s13 + $0xaa0] sm:$0xf]  ;;  %v13301_v57 = vld [vmem:[%s14330_s13 + $0xaac] sm:$0xf0]  ;;  %v10060_v62 = vor.u32 %v13269_v55, %v10059_v53  ;;  %6824 = vmatpush.bf16.msra.mxu3 %v10332_v54 }
  0x7a   : > { %v10315_v59 = vld [vmem:[%s14330_s13 + $0xba0] sm:$0xf]  ;;  %v13333_v60 = vld [vmem:[%s14330_s13 + $0xbac] sm:$0xf0]  ;;  %v10188_v63 = vor.u32 %v13301_v57, %v10187_v56  ;;  %6783 = vmatpush.bf16.msra.mxu0 %v9932_v61 }
  0x7b   : > { %v9915_v0 = vld [vmem:[%s14330_s13 + $0x880] sm:$0xf]  ;;  %v13233_v2 = vld [vmem:[%s14330_s13 + $0x88c] sm:$0xf0]  ;;  %v10316_v4 = vor.u32 %v13333_v60, %v10315_v59  ;;  %6797 = vmatpush.bf16.msra.mxu1 %v10060_v62 }
  0x7c   : > { %v10043_v3 = vld [vmem:[%s14330_s13 + $0x980] sm:$0xf]  ;;  %v13265_v5 = vld [vmem:[%s14330_s13 + $0x98c] sm:$0xf0]  ;;  %v9916_v11 = vor.u32 %v13233_v2, %v9915_v0  ;;  %6811 = vmatpush.bf16.msra.mxu2 %v10188_v63 }
  0x7d   : > { %v10171_v6 = vld [vmem:[%s14330_s13 + $0xa80] sm:$0xf]  ;;  %v13297_v7 = vld [vmem:[%s14330_s13 + $0xa8c] sm:$0xf0]  ;;  %v10044_v12 = vor.u32 %v13265_v5, %v10043_v3  ;;  %6825 = vmatpush.bf16.msra.mxu3 %v10316_v4 }
  0x7e   : > { %v10299_v8 = vld [vmem:[%s14330_s13 + $0xb80] sm:$0xf]  ;;  %v13329_v9 = vld [vmem:[%s14330_s13 + $0xb8c] sm:$0xf0]  ;;  %v10172_v13 = vor.u32 %v13297_v7, %v10171_v6  ;;  %6784 = vmatpush.bf16.msra.mxu0 %v9916_v11 }
  0x7f   : > { %v9899_v14 = vld [vmem:[%s14330_s13 + $0x860] sm:$0xf]  ;;  %v13229_v15 = vld [vmem:[%s14330_s13 + $0x86c] sm:$0xf0]  ;;  %v10300_v18 = vor.u32 %v13329_v9, %v10299_v8  ;;  %6798 = vmatpush.bf16.msra.mxu1 %v10044_v12 }
  0x80   : > { %v10027_v16 = vld [vmem:[%s14330_s13 + $0x960] sm:$0xf]  ;;  %v13261_v19 = vld [vmem:[%s14330_s13 + $0x96c] sm:$0xf0]  ;;  %v9900_v24 = vor.u32 %v13229_v15, %v9899_v14  ;;  %6812 = vmatpush.bf16.msra.mxu2 %v10172_v13 }
  0x81   : > { %v10155_v20 = vld [vmem:[%s14330_s13 + $0xa60] sm:$0xf]  ;;  %v13293_v21 = vld [vmem:[%s14330_s13 + $0xa6c] sm:$0xf0]  ;;  %v10028_v25 = vor.u32 %v13261_v19, %v10027_v16  ;;  %6826 = vmatpush.bf16.msra.mxu3 %v10300_v18  ;;  %v8739_v16 = vld [vmem:[%s17192_s0 + $0x28] sm:$0xf] }
  0x82   : > { %v10283_v22 = vld [vmem:[%s14330_s13 + $0xb60] sm:$0xf]  ;;  %v13325_v23 = vld [vmem:[%s14330_s13 + $0xb6c] sm:$0xf0]  ;;  %v10156_v26 = vor.u32 %v13293_v21, %v10155_v20  ;;  %6785 = vmatpush.bf16.msra.mxu0 %v9900_v24  ;;  %v12948_v18 = vld [vmem:[%s17192_s0 + $0xa4] sm:$0xf0] }
  0x83   : > { %v9883_v27 = vld [vmem:[%s14330_s13 + $0x840] sm:$0xf]  ;;  %v13225_v28 = vld [vmem:[%s14330_s13 + $0x84c] sm:$0xf0]  ;;  %v10284_v30 = vor.u32 %v13325_v23, %v10283_v22  ;;  %6799 = vmatpush.bf16.msra.mxu1 %v10028_v25  ;;  %v12931_v19 = vld [vmem:[%s17192_s0 + $0x24] sm:$0xf] }
  0x84   : > { %v10011_v29 = vld [vmem:[%s14330_s13 + $0x940] sm:$0xf]  ;;  %v13257_v31 = vld [vmem:[%s14330_s13 + $0x94c] sm:$0xf0]  ;;  %v9884_v36 = vor.u32 %v13225_v28, %v9883_v27  ;;  %6813 = vmatpush.bf16.msra.mxu2 %v10156_v26  ;;  %v8733_v22 = vld [vmem:[%s17192_s0 + $0xa0] sm:$0xf0] }
  0x85   : > { %v10139_v32 = vld [vmem:[%s14330_s13 + $0xa40] sm:$0xf]  ;;  %v13289_v33 = vld [vmem:[%s14330_s13 + $0xa4c] sm:$0xf0]  ;;  %v10012_v38 = vor.u32 %v13257_v31, %v10011_v29  ;;  %6827 = vmatpush.bf16.msra.mxu3 %v10284_v30  ;;  %v12932_v23 = vld [vmem:[%s17192_s0 + $0x2c] sm:$0xf] }
  0x86   : > { %v10267_v34 = vld [vmem:[%s14330_s13 + $0xb40] sm:$0xf]  ;;  %v13321_v35 = vld [vmem:[%s14330_s13 + $0xb4c] sm:$0xf0]  ;;  %v10140_v40 = vor.u32 %v13289_v33, %v10139_v32  ;;  %6786 = vmatpush.bf16.msra.mxu0 %v9884_v36  ;;  %v8741_v24 = vld [vmem:[%s17192_s0 + $0xa8] sm:$0xf0]  ;;  %v14652_v36 = vor.u32 %v12931_v19, %v8733_v22 }
  0x87   : > { %v9867_v37 = vld [vmem:[%s14330_s13 + $0x820] sm:$0xf]  ;;  %v13221_v41 = vld [vmem:[%s14330_s13 + $0x82c] sm:$0xf0]  ;;  %v10268_v46 = vor.u32 %v13321_v35, %v10267_v34  ;;  %6800 = vmatpush.bf16.msra.mxu1 %v10012_v38  ;;  %v14650_v35 = vor.u32 %v12948_v18, %v8739_v16 }
  0x88   : > { %v9995_v42 = vld [vmem:[%s14330_s13 + $0x920] sm:$0xf]  ;;  %v13253_v45 = vld [vmem:[%s14330_s13 + $0x92c] sm:$0xf0]  ;;  %v9868_v54 = vor.u32 %v13221_v41, %v9867_v37  ;;  %6814 = vmatpush.bf16.msra.mxu2 %v10140_v40  ;;  %v14656_v40 = vor.u32 %v12932_v23, %v8741_v24 }
  0x89   : > { %v10123_v48 = vld [vmem:[%s14330_s13 + $0xa20] sm:$0xf]  ;;  %v13285_v49 = vld [vmem:[%s14330_s13 + $0xa2c] sm:$0xf0]  ;;  %v9996_v60 = vor.u32 %v13253_v45, %v9995_v42  ;;  %6828 = vmatpush.bf16.msra.mxu3 %v10268_v46 }
  0x8a   : > { %v10251_v50 = vld [vmem:[%s14330_s13 + $0xb20] sm:$0xf]  ;;  %v13317_v51 = vld [vmem:[%s14330_s13 + $0xb2c] sm:$0xf0]  ;;  %v10124_v61 = vor.u32 %v13285_v49, %v10123_v48  ;;  %6787 = vmatpush.bf16.msra.mxu0 %v9868_v54 }
  0x8b   : > { %v9851_v52 = vld [vmem:[%s14330_s13 + $0x800] sm:$0xf]  ;;  %v13217_v53 = vld [vmem:[%s14330_s13 + $0x80c] sm:$0xf0]  ;;  %v10252_v2 = vor.u32 %v13317_v51, %v10251_v50  ;;  %6801 = vmatpush.bf16.msra.mxu1 %v9996_v60 }
  0x8c   : > { %v9979_v55 = vld [vmem:[%s14330_s13 + $0x900] sm:$0xf]  ;;  %v13249_v56 = vld [vmem:[%s14330_s13 + $0x90c] sm:$0xf0]  ;;  %v9852_v9 = vor.u32 %v13217_v53, %v9851_v52  ;;  %6815 = vmatpush.bf16.msra.mxu2 %v10124_v61 }
  0x8d   : > { %v10107_v57 = vld [vmem:[%s14330_s13 + $0xa00] sm:$0xf]  ;;  %v13281_v59 = vld [vmem:[%s14330_s13 + $0xa0c] sm:$0xf0]  ;;  %v9980_v14 = vor.u32 %v13249_v56, %v9979_v55  ;;  %6829 = vmatpush.bf16.msra.mxu3 %v10252_v2 }
  0x8e   : > { %v10235_v62 = vld [vmem:[%s14330_s13 + $0xb00] sm:$0xf]  ;;  %v13313_v63 = vld [vmem:[%s14330_s13 + $0xb0c] sm:$0xf0]  ;;  %v10108_v15 = vor.u32 %v13281_v59, %v10107_v57  ;;  %6788 = vmatpush.bf16.msra.mxu0 %v9852_v9 }
  0x8f   : > { %v10475_v0 = vld [vmem:[%s14330_s13 + $0xce0] sm:$0xf]  ;;  %v13373_v3 = vld [vmem:[%s14330_s13 + $0xcec] sm:$0xf0]  ;;  %v10236_v20 = vor.u32 %v13313_v63, %v10235_v62  ;;  %6802 = vmatpush.bf16.msra.mxu1 %v9980_v14 }
  0x90   : > { %v10603_v4 = vld [vmem:[%s14330_s13 + $0xde0] sm:$0xf]  ;;  %v13405_v5 = vld [vmem:[%s14330_s13 + $0xdec] sm:$0xf0]  ;;  %v10476_v21 = vor.u32 %v13373_v3, %v10475_v0  ;;  %6816 = vmatpush.bf16.msra.mxu2 %v10108_v15 }
  0x91   : > { %v10731_v6 = vld [vmem:[%s14330_s13 + $0xee0] sm:$0xf]  ;;  %v13437_v7 = vld [vmem:[%s14330_s13 + $0xeec] sm:$0xf0]  ;;  %v10604_v25 = vor.u32 %v13405_v5, %v10603_v4  ;;  %6830 = vmatpush.bf16.msra.mxu3 %v10236_v20 }
  0x92   : > { %v10859_v8 = vld [vmem:[%s14330_s13 + $0xfe0] sm:$0xf]  ;;  %v13469_v11 = vld [vmem:[%s14330_s13 + $0xfec] sm:$0xf0]  ;;  %v10732_v26 = vor.u32 %v13437_v7, %v10731_v6  ;;  %6837 = vmatpush.bf16.msrb.mxu0 %v10476_v21  ;;  %6803 = vmatmul.bf16.vlgmr.msra.gmra.mxu1 %v14652_v36 }
  0x93   : > { %v8731_v12 = vld [vmem:[%s17192_s0 + $0x20] sm:$0xf]  ;;  %v13369_v28 = vld [vmem:[%s14330_s13 + $0xccc] sm:$0xf0]  ;;  %v10860_v30 = vor.u32 %v13469_v11, %v10859_v8  ;;  %6851 = vmatpush.bf16.msrb.mxu1 %v10604_v25  ;;  %6817 = vmatmul.bf16.vlgmr.msra.gmra.mxu2 %v14650_v35 }
  0x94   : > { %v12947_v13 = vld [vmem:[%s17192_s0 + $0x9c] sm:$0xf0]  ;;  %v13401_v32 = vld [vmem:[%s14330_s13 + $0xdcc] sm:$0xf0]  ;;  %6865 = vmatpush.bf16.msrb.mxu2 %v10732_v26  ;;  %6831 = vmatmul.bf16.vlgmr.msra.gmra.mxu3 %v14656_v40 }
  0x95   : > { %v10459_v27 = vld [vmem:[%s14330_s13 + $0xcc0] sm:$0xf]  ;;  %v14645_v31 = vor.u32 %v12947_v13, %v8731_v12  ;;  %v13433_v34 = vld [vmem:[%s14330_s13 + $0xecc] sm:$0xf0]  ;;  %6879 = vmatpush.bf16.msrb.mxu3 %v10860_v30 }
  0x96   : > { %v10587_v29 = vld [vmem:[%s14330_s13 + $0xdc0] sm:$0xf]  ;;  %v13465_v38 = vld [vmem:[%s14330_s13 + $0xfcc] sm:$0xf0]  ;;  %v10460_v41 = vor.u32 %v13369_v28, %v10459_v27 }
  0x97   : > { %v10715_v33 = vld [vmem:[%s14330_s13 + $0xec0] sm:$0xf]  ;;  %v10588_v42 = vor.u32 %v13401_v32, %v10587_v29  ;;  %v13365_v48 = vld [vmem:[%s14330_s13 + $0xcac] sm:$0xf0]  ;;  %6789 = vmatmul.bf16.vlgmr.msra.gmra.mxu0 %v14645_v31 }
  0x98   : > { %v10843_v37 = vld [vmem:[%s14330_s13 + $0xfc0] sm:$0xf]  ;;  %v10716_v45 = vor.u32 %v13433_v34, %v10715_v33  ;;  %v13397_v51 = vld [vmem:[%s14330_s13 + $0xdac] sm:$0xf0]  ;;  %6838 = vmatpush.bf16.msrb.mxu0 %v10460_v41 }
  0x99   : > { %v10443_v46 = vld [vmem:[%s14330_s13 + $0xca0] sm:$0xf]  ;;  %v10844_v50 = vor.u32 %v13465_v38, %v10843_v37  ;;  %v13429_v53 = vld [vmem:[%s14330_s13 + $0xeac] sm:$0xf0]  ;;  %6852 = vmatpush.bf16.msrb.mxu1 %v10588_v42 }
  0x9a   : > { %v10571_v49 = vld [vmem:[%s14330_s13 + $0xda0] sm:$0xf]  ;;  %v13461_v55 = vld [vmem:[%s14330_s13 + $0xfac] sm:$0xf0]  ;;  %v10444_v56 = vor.u32 %v13365_v48, %v10443_v46  ;;  %6866 = vmatpush.bf16.msrb.mxu2 %v10716_v45 }
  0x9b   : > { %v10699_v52 = vld [vmem:[%s14330_s13 + $0xea0] sm:$0xf]  ;;  %v10572_v57 = vor.u32 %v13397_v51, %v10571_v49  ;;  %v13361_v61 = vld [vmem:[%s14330_s13 + $0xc8c] sm:$0xf0]  ;;  %6880 = vmatpush.bf16.msrb.mxu3 %v10844_v50 }
  0x9c   : > { %v10827_v54 = vld [vmem:[%s14330_s13 + $0xfa0] sm:$0xf]  ;;  %v10700_v59 = vor.u32 %v13429_v53, %v10699_v52  ;;  %v13393_v0 = vld [vmem:[%s14330_s13 + $0xd8c] sm:$0xf0]  ;;  %6839 = vmatpush.bf16.msrb.mxu0 %v10444_v56 }
  0x9d   : > { %v10427_v60 = vld [vmem:[%s14330_s13 + $0xc80] sm:$0xf]  ;;  %v10828_v63 = vor.u32 %v13461_v55, %v10827_v54  ;;  %v13425_v3 = vld [vmem:[%s14330_s13 + $0xe8c] sm:$0xf0]  ;;  %6853 = vmatpush.bf16.msrb.mxu1 %v10572_v57 }
  0x9e   : > { %v10555_v62 = vld [vmem:[%s14330_s13 + $0xd80] sm:$0xf]  ;;  %v13457_v5 = vld [vmem:[%s14330_s13 + $0xf8c] sm:$0xf0]  ;;  %v10428_v6 = vor.u32 %v13361_v61, %v10427_v60  ;;  %6867 = vmatpush.bf16.msrb.mxu2 %v10700_v59 }
  0x9f   : > { %v10683_v2 = vld [vmem:[%s14330_s13 + $0xe80] sm:$0xf]  ;;  %v10556_v7 = vor.u32 %v13393_v0, %v10555_v62  ;;  %v13357_v11 = vld [vmem:[%s14330_s13 + $0xc6c] sm:$0xf0]  ;;  %6881 = vmatpush.bf16.msrb.mxu3 %v10828_v63 }
  0xa0   : > { %v10811_v4 = vld [vmem:[%s14330_s13 + $0xf80] sm:$0xf]  ;;  %v10684_v8 = vor.u32 %v13425_v3, %v10683_v2  ;;  %v13389_v14 = vld [vmem:[%s14330_s13 + $0xd6c] sm:$0xf0]  ;;  %6840 = vmatpush.bf16.msrb.mxu0 %v10428_v6 }
  0xa1   : > { %v10411_v9 = vld [vmem:[%s14330_s13 + $0xc60] sm:$0xf]  ;;  %v10812_v13 = vor.u32 %v13457_v5, %v10811_v4  ;;  %v13421_v16 = vld [vmem:[%s14330_s13 + $0xe6c] sm:$0xf0]  ;;  %6854 = vmatpush.bf16.msrb.mxu1 %v10556_v7 }
  0xa2   : > { %v10539_v12 = vld [vmem:[%s14330_s13 + $0xd60] sm:$0xf]  ;;  %v13453_v19 = vld [vmem:[%s14330_s13 + $0xf6c] sm:$0xf0]  ;;  %v10412_v20 = vor.u32 %v13357_v11, %v10411_v9  ;;  %6868 = vmatpush.bf16.msrb.mxu2 %v10684_v8 }
  0xa3   : > { %v10667_v15 = vld [vmem:[%s14330_s13 + $0xe60] sm:$0xf]  ;;  %v10540_v21 = vor.u32 %v13389_v14, %v10539_v12  ;;  %v13353_v24 = vld [vmem:[%s14330_s13 + $0xc4c] sm:$0xf0]  ;;  %6882 = vmatpush.bf16.msrb.mxu3 %v10812_v13 }
  0xa4   : > { %v10795_v18 = vld [vmem:[%s14330_s13 + $0xf60] sm:$0xf]  ;;  %v10668_v22 = vor.u32 %v13421_v16, %v10667_v15  ;;  %v13385_v27 = vld [vmem:[%s14330_s13 + $0xd4c] sm:$0xf0]  ;;  %6841 = vmatpush.bf16.msrb.mxu0 %v10412_v20  ;;  %v8755_v16 = vld [vmem:[%s17192_s0 + $0x38] sm:$0xf] }
  0xa5   : > { %v10395_v23 = vld [vmem:[%s14330_s13 + $0xc40] sm:$0xf]  ;;  %v10796_v26 = vor.u32 %v13453_v19, %v10795_v18  ;;  %v13417_v29 = vld [vmem:[%s14330_s13 + $0xe4c] sm:$0xf0]  ;;  %6855 = vmatpush.bf16.msrb.mxu1 %v10540_v21  ;;  %v12950_v18 = vld [vmem:[%s17192_s0 + $0xb4] sm:$0xf0] }
  0xa6   : > { %v10523_v25 = vld [vmem:[%s14330_s13 + $0xd40] sm:$0xf]  ;;  %v13449_v32 = vld [vmem:[%s14330_s13 + $0xf4c] sm:$0xf0]  ;;  %v10396_v33 = vor.u32 %v13353_v24, %v10395_v23  ;;  %6869 = vmatpush.bf16.msrb.mxu2 %v10668_v22  ;;  %v12933_v19 = vld [vmem:[%s17192_s0 + $0x34] sm:$0xf] }
  0xa7   : > { %v10651_v28 = vld [vmem:[%s14330_s13 + $0xe40] sm:$0xf]  ;;  %v10524_v37 = vor.u32 %v13385_v27, %v10523_v25  ;;  %v13349_v41 = vld [vmem:[%s14330_s13 + $0xc2c] sm:$0xf0]  ;;  %6883 = vmatpush.bf16.msrb.mxu3 %v10796_v26  ;;  %v8749_v22 = vld [vmem:[%s17192_s0 + $0xb0] sm:$0xf0] }
  0xa8   : > { %v10779_v30 = vld [vmem:[%s14330_s13 + $0xf40] sm:$0xf]  ;;  %v10652_v38 = vor.u32 %v13417_v29, %v10651_v28  ;;  %v13381_v45 = vld [vmem:[%s14330_s13 + $0xd2c] sm:$0xf0]  ;;  %6842 = vmatpush.bf16.msrb.mxu0 %v10396_v33  ;;  %v12934_v23 = vld [vmem:[%s17192_s0 + $0x3c] sm:$0xf] }
  0xa9   : > { %v10379_v34 = vld [vmem:[%s14330_s13 + $0xc20] sm:$0xf]  ;;  %v10780_v46 = vor.u32 %v13449_v32, %v10779_v30  ;;  %v13413_v49 = vld [vmem:[%s14330_s13 + $0xe2c] sm:$0xf0]  ;;  %6856 = vmatpush.bf16.msrb.mxu1 %v10524_v37  ;;  %v8757_v24 = vld [vmem:[%s17192_s0 + $0xb8] sm:$0xf0] }
  0xaa   : > { %v10507_v42 = vld [vmem:[%s14330_s13 + $0xd20] sm:$0xf]  ;;  %v13445_v51 = vld [vmem:[%s14330_s13 + $0xf2c] sm:$0xf0]  ;;  %v10380_v54 = vor.u32 %v13349_v41, %v10379_v34  ;;  %6870 = vmatpush.bf16.msrb.mxu2 %v10652_v38  ;;  %v14750_v38 = vor.u32 %v12950_v18, %v8755_v16  ;;  %v14752_v41 = vor.u32 %v12933_v19, %v8749_v22 }
  0xab   : > { %v10635_v48 = vld [vmem:[%s14330_s13 + $0xe20] sm:$0xf]  ;;  %v13345_v53 = vld [vmem:[%s14330_s13 + $0xc0c] sm:$0xf0]  ;;  %v10508_v60 = vor.u32 %v13381_v45, %v10507_v42  ;;  %6884 = vmatpush.bf16.msrb.mxu3 %v10780_v46  ;;  %v14756_v46 = vor.u32 %v12934_v23, %v8757_v24 }
  0xac   : > { %v10763_v50 = vld [vmem:[%s14330_s13 + $0xf20] sm:$0xf]  ;;  %v13377_v56 = vld [vmem:[%s14330_s13 + $0xd0c] sm:$0xf0]  ;;  %v10636_v61 = vor.u32 %v13413_v49, %v10635_v48  ;;  %6843 = vmatpush.bf16.msrb.mxu0 %v10380_v54 }
  0xad   : > { %v10363_v52 = vld [vmem:[%s14330_s13 + $0xc00] sm:$0xf]  ;;  %v13409_v59 = vld [vmem:[%s14330_s13 + $0xe0c] sm:$0xf0]  ;;  %v10764_v2 = vor.u32 %v13445_v51, %v10763_v50  ;;  %6857 = vmatpush.bf16.msrb.mxu1 %v10508_v60  ;;  %17249 = vst [vmem:[#allocation16_spill] sm:$0xff] %v14756_v46 }
  0xae   : > { %v10491_v55 = vld [vmem:[%s14330_s13 + $0xd00] sm:$0xf]  ;;  %v13441_v63 = vld [vmem:[%s14330_s13 + $0xf0c] sm:$0xf0]  ;;  %v10364_v9 = vor.u32 %v13345_v53, %v10363_v52  ;;  %6871 = vmatpush.bf16.msrb.mxu2 %v10636_v61 }
  0xaf   : > { %v10619_v57 = vld [vmem:[%s14330_s13 + $0xe00] sm:$0xf]  ;;  %v13501_v3 = vld [vmem:[%s14330_s13 + $0x10ec] sm:$0xf0]  ;;  %v10492_v14 = vor.u32 %v13377_v56, %v10491_v55  ;;  %6885 = vmatpush.bf16.msrb.mxu3 %v10764_v2 }
  0xb0   : > { %v10747_v62 = vld [vmem:[%s14330_s13 + $0xf00] sm:$0xf]  ;;  %v13533_v5 = vld [vmem:[%s14330_s13 + $0x11ec] sm:$0xf0]  ;;  %v10620_v15 = vor.u32 %v13409_v59, %v10619_v57  ;;  %6844 = vmatpush.bf16.msrb.mxu0 %v10364_v9 }
  0xb1   : > { %v10987_v0 = vld [vmem:[%s14330_s13 + $0x10e0] sm:$0xf]  ;;  %v13565_v7 = vld [vmem:[%s14330_s13 + $0x12ec] sm:$0xf0]  ;;  %v10748_v20 = vor.u32 %v13441_v63, %v10747_v62  ;;  %6858 = vmatpush.bf16.msrb.mxu1 %v10492_v14 }
  0xb2   : > { %v11115_v4 = vld [vmem:[%s14330_s13 + $0x11e0] sm:$0xf]  ;;  %v13597_v11 = vld [vmem:[%s14330_s13 + $0x13ec] sm:$0xf0]  ;;  %v10988_v21 = vor.u32 %v13501_v3, %v10987_v0  ;;  %6872 = vmatpush.bf16.msrb.mxu2 %v10620_v15 }
  0xb3   : > { %v11243_v6 = vld [vmem:[%s14330_s13 + $0x12e0] sm:$0xf]  ;;  %v8747_v12 = vld [vmem:[%s17192_s0 + $0x30] sm:$0xf]  ;;  %v11116_v25 = vor.u32 %v13533_v5, %v11115_v4  ;;  %6886 = vmatpush.bf16.msrb.mxu3 %v10748_v20 }
  0xb4   : > { %v11371_v8 = vld [vmem:[%s14330_s13 + $0x13e0] sm:$0xf]  ;;  %v12949_v13 = vld [vmem:[%s17192_s0 + $0xac] sm:$0xf0]  ;;  %v11244_v26 = vor.u32 %v13565_v7, %v11243_v6  ;;  %6893 = vmatpush.bf16.msra.mxu0 %v10988_v21  ;;  %6859 = vmatmul.bf16.vlgmr.msrb.gmra.mxu1 %v14752_v41 }
  0xb5   : > { %v10971_v27 = vld [vmem:[%s14330_s13 + $0x10c0] sm:$0xf]  ;;  %v13497_v28 = vld [vmem:[%s14330_s13 + $0x10cc] sm:$0xf0]  ;;  %v11372_v30 = vor.u32 %v13597_v11, %v11371_v8  ;;  %v14745_v32 = vor.u32 %v12949_v13, %v8747_v12  ;;  %6907 = vmatpush.bf16.msra.mxu1 %v11116_v25  ;;  %6873 = vmatmul.bf16.vlgmr.msrb.gmra.mxu2 %v14750_v38 }
  0xb6   : > { %v11099_v29 = vld [vmem:[%s14330_s13 + $0x11c0] sm:$0xf]  ;;  %v13529_v33 = vld [vmem:[%s14330_s13 + $0x11cc] sm:$0xf0]  ;;  %v10972_v48 = vor.u32 %v13497_v28, %v10971_v27  ;;  %6921 = vmatpush.bf16.msra.mxu2 %v11244_v26  ;;  %6887 = vmatmul.bf16.vlgmr.msrb.gmra.mxu3 %v14756_v46 }
  0xb7   : > { %v11227_v34 = vld [vmem:[%s14330_s13 + $0x12c0] sm:$0xf]  ;;  %v13561_v37 = vld [vmem:[%s14330_s13 + $0x12cc] sm:$0xf0]  ;;  %v11100_v49 = vor.u32 %v13529_v33, %v11099_v29  ;;  %6935 = vmatpush.bf16.msra.mxu3 %v11372_v30  ;;  %6845 = vmatmul.bf16.vlgmr.msrb.gmra.mxu0 %v14745_v32 }
  0xb8   : > { %v11355_v42 = vld [vmem:[%s14330_s13 + $0x13c0] sm:$0xf]  ;;  %v13593_v45 = vld [vmem:[%s14330_s13 + $0x13cc] sm:$0xf0]  ;;  %v11228_v50 = vor.u32 %v13561_v37, %v11227_v34  ;;  %6894 = vmatpush.bf16.msra.mxu0 %v10972_v48 }
  0xb9   : > { %v10955_v51 = vld [vmem:[%s14330_s13 + $0x10a0] sm:$0xf]  ;;  %v13493_v52 = vld [vmem:[%s14330_s13 + $0x10ac] sm:$0xf0]  ;;  %v11356_v54 = vor.u32 %v13593_v45, %v11355_v42  ;;  %6908 = vmatpush.bf16.msra.mxu1 %v11100_v49 }
  0xba   : > { %v11083_v53 = vld [vmem:[%s14330_s13 + $0x11a0] sm:$0xf]  ;;  %v13525_v55 = vld [vmem:[%s14330_s13 + $0x11ac] sm:$0xf0]  ;;  %v10956_v61 = vor.u32 %v13493_v52, %v10955_v51  ;;  %6922 = vmatpush.bf16.msra.mxu2 %v11228_v50 }
  0xbb   : > { %v11211_v56 = vld [vmem:[%s14330_s13 + $0x12a0] sm:$0xf]  ;;  %v13557_v57 = vld [vmem:[%s14330_s13 + $0x12ac] sm:$0xf0]  ;;  %v11084_v62 = vor.u32 %v13525_v55, %v11083_v53  ;;  %6936 = vmatpush.bf16.msra.mxu3 %v11356_v54 }
  0xbc   : > { %v11339_v59 = vld [vmem:[%s14330_s13 + $0x13a0] sm:$0xf]  ;;  %v13589_v60 = vld [vmem:[%s14330_s13 + $0x13ac] sm:$0xf0]  ;;  %v11212_v63 = vor.u32 %v13557_v57, %v11211_v56  ;;  %6895 = vmatpush.bf16.msra.mxu0 %v10956_v61 }
  0xbd   : > { %v10939_v0 = vld [vmem:[%s14330_s13 + $0x1080] sm:$0xf]  ;;  %v13489_v2 = vld [vmem:[%s14330_s13 + $0x108c] sm:$0xf0]  ;;  %v11340_v4 = vor.u32 %v13589_v60, %v11339_v59  ;;  %6909 = vmatpush.bf16.msra.mxu1 %v11084_v62 }
  0xbe   : > { %v11067_v3 = vld [vmem:[%s14330_s13 + $0x1180] sm:$0xf]  ;;  %v13521_v5 = vld [vmem:[%s14330_s13 + $0x118c] sm:$0xf0]  ;;  %v10940_v11 = vor.u32 %v13489_v2, %v10939_v0  ;;  %6923 = vmatpush.bf16.msra.mxu2 %v11212_v63 }
  0xbf   : > { %v11195_v6 = vld [vmem:[%s14330_s13 + $0x1280] sm:$0xf]  ;;  %v13553_v7 = vld [vmem:[%s14330_s13 + $0x128c] sm:$0xf0]  ;;  %v11068_v12 = vor.u32 %v13521_v5, %v11067_v3  ;;  %6937 = vmatpush.bf16.msra.mxu3 %v11340_v4 }
  0xc0   : > { %v11323_v8 = vld [vmem:[%s14330_s13 + $0x1380] sm:$0xf]  ;;  %v13585_v9 = vld [vmem:[%s14330_s13 + $0x138c] sm:$0xf0]  ;;  %v11196_v13 = vor.u32 %v13553_v7, %v11195_v6  ;;  %6896 = vmatpush.bf16.msra.mxu0 %v10940_v11 }
  0xc1   : > { %v10923_v14 = vld [vmem:[%s14330_s13 + $0x1060] sm:$0xf]  ;;  %v13485_v15 = vld [vmem:[%s14330_s13 + $0x106c] sm:$0xf0]  ;;  %v11324_v18 = vor.u32 %v13585_v9, %v11323_v8  ;;  %6910 = vmatpush.bf16.msra.mxu1 %v11068_v12 }
  0xc2   : > { %v11051_v16 = vld [vmem:[%s14330_s13 + $0x1160] sm:$0xf]  ;;  %v13517_v19 = vld [vmem:[%s14330_s13 + $0x116c] sm:$0xf0]  ;;  %v10924_v24 = vor.u32 %v13485_v15, %v10923_v14  ;;  %6924 = vmatpush.bf16.msra.mxu2 %v11196_v13 }
  0xc3   : > { %v11179_v20 = vld [vmem:[%s14330_s13 + $0x1260] sm:$0xf]  ;;  %v13549_v21 = vld [vmem:[%s14330_s13 + $0x126c] sm:$0xf0]  ;;  %v11052_v25 = vor.u32 %v13517_v19, %v11051_v16  ;;  %6938 = vmatpush.bf16.msra.mxu3 %v11324_v18 }
  0xc4   : > { %v11307_v22 = vld [vmem:[%s14330_s13 + $0x1360] sm:$0xf]  ;;  %v13581_v23 = vld [vmem:[%s14330_s13 + $0x136c] sm:$0xf0]  ;;  %v11180_v26 = vor.u32 %v13549_v21, %v11179_v20  ;;  %6897 = vmatpush.bf16.msra.mxu0 %v10924_v24 }
  0xc5   : > { %v10907_v27 = vld [vmem:[%s14330_s13 + $0x1040] sm:$0xf]  ;;  %v13481_v28 = vld [vmem:[%s14330_s13 + $0x104c] sm:$0xf0]  ;;  %v11308_v30 = vor.u32 %v13581_v23, %v11307_v22  ;;  %6911 = vmatpush.bf16.msra.mxu1 %v11052_v25  ;;  %v8771_v25 = vld [vmem:[%s17192_s0 + $0x48] sm:$0xf] }
  0xc6   : > { %v11035_v29 = vld [vmem:[%s14330_s13 + $0x1140] sm:$0xf]  ;;  %v13513_v33 = vld [vmem:[%s14330_s13 + $0x114c] sm:$0xf0]  ;;  %v10908_v48 = vor.u32 %v13481_v28, %v10907_v27  ;;  %6925 = vmatpush.bf16.msra.mxu2 %v11180_v26  ;;  %v12952_v26 = vld [vmem:[%s17192_s0 + $0xc4] sm:$0xf0] }
  0xc7   : > { %v11163_v34 = vld [vmem:[%s14330_s13 + $0x1240] sm:$0xf]  ;;  %v13545_v37 = vld [vmem:[%s14330_s13 + $0x124c] sm:$0xf0]  ;;  %v11036_v50 = vor.u32 %v13513_v33, %v11035_v29  ;;  %6939 = vmatpush.bf16.msra.mxu3 %v11308_v30  ;;  %v12935_v27 = vld [vmem:[%s17192_s0 + $0x44] sm:$0xf] }
  0xc8   : > { %v11291_v42 = vld [vmem:[%s14330_s13 + $0x1340] sm:$0xf]  ;;  %v13577_v45 = vld [vmem:[%s14330_s13 + $0x134c] sm:$0xf0]  ;;  %v11164_v51 = vor.u32 %v13545_v37, %v11163_v34  ;;  %6898 = vmatpush.bf16.msra.mxu0 %v10908_v48  ;;  %v8765_v30 = vld [vmem:[%s17192_s0 + $0xc0] sm:$0xf0] }
  0xc9   : > { %v10891_v49 = vld [vmem:[%s14330_s13 + $0x1020] sm:$0xf]  ;;  %v13477_v52 = vld [vmem:[%s14330_s13 + $0x102c] sm:$0xf0]  ;;  %v11292_v55 = vor.u32 %v13577_v45, %v11291_v42  ;;  %6912 = vmatpush.bf16.msra.mxu1 %v11036_v50  ;;  %v12936_v33 = vld [vmem:[%s17192_s0 + $0x4c] sm:$0xf] }
  0xca   : > { %v11019_v53 = vld [vmem:[%s14330_s13 + $0x1120] sm:$0xf]  ;;  %v13509_v54 = vld [vmem:[%s14330_s13 + $0x112c] sm:$0xf0]  ;;  %v10892_v63 = vor.u32 %v13477_v52, %v10891_v49  ;;  %6926 = vmatpush.bf16.msra.mxu2 %v11164_v51  ;;  %v8773_v34 = vld [vmem:[%s17192_s0 + $0xc8] sm:$0xf0] }
  0xcb   : > { %v11147_v56 = vld [vmem:[%s14330_s13 + $0x1220] sm:$0xf]  ;;  %v13541_v57 = vld [vmem:[%s14330_s13 + $0x122c] sm:$0xf0]  ;;  %v11020_v5 = vor.u32 %v13509_v54, %v11019_v53  ;;  %6940 = vmatpush.bf16.msra.mxu3 %v11292_v55  ;;  %v14850_v55 = vor.u32 %v12952_v26, %v8771_v25 }
  0xcc   : > { %v11275_v59 = vld [vmem:[%s14330_s13 + $0x1320] sm:$0xf]  ;;  %v13573_v60 = vld [vmem:[%s14330_s13 + $0x132c] sm:$0xf0]  ;;  %v11148_v6 = vor.u32 %v13541_v57, %v11147_v56  ;;  %6899 = vmatpush.bf16.msra.mxu0 %v10892_v63  ;;  %v14852_v56 = vor.u32 %v12935_v27, %v8765_v30 }
  0xcd   : > { %v10875_v61 = vld [vmem:[%s14330_s13 + $0x1000] sm:$0xf]  ;;  %v13473_v62 = vld [vmem:[%s14330_s13 + $0x100c] sm:$0xf0]  ;;  %v11276_v11 = vor.u32 %v13573_v60, %v11275_v59  ;;  %6913 = vmatpush.bf16.msra.mxu1 %v11020_v5  ;;  %17251 = vst [vmem:[#allocation18_spill] sm:$0xff] %v14850_v55  ;;  %v14856_v60 = vor.u32 %v12936_v33, %v8773_v34 }
  0xce   : > { %v11003_v0 = vld [vmem:[%s14330_s13 + $0x1100] sm:$0xf]  ;;  %v13505_v2 = vld [vmem:[%s14330_s13 + $0x110c] sm:$0xf0]  ;;  %v10876_v19 = vor.u32 %v13473_v62, %v10875_v61  ;;  %6927 = vmatpush.bf16.msra.mxu2 %v11148_v6  ;;  %17252 = vst [vmem:[#allocation19_spill] sm:$0xff] %v14852_v56 }
  0xcf   : > { %v11131_v3 = vld [vmem:[%s14330_s13 + $0x1200] sm:$0xf]  ;;  %v13537_v4 = vld [vmem:[%s14330_s13 + $0x120c] sm:$0xf0]  ;;  %v11004_v23 = vor.u32 %v13505_v2, %v11003_v0  ;;  %6941 = vmatpush.bf16.msra.mxu3 %v11276_v11  ;;  %17253 = vst [vmem:[#allocation20_spill] sm:$0xff] %v14856_v60 }
  0xd0   : > { %v11259_v7 = vld [vmem:[%s14330_s13 + $0x1300] sm:$0xf]  ;;  %v13569_v8 = vld [vmem:[%s14330_s13 + $0x130c] sm:$0xf0]  ;;  %v11132_v24 = vor.u32 %v13537_v4, %v11131_v3  ;;  %6900 = vmatpush.bf16.msra.mxu0 %v10876_v19 }
  0xd1   : > { %v11499_v9 = vld [vmem:[%s14330_s13 + $0x14e0] sm:$0xf]  ;;  %v13629_v12 = vld [vmem:[%s14330_s13 + $0x14ec] sm:$0xf0]  ;;  %v11260_v28 = vor.u32 %v13569_v8, %v11259_v7  ;;  %6914 = vmatpush.bf16.msra.mxu1 %v11004_v23 }
  0xd2   : > { %v11627_v13 = vld [vmem:[%s14330_s13 + $0x15e0] sm:$0xf]  ;;  %v13661_v14 = vld [vmem:[%s14330_s13 + $0x15ec] sm:$0xf0]  ;;  %v11500_v29 = vor.u32 %v13629_v12, %v11499_v9  ;;  %6928 = vmatpush.bf16.msra.mxu2 %v11132_v24 }
  0xd3   : > { %v11755_v15 = vld [vmem:[%s14330_s13 + $0x16e0] sm:$0xf]  ;;  %v13693_v16 = vld [vmem:[%s14330_s13 + $0x16ec] sm:$0xf0]  ;;  %v11628_v37 = vor.u32 %v13661_v14, %v11627_v13  ;;  %6942 = vmatpush.bf16.msra.mxu3 %v11260_v28 }
  0xd4   : > { %v11883_v18 = vld [vmem:[%s14330_s13 + $0x17e0] sm:$0xf]  ;;  %v13725_v20 = vld [vmem:[%s14330_s13 + $0x17ec] sm:$0xf0]  ;;  %v11756_v42 = vor.u32 %v13693_v16, %v11755_v15  ;;  %6949 = vmatpush.bf16.msrb.mxu0 %v11500_v29  ;;  %6915 = vmatmul.bf16.vlgmr.msra.gmra.mxu1 %v14852_v56 }
  0xd5   : > { %v8763_v21 = vld [vmem:[%s17192_s0 + $0x40] sm:$0xf]  ;;  %v13625_v48 = vld [vmem:[%s14330_s13 + $0x14cc] sm:$0xf0]  ;;  %v11884_v50 = vor.u32 %v13725_v20, %v11883_v18  ;;  %6963 = vmatpush.bf16.msrb.mxu1 %v11628_v37  ;;  %6929 = vmatmul.bf16.vlgmr.msra.gmra.mxu2 %v14850_v55 }
  0xd6   : > { %v12951_v22 = vld [vmem:[%s17192_s0 + $0xbc] sm:$0xf0]  ;;  %v13657_v52 = vld [vmem:[%s14330_s13 + $0x15cc] sm:$0xf0]  ;;  %6977 = vmatpush.bf16.msrb.mxu2 %v11756_v42  ;;  %6943 = vmatmul.bf16.vlgmr.msra.gmra.mxu3 %v14856_v60 }
  0xd7   : > { %v11483_v45 = vld [vmem:[%s14330_s13 + $0x14c0] sm:$0xf]  ;;  %v14845_v51 = vor.u32 %v12951_v22, %v8763_v21  ;;  %v13689_v54 = vld [vmem:[%s14330_s13 + $0x16cc] sm:$0xf0]  ;;  %6991 = vmatpush.bf16.msrb.mxu3 %v11884_v50 }
  0xd8   : > { %v11611_v49 = vld [vmem:[%s14330_s13 + $0x15c0] sm:$0xf]  ;;  %v13721_v59 = vld [vmem:[%s14330_s13 + $0x17cc] sm:$0xf0]  ;;  %v11484_v61 = vor.u32 %v13625_v48, %v11483_v45  ;;  %v6678_v48 = vpop.f32.mrf.mxu0 }
  0xd9   : > { %17250 = vst [vmem:[#allocation17_spill] sm:$0xff] %v14845_v51  ;;  %v11739_v53 = vld [vmem:[%s14330_s13 + $0x16c0] sm:$0xf]  ;;  %v11612_v62 = vor.u32 %v13657_v52, %v11611_v49  ;;  %v13621_v2 = vld [vmem:[%s14330_s13 + $0x14ac] sm:$0xf0]  ;;  %6901 = vmatmul.bf16.vlgmr.msra.gmra.mxu0 %v14845_v51  ;;  %v6692_v49 = vpop.f32.mrf.mxu1 }
  0xda   : > { %v11867_v57 = vld [vmem:[%s14330_s13 + $0x17c0] sm:$0xf]  ;;  %v11740_v63 = vor.u32 %v13689_v54, %v11739_v53  ;;  %v13653_v5 = vld [vmem:[%s14330_s13 + $0x15ac] sm:$0xf0]  ;;  %6950 = vmatpush.bf16.msrb.mxu0 %v11484_v61  ;;  %v6693_v52 = vadd.f32 %v6692_v49, %v6678_v48 }
  0xdb   : > { %v11467_v0 = vld [vmem:[%s14330_s13 + $0x14a0] sm:$0xf]  ;;  %v11868_v4 = vor.u32 %v13721_v59, %v11867_v57  ;;  %v13685_v7 = vld [vmem:[%s14330_s13 + $0x16ac] sm:$0xf0]  ;;  %6964 = vmatpush.bf16.msrb.mxu1 %v11612_v62 }
  0xdc   : > { %v11595_v3 = vld [vmem:[%s14330_s13 + $0x15a0] sm:$0xf]  ;;  %v13717_v9 = vld [vmem:[%s14330_s13 + $0x17ac] sm:$0xf0]  ;;  %v11468_v11 = vor.u32 %v13621_v2, %v11467_v0  ;;  %6978 = vmatpush.bf16.msrb.mxu2 %v11740_v63 }
  0xdd   : > { %v11723_v6 = vld [vmem:[%s14330_s13 + $0x16a0] sm:$0xf]  ;;  %v11596_v12 = vor.u32 %v13653_v5, %v11595_v3  ;;  %v13617_v15 = vld [vmem:[%s14330_s13 + $0x148c] sm:$0xf0]  ;;  %6992 = vmatpush.bf16.msrb.mxu3 %v11868_v4  ;;  %v6706_v3 = vpop.f32.mrf.mxu2 }
  0xde   : > { %v11851_v8 = vld [vmem:[%s14330_s13 + $0x17a0] sm:$0xf]  ;;  %v11724_v13 = vor.u32 %v13685_v7, %v11723_v6  ;;  %v13649_v19 = vld [vmem:[%s14330_s13 + $0x158c] sm:$0xf0]  ;;  %6951 = vmatpush.bf16.msrb.mxu0 %v11468_v11  ;;  %v6707_v6 = vadd.f32 %v6706_v3, %v6693_v52  ;;  %v12954_v3 = vld [vmem:[%s17192_s0 + $0xd4] sm:$0xf0] }
  0xdf   : > { %v11451_v14 = vld [vmem:[%s14330_s13 + $0x1480] sm:$0xf]  ;;  %v11852_v18 = vor.u32 %v13717_v9, %v11851_v8  ;;  %v13681_v21 = vld [vmem:[%s14330_s13 + $0x168c] sm:$0xf0]  ;;  %6965 = vmatpush.bf16.msrb.mxu1 %v11596_v12 }
  0xe0   : > { %v11579_v16 = vld [vmem:[%s14330_s13 + $0x1580] sm:$0xf]  ;;  %v13713_v23 = vld [vmem:[%s14330_s13 + $0x178c] sm:$0xf0]  ;;  %v11452_v24 = vor.u32 %v13617_v15, %v11451_v14  ;;  %6979 = vmatpush.bf16.msrb.mxu2 %v11724_v13 }
  0xe1   : > { %v11707_v20 = vld [vmem:[%s14330_s13 + $0x1680] sm:$0xf]  ;;  %v11580_v25 = vor.u32 %v13649_v19, %v11579_v16  ;;  %v13613_v28 = vld [vmem:[%s14330_s13 + $0x146c] sm:$0xf0]  ;;  %6993 = vmatpush.bf16.msrb.mxu3 %v11852_v18 }
  0xe2   : > { %v11835_v22 = vld [vmem:[%s14330_s13 + $0x1780] sm:$0xf]  ;;  %v11708_v26 = vor.u32 %v13681_v21, %v11707_v20  ;;  %v13645_v33 = vld [vmem:[%s14330_s13 + $0x156c] sm:$0xf0]  ;;  %6952 = vmatpush.bf16.msrb.mxu0 %v11452_v24  ;;  %v6720_v20 = vpop.f32.mrf.mxu3 }
  0xe3   : > { %v11435_v27 = vld [vmem:[%s14330_s13 + $0x1460] sm:$0xf]  ;;  %v11836_v30 = vor.u32 %v13713_v23, %v11835_v22  ;;  %v13677_v37 = vld [vmem:[%s14330_s13 + $0x166c] sm:$0xf0]  ;;  %6966 = vmatpush.bf16.msrb.mxu1 %v11580_v25  ;;  %v14904_v24 = vadd.f32 %v6720_v20, %v6707_v6 }
  0xe4   : > { %v11563_v29 = vld [vmem:[%s14330_s13 + $0x1560] sm:$0xf]  ;;  %v13709_v45 = vld [vmem:[%s14330_s13 + $0x176c] sm:$0xf0]  ;;  %v11436_v50 = vor.u32 %v13613_v28, %v11435_v27  ;;  %6980 = vmatpush.bf16.msrb.mxu2 %v11708_v26 }
  0xe5   : > { %v11691_v34 = vld [vmem:[%s14330_s13 + $0x1660] sm:$0xf]  ;;  %v11564_v53 = vor.u32 %v13645_v33, %v11563_v29  ;;  %v13609_v59 = vld [vmem:[%s14330_s13 + $0x144c] sm:$0xf0]  ;;  %6994 = vmatpush.bf16.msrb.mxu3 %v11836_v30 }
  0xe6   : > { %v11819_v42 = vld [vmem:[%s14330_s13 + $0x1760] sm:$0xf]  ;;  %v11692_v54 = vor.u32 %v13677_v37, %v11691_v34  ;;  %v13641_v63 = vld [vmem:[%s14330_s13 + $0x154c] sm:$0xf0]  ;;  %6953 = vmatpush.bf16.msrb.mxu0 %v11436_v50 }
  0xe7   : > { %v11419_v57 = vld [vmem:[%s14330_s13 + $0x1440] sm:$0xf]  ;;  %v11820_v62 = vor.u32 %v13709_v45, %v11819_v42  ;;  %v13673_v2 = vld [vmem:[%s14330_s13 + $0x164c] sm:$0xf0]  ;;  %6967 = vmatpush.bf16.msrb.mxu1 %v11564_v53 }
  0xe8   : > { %v11547_v61 = vld [vmem:[%s14330_s13 + $0x1540] sm:$0xf]  ;;  %v13705_v5 = vld [vmem:[%s14330_s13 + $0x174c] sm:$0xf0]  ;;  %v11420_v7 = vor.u32 %v13609_v59, %v11419_v57  ;;  %6981 = vmatpush.bf16.msrb.mxu2 %v11692_v54 }
  0xe9   : > { %v11675_v0 = vld [vmem:[%s14330_s13 + $0x1640] sm:$0xf]  ;;  %v11548_v9 = vor.u32 %v13641_v63, %v11547_v61  ;;  %v13605_v12 = vld [vmem:[%s14330_s13 + $0x142c] sm:$0xf0]  ;;  %6995 = vmatpush.bf16.msrb.mxu3 %v11820_v62 }
  0xea   : > { %v11803_v4 = vld [vmem:[%s14330_s13 + $0x1740] sm:$0xf]  ;;  %v11676_v11 = vor.u32 %v13673_v2, %v11675_v0  ;;  %v13637_v14 = vld [vmem:[%s14330_s13 + $0x152c] sm:$0xf0]  ;;  %6954 = vmatpush.bf16.msrb.mxu0 %v11420_v7  ;;  %v8787_v2 = vld [vmem:[%s17192_s0 + $0x58] sm:$0xf] }
  0xeb   : > { %v11403_v8 = vld [vmem:[%s14330_s13 + $0x1420] sm:$0xf]  ;;  %v11804_v15 = vor.u32 %v13705_v5, %v11803_v4  ;;  %v13669_v18 = vld [vmem:[%s14330_s13 + $0x162c] sm:$0xf0]  ;;  %6968 = vmatpush.bf16.msrb.mxu1 %v11548_v9  ;;  %v12937_v4 = vld [vmem:[%s17192_s0 + $0x54] sm:$0xf] }
  0xec   : > { %v11531_v13 = vld [vmem:[%s14330_s13 + $0x1520] sm:$0xf]  ;;  %v13701_v21 = vld [vmem:[%s14330_s13 + $0x172c] sm:$0xf0]  ;;  %v11404_v25 = vor.u32 %v13605_v12, %v11403_v8  ;;  %6982 = vmatpush.bf16.msrb.mxu2 %v11676_v11  ;;  %v8781_v7 = vld [vmem:[%s17192_s0 + $0xd0] sm:$0xf0] }
  0xed   : > { %v11659_v16 = vld [vmem:[%s14330_s13 + $0x1620] sm:$0xf]  ;;  %v13601_v23 = vld [vmem:[%s14330_s13 + $0x140c] sm:$0xf0]  ;;  %v11532_v30 = vor.u32 %v13637_v14, %v11531_v13  ;;  %6996 = vmatpush.bf16.msrb.mxu3 %v11804_v15  ;;  %v12938_v8 = vld [vmem:[%s17192_s0 + $0x5c] sm:$0xf]  ;;  %v14944_v13 = vpop.f32.mrf.mxu0 }
  0xee   : > { %v11787_v19 = vld [vmem:[%s14330_s13 + $0x1720] sm:$0xf]  ;;  %v13633_v27 = vld [vmem:[%s14330_s13 + $0x150c] sm:$0xf0]  ;;  %v11660_v33 = vor.u32 %v13669_v18, %v11659_v16  ;;  %6955 = vmatpush.bf16.msrb.mxu0 %v11404_v25  ;;  %v8789_v9 = vld [vmem:[%s17192_s0 + $0xd8] sm:$0xf0]  ;;  %v14956_v25 = vor.u32 %v12937_v4, %v8781_v7  ;;  %v14981_v4 = vpop.f32.mrf.mxu3 }
  0xef   : > { %v11387_v22 = vld [vmem:[%s14330_s13 + $0x1400] sm:$0xf]  ;;  %v13665_v29 = vld [vmem:[%s14330_s13 + $0x160c] sm:$0xf0]  ;;  %v11788_v45 = vor.u32 %v13701_v21, %v11787_v19  ;;  %6969 = vmatpush.bf16.msrb.mxu1 %v11532_v30  ;;  %17258 = vst [vmem:[#allocation25_spill] sm:$0xff] %v14981_v4 }
  0xf0   : > { %v11515_v26 = vld [vmem:[%s14330_s13 + $0x1500] sm:$0xf]  ;;  %v13697_v37 = vld [vmem:[%s14330_s13 + $0x170c] sm:$0xf0]  ;;  %v11388_v57 = vor.u32 %v13601_v23, %v11387_v22  ;;  %6983 = vmatpush.bf16.msrb.mxu2 %v11660_v33  ;;  %v14954_v23 = vor.u32 %v12954_v3, %v8787_v2  ;;  %17256 = vst [vmem:[#allocation23_spill] sm:$0xff] %v14956_v25 }
  0xf1   : > { %v11643_v28 = vld [vmem:[%s14330_s13 + $0x1600] sm:$0xf]  ;;  %v13757_v48 = vld [vmem:[%s14330_s13 + $0x18ec] sm:$0xf0]  ;;  %v11516_v63 = vor.u32 %v13633_v27, %v11515_v26  ;;  %6997 = vmatpush.bf16.msrb.mxu3 %v11788_v45  ;;  %v9565_v4 = vld [vmem:[%s14330_s13 + $0x5d0] sm:$0xf0] }
  0xf2   : > { %v11771_v34 = vld [vmem:[%s14330_s13 + $0x1700] sm:$0xf]  ;;  %v13789_v50 = vld [vmem:[%s14330_s13 + $0x19ec] sm:$0xf0]  ;;  %v11644_v0 = vor.u32 %v13665_v29, %v11643_v28  ;;  %6956 = vmatpush.bf16.msrb.mxu0 %v11388_v57  ;;  %17255 = vst [vmem:[#allocation22_spill] sm:$0xff] %v14954_v23  ;;  %v14960_v28 = vpop.f32.mrf.mxu1  ;;  %v14962_v29 = vor.u32 %v12938_v8, %v8789_v9 }
  0xf3   : > { %v12011_v42 = vld [vmem:[%s14330_s13 + $0x18e0] sm:$0xf]  ;;  %v13821_v53 = vld [vmem:[%s14330_s13 + $0x1aec] sm:$0xf0]  ;;  %v11772_v5 = vor.u32 %v13697_v37, %v11771_v34  ;;  %6970 = vmatpush.bf16.msrb.mxu1 %v11516_v63 }
  0xf4   : > { %v12139_v49 = vld [vmem:[%s14330_s13 + $0x19e0] sm:$0xf]  ;;  %v13853_v59 = vld [vmem:[%s14330_s13 + $0x1bec] sm:$0xf0]  ;;  %v12012_v6 = vor.u32 %v13757_v48, %v12011_v42  ;;  %6984 = vmatpush.bf16.msrb.mxu2 %v11644_v0  ;;  %17257 = vst [vmem:[#allocation24_spill] sm:$0xff] %v14962_v29 }
  0xf5   : > { %v12267_v52 = vld [vmem:[%s14330_s13 + $0x1ae0] sm:$0xf]  ;;  %v8779_v61 = vld [vmem:[%s17192_s0 + $0x50] sm:$0xf]  ;;  %v12140_v11 = vor.u32 %v13789_v50, %v12139_v49  ;;  %6998 = vmatpush.bf16.msrb.mxu3 %v11772_v5  ;;  %v6734_v8 = vpop.f32.mrf.mxu0 }
  0xf6   : > { %v12395_v54 = vld [vmem:[%s14330_s13 + $0x1be0] sm:$0xf]  ;;  %v12953_v62 = vld [vmem:[%s17192_s0 + $0xcc] sm:$0xf0]  ;;  %v12268_v12 = vor.u32 %v13821_v53, %v12267_v52  ;;  %7005 = vmatpush.bf16.msra.mxu0 %v12012_v6  ;;  %6971 = vmatmul.bf16.vlgmr.msrb.gmra.mxu1 %v14956_v25 }
  0xf7   : > { %v11995_v14 = vld [vmem:[%s14330_s13 + $0x18c0] sm:$0xf]  ;;  %v13753_v15 = vld [vmem:[%s14330_s13 + $0x18cc] sm:$0xf0]  ;;  %v12396_v18 = vor.u32 %v13853_v59, %v12395_v54  ;;  %v14949_v19 = vor.u32 %v12953_v62, %v8779_v61  ;;  %7019 = vmatpush.bf16.msra.mxu1 %v12140_v11  ;;  %6985 = vmatmul.bf16.vlgmr.msrb.gmra.mxu2 %v14954_v23  ;;  %v14976_v59 = vpop.f32.mrf.mxu2 }
  0xf8   : > { %v12123_v16 = vld [vmem:[%s14330_s13 + $0x19c0] sm:$0xf]  ;;  %v13785_v20 = vld [vmem:[%s14330_s13 + $0x19cc] sm:$0xf0]  ;;  %v11996_v30 = vor.u32 %v13753_v15, %v11995_v14  ;;  %7033 = vmatpush.bf16.msra.mxu2 %v12268_v12  ;;  %6999 = vmatmul.bf16.vlgmr.msrb.gmra.mxu3 %v14962_v29  ;;  %v6735_v12 = vadd.f32 %v6734_v8, %v14904_v24 }
  0xf9   : > { %17254 = vst [vmem:[#allocation21_spill] sm:$0xff] %v14949_v19  ;;  %v12251_v21 = vld [vmem:[%s14330_s13 + $0x1ac0] sm:$0xf]  ;;  %v13817_v22 = vld [vmem:[%s14330_s13 + $0x1acc] sm:$0xf0]  ;;  %v12124_v33 = vor.u32 %v13785_v20, %v12123_v16  ;;  %7047 = vmatpush.bf16.msra.mxu3 %v12396_v18  ;;  %6957 = vmatmul.bf16.vlgmr.msrb.gmra.mxu0 %v14949_v19 }
  0xfa   : > { %v12379_v26 = vld [vmem:[%s14330_s13 + $0x1bc0] sm:$0xf]  ;;  %v13849_v27 = vld [vmem:[%s14330_s13 + $0x1bcc] sm:$0xf0]  ;;  %v12252_v34 = vor.u32 %v13817_v22, %v12251_v21  ;;  %7006 = vmatpush.bf16.msra.mxu0 %v11996_v30  ;;  %v6748_v18 = vpop.f32.mrf.mxu1 }
  0xfb   : > { %v11979_v37 = vld [vmem:[%s14330_s13 + $0x18a0] sm:$0xf]  ;;  %v13749_v42 = vld [vmem:[%s14330_s13 + $0x18ac] sm:$0xf0]  ;;  %v12380_v48 = vor.u32 %v13849_v27, %v12379_v26  ;;  %7020 = vmatpush.bf16.msra.mxu1 %v12124_v33  ;;  %v6749_v27 = vadd.f32 %v6748_v18, %v6735_v12 }
  0xfc   : > { %v12107_v45 = vld [vmem:[%s14330_s13 + $0x19a0] sm:$0xf]  ;;  %v13781_v49 = vld [vmem:[%s14330_s13 + $0x19ac] sm:$0xf0]  ;;  %v11980_v57 = vor.u32 %v13749_v42, %v11979_v37  ;;  %7034 = vmatpush.bf16.msra.mxu2 %v12252_v34 }
  0xfd   : > { %v12235_v50 = vld [vmem:[%s14330_s13 + $0x1aa0] sm:$0xf]  ;;  %v13813_v52 = vld [vmem:[%s14330_s13 + $0x1aac] sm:$0xf0]  ;;  %v12108_v61 = vor.u32 %v13781_v49, %v12107_v45  ;;  %7048 = vmatpush.bf16.msra.mxu3 %v12380_v48 }
  0xfe   : > { %v12363_v53 = vld [vmem:[%s14330_s13 + $0x1ba0] sm:$0xf]  ;;  %v13845_v54 = vld [vmem:[%s14330_s13 + $0x1bac] sm:$0xf0]  ;;  %v12236_v62 = vor.u32 %v13813_v52, %v12235_v50  ;;  %7007 = vmatpush.bf16.msra.mxu0 %v11980_v57 }
  0xff   : > { %v11963_v63 = vld [vmem:[%s14330_s13 + $0x1880] sm:$0xf]  ;;  %v13745_v0 = vld [vmem:[%s14330_s13 + $0x188c] sm:$0xf0]  ;;  %v12364_v3 = vor.u32 %v13845_v54, %v12363_v53  ;;  %7021 = vmatpush.bf16.msra.mxu1 %v12108_v61  ;;  %v6762_v54 = vpop.f32.mrf.mxu2 }
 0x100   : > { %v12091_v2 = vld [vmem:[%s14330_s13 + $0x1980] sm:$0xf]  ;;  %v13777_v5 = vld [vmem:[%s14330_s13 + $0x198c] sm:$0xf0]  ;;  %v11964_v14 = vor.u32 %v13745_v0, %v11963_v63  ;;  %7035 = vmatpush.bf16.msra.mxu2 %v12236_v62  ;;  %v6763_v63 = vadd.f32 %v6762_v54, %v6749_v27 }
 0x101   : > { %v12219_v6 = vld [vmem:[%s14330_s13 + $0x1a80] sm:$0xf]  ;;  %v13809_v7 = vld [vmem:[%s14330_s13 + $0x1a8c] sm:$0xf0]  ;;  %v12092_v15 = vor.u32 %v13777_v5, %v12091_v2  ;;  %7049 = vmatpush.bf16.msra.mxu3 %v12364_v3  ;;  %v6776_v3 = vpop.f32.mrf.mxu3 }
 0x102   : > { %v12347_v9 = vld [vmem:[%s14330_s13 + $0x1b80] sm:$0xf]  ;;  %v13841_v11 = vld [vmem:[%s14330_s13 + $0x1b8c] sm:$0xf0]  ;;  %v12220_v16 = vor.u32 %v13809_v7, %v12219_v6  ;;  %7008 = vmatpush.bf16.msra.mxu0 %v11964_v14  ;;  %v15006_v7 = vadd.f32 %v6776_v3, %v6763_v63 }
 0x103   : > { %v11947_v20 = vld [vmem:[%s14330_s13 + $0x1860] sm:$0xf]  ;;  %v13741_v21 = vld [vmem:[%s14330_s13 + $0x186c] sm:$0xf0]  ;;  %v12348_v26 = vor.u32 %v13841_v11, %v12347_v9  ;;  %7022 = vmatpush.bf16.msra.mxu1 %v12092_v15 }
 0x104   : > { %v12075_v22 = vld [vmem:[%s14330_s13 + $0x1960] sm:$0xf]  ;;  %v13773_v30 = vld [vmem:[%s14330_s13 + $0x196c] sm:$0xf0]  ;;  %v11948_v42 = vor.u32 %v13741_v21, %v11947_v20  ;;  %7036 = vmatpush.bf16.msra.mxu2 %v12220_v16 }
 0x105   : > { %v12203_v33 = vld [vmem:[%s14330_s13 + $0x1a60] sm:$0xf]  ;;  %v13805_v24 = vld [vmem:[%s14330_s13 + $0x1a6c] sm:$0xf0]  ;;  %v12076_v45 = vor.u32 %v13773_v30, %v12075_v22  ;;  %7050 = vmatpush.bf16.msra.mxu3 %v12348_v26 }
 0x106   : > { %v12331_v34 = vld [vmem:[%s14330_s13 + $0x1b60] sm:$0xf]  ;;  %v13837_v37 = vld [vmem:[%s14330_s13 + $0x1b6c] sm:$0xf0]  ;;  %v12204_v48 = vor.u32 %v13805_v24, %v12203_v33  ;;  %7009 = vmatpush.bf16.msra.mxu0 %v11948_v42 }
 0x107   : > { %v11931_v49 = vld [vmem:[%s14330_s13 + $0x1840] sm:$0xf]  ;;  %v13737_v50 = vld [vmem:[%s14330_s13 + $0x184c] sm:$0xf0]  ;;  %v12332_v53 = vor.u32 %v13837_v37, %v12331_v34  ;;  %7023 = vmatpush.bf16.msra.mxu1 %v12076_v45 }
 0x108   : > { %v12059_v52 = vld [vmem:[%s14330_s13 + $0x1940] sm:$0xf]  ;;  %v13769_v57 = vld [vmem:[%s14330_s13 + $0x194c] sm:$0xf0]  ;;  %v11932_v5 = vor.u32 %v13737_v50, %v11931_v49  ;;  %7037 = vmatpush.bf16.msra.mxu2 %v12204_v48 }
 0x109   : > { %v12187_v61 = vld [vmem:[%s14330_s13 + $0x1a40] sm:$0xf]  ;;  %v13801_v62 = vld [vmem:[%s14330_s13 + $0x1a4c] sm:$0xf0]  ;;  %v12060_v8 = vor.u32 %v13769_v57, %v12059_v52  ;;  %7051 = vmatpush.bf16.msra.mxu3 %v12332_v53 }
 0x10a   : > { %v12315_v0 = vld [vmem:[%s14330_s13 + $0x1b40] sm:$0xf]  ;;  %v13833_v2 = vld [vmem:[%s14330_s13 + $0x1b4c] sm:$0xf0]  ;;  %v12188_v9 = vor.u32 %v13801_v62, %v12187_v61  ;;  %7010 = vmatpush.bf16.msra.mxu0 %v11932_v5 }
 0x10b   : > { %v11915_v6 = vld [vmem:[%s14330_s13 + $0x1820] sm:$0xf]  ;;  %v13733_v11 = vld [vmem:[%s14330_s13 + $0x182c] sm:$0xf0]  ;;  %v12316_v15 = vor.u32 %v13833_v2, %v12315_v0  ;;  %7024 = vmatpush.bf16.msra.mxu1 %v12060_v8  ;;  %v8803_v8 = vld [vmem:[%s17192_s0 + $0x68] sm:$0xf] }
 0x10c   : > { %v12043_v12 = vld [vmem:[%s14330_s13 + $0x1920] sm:$0xf]  ;;  %v13765_v14 = vld [vmem:[%s14330_s13 + $0x192c] sm:$0xf0]  ;;  %v11916_v27 = vor.u32 %v13733_v11, %v11915_v6  ;;  %7038 = vmatpush.bf16.msra.mxu2 %v12188_v9  ;;  %v12956_v9 = vld [vmem:[%s17192_s0 + $0xe4] sm:$0xf0] }
 0x10d   : > { %v12171_v16 = vld [vmem:[%s14330_s13 + $0x1a20] sm:$0xf]  ;;  %v13797_v18 = vld [vmem:[%s14330_s13 + $0x1a2c] sm:$0xf0]  ;;  %v12044_v37 = vor.u32 %v13765_v14, %v12043_v12  ;;  %7052 = vmatpush.bf16.msra.mxu3 %v12316_v15  ;;  %v12939_v11 = vld [vmem:[%s17192_s0 + $0x64] sm:$0xf] }
 0x10e   : > { %v12299_v20 = vld [vmem:[%s14330_s13 + $0x1b20] sm:$0xf]  ;;  %v13829_v21 = vld [vmem:[%s14330_s13 + $0x1b2c] sm:$0xf0]  ;;  %v12172_v42 = vor.u32 %v13797_v18, %v12171_v16  ;;  %7011 = vmatpush.bf16.msra.mxu0 %v11916_v27  ;;  %v8797_v15 = vld [vmem:[%s17192_s0 + $0xe0] sm:$0xf0] }
 0x10f   : > { %v11899_v22 = vld [vmem:[%s14330_s13 + $0x1800] sm:$0xf]  ;;  %v13729_v26 = vld [vmem:[%s14330_s13 + $0x180c] sm:$0xf0]  ;;  %v12300_v50 = vor.u32 %v13829_v21, %v12299_v20  ;;  %7025 = vmatpush.bf16.msra.mxu1 %v12044_v37  ;;  %v12940_v16 = vld [vmem:[%s17192_s0 + $0x6c] sm:$0xf] }
 0x110   : > { %v12027_v30 = vld [vmem:[%s14330_s13 + $0x1900] sm:$0xf]  ;;  %v13761_v33 = vld [vmem:[%s14330_s13 + $0x190c] sm:$0xf0]  ;;  %v11900_v63 = vor.u32 %v13729_v26, %v11899_v22  ;;  %7039 = vmatpush.bf16.msra.mxu2 %v12172_v42  ;;  %v8805_v18 = vld [vmem:[%s17192_s0 + $0xe8] sm:$0xf0]  ;;  %v15063_v42 = vpop.f32.mrf.mxu0 }
 0x111   : > { %v12155_v24 = vld [vmem:[%s14330_s13 + $0x1a00] sm:$0xf]  ;;  %v13793_v34 = vld [vmem:[%s14330_s13 + $0x1a0c] sm:$0xf0]  ;;  %v12028_v5 = vor.u32 %v13761_v33, %v12027_v30  ;;  %7053 = vmatpush.bf16.msra.mxu3 %v12300_v50  ;;  %17260 = vst [vmem:[#allocation27_spill] sm:$0xff] %v15063_v42 }
 0x112   : > { %v12283_v45 = vld [vmem:[%s14330_s13 + $0x1b00] sm:$0xf]  ;;  %v13825_v48 = vld [vmem:[%s14330_s13 + $0x1b0c] sm:$0xf0]  ;;  %v12156_v6 = vor.u32 %v13793_v34, %v12155_v24  ;;  %7012 = vmatpush.bf16.msra.mxu0 %v11900_v63  ;;  %v13143_v42 = vld [vmem:[%s14330_s13 + $0x5c4] sm:$0xf] }
 0x113   : > { %v12523_v49 = vld [vmem:[%s14330_s13 + $0x1ce0] sm:$0xf]  ;;  %v13885_v52 = vld [vmem:[%s14330_s13 + $0x1cec] sm:$0xf0]  ;;  %v12284_v12 = vor.u32 %v13825_v48, %v12283_v45  ;;  %7026 = vmatpush.bf16.msra.mxu1 %v12028_v5  ;;  %v15065_v45 = vor.u32 %v12956_v9, %v8803_v8  ;;  %v15067_v48 = vor.u32 %v12939_v11, %v8797_v15 }
 0x114   : > { %v12651_v53 = vld [vmem:[%s14330_s13 + $0x1de0] sm:$0xf]  ;;  %v13917_v54 = vld [vmem:[%s14330_s13 + $0x1dec] sm:$0xf0]  ;;  %v12524_v14 = vor.u32 %v13885_v52, %v12523_v49  ;;  %7040 = vmatpush.bf16.msra.mxu2 %v12156_v6  ;;  %v15071_v52 = vpop.f32.mrf.mxu1 }
 0x115   : > { %v12779_v57 = vld [vmem:[%s14330_s13 + $0x1ee0] sm:$0xf]  ;;  %v13949_v61 = vld [vmem:[%s14330_s13 + $0x1eec] sm:$0xf0]  ;;  %v12652_v20 = vor.u32 %v13917_v54, %v12651_v53  ;;  %17261 = vst [vmem:[#allocation28_spill] sm:$0xff] %v15065_v45  ;;  %7054 = vmatpush.bf16.msra.mxu3 %v12284_v12  ;;  %v15073_v53 = vor.u32 %v12940_v16, %v8805_v18 }
 0x116   : > { %v12907_v62 = vld [vmem:[%s14330_s13 + $0x1fe0] sm:$0xf]  ;;  %v13981_v0 = vld [vmem:[%s14330_s13 + $0x1fec] sm:$0xf0]  ;;  %v12780_v21 = vor.u32 %v13949_v61, %v12779_v57  ;;  %17262 = vst [vmem:[#allocation29_spill] sm:$0xff] %v15067_v48  ;;  %7061 = vmatpush.bf16.msrb.mxu0 %v12524_v14  ;;  %7027 = vmatmul.bf16.vlgmr.msra.gmra.mxu1 %v15067_v48 }
 0x117   : > { %v8795_v2 = vld [vmem:[%s17192_s0 + $0x60] sm:$0xf]  ;;  %v13881_v26 = vld [vmem:[%s14330_s13 + $0x1ccc] sm:$0xf0]  ;;  %v12908_v30 = vor.u32 %v13981_v0, %v12907_v62  ;;  %17263 = vst [vmem:[#allocation30_spill] sm:$0xff] %v15071_v52  ;;  %7075 = vmatpush.bf16.msrb.mxu1 %v12652_v20  ;;  %7041 = vmatmul.bf16.vlgmr.msra.gmra.mxu2 %v15065_v45  ;;  %v15090_v20 = vpop.f32.mrf.mxu2 }
 0x118   : > { %v12955_v3 = vld [vmem:[%s17192_s0 + $0xdc] sm:$0xf0]  ;;  %v13913_v24 = vld [vmem:[%s14330_s13 + $0x1dcc] sm:$0xf0]  ;;  %17264 = vst [vmem:[#allocation31_spill] sm:$0xff] %v15073_v53  ;;  %7089 = vmatpush.bf16.msrb.mxu2 %v12780_v21  ;;  %7055 = vmatmul.bf16.vlgmr.msra.gmra.mxu3 %v15073_v53 }
 0x119   : > { %v12507_v22 = vld [vmem:[%s14330_s13 + $0x1cc0] sm:$0xf]  ;;  %v15058_v33 = vor.u32 %v12955_v3, %v8795_v2  ;;  %v13945_v37 = vld [vmem:[%s14330_s13 + $0x1ecc] sm:$0xf0]  ;;  %7103 = vmatpush.bf16.msrb.mxu3 %v12908_v30  ;;  %17265 = vst [vmem:[#allocation32_spill] sm:$0xff] %v15090_v20  ;;  %v15095_v30 = vpop.f32.mrf.mxu3 }
 0x11a   : > { %v12635_v27 = vld [vmem:[%s14330_s13 + $0x1dc0] sm:$0xf]  ;;  %v13977_v50 = vld [vmem:[%s14330_s13 + $0x1fcc] sm:$0xf0]  ;;  %v12508_v54 = vor.u32 %v13881_v26, %v12507_v22  ;;  %17266 = vst [vmem:[#allocation33_spill] sm:$0xff] %v15095_v30 }
 0x11b   : > { %17259 = vst [vmem:[#allocation26_spill] sm:$0xff] %v15058_v33  ;;  %v12763_v34 = vld [vmem:[%s14330_s13 + $0x1ec0] sm:$0xf]  ;;  %v12636_v57 = vor.u32 %v13913_v24, %v12635_v27  ;;  %v13877_v63 = vld [vmem:[%s14330_s13 + $0x1cac] sm:$0xf0]  ;;  %7013 = vmatmul.bf16.vlgmr.msra.gmra.mxu0 %v15058_v33  ;;  %v6790_v24 = vpop.f32.mrf.mxu0 }
 0x11c   : > { %v12891_v49 = vld [vmem:[%s14330_s13 + $0x1fc0] sm:$0xf]  ;;  %v12764_v61 = vor.u32 %v13945_v37, %v12763_v34  ;;  %v13909_v3 = vld [vmem:[%s14330_s13 + $0x1dac] sm:$0xf0]  ;;  %7062 = vmatpush.bf16.msrb.mxu0 %v12508_v54  ;;  %v6804_v54 = vpop.f32.mrf.mxu1  ;;  %v13083_v30 = vld [vmem:[%s14330_s13 + $0x3e4] sm:$0xf] }
 0x11d   : > { %v12491_v62 = vld [vmem:[%s14330_s13 + $0x1ca0] sm:$0xf]  ;;  %v12892_v2 = vor.u32 %v13977_v50, %v12891_v49  ;;  %v13941_v6 = vld [vmem:[%s14330_s13 + $0x1eac] sm:$0xf0]  ;;  %7076 = vmatpush.bf16.msrb.mxu1 %v12636_v57  ;;  %v6791_v49 = vadd.f32 %v6790_v24, %v15006_v7  ;;  %v9325_v52 = vld [vmem:[%s14330_s13 + $0x3f0] sm:$0xf0] }
 0x11e   : > { %v12619_v0 = vld [vmem:[%s14330_s13 + $0x1da0] sm:$0xf]  ;;  %v13973_v9 = vld [vmem:[%s14330_s13 + $0x1fac] sm:$0xf0]  ;;  %v12492_v11 = vor.u32 %v13877_v63, %v12491_v62  ;;  %7090 = vmatpush.bf16.msrb.mxu2 %v12764_v61 }
 0x11f   : > { %v12747_v5 = vld [vmem:[%s14330_s13 + $0x1ea0] sm:$0xf]  ;;  %v12620_v12 = vor.u32 %v13909_v3, %v12619_v0  ;;  %v13873_v16 = vld [vmem:[%s14330_s13 + $0x1c8c] sm:$0xf0]  ;;  %7104 = vmatpush.bf16.msrb.mxu3 %v12892_v2  ;;  %v6805_v3 = vadd.f32 %v6804_v54, %v6791_v49 }
 0x120   : > { %v12875_v8 = vld [vmem:[%s14330_s13 + $0x1fa0] sm:$0xf]  ;;  %v12748_v14 = vor.u32 %v13941_v6, %v12747_v5  ;;  %v13905_v22 = vld [vmem:[%s14330_s13 + $0x1d8c] sm:$0xf0]  ;;  %7063 = vmatpush.bf16.msrb.mxu0 %v12492_v11 }
 0x121   : > { %v12475_v15 = vld [vmem:[%s14330_s13 + $0x1c80] sm:$0xf]  ;;  %v12876_v21 = vor.u32 %v13973_v9, %v12875_v8  ;;  %v13937_v27 = vld [vmem:[%s14330_s13 + $0x1e8c] sm:$0xf0]  ;;  %7077 = vmatpush.bf16.msrb.mxu1 %v12620_v12 }
 0x122   : > { %v12603_v18 = vld [vmem:[%s14330_s13 + $0x1d80] sm:$0xf]  ;;  %v13969_v37 = vld [vmem:[%s14330_s13 + $0x1f8c] sm:$0xf0]  ;;  %v12476_v50 = vor.u32 %v13873_v16, %v12475_v15  ;;  %7091 = vmatpush.bf16.msrb.mxu2 %v12748_v14 }
 0x123   : > { %v12731_v26 = vld [vmem:[%s14330_s13 + $0x1e80] sm:$0xf]  ;;  %v12604_v57 = vor.u32 %v13905_v22, %v12603_v18  ;;  %v13869_v63 = vld [vmem:[%s14330_s13 + $0x1c6c] sm:$0xf0]  ;;  %7105 = vmatpush.bf16.msrb.mxu3 %v12876_v21  ;;  %v6818_v22 = vpop.f32.mrf.mxu2 }
 0x124   : > { %v12859_v34 = vld [vmem:[%s14330_s13 + $0x1f80] sm:$0xf]  ;;  %v12732_v61 = vor.u32 %v13937_v27, %v12731_v26  ;;  %v13901_v5 = vld [vmem:[%s14330_s13 + $0x1d6c] sm:$0xf0]  ;;  %7064 = vmatpush.bf16.msrb.mxu0 %v12476_v50 }
 0x125   : > { %v12459_v62 = vld [vmem:[%s14330_s13 + $0x1c60] sm:$0xf]  ;;  %v12860_v2 = vor.u32 %v13969_v37, %v12859_v34  ;;  %v13933_v7 = vld [vmem:[%s14330_s13 + $0x1e6c] sm:$0xf0]  ;;  %7078 = vmatpush.bf16.msrb.mxu1 %v12604_v57  ;;  %v6819_v34 = vadd.f32 %v6818_v22, %v6805_v3  ;;  %v6832_v37 = vpop.f32.mrf.mxu3 }
 0x126   : > { %v12587_v0 = vld [vmem:[%s14330_s13 + $0x1d60] sm:$0xf]  ;;  %v13965_v9 = vld [vmem:[%s14330_s13 + $0x1f6c] sm:$0xf0]  ;;  %v12460_v11 = vor.u32 %v13869_v63, %v12459_v62  ;;  %7092 = vmatpush.bf16.msrb.mxu2 %v12732_v61 }
 0x127   : > { %v12715_v6 = vld [vmem:[%s14330_s13 + $0x1e60] sm:$0xf]  ;;  %v12588_v12 = vor.u32 %v13901_v5, %v12587_v0  ;;  %v13865_v16 = vld [vmem:[%s14330_s13 + $0x1c4c] sm:$0xf0]  ;;  %7106 = vmatpush.bf16.msrb.mxu3 %v12860_v2  ;;  %v15117_v61 = vadd.f32 %v6832_v37, %v6819_v34  ;;  %v12987_v34 = vld [vmem:[%s14330_s13 + $0xe4] sm:$0xf] }
 0x128   : > { %v12843_v8 = vld [vmem:[%s14330_s13 + $0x1f60] sm:$0xf]  ;;  %v12716_v14 = vor.u32 %v13933_v7, %v12715_v6  ;;  %v13897_v26 = vld [vmem:[%s14330_s13 + $0x1d4c] sm:$0xf0]  ;;  %7065 = vmatpush.bf16.msrb.mxu0 %v12460_v11 }
 0x129   : > { %v12443_v15 = vld [vmem:[%s14330_s13 + $0x1c40] sm:$0xf]  ;;  %v12844_v21 = vor.u32 %v13965_v9, %v12843_v8  ;;  %v13929_v24 = vld [vmem:[%s14330_s13 + $0x1e4c] sm:$0xf0]  ;;  %7079 = vmatpush.bf16.msrb.mxu1 %v12588_v12 }
 0x12a   : > { %v12571_v18 = vld [vmem:[%s14330_s13 + $0x1d40] sm:$0xf]  ;;  %v13961_v50 = vld [vmem:[%s14330_s13 + $0x1f4c] sm:$0xf0]  ;;  %v12444_v54 = vor.u32 %v13865_v16, %v12443_v15  ;;  %7093 = vmatpush.bf16.msrb.mxu2 %v12716_v14 }
 0x12b   : > { %v12699_v27 = vld [vmem:[%s14330_s13 + $0x1e40] sm:$0xf]  ;;  %v12572_v62 = vor.u32 %v13897_v26, %v12571_v18  ;;  %v13861_v0 = vld [vmem:[%s14330_s13 + $0x1c2c] sm:$0xf0]  ;;  %7107 = vmatpush.bf16.msrb.mxu3 %v12844_v21 }
 0x12c   : > { %v12827_v49 = vld [vmem:[%s14330_s13 + $0x1f40] sm:$0xf]  ;;  %v12700_v63 = vor.u32 %v13929_v24, %v12699_v27  ;;  %v13893_v3 = vld [vmem:[%s14330_s13 + $0x1d2c] sm:$0xf0]  ;;  %7066 = vmatpush.bf16.msrb.mxu0 %v12444_v54  ;;  %v9069_v54 = vld [vmem:[%s14330_s13 + $0x1f0] sm:$0xf0] }
 0x12d   : > { %v12427_v57 = vld [vmem:[%s14330_s13 + $0x1c20] sm:$0xf]  ;;  %v12828_v5 = vor.u32 %v13961_v50, %v12827_v49  ;;  %v13925_v7 = vld [vmem:[%s14330_s13 + $0x1e2c] sm:$0xf0]  ;;  %7080 = vmatpush.bf16.msrb.mxu1 %v12572_v62  ;;  %v8941_v49 = vld [vmem:[%s14330_s13 + $0xf0] sm:$0xf0] }
 0x12e   : > { %v12555_v2 = vld [vmem:[%s14330_s13 + $0x1d20] sm:$0xf]  ;;  %v13957_v9 = vld [vmem:[%s14330_s13 + $0x1f2c] sm:$0xf0]  ;;  %v12428_v14 = vor.u32 %v13861_v0, %v12427_v57  ;;  %7094 = vmatpush.bf16.msrb.mxu2 %v12700_v63  ;;  %v13019_v50 = vld [vmem:[%s14330_s13 + $0x1e4] sm:$0xf] }
 0x12f   : > { %v12683_v6 = vld [vmem:[%s14330_s13 + $0x1e20] sm:$0xf]  ;;  %v13857_v12 = vld [vmem:[%s14330_s13 + $0x1c0c] sm:$0xf0]  ;;  %v12556_v22 = vor.u32 %v13893_v3, %v12555_v2  ;;  %7108 = vmatpush.bf16.msrb.mxu3 %v12828_v5  ;;  %v13051_v57 = vld [vmem:[%s14330_s13 + $0x2e4] sm:$0xf] }
 0x130   : > { %v12811_v8 = vld [vmem:[%s14330_s13 + $0x1f20] sm:$0xf]  ;;  %v13889_v16 = vld [vmem:[%s14330_s13 + $0x1d0c] sm:$0xf0]  ;;  %v12684_v26 = vor.u32 %v13925_v7, %v12683_v6  ;;  %v9197_v0 = vld [vmem:[%s14330_s13 + $0x2f0] sm:$0xf0]  ;;  %7067 = vmatpush.bf16.msrb.mxu0 %v12428_v14 }
 0x131   : > { %v12411_v11 = vld [vmem:[%s14330_s13 + $0x1c00] sm:$0xf]  ;;  %v13921_v21 = vld [vmem:[%s14330_s13 + $0x1e0c] sm:$0xf0]  ;;  %v12812_v37 = vor.u32 %v13957_v9, %v12811_v8  ;;  %7081 = vmatpush.bf16.msrb.mxu1 %v12556_v22  ;;  %v8819_v5 = vld [vmem:[%s17192_s0 + $0x78] sm:$0xf]  ;;  %v8944_v9 = vor.u32 %v12987_v34, %v8941_v49  ;;  %v15174_v49 = vpop.f32.mrf.mxu0 }
 0x132   : > { %v12539_v15 = vld [vmem:[%s14330_s13 + $0x1d00] sm:$0xf]  ;;  %v13953_v24 = vld [vmem:[%s14330_s13 + $0x1f0c] sm:$0xf0]  ;;  %v12412_v20 = vor.u32 %v13857_v12, %v12411_v11  ;;  %7095 = vmatpush.bf16.msrb.mxu2 %v12684_v26  ;;  %v12958_v6 = vld [vmem:[%s17192_s0 + $0xf4] sm:$0xf0]  ;;  %v9328_v26 = vor.u32 %v13083_v30, %v9325_v52  ;;  %v15182_v52 = vpop.f32.mrf.mxu1 }
 0x133   : > { %v12667_v18 = vld [vmem:[%s14330_s13 + $0x1e00] sm:$0xf]  ;;  %v8811_v62 = vld [vmem:[%s17192_s0 + $0x70] sm:$0xf]  ;;  %v12540_v2 = vor.u32 %v13889_v16, %v12539_v15  ;;  %v12941_v7 = vld [vmem:[%s17192_s0 + $0x74] sm:$0xf]  ;;  %7109 = vmatpush.bf16.msrb.mxu3 %v12812_v37  ;;  %v9072_v15 = vor.u32 %v13019_v50, %v9069_v54  ;;  %v9200_v16 = vor.u32 %v13051_v57, %v9197_v0  ;;  %v15176_v50 = vor.u32 %v12958_v6, %v8819_v5 }
 0x134   : > { %v12795_v27 = vld [vmem:[%s14330_s13 + $0x1f00] sm:$0xf]  ;;  %v12957_v63 = vld [vmem:[%s17192_s0 + $0xec] sm:$0xf0]  ;;  %v12668_v3 = vor.u32 %v13921_v21, %v12667_v18  ;;  %v8813_v11 = vld [vmem:[%s17192_s0 + $0xf0] sm:$0xf0]  ;;  %7068 = vmatpush.bf16.msrb.mxu0 %v12412_v20 }
 0x135   : > { %v12796_v8 = vor.u32 %v13953_v24, %v12795_v27  ;;  %v12942_v12 = vld [vmem:[%s17192_s0 + $0x7c] sm:$0xf]  ;;  %v12983_v18 = vld [vmem:[%s14330_s13 + $0xc4] sm:$0xf]  ;;  %v8925_v21 = vld [vmem:[%s14330_s13 + $0xd0] sm:$0xf0]  ;;  %v15169_v27 = vor.u32 %v12957_v63, %v8811_v62  ;;  %7082 = vmatpush.bf16.msrb.mxu1 %v12540_v2  ;;  %v15178_v54 = vor.u32 %v12941_v7, %v8813_v11 }
 0x136   : > { %v8821_v14 = vld [vmem:[%s17192_s0 + $0xf8] sm:$0xf0]  ;;  %v13015_v22 = vld [vmem:[%s14330_s13 + $0x1c4] sm:$0xf]  ;;  %v9053_v24 = vld [vmem:[%s14330_s13 + $0x1d0] sm:$0xf0]  ;;  %7096 = vmatpush.bf16.msrb.mxu2 %v12668_v3  ;;  %v8928_v30 = vor.u32 %v12983_v18, %v8925_v21 }
 0x137   : > { %17267 = vst [vmem:[#allocation34_spill] sm:$0xff] %v15169_v27  ;;  %v13047_v34 = vld [vmem:[%s14330_s13 + $0x2c4] sm:$0xf]  ;;  %v9181_v37 = vld [vmem:[%s14330_s13 + $0x2d0] sm:$0xf0]  ;;  %7110 = vmatpush.bf16.msrb.mxu3 %v12796_v8  ;;  %v15184_v20 = vor.u32 %v12942_v12, %v8821_v14  ;;  %v9056_v62 = vor.u32 %v13015_v22, %v9053_v24  ;;  %7069 = vmatmul.bf16.vlgmr.msrb.gmra.mxu0 %v15169_v27 }
 0x138   : > { %17268 = vst [vmem:[#allocation35_spill] sm:$0xff] %v15174_v49  ;;  %v13079_v57 = vld [vmem:[%s14330_s13 + $0x3c4] sm:$0xf]  ;;  %v9309_v0 = vld [vmem:[%s14330_s13 + $0x3d0] sm:$0xf0]  ;;  %7117 = vmatpush.bf16.msra.mxu0 %v8944_v9  ;;  %v9184_v63 = vor.u32 %v13047_v34, %v9181_v37  ;;  %7083 = vmatmul.bf16.vlgmr.msrb.gmra.mxu1 %v15178_v54 }
 0x139   : > { %17269 = vst [vmem:[#allocation36_spill] sm:$0xff] %v15176_v50  ;;  %7131 = vmatpush.bf16.msra.mxu1 %v9072_v15  ;;  %v12979_v2 = vld [vmem:[%s14330_s13 + $0xa4] sm:$0xf]  ;;  %v8909_v3 = vld [vmem:[%s14330_s13 + $0xb0] sm:$0xf0]  ;;  %v9312_v6 = vor.u32 %v13079_v57, %v9309_v0  ;;  %7097 = vmatmul.bf16.vlgmr.msrb.gmra.mxu2 %v15176_v50  ;;  %v15206_v0 = vpop.f32.mrf.mxu3 }
 0x13a   : > { %17270 = vst [vmem:[#allocation37_spill] sm:$0xff] %v15178_v54  ;;  %7145 = vmatpush.bf16.msra.mxu2 %v9200_v16  ;;  %v13011_v5 = vld [vmem:[%s14330_s13 + $0x1a4] sm:$0xf]  ;;  %v9037_v7 = vld [vmem:[%s14330_s13 + $0x1b0] sm:$0xf0]  ;;  %7111 = vmatmul.bf16.vlgmr.msrb.gmra.mxu3 %v15184_v20  ;;  %v8912_v14 = vor.u32 %v12979_v2, %v8909_v3 }
 0x13b   : > { %17271 = vst [vmem:[#allocation38_spill] sm:$0xff] %v15182_v52  ;;  %7159 = vmatpush.bf16.msra.mxu3 %v9328_v26  ;;  %v13043_v8 = vld [vmem:[%s14330_s13 + $0x2a4] sm:$0xf]  ;;  %v9165_v9 = vld [vmem:[%s14330_s13 + $0x2b0] sm:$0xf0]  ;;  %v9040_v15 = vor.u32 %v13011_v5, %v9037_v7  ;;  %v15201_v26 = vpop.f32.mrf.mxu2  ;;  %v6860_v5 = vpop.f32.mrf.mxu1 }
 0x13c   : > { %17272 = vst [vmem:[#allocation39_spill] sm:$0xff] %v15184_v20  ;;  %v13075_v11 = vld [vmem:[%s14330_s13 + $0x3a4] sm:$0xf]  ;;  %v9293_v12 = vld [vmem:[%s14330_s13 + $0x3b0] sm:$0xf0]  ;;  %7118 = vmatpush.bf16.msra.mxu0 %v8928_v30  ;;  %v9168_v16 = vor.u32 %v13043_v8, %v9165_v9  ;;  %v6846_v30 = vpop.f32.mrf.mxu0 }
 0x13d   : > { %7132 = vmatpush.bf16.msra.mxu1 %v9056_v62  ;;  %v12975_v18 = vld [vmem:[%s14330_s13 + $0x84] sm:$0xf]  ;;  %v8893_v21 = vld [vmem:[%s14330_s13 + $0x90] sm:$0xf0]  ;;  %17273 = vst [vmem:[#allocation40_spill] sm:$0xff] %v15201_v26  ;;  %v9296_v24 = vor.u32 %v13075_v11, %v9293_v12  ;;  %v6847_v2 = vadd.f32 %v6846_v30, %v15117_v61 }
 0x13e   : > { %7146 = vmatpush.bf16.msra.mxu2 %v9184_v63  ;;  %v13007_v22 = vld [vmem:[%s14330_s13 + $0x184] sm:$0xf]  ;;  %v9021_v34 = vld [vmem:[%s14330_s13 + $0x190] sm:$0xf0]  ;;  %17274 = vst [vmem:[#allocation41_spill] sm:$0xff] %v15206_v0  ;;  %v8896_v3 = vor.u32 %v12975_v18, %v8893_v21 }
 0x13f   : > { %7160 = vmatpush.bf16.msra.mxu3 %v9312_v6  ;;  %v13039_v37 = vld [vmem:[%s14330_s13 + $0x284] sm:$0xf]  ;;  %v9149_v57 = vld [vmem:[%s14330_s13 + $0x290] sm:$0xf0]  ;;  %v9024_v6 = vor.u32 %v13007_v22, %v9021_v34 }
 0x140   : > { %v13071_v62 = vld [vmem:[%s14330_s13 + $0x384] sm:$0xf]  ;;  %v9277_v63 = vld [vmem:[%s14330_s13 + $0x390] sm:$0xf0]  ;;  %7119 = vmatpush.bf16.msra.mxu0 %v8912_v14  ;;  %v9152_v7 = vor.u32 %v13039_v37, %v9149_v57  ;;  %v6861_v14 = vadd.f32 %v6860_v5, %v6847_v2 }
 0x141   : > { %7133 = vmatpush.bf16.msra.mxu1 %v9040_v15  ;;  %v12971_v8 = vld [vmem:[%s14330_s13 + $0x64] sm:$0xf]  ;;  %v8877_v9 = vld [vmem:[%s14330_s13 + $0x70] sm:$0xf0]  ;;  %v9280_v12 = vor.u32 %v13071_v62, %v9277_v63  ;;  %v6888_v5 = vpop.f32.mrf.mxu3 }
 0x142   : > { %7147 = vmatpush.bf16.msra.mxu2 %v9168_v16  ;;  %v13003_v11 = vld [vmem:[%s14330_s13 + $0x164] sm:$0xf]  ;;  %v9005_v0 = vld [vmem:[%s14330_s13 + $0x170] sm:$0xf0]  ;;  %v8880_v16 = vor.u32 %v12971_v8, %v8877_v9 }
 0x143   : > { %7161 = vmatpush.bf16.msra.mxu3 %v9296_v24  ;;  %v13035_v26 = vld [vmem:[%s14330_s13 + $0x264] sm:$0xf]  ;;  %v9133_v61 = vld [vmem:[%s14330_s13 + $0x270] sm:$0xf0]  ;;  %v9008_v21 = vor.u32 %v13003_v11, %v9005_v0  ;;  %v6874_v30 = vpop.f32.mrf.mxu2 }
 0x144   : > { %v13067_v18 = vld [vmem:[%s14330_s13 + $0x364] sm:$0xf]  ;;  %v9261_v15 = vld [vmem:[%s14330_s13 + $0x370] sm:$0xf0]  ;;  %7120 = vmatpush.bf16.msra.mxu0 %v8896_v3  ;;  %v9136_v22 = vor.u32 %v13035_v26, %v9133_v61  ;;  %v6875_v3 = vadd.f32 %v6874_v30, %v6861_v14 }
 0x145   : > { %7134 = vmatpush.bf16.msra.mxu1 %v9024_v6  ;;  %v12967_v24 = vld [vmem:[%s14330_s13 + $0x44] sm:$0xf]  ;;  %v8861_v34 = vld [vmem:[%s14330_s13 + $0x50] sm:$0xf0]  ;;  %v9264_v57 = vor.u32 %v13067_v18, %v9261_v15 }
 0x146   : > { %7148 = vmatpush.bf16.msra.mxu2 %v9152_v7  ;;  %v12999_v37 = vld [vmem:[%s14330_s13 + $0x144] sm:$0xf]  ;;  %v8989_v62 = vld [vmem:[%s14330_s13 + $0x150] sm:$0xf0]  ;;  %v8864_v26 = vor.u32 %v12967_v24, %v8861_v34  ;;  %v15227_v7 = vadd.f32 %v6888_v5, %v6875_v3 }
 0x147   : > { %7162 = vmatpush.bf16.msra.mxu3 %v9280_v12  ;;  %v13031_v63 = vld [vmem:[%s14330_s13 + $0x244] sm:$0xf]  ;;  %v9117_v2 = vld [vmem:[%s14330_s13 + $0x250] sm:$0xf0]  ;;  %v8992_v8 = vor.u32 %v12999_v37, %v8989_v62 }
 0x148   : > { %v13063_v6 = vld [vmem:[%s14330_s13 + $0x344] sm:$0xf]  ;;  %v9245_v0 = vld [vmem:[%s14330_s13 + $0x350] sm:$0xf0]  ;;  %7121 = vmatpush.bf16.msra.mxu0 %v8880_v16  ;;  %v9120_v9 = vor.u32 %v13031_v63, %v9117_v2 }
 0x149   : > { %7135 = vmatpush.bf16.msra.mxu1 %v9008_v21  ;;  %v12963_v11 = vld [vmem:[%s14330_s13 + $0x24] sm:$0xf]  ;;  %v8845_v12 = vld [vmem:[%s14330_s13 + $0x30] sm:$0xf0]  ;;  %v9248_v61 = vor.u32 %v13063_v6, %v9245_v0 }
 0x14a   : > { %7149 = vmatpush.bf16.msra.mxu2 %v9136_v22  ;;  %v12995_v14 = vld [vmem:[%s14330_s13 + $0x124] sm:$0xf]  ;;  %v8973_v18 = vld [vmem:[%s14330_s13 + $0x130] sm:$0xf0]  ;;  %v8848_v24 = vor.u32 %v12963_v11, %v8845_v12 }
 0x14b   : > { %7163 = vmatpush.bf16.msra.mxu3 %v9264_v57  ;;  %v13027_v15 = vld [vmem:[%s14330_s13 + $0x224] sm:$0xf]  ;;  %v9101_v16 = vld [vmem:[%s14330_s13 + $0x230] sm:$0xf0]  ;;  %v8976_v57 = vor.u32 %v12995_v14, %v8973_v18 }
 0x14c   : > { %v13059_v21 = vld [vmem:[%s14330_s13 + $0x324] sm:$0xf]  ;;  %v9229_v22 = vld [vmem:[%s14330_s13 + $0x330] sm:$0xf0]  ;;  %7122 = vmatpush.bf16.msra.mxu0 %v8864_v26  ;;  %v9104_v30 = vor.u32 %v13027_v15, %v9101_v16 }
 0x14d   : > { %v12959_v34 = vld [vmem:[%s14330_s13 + $0x4] sm:$0xf]  ;;  %v8829_v37 = vld [vmem:[%s14330_s13 + $0x10] sm:$0xf0]  ;;  %7136 = vmatpush.bf16.msra.mxu1 %v8992_v8  ;;  %v9232_v3 = vor.u32 %v13059_v21, %v9229_v22 }
 0x14e   : > { %7150 = vmatpush.bf16.msra.mxu2 %v9120_v9  ;;  %v12991_v62 = vld [vmem:[%s14330_s13 + $0x104] sm:$0xf]  ;;  %v8957_v63 = vld [vmem:[%s14330_s13 + $0x110] sm:$0xf0]  ;;  %v8832_v8 = vor.u32 %v12959_v34, %v8829_v37 }
 0x14f   : > { %v13023_v2 = vld [vmem:[%s14330_s13 + $0x204] sm:$0xf]  ;;  %7164 = vmatpush.bf16.msra.mxu3 %v9248_v61  ;;  %v9085_v5 = vld [vmem:[%s14330_s13 + $0x210] sm:$0xf0]  ;;  %v8960_v61 = vor.u32 %v12991_v62, %v8957_v63  ;;  %v15259_v63 = vpop.f32.mrf.mxu0 }
 0x150   : > { %v13055_v6 = vld [vmem:[%s14330_s13 + $0x304] sm:$0xf]  ;;  %v9213_v0 = vld [vmem:[%s14330_s13 + $0x310] sm:$0xf0]  ;;  %7123 = vmatpush.bf16.msra.mxu0 %v8848_v24  ;;  %v9088_v15 = vor.u32 %v13023_v2, %v9085_v5  ;;  %17275 = vst [vmem:[#allocation42_spill] sm:$0xff] %v15259_v63  ;;  %v15263_v5 = vpop.f32.mrf.mxu1 }
 0x151   : > { %v13115_v26 = vld [vmem:[%s14330_s13 + $0x4e4] sm:$0xf]  ;;  %v9453_v11 = vld [vmem:[%s14330_s13 + $0x4f0] sm:$0xf0]  ;;  %7137 = vmatpush.bf16.msra.mxu1 %v8976_v57  ;;  %v9216_v22 = vor.u32 %v13055_v6, %v9213_v0  ;;  %17276 = vst [vmem:[#allocation43_spill] sm:$0xff] %v15263_v5  ;;  %v9568_v0 = vor.u32 %v13143_v42, %v9565_v4 }
 0x152   : > { %v13147_v12 = vld [vmem:[%s14330_s13 + $0x5e4] sm:$0xf]  ;;  %v9581_v9 = vld [vmem:[%s14330_s13 + $0x5f0] sm:$0xf0]  ;;  %7151 = vmatpush.bf16.msra.mxu2 %v9104_v30  ;;  %v9456_v24 = vor.u32 %v13115_v26, %v9453_v11 }
 0x153   : > { %v13179_v14 = vld [vmem:[%s14330_s13 + $0x6e4] sm:$0xf]  ;;  %v9709_v18 = vld [vmem:[%s14330_s13 + $0x6f0] sm:$0xf0]  ;;  %7165 = vmatpush.bf16.msra.mxu3 %v9232_v3  ;;  %v9584_v34 = vor.u32 %v13147_v12, %v9581_v9 }
 0x154   : > { %v13211_v16 = vld [vmem:[%s14330_s13 + $0x7e4] sm:$0xf]  ;;  %v9837_v21 = vld [vmem:[%s14330_s13 + $0x7f0] sm:$0xf0]  ;;  %v9712_v37 = vor.u32 %v13179_v14, %v9709_v18  ;;  %7124 = vmatpush.bf16.msra.mxu0 %v8832_v8 }
 0x155   : > { %v13111_v52 = vld [vmem:[%s14330_s13 + $0x4c4] sm:$0xf]  ;;  %v9437_v49 = vld [vmem:[%s14330_s13 + $0x4d0] sm:$0xf0]  ;;  %v9840_v57 = vor.u32 %v13211_v16, %v9837_v21  ;;  %7138 = vmatpush.bf16.msra.mxu1 %v8960_v61 }
 0x156   : > { %v13175_v30 = vld [vmem:[%s14330_s13 + $0x6c4] sm:$0xf]  ;;  %v9693_v62 = vld [vmem:[%s14330_s13 + $0x6d0] sm:$0xf0]  ;;  %7152 = vmatpush.bf16.msra.mxu2 %v9088_v15  ;;  %v9440_v6 = vor.u32 %v13111_v52, %v9437_v49 }
 0x157   : > { %v13207_v2 = vld [vmem:[%s14330_s13 + $0x7c4] sm:$0xf]  ;;  %v9821_v3 = vld [vmem:[%s14330_s13 + $0x7d0] sm:$0xf0]  ;;  %7166 = vmatpush.bf16.msra.mxu3 %v9216_v22  ;;  %v9696_v26 = vor.u32 %v13175_v30, %v9693_v62  ;;  %7125 = vmatmul.bf16.vlgmr.msra.gmra.mxu0 %v14437_v58  ;;  %v15285_v62 = vpop.f32.mrf.mxu3 }
 0x158   : > { %7173 = vmatpush.bf16.msrb.mxu0 %v9456_v24  ;;  %v13107_v11 = vld [vmem:[%s14330_s13 + $0x4a4] sm:$0xf]  ;;  %v9421_v12 = vld [vmem:[%s14330_s13 + $0x4b0] sm:$0xf0]  ;;  %v9824_v9 = vor.u32 %v13207_v2, %v9821_v3  ;;  %7139 = vmatmul.bf16.vlgmr.msra.gmra.mxu1 %v14461_v10  ;;  %v15280_v24 = vpop.f32.mrf.mxu2  ;;  %17278 = vst [vmem:[#allocation45_spill] sm:$0xff] %v15285_v62  ;;  %v6902_v2 = vpop.f32.mrf.mxu0 }
 0x159   : > { %7187 = vmatpush.bf16.msrb.mxu1 %v9584_v34  ;;  %v13139_v8 = vld [vmem:[%s14330_s13 + $0x5a4] sm:$0xf]  ;;  %v9549_v14 = vld [vmem:[%s14330_s13 + $0x5b0] sm:$0xf0]  ;;  %7153 = vmatmul.bf16.vlgmr.msra.gmra.mxu2 %v14445_v1  ;;  %v9424_v4 = vor.u32 %v13107_v11, %v9421_v12  ;;  %17277 = vst [vmem:[#allocation44_spill] sm:$0xff] %v15280_v24  ;;  %v6916_v11 = vpop.f32.mrf.mxu1 }
 0x15a   : > { %7201 = vmatpush.bf16.msrb.mxu2 %v9712_v37  ;;  %v13171_v18 = vld [vmem:[%s14330_s13 + $0x6a4] sm:$0xf]  ;;  %v9677_v61 = vld [vmem:[%s14330_s13 + $0x6b0] sm:$0xf0]  ;;  %7167 = vmatmul.bf16.vlgmr.msra.gmra.mxu3 %v14469_v17  ;;  %v9552_v42 = vor.u32 %v13139_v8, %v9549_v14 }
 0x15b   : > { %7215 = vmatpush.bf16.msrb.mxu3 %v9840_v57  ;;  %v13203_v15 = vld [vmem:[%s14330_s13 + $0x7a4] sm:$0xf]  ;;  %v9805_v16 = vld [vmem:[%s14330_s13 + $0x7b0] sm:$0xf0]  ;;  %v9680_v49 = vor.u32 %v13171_v18, %v9677_v61 }
 0x15c   : > { %7174 = vmatpush.bf16.msrb.mxu0 %v9440_v6  ;;  %v13103_v52 = vld [vmem:[%s14330_s13 + $0x484] sm:$0xf]  ;;  %v9405_v21 = vld [vmem:[%s14330_s13 + $0x490] sm:$0xf0]  ;;  %v9808_v34 = vor.u32 %v13203_v15, %v9805_v16 }
 0x15d   : > { %7188 = vmatpush.bf16.msrb.mxu1 %v9568_v0  ;;  %v13135_v22 = vld [vmem:[%s14330_s13 + $0x584] sm:$0xf]  ;;  %v9533_v37 = vld [vmem:[%s14330_s13 + $0x590] sm:$0xf0]  ;;  %v6903_v0 = vadd.f32 %v6902_v2, %v15227_v7 }
 0x15e   : > { %7202 = vmatpush.bf16.msrb.mxu2 %v9696_v26  ;;  %v13167_v57 = vld [vmem:[%s14330_s13 + $0x684] sm:$0xf]  ;;  %v9661_v30 = vld [vmem:[%s14330_s13 + $0x690] sm:$0xf0]  ;;  %v9408_v26 = vor.u32 %v13103_v52, %v9405_v21  ;;  %v9536_v12 = vor.u32 %v13135_v22, %v9533_v37 }
 0x15f   : > { %7216 = vmatpush.bf16.msrb.mxu3 %v9824_v9  ;;  %v13199_v3 = vld [vmem:[%s14330_s13 + $0x784] sm:$0xf]  ;;  %v9789_v6 = vld [vmem:[%s14330_s13 + $0x790] sm:$0xf0]  ;;  %v9664_v8 = vor.u32 %v13167_v57, %v9661_v30  ;;  %v6917_v15 = vadd.f32 %v6916_v11, %v6903_v0  ;;  %v6944_v11 = vpop.f32.mrf.mxu3 }
 0x160   : > { %7175 = vmatpush.bf16.msrb.mxu0 %v9424_v4  ;;  %v13099_v9 = vld [vmem:[%s14330_s13 + $0x464] sm:$0xf]  ;;  %v9389_v14 = vld [vmem:[%s14330_s13 + $0x470] sm:$0xf0]  ;;  %v9792_v61 = vor.u32 %v13199_v3, %v9789_v6  ;;  %v6930_v2 = vpop.f32.mrf.mxu2 }
 0x161   : > { %7189 = vmatpush.bf16.msrb.mxu1 %v9552_v42  ;;  %v13131_v18 = vld [vmem:[%s14330_s13 + $0x564] sm:$0xf]  ;;  %v9517_v16 = vld [vmem:[%s14330_s13 + $0x570] sm:$0xf0] }
 0x162   : > { %7203 = vmatpush.bf16.msrb.mxu2 %v9680_v49  ;;  %v13163_v4 = vld [vmem:[%s14330_s13 + $0x664] sm:$0xf]  ;;  %v9645_v7 = vld [vmem:[%s14330_s13 + $0x670] sm:$0xf0]  ;;  %v9392_v49 = vor.u32 %v13099_v9, %v9389_v14  ;;  %v9520_v21 = vor.u32 %v13131_v18, %v9517_v16 }
 0x163   : > { %7217 = vmatpush.bf16.msrb.mxu3 %v9808_v34  ;;  %v13195_v52 = vld [vmem:[%s14330_s13 + $0x764] sm:$0xf]  ;;  %v9773_v42 = vld [vmem:[%s14330_s13 + $0x770] sm:$0xf0]  ;;  %v9648_v22 = vor.u32 %v13163_v4, %v9645_v7 }
 0x164   : > { %7176 = vmatpush.bf16.msrb.mxu0 %v9408_v26  ;;  %v13095_v34 = vld [vmem:[%s14330_s13 + $0x444] sm:$0xf]  ;;  %v9373_v37 = vld [vmem:[%s14330_s13 + $0x450] sm:$0xf0]  ;;  %v9776_v30 = vor.u32 %v13195_v52, %v9773_v42  ;;  %v6931_v26 = vadd.f32 %v6930_v2, %v6917_v15 }
 0x165   : > { %7190 = vmatpush.bf16.msrb.mxu1 %v9536_v12  ;;  %v13127_v57 = vld [vmem:[%s14330_s13 + $0x544] sm:$0xf]  ;;  %v9501_v3 = vld [vmem:[%s14330_s13 + $0x550] sm:$0xf0]  ;;  %v9376_v9 = vor.u32 %v13095_v34, %v9373_v37 }
 0x166   : > { %7204 = vmatpush.bf16.msrb.mxu2 %v9664_v8  ;;  %v13159_v6 = vld [vmem:[%s14330_s13 + $0x644] sm:$0xf]  ;;  %v9629_v0 = vld [vmem:[%s14330_s13 + $0x650] sm:$0xf0]  ;;  %v15306_v14 = vadd.f32 %v6944_v11, %v6931_v26  ;;  %v9504_v18 = vor.u32 %v13127_v57, %v9501_v3 }
 0x167   : > { %7218 = vmatpush.bf16.msrb.mxu3 %v9792_v61  ;;  %v13191_v12 = vld [vmem:[%s14330_s13 + $0x744] sm:$0xf]  ;;  %v9757_v8 = vld [vmem:[%s14330_s13 + $0x750] sm:$0xf0]  ;;  %v9632_v61 = vor.u32 %v13159_v6, %v9629_v0 }
 0x168   : > { %7177 = vmatpush.bf16.msrb.mxu0 %v9392_v49  ;;  %v13091_v16 = vld [vmem:[%s14330_s13 + $0x424] sm:$0xf]  ;;  %v9357_v15 = vld [vmem:[%s14330_s13 + $0x430] sm:$0xf0]  ;;  %v9760_v7 = vor.u32 %v13191_v12, %v9757_v8 }
 0x169   : > { %7191 = vmatpush.bf16.msrb.mxu1 %v9520_v21  ;;  %v13123_v4 = vld [vmem:[%s14330_s13 + $0x524] sm:$0xf]  ;;  %v9485_v52 = vld [vmem:[%s14330_s13 + $0x530] sm:$0xf0]  ;;  %v9360_v34 = vor.u32 %v13091_v16, %v9357_v15 }
 0x16a   : > { %7205 = vmatpush.bf16.msrb.mxu2 %v9648_v22  ;;  %v13155_v42 = vld [vmem:[%s14330_s13 + $0x624] sm:$0xf]  ;;  %v9613_v49 = vld [vmem:[%s14330_s13 + $0x630] sm:$0xf0] }
 0x16b   : > { %7219 = vmatpush.bf16.msrb.mxu3 %v9776_v30  ;;  %v13187_v21 = vld [vmem:[%s14330_s13 + $0x724] sm:$0xf]  ;;  %v9741_v22 = vld [vmem:[%s14330_s13 + $0x730] sm:$0xf0]  ;;  %v9488_v30 = vor.u32 %v13123_v4, %v9485_v52  ;;  %v9616_v2 = vor.u32 %v13155_v42, %v9613_v49 }
 0x16c   : > { %7178 = vmatpush.bf16.msrb.mxu0 %v9376_v9  ;;  %v13087_v37 = vld [vmem:[%s14330_s13 + $0x404] sm:$0xf]  ;;  %v9341_v57 = vld [vmem:[%s14330_s13 + $0x410] sm:$0xf0]  ;;  %v9744_v26 = vor.u32 %v13187_v21, %v9741_v22 }
 0x16d   : > { %7192 = vmatpush.bf16.msrb.mxu1 %v9504_v18  ;;  %v13119_v3 = vld [vmem:[%s14330_s13 + $0x504] sm:$0xf]  ;;  %v9469_v6 = vld [vmem:[%s14330_s13 + $0x510] sm:$0xf0]  ;;  %v9344_v18 = vor.u32 %v13087_v37, %v9341_v57 }
 0x16e   : > { %7206 = vmatpush.bf16.msrb.mxu2 %v9632_v61  ;;  %v13151_v0 = vld [vmem:[%s14330_s13 + $0x604] sm:$0xf]  ;;  %v9597_v11 = vld [vmem:[%s14330_s13 + $0x610] sm:$0xf0] }
 0x16f   : > { %7220 = vmatpush.bf16.msrb.mxu3 %v9760_v7  ;;  %v13183_v12 = vld [vmem:[%s14330_s13 + $0x704] sm:$0xf]  ;;  %v9725_v8 = vld [vmem:[%s14330_s13 + $0x710] sm:$0xf0]  ;;  %v9472_v7 = vor.u32 %v13119_v3, %v9469_v6  ;;  %v9600_v42 = vor.u32 %v13151_v0, %v9597_v11  ;;  %v15338_v6 = vpop.f32.mrf.mxu0  ;;  %v15342_v11 = vpop.f32.mrf.mxu1 }
 0x170   : > { %v13243_v9 = vld [vmem:[%s14330_s13 + $0x8e4] sm:$0xf]  ;;  %v9965_v16 = vld [vmem:[%s14330_s13 + $0x8f0] sm:$0xf0]  ;;  %7179 = vmatpush.bf16.msrb.mxu0 %v9360_v34  ;;  %v9728_v22 = vor.u32 %v13183_v12, %v9725_v8  ;;  %17279 = vst [vmem:[#allocation46_spill] sm:$0xff] %v15338_v6 }
 0x171   : > { %v13275_v15 = vld [vmem:[%s14330_s13 + $0x9e4] sm:$0xf]  ;;  %v10093_v61 = vld [vmem:[%s14330_s13 + $0x9f0] sm:$0xf0]  ;;  %7193 = vmatpush.bf16.msrb.mxu1 %v9488_v30  ;;  %v9968_v34 = vor.u32 %v13243_v9, %v9965_v16  ;;  %17280 = vst [vmem:[#allocation47_spill] sm:$0xff] %v15342_v11 }
 0x172   : > { %v13307_v4 = vld [vmem:[%s14330_s13 + $0xae4] sm:$0xf]  ;;  %v10221_v52 = vld [vmem:[%s14330_s13 + $0xaf0] sm:$0xf0]  ;;  %7207 = vmatpush.bf16.msrb.mxu2 %v9616_v2  ;;  %v10096_v37 = vor.u32 %v13275_v15, %v10093_v61 }
 0x173   : > { %v13339_v49 = vld [vmem:[%s14330_s13 + $0xbe4] sm:$0xf]  ;;  %v10349_v21 = vld [vmem:[%s14330_s13 + $0xbf0] sm:$0xf0]  ;;  %7221 = vmatpush.bf16.msrb.mxu3 %v9744_v26  ;;  %v10224_v57 = vor.u32 %v13307_v4, %v10221_v52 }
 0x174   : > { %v13239_v62 = vld [vmem:[%s14330_s13 + $0x8c4] sm:$0xf]  ;;  %v9949_v24 = vld [vmem:[%s14330_s13 + $0x8d0] sm:$0xf0]  ;;  %7180 = vmatpush.bf16.msrb.mxu0 %v9344_v18  ;;  %v10352_v30 = vor.u32 %v13339_v49, %v10349_v21 }
 0x175   : > { %v13271_v5 = vld [vmem:[%s14330_s13 + $0x9c4] sm:$0xf]  ;;  %v10077_v63 = vld [vmem:[%s14330_s13 + $0x9d0] sm:$0xf0]  ;;  %7194 = vmatpush.bf16.msrb.mxu1 %v9472_v7  ;;  %v9952_v12 = vor.u32 %v13239_v62, %v9949_v24 }
 0x176   : > { %v13303_v2 = vld [vmem:[%s14330_s13 + $0xac4] sm:$0xf]  ;;  %v10205_v3 = vld [vmem:[%s14330_s13 + $0xad0] sm:$0xf0]  ;;  %7208 = vmatpush.bf16.msrb.mxu2 %v9600_v42  ;;  %v10080_v8 = vor.u32 %v13271_v5, %v10077_v63 }
 0x177   : > { %v13335_v0 = vld [vmem:[%s14330_s13 + $0xbc4] sm:$0xf]  ;;  %v10333_v26 = vld [vmem:[%s14330_s13 + $0xbd0] sm:$0xf0]  ;;  %7222 = vmatpush.bf16.msrb.mxu3 %v9728_v22  ;;  %v10208_v9 = vor.u32 %v13303_v2, %v10205_v3  ;;  %7181 = vmatmul.bf16.vlgmr.msrb.gmra.mxu0 %v14545_v39  ;;  %v15364_v3 = vpop.f32.mrf.mxu3 }
 0x178   : > { %7229 = vmatpush.bf16.msra.mxu0 %v9968_v34  ;;  %v13235_v16 = vld [vmem:[%s14330_s13 + $0x8a4] sm:$0xf]  ;;  %v9933_v15 = vld [vmem:[%s14330_s13 + $0x8b0] sm:$0xf0]  ;;  %v10336_v61 = vor.u32 %v13335_v0, %v10333_v26  ;;  %7195 = vmatmul.bf16.vlgmr.msrb.gmra.mxu1 %v14552_v44  ;;  %v15359_v34 = vpop.f32.mrf.mxu2  ;;  %17282 = vst [vmem:[#allocation49_spill] sm:$0xff] %v15364_v3  ;;  %v6958_v0 = vpop.f32.mrf.mxu0 }
 0x179   : > { %7243 = vmatpush.bf16.msra.mxu1 %v10096_v37  ;;  %v13267_v18 = vld [vmem:[%s14330_s13 + $0x9a4] sm:$0xf]  ;;  %v10061_v4 = vld [vmem:[%s14330_s13 + $0x9b0] sm:$0xf0]  ;;  %7209 = vmatmul.bf16.vlgmr.msrb.gmra.mxu2 %v14550_v43  ;;  %v9936_v24 = vor.u32 %v13235_v16, %v9933_v15  ;;  %17281 = vst [vmem:[#allocation48_spill] sm:$0xff] %v15359_v34  ;;  %v6972_v16 = vpop.f32.mrf.mxu1 }
 0x17a   : > { %7257 = vmatpush.bf16.msra.mxu2 %v10224_v57  ;;  %v13299_v52 = vld [vmem:[%s14330_s13 + $0xaa4] sm:$0xf]  ;;  %v10189_v7 = vld [vmem:[%s14330_s13 + $0xab0] sm:$0xf0]  ;;  %7223 = vmatmul.bf16.vlgmr.msrb.gmra.mxu3 %v14556_v47  ;;  %v10064_v62 = vor.u32 %v13267_v18, %v10061_v4 }
 0x17b   : > { %7271 = vmatpush.bf16.msra.mxu3 %v10352_v30  ;;  %v13331_v63 = vld [vmem:[%s14330_s13 + $0xba4] sm:$0xf]  ;;  %v10317_v5 = vld [vmem:[%s14330_s13 + $0xbb0] sm:$0xf0]  ;;  %v10192_v42 = vor.u32 %v13299_v52, %v10189_v7 }
 0x17c   : > { %7230 = vmatpush.bf16.msra.mxu0 %v9952_v12  ;;  %v13231_v49 = vld [vmem:[%s14330_s13 + $0x884] sm:$0xf]  ;;  %v9917_v21 = vld [vmem:[%s14330_s13 + $0x890] sm:$0xf0]  ;;  %v10320_v37 = vor.u32 %v13331_v63, %v10317_v5 }
 0x17d   : > { %7244 = vmatpush.bf16.msra.mxu1 %v10080_v8  ;;  %v13263_v22 = vld [vmem:[%s14330_s13 + $0x984] sm:$0xf]  ;;  %v10045_v57 = vld [vmem:[%s14330_s13 + $0x990] sm:$0xf0]  ;;  %v6959_v8 = vadd.f32 %v6958_v0, %v15306_v14 }
 0x17e   : > { %7258 = vmatpush.bf16.msra.mxu2 %v10208_v9  ;;  %v13295_v30 = vld [vmem:[%s14330_s13 + $0xa84] sm:$0xf]  ;;  %v10173_v2 = vld [vmem:[%s14330_s13 + $0xa90] sm:$0xf0]  ;;  %v9920_v9 = vor.u32 %v13231_v49, %v9917_v21  ;;  %v10048_v15 = vor.u32 %v13263_v22, %v10045_v57 }
 0x17f   : > { %7272 = vmatpush.bf16.msra.mxu3 %v10336_v61  ;;  %v13327_v26 = vld [vmem:[%s14330_s13 + $0xb84] sm:$0xf]  ;;  %v10301_v12 = vld [vmem:[%s14330_s13 + $0xb90] sm:$0xf0]  ;;  %v10176_v18 = vor.u32 %v13295_v30, %v10173_v2  ;;  %v6973_v63 = vadd.f32 %v6972_v16, %v6959_v8  ;;  %v7000_v16 = vpop.f32.mrf.mxu3 }
 0x180   : > { %7231 = vmatpush.bf16.msra.mxu0 %v9936_v24  ;;  %v13227_v61 = vld [vmem:[%s14330_s13 + $0x864] sm:$0xf]  ;;  %v9901_v4 = vld [vmem:[%s14330_s13 + $0x870] sm:$0xf0]  ;;  %v10304_v7 = vor.u32 %v13327_v26, %v10301_v12  ;;  %v6986_v0 = vpop.f32.mrf.mxu2 }
 0x181   : > { %7245 = vmatpush.bf16.msra.mxu1 %v10064_v62  ;;  %v13259_v52 = vld [vmem:[%s14330_s13 + $0x964] sm:$0xf]  ;;  %v10029_v5 = vld [vmem:[%s14330_s13 + $0x970] sm:$0xf0] }
 0x182   : > { %7259 = vmatpush.bf16.msra.mxu2 %v10192_v42  ;;  %v13291_v24 = vld [vmem:[%s14330_s13 + $0xa64] sm:$0xf]  ;;  %v10157_v14 = vld [vmem:[%s14330_s13 + $0xa70] sm:$0xf0]  ;;  %v9904_v42 = vor.u32 %v13227_v61, %v9901_v4  ;;  %v10032_v21 = vor.u32 %v13259_v52, %v10029_v5 }
 0x183   : > { %7273 = vmatpush.bf16.msra.mxu3 %v10320_v37  ;;  %v13323_v49 = vld [vmem:[%s14330_s13 + $0xb64] sm:$0xf]  ;;  %v10285_v62 = vld [vmem:[%s14330_s13 + $0xb70] sm:$0xf0]  ;;  %v10160_v22 = vor.u32 %v13291_v24, %v10157_v14 }
 0x184   : > { %7232 = vmatpush.bf16.msra.mxu0 %v9920_v9  ;;  %v13223_v37 = vld [vmem:[%s14330_s13 + $0x844] sm:$0xf]  ;;  %v9885_v57 = vld [vmem:[%s14330_s13 + $0x850] sm:$0xf0]  ;;  %v10288_v2 = vor.u32 %v13323_v49, %v10285_v62  ;;  %v6987_v9 = vadd.f32 %v6986_v0, %v6973_v63 }
 0x185   : > { %7246 = vmatpush.bf16.msra.mxu1 %v10048_v15  ;;  %v13255_v30 = vld [vmem:[%s14330_s13 + $0x944] sm:$0xf]  ;;  %v10013_v26 = vld [vmem:[%s14330_s13 + $0x950] sm:$0xf0]  ;;  %v9888_v61 = vor.u32 %v13223_v37, %v9885_v57 }
 0x186   : > { %7260 = vmatpush.bf16.msra.mxu2 %v10176_v18  ;;  %v13287_v12 = vld [vmem:[%s14330_s13 + $0xa44] sm:$0xf]  ;;  %v10141_v8 = vld [vmem:[%s14330_s13 + $0xa50] sm:$0xf0]  ;;  %v15385_v4 = vadd.f32 %v7000_v16, %v6987_v9  ;;  %v10016_v52 = vor.u32 %v13255_v30, %v10013_v26 }
 0x187   : > { %7274 = vmatpush.bf16.msra.mxu3 %v10304_v7  ;;  %v13319_v15 = vld [vmem:[%s14330_s13 + $0xb44] sm:$0xf]  ;;  %v10269_v18 = vld [vmem:[%s14330_s13 + $0xb50] sm:$0xf0]  ;;  %v10144_v7 = vor.u32 %v13287_v12, %v10141_v8 }
 0x188   : > { %7233 = vmatpush.bf16.msra.mxu0 %v9904_v42  ;;  %v13219_v5 = vld [vmem:[%s14330_s13 + $0x824] sm:$0xf]  ;;  %v9869_v63 = vld [vmem:[%s14330_s13 + $0x830] sm:$0xf0]  ;;  %v10272_v14 = vor.u32 %v13319_v15, %v10269_v18 }
 0x189   : > { %7247 = vmatpush.bf16.msra.mxu1 %v10032_v21  ;;  %v13251_v24 = vld [vmem:[%s14330_s13 + $0x924] sm:$0xf]  ;;  %v9997_v49 = vld [vmem:[%s14330_s13 + $0x930] sm:$0xf0]  ;;  %v9872_v37 = vor.u32 %v13219_v5, %v9869_v63 }
 0x18a   : > { %7261 = vmatpush.bf16.msra.mxu2 %v10160_v22  ;;  %v13283_v62 = vld [vmem:[%s14330_s13 + $0xa24] sm:$0xf]  ;;  %v10125_v42 = vld [vmem:[%s14330_s13 + $0xa30] sm:$0xf0] }
 0x18b   : > { %7275 = vmatpush.bf16.msra.mxu3 %v10288_v2  ;;  %v13315_v21 = vld [vmem:[%s14330_s13 + $0xb24] sm:$0xf]  ;;  %v10253_v22 = vld [vmem:[%s14330_s13 + $0xb30] sm:$0xf0]  ;;  %v10000_v2 = vor.u32 %v13251_v24, %v9997_v49  ;;  %v10128_v0 = vor.u32 %v13283_v62, %v10125_v42 }
 0x18c   : > { %7234 = vmatpush.bf16.msra.mxu0 %v9888_v61  ;;  %v13215_v57 = vld [vmem:[%s14330_s13 + $0x804] sm:$0xf]  ;;  %v9853_v30 = vld [vmem:[%s14330_s13 + $0x810] sm:$0xf0]  ;;  %v10256_v9 = vor.u32 %v13315_v21, %v10253_v22 }
 0x18d   : > { %7248 = vmatpush.bf16.msra.mxu1 %v10016_v52  ;;  %v13247_v26 = vld [vmem:[%s14330_s13 + $0x904] sm:$0xf]  ;;  %v9981_v12 = vld [vmem:[%s14330_s13 + $0x910] sm:$0xf0]  ;;  %v9856_v52 = vor.u32 %v13215_v57, %v9853_v30 }
 0x18e   : > { %7262 = vmatpush.bf16.msra.mxu2 %v10144_v7  ;;  %v13279_v8 = vld [vmem:[%s14330_s13 + $0xa04] sm:$0xf]  ;;  %v10109_v16 = vld [vmem:[%s14330_s13 + $0xa10] sm:$0xf0] }
 0x18f   : > { %7276 = vmatpush.bf16.msra.mxu3 %v10272_v14  ;;  %v13311_v15 = vld [vmem:[%s14330_s13 + $0xb04] sm:$0xf]  ;;  %v10237_v18 = vld [vmem:[%s14330_s13 + $0xb10] sm:$0xf0]  ;;  %v9984_v14 = vor.u32 %v13247_v26, %v9981_v12  ;;  %v10112_v62 = vor.u32 %v13279_v8, %v10109_v16  ;;  %v15417_v12 = vpop.f32.mrf.mxu0  ;;  %v15421_v16 = vpop.f32.mrf.mxu1 }
 0x190   : > { %v13371_v61 = vld [vmem:[%s14330_s13 + $0xce4] sm:$0xf]  ;;  %v10477_v5 = vld [vmem:[%s14330_s13 + $0xcf0] sm:$0xf0]  ;;  %7235 = vmatpush.bf16.msra.mxu0 %v9872_v37  ;;  %v10240_v22 = vor.u32 %v13311_v15, %v10237_v18  ;;  %17283 = vst [vmem:[#allocation50_spill] sm:$0xff] %v15417_v12 }
 0x191   : > { %v13403_v63 = vld [vmem:[%s14330_s13 + $0xde4] sm:$0xf]  ;;  %v10605_v7 = vld [vmem:[%s14330_s13 + $0xdf0] sm:$0xf0]  ;;  %7249 = vmatpush.bf16.msra.mxu1 %v10000_v2  ;;  %v10480_v37 = vor.u32 %v13371_v61, %v10477_v5  ;;  %17284 = vst [vmem:[#allocation51_spill] sm:$0xff] %v15421_v16 }
 0x192   : > { %v13435_v24 = vld [vmem:[%s14330_s13 + $0xee4] sm:$0xf]  ;;  %v10733_v49 = vld [vmem:[%s14330_s13 + $0xef0] sm:$0xf0]  ;;  %7263 = vmatpush.bf16.msra.mxu2 %v10128_v0  ;;  %v10608_v57 = vor.u32 %v13403_v63, %v10605_v7 }
 0x193   : > { %v13467_v42 = vld [vmem:[%s14330_s13 + $0xfe4] sm:$0xf]  ;;  %v10861_v21 = vld [vmem:[%s14330_s13 + $0xff0] sm:$0xf0]  ;;  %7277 = vmatpush.bf16.msra.mxu3 %v10256_v9  ;;  %v10736_v30 = vor.u32 %v13435_v24, %v10733_v49 }
 0x194   : > { %v13367_v3 = vld [vmem:[%s14330_s13 + $0xcc4] sm:$0xf]  ;;  %v10461_v34 = vld [vmem:[%s14330_s13 + $0xcd0] sm:$0xf0]  ;;  %7236 = vmatpush.bf16.msra.mxu0 %v9856_v52  ;;  %v10864_v2 = vor.u32 %v13467_v42, %v10861_v21 }
 0x195   : > { %v13399_v11 = vld [vmem:[%s14330_s13 + $0xdc4] sm:$0xf]  ;;  %v10589_v6 = vld [vmem:[%s14330_s13 + $0xdd0] sm:$0xf0]  ;;  %7250 = vmatpush.bf16.msra.mxu1 %v9984_v14  ;;  %v10464_v15 = vor.u32 %v13367_v3, %v10461_v34 }
 0x196   : > { %v13431_v0 = vld [vmem:[%s14330_s13 + $0xec4] sm:$0xf]  ;;  %v10717_v26 = vld [vmem:[%s14330_s13 + $0xed0] sm:$0xf0]  ;;  %7264 = vmatpush.bf16.msra.mxu2 %v10112_v62  ;;  %v10592_v18 = vor.u32 %v13399_v11, %v10589_v6 }
 0x197   : > { %v13463_v8 = vld [vmem:[%s14330_s13 + $0xfc4] sm:$0xf]  ;;  %v10845_v9 = vld [vmem:[%s14330_s13 + $0xfd0] sm:$0xf0]  ;;  %7278 = vmatpush.bf16.msra.mxu3 %v10240_v22  ;;  %v10720_v61 = vor.u32 %v13431_v0, %v10717_v26  ;;  %7237 = vmatmul.bf16.vlgmr.msra.gmra.mxu0 %v14645_v31  ;;  %v15443_v26 = vpop.f32.mrf.mxu3 }
 0x198   : > { %7285 = vmatpush.bf16.msrb.mxu0 %v10480_v37  ;;  %v13363_v5 = vld [vmem:[%s14330_s13 + $0xca4] sm:$0xf]  ;;  %v10445_v63 = vld [vmem:[%s14330_s13 + $0xcb0] sm:$0xf0]  ;;  %v10848_v7 = vor.u32 %v13463_v8, %v10845_v9  ;;  %7251 = vmatmul.bf16.vlgmr.msra.gmra.mxu1 %v14652_v36  ;;  %v15438_v37 = vpop.f32.mrf.mxu2  ;;  %17286 = vst [vmem:[#allocation53_spill] sm:$0xff] %v15443_v26  ;;  %v7014_v8 = vpop.f32.mrf.mxu0 }
 0x199   : > { %7299 = vmatpush.bf16.msrb.mxu1 %v10608_v57  ;;  %v13395_v52 = vld [vmem:[%s14330_s13 + $0xda4] sm:$0xf]  ;;  %v10573_v24 = vld [vmem:[%s14330_s13 + $0xdb0] sm:$0xf0]  ;;  %7265 = vmatmul.bf16.vlgmr.msra.gmra.mxu2 %v14650_v35  ;;  %v10448_v34 = vor.u32 %v13363_v5, %v10445_v63  ;;  %17285 = vst [vmem:[#allocation52_spill] sm:$0xff] %v15438_v37  ;;  %v7028_v5 = vpop.f32.mrf.mxu1 }
 0x19a   : > { %7313 = vmatpush.bf16.msrb.mxu2 %v10736_v30  ;;  %v13427_v49 = vld [vmem:[%s14330_s13 + $0xea4] sm:$0xf]  ;;  %v10701_v14 = vld [vmem:[%s14330_s13 + $0xeb0] sm:$0xf0]  ;;  %7279 = vmatmul.bf16.vlgmr.msra.gmra.mxu3 %v14656_v40  ;;  %v10576_v3 = vor.u32 %v13395_v52, %v10573_v24 }
 0x19b   : > { %7327 = vmatpush.bf16.msrb.mxu3 %v10864_v2  ;;  %v13459_v6 = vld [vmem:[%s14330_s13 + $0xfa4] sm:$0xf]  ;;  %v10829_v11 = vld [vmem:[%s14330_s13 + $0xfb0] sm:$0xf0]  ;;  %v10704_v62 = vor.u32 %v13427_v49, %v10701_v14 }
 0x19c   : > { %7286 = vmatpush.bf16.msrb.mxu0 %v10464_v15  ;;  %v13359_v42 = vld [vmem:[%s14330_s13 + $0xc84] sm:$0xf]  ;;  %v10429_v21 = vld [vmem:[%s14330_s13 + $0xc90] sm:$0xf0]  ;;  %v10832_v57 = vor.u32 %v13459_v6, %v10829_v11 }
 0x19d   : > { %7300 = vmatpush.bf16.msrb.mxu1 %v10592_v18  ;;  %v13391_v22 = vld [vmem:[%s14330_s13 + $0xd84] sm:$0xf]  ;;  %v10557_v30 = vld [vmem:[%s14330_s13 + $0xd90] sm:$0xf0]  ;;  %v7015_v18 = vadd.f32 %v7014_v8, %v15385_v4 }
 0x19e   : > { %7314 = vmatpush.bf16.msrb.mxu2 %v10720_v61  ;;  %v13423_v2 = vld [vmem:[%s14330_s13 + $0xe84] sm:$0xf]  ;;  %v10685_v0 = vld [vmem:[%s14330_s13 + $0xe90] sm:$0xf0]  ;;  %v10432_v61 = vor.u32 %v13359_v42, %v10429_v21  ;;  %v10560_v63 = vor.u32 %v13391_v22, %v10557_v30 }
 0x19f   : > { %7328 = vmatpush.bf16.msrb.mxu3 %v10848_v7  ;;  %v13455_v9 = vld [vmem:[%s14330_s13 + $0xf84] sm:$0xf]  ;;  %v10813_v15 = vld [vmem:[%s14330_s13 + $0xf90] sm:$0xf0]  ;;  %v10688_v52 = vor.u32 %v13423_v2, %v10685_v0  ;;  %v7029_v6 = vadd.f32 %v7028_v5, %v7015_v18  ;;  %v7056_v5 = vpop.f32.mrf.mxu3 }
 0x1a0   : > { %7287 = vmatpush.bf16.msrb.mxu0 %v10448_v34  ;;  %v13355_v7 = vld [vmem:[%s14330_s13 + $0xc64] sm:$0xf]  ;;  %v10413_v24 = vld [vmem:[%s14330_s13 + $0xc70] sm:$0xf0]  ;;  %v10816_v14 = vor.u32 %v13455_v9, %v10813_v15  ;;  %v7042_v8 = vpop.f32.mrf.mxu2 }
 0x1a1   : > { %7301 = vmatpush.bf16.msrb.mxu1 %v10576_v3  ;;  %v13387_v49 = vld [vmem:[%s14330_s13 + $0xd64] sm:$0xf]  ;;  %v10541_v11 = vld [vmem:[%s14330_s13 + $0xd70] sm:$0xf0] }
 0x1a2   : > { %7315 = vmatpush.bf16.msrb.mxu2 %v10704_v62  ;;  %v13419_v34 = vld [vmem:[%s14330_s13 + $0xe64] sm:$0xf]  ;;  %v10669_v4 = vld [vmem:[%s14330_s13 + $0xe70] sm:$0xf0]  ;;  %v10416_v62 = vor.u32 %v13355_v7, %v10413_v24  ;;  %v10544_v21 = vor.u32 %v13387_v49, %v10541_v11 }
 0x1a3   : > { %7329 = vmatpush.bf16.msrb.mxu3 %v10832_v57  ;;  %v13451_v42 = vld [vmem:[%s14330_s13 + $0xf64] sm:$0xf]  ;;  %v10797_v3 = vld [vmem:[%s14330_s13 + $0xf70] sm:$0xf0]  ;;  %v10672_v22 = vor.u32 %v13419_v34, %v10669_v4 }
 0x1a4   : > { %7288 = vmatpush.bf16.msrb.mxu0 %v10432_v61  ;;  %v13351_v57 = vld [vmem:[%s14330_s13 + $0xc44] sm:$0xf]  ;;  %v10397_v30 = vld [vmem:[%s14330_s13 + $0xc50] sm:$0xf0]  ;;  %v10800_v0 = vor.u32 %v13451_v42, %v10797_v3  ;;  %v7043_v61 = vadd.f32 %v7042_v8, %v7029_v6 }
 0x1a5   : > { %7302 = vmatpush.bf16.msrb.mxu1 %v10560_v63  ;;  %v13383_v2 = vld [vmem:[%s14330_s13 + $0xd44] sm:$0xf]  ;;  %v10525_v9 = vld [vmem:[%s14330_s13 + $0xd50] sm:$0xf0]  ;;  %v10400_v7 = vor.u32 %v13351_v57, %v10397_v30 }
 0x1a6   : > { %7316 = vmatpush.bf16.msrb.mxu2 %v10688_v52  ;;  %v13415_v15 = vld [vmem:[%s14330_s13 + $0xe44] sm:$0xf]  ;;  %v10653_v18 = vld [vmem:[%s14330_s13 + $0xe50] sm:$0xf0]  ;;  %v15464_v24 = vadd.f32 %v7056_v5, %v7043_v61  ;;  %v10528_v49 = vor.u32 %v13383_v2, %v10525_v9 }
 0x1a7   : > { %7330 = vmatpush.bf16.msrb.mxu3 %v10816_v14  ;;  %v13447_v63 = vld [vmem:[%s14330_s13 + $0xf44] sm:$0xf]  ;;  %v10781_v52 = vld [vmem:[%s14330_s13 + $0xf50] sm:$0xf0]  ;;  %v10656_v14 = vor.u32 %v13415_v15, %v10653_v18 }
 0x1a8   : > { %7289 = vmatpush.bf16.msrb.mxu0 %v10416_v62  ;;  %v13347_v11 = vld [vmem:[%s14330_s13 + $0xc24] sm:$0xf]  ;;  %v10381_v6 = vld [vmem:[%s14330_s13 + $0xc30] sm:$0xf0]  ;;  %v10784_v4 = vor.u32 %v13447_v63, %v10781_v52 }
 0x1a9   : > { %7303 = vmatpush.bf16.msrb.mxu1 %v10544_v21  ;;  %v13379_v34 = vld [vmem:[%s14330_s13 + $0xd24] sm:$0xf]  ;;  %v10509_v42 = vld [vmem:[%s14330_s13 + $0xd30] sm:$0xf0]  ;;  %v10384_v57 = vor.u32 %v13347_v11, %v10381_v6 }
 0x1aa   : > { %7317 = vmatpush.bf16.msrb.mxu2 %v10672_v22  ;;  %v13411_v3 = vld [vmem:[%s14330_s13 + $0xe24] sm:$0xf]  ;;  %v10637_v62 = vld [vmem:[%s14330_s13 + $0xe30] sm:$0xf0] }
 0x1ab   : > { %7331 = vmatpush.bf16.msrb.mxu3 %v10800_v0  ;;  %v13443_v21 = vld [vmem:[%s14330_s13 + $0xf24] sm:$0xf]  ;;  %v10765_v22 = vld [vmem:[%s14330_s13 + $0xf30] sm:$0xf0]  ;;  %v10512_v0 = vor.u32 %v13379_v34, %v10509_v42  ;;  %v10640_v8 = vor.u32 %v13411_v3, %v10637_v62 }
 0x1ac   : > { %7290 = vmatpush.bf16.msrb.mxu0 %v10400_v7  ;;  %v13343_v30 = vld [vmem:[%s14330_s13 + $0xc04] sm:$0xf]  ;;  %v10365_v2 = vld [vmem:[%s14330_s13 + $0xc10] sm:$0xf0]  ;;  %v10768_v61 = vor.u32 %v13443_v21, %v10765_v22 }
 0x1ad   : > { %7304 = vmatpush.bf16.msrb.mxu1 %v10528_v49  ;;  %v13375_v9 = vld [vmem:[%s14330_s13 + $0xd04] sm:$0xf]  ;;  %v10493_v15 = vld [vmem:[%s14330_s13 + $0xd10] sm:$0xf0]  ;;  %v10368_v49 = vor.u32 %v13343_v30, %v10365_v2 }
 0x1ae   : > { %7318 = vmatpush.bf16.msrb.mxu2 %v10656_v14  ;;  %v13407_v18 = vld [vmem:[%s14330_s13 + $0xe04] sm:$0xf]  ;;  %v10621_v5 = vld [vmem:[%s14330_s13 + $0xe10] sm:$0xf0] }
 0x1af   : > { %7332 = vmatpush.bf16.msrb.mxu3 %v10784_v4  ;;  %v13439_v63 = vld [vmem:[%s14330_s13 + $0xf04] sm:$0xf]  ;;  %v10749_v52 = vld [vmem:[%s14330_s13 + $0xf10] sm:$0xf0]  ;;  %v10496_v4 = vor.u32 %v13375_v9, %v10493_v15  ;;  %v10624_v3 = vor.u32 %v13407_v18, %v10621_v5  ;;  %v15496_v15 = vpop.f32.mrf.mxu0  ;;  %v15500_v5 = vpop.f32.mrf.mxu1 }
 0x1b0   : > { %v13499_v7 = vld [vmem:[%s14330_s13 + $0x10e4] sm:$0xf]  ;;  %v10989_v11 = vld [vmem:[%s14330_s13 + $0x10f0] sm:$0xf0]  ;;  %7291 = vmatpush.bf16.msrb.mxu0 %v10384_v57  ;;  %v10752_v22 = vor.u32 %v13439_v63, %v10749_v52 }
 0x1b1   : > { %v13531_v6 = vld [vmem:[%s14330_s13 + $0x11e4] sm:$0xf]  ;;  %v11117_v14 = vld [vmem:[%s14330_s13 + $0x11f0] sm:$0xf0]  ;;  %7305 = vmatpush.bf16.msrb.mxu1 %v10512_v0  ;;  %v10992_v57 = vor.u32 %v13499_v7, %v10989_v11 }
 0x1b2   : > { %v13563_v34 = vld [vmem:[%s14330_s13 + $0x12e4] sm:$0xf]  ;;  %v11245_v42 = vld [vmem:[%s14330_s13 + $0x12f0] sm:$0xf0]  ;;  %7319 = vmatpush.bf16.msrb.mxu2 %v10640_v8  ;;  %v11120_v30 = vor.u32 %v13531_v6, %v11117_v14 }
 0x1b3   : > { %v13595_v62 = vld [vmem:[%s14330_s13 + $0x13e4] sm:$0xf]  ;;  %v11373_v21 = vld [vmem:[%s14330_s13 + $0x13f0] sm:$0xf0]  ;;  %7333 = vmatpush.bf16.msrb.mxu3 %v10768_v61  ;;  %v11248_v2 = vor.u32 %v13563_v34, %v11245_v42 }
 0x1b4   : > { %v13495_v26 = vld [vmem:[%s14330_s13 + $0x10c4] sm:$0xf]  ;;  %v10973_v37 = vld [vmem:[%s14330_s13 + $0x10d0] sm:$0xf0]  ;;  %7292 = vmatpush.bf16.msrb.mxu0 %v10368_v49  ;;  %v11376_v0 = vor.u32 %v13595_v62, %v11373_v21 }
 0x1b5   : > { %v13527_v16 = vld [vmem:[%s14330_s13 + $0x11c4] sm:$0xf]  ;;  %v11101_v12 = vld [vmem:[%s14330_s13 + $0x11d0] sm:$0xf0]  ;;  %7306 = vmatpush.bf16.msrb.mxu1 %v10496_v4  ;;  %v10976_v63 = vor.u32 %v13495_v26, %v10973_v37 }
 0x1b6   : > { %v13559_v8 = vld [vmem:[%s14330_s13 + $0x12c4] sm:$0xf]  ;;  %v11229_v9 = vld [vmem:[%s14330_s13 + $0x12d0] sm:$0xf0]  ;;  %7320 = vmatpush.bf16.msrb.mxu2 %v10624_v3  ;;  %v11104_v52 = vor.u32 %v13527_v16, %v11101_v12 }
 0x1b7   : > { %v13591_v18 = vld [vmem:[%s14330_s13 + $0x13c4] sm:$0xf]  ;;  %v11357_v61 = vld [vmem:[%s14330_s13 + $0x13d0] sm:$0xf0]  ;;  %7334 = vmatpush.bf16.msrb.mxu3 %v10752_v22  ;;  %v11232_v7 = vor.u32 %v13559_v8, %v11229_v9  ;;  %7293 = vmatmul.bf16.vlgmr.msrb.gmra.mxu0 %v14745_v32  ;;  %v15522_v9 = vpop.f32.mrf.mxu3 }
 0x1b8   : > { %7341 = vmatpush.bf16.msra.mxu0 %v10992_v57  ;;  %v13491_v11 = vld [vmem:[%s14330_s13 + $0x10a4] sm:$0xf]  ;;  %v10957_v6 = vld [vmem:[%s14330_s13 + $0x10b0] sm:$0xf0]  ;;  %v11360_v14 = vor.u32 %v13591_v18, %v11357_v61  ;;  %7307 = vmatmul.bf16.vlgmr.msrb.gmra.mxu1 %v14752_v41  ;;  %v15517_v57 = vpop.f32.mrf.mxu2  ;;  %17287 = vst [vmem:[#allocation54_spill] sm:$0xff] %v15522_v9  ;;  %v7070_v18 = vpop.f32.mrf.mxu0 }
 0x1b9   : > { %7355 = vmatpush.bf16.msra.mxu1 %v11120_v30  ;;  %v13523_v49 = vld [vmem:[%s14330_s13 + $0x11a4] sm:$0xf]  ;;  %v11085_v34 = vld [vmem:[%s14330_s13 + $0x11b0] sm:$0xf0]  ;;  %7321 = vmatmul.bf16.vlgmr.msrb.gmra.mxu2 %v14750_v38  ;;  %v10960_v37 = vor.u32 %v13491_v11, %v10957_v6  ;;  %v7084_v11 = vpop.f32.mrf.mxu1 }
 0x1ba   : > { %7369 = vmatpush.bf16.msra.mxu2 %v11248_v2  ;;  %v13555_v42 = vld [vmem:[%s14330_s13 + $0x12a4] sm:$0xf]  ;;  %v11213_v4 = vld [vmem:[%s14330_s13 + $0x12b0] sm:$0xf0]  ;;  %7335 = vmatmul.bf16.vlgmr.msrb.gmra.mxu3 %v14756_v46  ;;  %v11088_v26 = vor.u32 %v13523_v49, %v11085_v34 }
 0x1bb   : > { %7383 = vmatpush.bf16.msra.mxu3 %v11376_v0  ;;  %v13587_v12 = vld [vmem:[%s14330_s13 + $0x13a4] sm:$0xf]  ;;  %v11341_v16 = vld [vmem:[%s14330_s13 + $0x13b0] sm:$0xf0]  ;;  %v11216_v3 = vor.u32 %v13555_v42, %v11213_v4 }
 0x1bc   : > { %7342 = vmatpush.bf16.msra.mxu0 %v10976_v63  ;;  %v13487_v62 = vld [vmem:[%s14330_s13 + $0x1084] sm:$0xf]  ;;  %v10941_v21 = vld [vmem:[%s14330_s13 + $0x1090] sm:$0xf0]  ;;  %v11344_v30 = vor.u32 %v13587_v12, %v11341_v16 }
 0x1bd   : > { %7356 = vmatpush.bf16.msra.mxu1 %v11104_v52  ;;  %v13519_v22 = vld [vmem:[%s14330_s13 + $0x1184] sm:$0xf]  ;;  %v11069_v2 = vld [vmem:[%s14330_s13 + $0x1190] sm:$0xf0]  ;;  %v7071_v52 = vadd.f32 %v7070_v18, %v15464_v24 }
 0x1be   : > { %7370 = vmatpush.bf16.msra.mxu2 %v11232_v7  ;;  %v13551_v0 = vld [vmem:[%s14330_s13 + $0x1284] sm:$0xf]  ;;  %v11197_v8 = vld [vmem:[%s14330_s13 + $0x1290] sm:$0xf0]  ;;  %v10944_v7 = vor.u32 %v13487_v62, %v10941_v21  ;;  %v11072_v6 = vor.u32 %v13519_v22, %v11069_v2 }
 0x1bf   : > { %7384 = vmatpush.bf16.msra.mxu3 %v11360_v14  ;;  %v13583_v61 = vld [vmem:[%s14330_s13 + $0x1384] sm:$0xf]  ;;  %v11325_v63 = vld [vmem:[%s14330_s13 + $0x1390] sm:$0xf0]  ;;  %v11200_v49 = vor.u32 %v13551_v0, %v11197_v8  ;;  %v7085_v12 = vadd.f32 %v7084_v11, %v7071_v52  ;;  %v7112_v11 = vpop.f32.mrf.mxu3 }
 0x1c0   : > { %7343 = vmatpush.bf16.msra.mxu0 %v10960_v37  ;;  %v13483_v14 = vld [vmem:[%s14330_s13 + $0x1064] sm:$0xf]  ;;  %v10925_v34 = vld [vmem:[%s14330_s13 + $0x1070] sm:$0xf0]  ;;  %v11328_v4 = vor.u32 %v13583_v61, %v11325_v63  ;;  %v7098_v18 = vpop.f32.mrf.mxu2 }
 0x1c1   : > { %7357 = vmatpush.bf16.msra.mxu1 %v11088_v26  ;;  %v13515_v42 = vld [vmem:[%s14330_s13 + $0x1164] sm:$0xf]  ;;  %v11053_v16 = vld [vmem:[%s14330_s13 + $0x1170] sm:$0xf0] }
 0x1c2   : > { %7371 = vmatpush.bf16.msra.mxu2 %v11216_v3  ;;  %v13547_v37 = vld [vmem:[%s14330_s13 + $0x1264] sm:$0xf]  ;;  %v11181_v24 = vld [vmem:[%s14330_s13 + $0x1270] sm:$0xf0]  ;;  %v10928_v3 = vor.u32 %v13483_v14, %v10925_v34  ;;  %v11056_v21 = vor.u32 %v13515_v42, %v11053_v16 }
 0x1c3   : > { %7385 = vmatpush.bf16.msra.mxu3 %v11344_v30  ;;  %v13579_v62 = vld [vmem:[%s14330_s13 + $0x1364] sm:$0xf]  ;;  %v11309_v26 = vld [vmem:[%s14330_s13 + $0x1370] sm:$0xf0]  ;;  %v11184_v22 = vor.u32 %v13547_v37, %v11181_v24 }
 0x1c4   : > { %7344 = vmatpush.bf16.msra.mxu0 %v10944_v7  ;;  %v13479_v30 = vld [vmem:[%s14330_s13 + $0x1044] sm:$0xf]  ;;  %v10909_v2 = vld [vmem:[%s14330_s13 + $0x1050] sm:$0xf0]  ;;  %v11312_v8 = vor.u32 %v13579_v62, %v11309_v26  ;;  %v7099_v7 = vadd.f32 %v7098_v18, %v7085_v12 }
 0x1c5   : > { %7358 = vmatpush.bf16.msra.mxu1 %v11072_v6  ;;  %v13511_v0 = vld [vmem:[%s14330_s13 + $0x1144] sm:$0xf]  ;;  %v11037_v61 = vld [vmem:[%s14330_s13 + $0x1150] sm:$0xf0]  ;;  %v10912_v14 = vor.u32 %v13479_v30, %v10909_v2 }
 0x1c6   : > { %7372 = vmatpush.bf16.msra.mxu2 %v11200_v49  ;;  %v13543_v63 = vld [vmem:[%s14330_s13 + $0x1244] sm:$0xf]  ;;  %v11165_v52 = vld [vmem:[%s14330_s13 + $0x1250] sm:$0xf0]  ;;  %v15543_v34 = vadd.f32 %v7112_v11, %v7099_v7  ;;  %v11040_v42 = vor.u32 %v13511_v0, %v11037_v61 }
 0x1c7   : > { %7386 = vmatpush.bf16.msra.mxu3 %v11328_v4  ;;  %v13575_v6 = vld [vmem:[%s14330_s13 + $0x1344] sm:$0xf]  ;;  %v11293_v49 = vld [vmem:[%s14330_s13 + $0x1350] sm:$0xf0]  ;;  %v11168_v4 = vor.u32 %v13543_v63, %v11165_v52 }
 0x1c8   : > { %7345 = vmatpush.bf16.msra.mxu0 %v10928_v3  ;;  %17288 = vst [vmem:[#allocation55_spill] sm:$0xff] %v15543_v34  ;;  %v13475_v16 = vld [vmem:[%s14330_s13 + $0x1024] sm:$0xf]  ;;  %v10893_v12 = vld [vmem:[%s14330_s13 + $0x1030] sm:$0xf0]  ;;  %v11296_v24 = vor.u32 %v13575_v6, %v11293_v49 }
 0x1c9   : > { %7359 = vmatpush.bf16.msra.mxu1 %v11056_v21  ;;  %v13507_v37 = vld [vmem:[%s14330_s13 + $0x1124] sm:$0xf]  ;;  %v11021_v62 = vld [vmem:[%s14330_s13 + $0x1130] sm:$0xf0]  ;;  %v10896_v30 = vor.u32 %v13475_v16, %v10893_v12 }
 0x1ca   : > { %7373 = vmatpush.bf16.msra.mxu2 %v11184_v22  ;;  %v13539_v26 = vld [vmem:[%s14330_s13 + $0x1224] sm:$0xf]  ;;  %v11149_v3 = vld [vmem:[%s14330_s13 + $0x1230] sm:$0xf0] }
 0x1cb   : > { %7387 = vmatpush.bf16.msra.mxu3 %v11312_v8  ;;  %v13571_v21 = vld [vmem:[%s14330_s13 + $0x1324] sm:$0xf]  ;;  %v11277_v22 = vld [vmem:[%s14330_s13 + $0x1330] sm:$0xf0]  ;;  %v11024_v8 = vor.u32 %v13507_v37, %v11021_v62  ;;  %v11152_v18 = vor.u32 %v13539_v26, %v11149_v3 }
 0x1cc   : > { %7346 = vmatpush.bf16.msra.mxu0 %v10912_v14  ;;  %v13471_v2 = vld [vmem:[%s14330_s13 + $0x1004] sm:$0xf]  ;;  %v10877_v0 = vld [vmem:[%s14330_s13 + $0x1010] sm:$0xf0]  ;;  %v11280_v7 = vor.u32 %v13571_v21, %v11277_v22 }
 0x1cd   : > { %7360 = vmatpush.bf16.msra.mxu1 %v11040_v42  ;;  %v13503_v61 = vld [vmem:[%s14330_s13 + $0x1104] sm:$0xf]  ;;  %v11005_v63 = vld [vmem:[%s14330_s13 + $0x1110] sm:$0xf0]  ;;  %v10880_v42 = vor.u32 %v13471_v2, %v10877_v0 }
 0x1ce   : > { %7374 = vmatpush.bf16.msra.mxu2 %v11168_v4  ;;  %v13535_v52 = vld [vmem:[%s14330_s13 + $0x1204] sm:$0xf]  ;;  %v11133_v11 = vld [vmem:[%s14330_s13 + $0x1210] sm:$0xf0] }
 0x1cf   : > { %7388 = vmatpush.bf16.msra.mxu3 %v11296_v24  ;;  %v13567_v6 = vld [vmem:[%s14330_s13 + $0x1304] sm:$0xf]  ;;  %v11261_v49 = vld [vmem:[%s14330_s13 + $0x1310] sm:$0xf0]  ;;  %v11008_v24 = vor.u32 %v13503_v61, %v11005_v63  ;;  %v11136_v26 = vor.u32 %v13535_v52, %v11133_v11 }
 0x1d0   : > { %v13627_v14 = vld [vmem:[%s14330_s13 + $0x14e4] sm:$0xf]  ;;  %v11501_v16 = vld [vmem:[%s14330_s13 + $0x14f0] sm:$0xf0]  ;;  %7347 = vmatpush.bf16.msra.mxu0 %v10896_v30  ;;  %v11264_v22 = vor.u32 %v13567_v6, %v11261_v49 }
 0x1d1   : > { %v13659_v12 = vld [vmem:[%s14330_s13 + $0x15e4] sm:$0xf]  ;;  %v11629_v4 = vld [vmem:[%s14330_s13 + $0x15f0] sm:$0xf0]  ;;  %7361 = vmatpush.bf16.msra.mxu1 %v11024_v8  ;;  %v11504_v30 = vor.u32 %v13627_v14, %v11501_v16 }
 0x1d2   : > { %v13691_v37 = vld [vmem:[%s14330_s13 + $0x16e4] sm:$0xf]  ;;  %v11757_v62 = vld [vmem:[%s14330_s13 + $0x16f0] sm:$0xf0]  ;;  %7375 = vmatpush.bf16.msra.mxu2 %v11152_v18  ;;  %v11632_v2 = vor.u32 %v13659_v12, %v11629_v4 }
 0x1d3   : > { %v13723_v3 = vld [vmem:[%s14330_s13 + $0x17e4] sm:$0xf]  ;;  %v11885_v21 = vld [vmem:[%s14330_s13 + $0x17f0] sm:$0xf0]  ;;  %7389 = vmatpush.bf16.msra.mxu3 %v11280_v7  ;;  %v11760_v0 = vor.u32 %v13691_v37, %v11757_v62 }
 0x1d4   : > { %v13623_v34 = vld [vmem:[%s14330_s13 + $0x14c4] sm:$0xf]  ;;  %v11485_v9 = vld [vmem:[%s14330_s13 + $0x14d0] sm:$0xf0]  ;;  %7348 = vmatpush.bf16.msra.mxu0 %v10880_v42  ;;  %v11888_v8 = vor.u32 %v13723_v3, %v11885_v21 }
 0x1d5   : > { %v13655_v46 = vld [vmem:[%s14330_s13 + $0x15c4] sm:$0xf]  ;;  %v11613_v18 = vld [vmem:[%s14330_s13 + $0x15d0] sm:$0xf0]  ;;  %7362 = vmatpush.bf16.msra.mxu1 %v11008_v24  ;;  %v11488_v11 = vor.u32 %v13623_v34, %v11485_v9 }
 0x1d6   : > { %v13687_v61 = vld [vmem:[%s14330_s13 + $0x16c4] sm:$0xf]  ;;  %v11741_v63 = vld [vmem:[%s14330_s13 + $0x16d0] sm:$0xf0]  ;;  %7376 = vmatpush.bf16.msra.mxu2 %v11136_v26  ;;  %v11616_v6 = vor.u32 %v13655_v46, %v11613_v18 }
 0x1d7   : > { %v13719_v52 = vld [vmem:[%s14330_s13 + $0x17c4] sm:$0xf]  ;;  %v11869_v7 = vld [vmem:[%s14330_s13 + $0x17d0] sm:$0xf0]  ;;  %7390 = vmatpush.bf16.msra.mxu3 %v11264_v22  ;;  %v11744_v49 = vor.u32 %v13687_v61, %v11741_v63  ;;  %7349 = vmatmul.bf16.vlgmr.msra.gmra.mxu0 %v14845_v51  ;;  %v10099_v51 = vld [vmem:[%s14330_s13 + $0x9e8] sm:$0xf] }
 0x1d8   : > { %7397 = vmatpush.bf16.msrb.mxu0 %v11504_v30  ;;  %v13619_v14 = vld [vmem:[%s14330_s13 + $0x14a4] sm:$0xf]  ;;  %v11469_v16 = vld [vmem:[%s14330_s13 + $0x14b0] sm:$0xf0]  ;;  %v11872_v42 = vor.u32 %v13719_v52, %v11869_v7  ;;  %7363 = vmatmul.bf16.vlgmr.msra.gmra.mxu1 %v14852_v56  ;;  %v13178_v56 = vld [vmem:[%s14330_s13 + $0x6d4] sm:$0xf0] }
 0x1d9   : > { %7411 = vmatpush.bf16.msrb.mxu1 %v11632_v2  ;;  %v13651_v12 = vld [vmem:[%s14330_s13 + $0x15a4] sm:$0xf]  ;;  %v11597_v4 = vld [vmem:[%s14330_s13 + $0x15b0] sm:$0xf0]  ;;  %7377 = vmatmul.bf16.vlgmr.msra.gmra.mxu2 %v14850_v55  ;;  %v11472_v34 = vor.u32 %v13619_v14, %v11469_v16  ;;  %v13246_v55 = vld [vmem:[%s14330_s13 + $0x8f4] sm:$0xf0] }
 0x1da   : > { %7425 = vmatpush.bf16.msrb.mxu2 %v11760_v0  ;;  %v13683_v37 = vld [vmem:[%s14330_s13 + $0x16a4] sm:$0xf]  ;;  %v11725_v62 = vld [vmem:[%s14330_s13 + $0x16b0] sm:$0xf0]  ;;  %7391 = vmatmul.bf16.vlgmr.msra.gmra.mxu3 %v14856_v60  ;;  %v11600_v24 = vor.u32 %v13651_v12, %v11597_v4 }
 0x1db   : > { %7439 = vmatpush.bf16.msrb.mxu3 %v11888_v8  ;;  %v13715_v46 = vld [vmem:[%s14330_s13 + $0x17a4] sm:$0xf]  ;;  %v11853_v9 = vld [vmem:[%s14330_s13 + $0x17b0] sm:$0xf0]  ;;  %v11728_v26 = vor.u32 %v13683_v37, %v11725_v62 }
 0x1dc   : > { %7398 = vmatpush.bf16.msrb.mxu0 %v11488_v11  ;;  %v13615_v3 = vld [vmem:[%s14330_s13 + $0x1484] sm:$0xf]  ;;  %v11453_v21 = vld [vmem:[%s14330_s13 + $0x1490] sm:$0xf0]  ;;  %v11856_v30 = vor.u32 %v13715_v46, %v11853_v9 }
 0x1dd   : > { %7412 = vmatpush.bf16.msrb.mxu1 %v11616_v6  ;;  %v13647_v22 = vld [vmem:[%s14330_s13 + $0x1584] sm:$0xf]  ;;  %v11581_v2 = vld [vmem:[%s14330_s13 + $0x1590] sm:$0xf0]  ;;  %v11456_v63 = vor.u32 %v13615_v3, %v11453_v21 }
 0x1de   : > { %7426 = vmatpush.bf16.msrb.mxu2 %v11744_v49  ;;  %v13679_v0 = vld [vmem:[%s14330_s13 + $0x1684] sm:$0xf]  ;;  %v11709_v8 = vld [vmem:[%s14330_s13 + $0x1690] sm:$0xf0]  ;;  %v11584_v52 = vor.u32 %v13647_v22, %v11581_v2 }
 0x1df   : > { %7440 = vmatpush.bf16.msrb.mxu3 %v11872_v42  ;;  %v13711_v18 = vld [vmem:[%s14330_s13 + $0x1784] sm:$0xf]  ;;  %v11837_v61 = vld [vmem:[%s14330_s13 + $0x1790] sm:$0xf0]  ;;  %v11712_v7 = vor.u32 %v13679_v0, %v11709_v8 }
 0x1e0   : > { %7399 = vmatpush.bf16.msrb.mxu0 %v11472_v34  ;;  %v13611_v11 = vld [vmem:[%s14330_s13 + $0x1464] sm:$0xf]  ;;  %v11437_v6 = vld [vmem:[%s14330_s13 + $0x1470] sm:$0xf0]  ;;  %v11840_v14 = vor.u32 %v13711_v18, %v11837_v61 }
 0x1e1   : > { %7413 = vmatpush.bf16.msrb.mxu1 %v11600_v24  ;;  %v13643_v49 = vld [vmem:[%s14330_s13 + $0x1564] sm:$0xf]  ;;  %v11565_v16 = vld [vmem:[%s14330_s13 + $0x1570] sm:$0xf0]  ;;  %v11440_v62 = vor.u32 %v13611_v11, %v11437_v6 }
 0x1e2   : > { %7427 = vmatpush.bf16.msrb.mxu2 %v11728_v26  ;;  %v13675_v12 = vld [vmem:[%s14330_s13 + $0x1664] sm:$0xf]  ;;  %v11693_v42 = vld [vmem:[%s14330_s13 + $0x1670] sm:$0xf0]  ;;  %v11568_v46 = vor.u32 %v13643_v49, %v11565_v16 }
 0x1e3   : > { %7441 = vmatpush.bf16.msrb.mxu3 %v11856_v30  ;;  %v13707_v4 = vld [vmem:[%s14330_s13 + $0x1764] sm:$0xf]  ;;  %v11821_v37 = vld [vmem:[%s14330_s13 + $0x1770] sm:$0xf0]  ;;  %v11696_v9 = vor.u32 %v13675_v12, %v11693_v42 }
 0x1e4   : > { %7400 = vmatpush.bf16.msrb.mxu0 %v11456_v63  ;;  %v13607_v34 = vld [vmem:[%s14330_s13 + $0x1444] sm:$0xf]  ;;  %v11421_v24 = vld [vmem:[%s14330_s13 + $0x1450] sm:$0xf0]  ;;  %v11824_v3 = vor.u32 %v13707_v4, %v11821_v37 }
 0x1e5   : > { %7414 = vmatpush.bf16.msrb.mxu1 %v11584_v52  ;;  %v13639_v26 = vld [vmem:[%s14330_s13 + $0x1544] sm:$0xf]  ;;  %v11549_v21 = vld [vmem:[%s14330_s13 + $0x1550] sm:$0xf0]  ;;  %v11424_v8 = vor.u32 %v13607_v34, %v11421_v24 }
 0x1e6   : > { %7428 = vmatpush.bf16.msrb.mxu2 %v11712_v7  ;;  %v13671_v22 = vld [vmem:[%s14330_s13 + $0x1644] sm:$0xf]  ;;  %v11677_v30 = vld [vmem:[%s14330_s13 + $0x1650] sm:$0xf0]  ;;  %v11552_v18 = vor.u32 %v13639_v26, %v11549_v21 }
 0x1e7   : > { %7442 = vmatpush.bf16.msrb.mxu3 %v11840_v14  ;;  %v13703_v2 = vld [vmem:[%s14330_s13 + $0x1744] sm:$0xf]  ;;  %v11805_v0 = vld [vmem:[%s14330_s13 + $0x1750] sm:$0xf0]  ;;  %v11680_v61 = vor.u32 %v13671_v22, %v11677_v30 }
 0x1e8   : > { %7401 = vmatpush.bf16.msrb.mxu0 %v11440_v62  ;;  %v13603_v63 = vld [vmem:[%s14330_s13 + $0x1424] sm:$0xf]  ;;  %v11405_v52 = vld [vmem:[%s14330_s13 + $0x1430] sm:$0xf0]  ;;  %v11808_v11 = vor.u32 %v13703_v2, %v11805_v0 }
 0x1e9   : > { %7415 = vmatpush.bf16.msrb.mxu1 %v11568_v46  ;;  %v13635_v7 = vld [vmem:[%s14330_s13 + $0x1524] sm:$0xf]  ;;  %v11533_v6 = vld [vmem:[%s14330_s13 + $0x1530] sm:$0xf0]  ;;  %v11408_v42 = vor.u32 %v13603_v63, %v11405_v52 }
 0x1ea   : > { %7429 = vmatpush.bf16.msrb.mxu2 %v11696_v9  ;;  %v13667_v49 = vld [vmem:[%s14330_s13 + $0x1624] sm:$0xf]  ;;  %v11661_v14 = vld [vmem:[%s14330_s13 + $0x1630] sm:$0xf0]  ;;  %v11536_v62 = vor.u32 %v13635_v7, %v11533_v6 }
 0x1eb   : > { %7443 = vmatpush.bf16.msrb.mxu3 %v11824_v3  ;;  %v13699_v16 = vld [vmem:[%s14330_s13 + $0x1724] sm:$0xf]  ;;  %v11789_v12 = vld [vmem:[%s14330_s13 + $0x1730] sm:$0xf0]  ;;  %v11664_v46 = vor.u32 %v13667_v49, %v11661_v14 }
 0x1ec   : > { %7402 = vmatpush.bf16.msrb.mxu0 %v11424_v8  ;;  %v13599_v4 = vld [vmem:[%s14330_s13 + $0x1404] sm:$0xf]  ;;  %v11389_v37 = vld [vmem:[%s14330_s13 + $0x1410] sm:$0xf0]  ;;  %v11792_v26 = vor.u32 %v13699_v16, %v11789_v12 }
 0x1ed   : > { %7416 = vmatpush.bf16.msrb.mxu1 %v11552_v18  ;;  %v13631_v9 = vld [vmem:[%s14330_s13 + $0x1504] sm:$0xf]  ;;  %v11517_v34 = vld [vmem:[%s14330_s13 + $0x1510] sm:$0xf0]  ;;  %v11392_v8 = vor.u32 %v13599_v4, %v11389_v37 }
 0x1ee   : > { %7430 = vmatpush.bf16.msrb.mxu2 %v11680_v61  ;;  %v13663_v24 = vld [vmem:[%s14330_s13 + $0x1604] sm:$0xf]  ;;  %v11645_v3 = vld [vmem:[%s14330_s13 + $0x1610] sm:$0xf0]  ;;  %v11520_v52 = vor.u32 %v13631_v9, %v11517_v34 }
 0x1ef   : > { %7444 = vmatpush.bf16.msrb.mxu3 %v11808_v11  ;;  %v13695_v21 = vld [vmem:[%s14330_s13 + $0x1704] sm:$0xf]  ;;  %v11773_v22 = vld [vmem:[%s14330_s13 + $0x1710] sm:$0xf0]  ;;  %v11648_v7 = vor.u32 %v13663_v24, %v11645_v3 }
 0x1f0   : > { %v13755_v30 = vld [vmem:[%s14330_s13 + $0x18e4] sm:$0xf]  ;;  %v12013_v2 = vld [vmem:[%s14330_s13 + $0x18f0] sm:$0xf0]  ;;  %7403 = vmatpush.bf16.msrb.mxu0 %v11408_v42  ;;  %v11776_v49 = vor.u32 %v13695_v21, %v11773_v22 }
 0x1f1   : > { %v13787_v0 = vld [vmem:[%s14330_s13 + $0x19e4] sm:$0xf]  ;;  %v12141_v18 = vld [vmem:[%s14330_s13 + $0x19f0] sm:$0xf0]  ;;  %7417 = vmatpush.bf16.msrb.mxu1 %v11536_v62  ;;  %v12016_v14 = vor.u32 %v13755_v30, %v12013_v2 }
 0x1f2   : > { %v13819_v61 = vld [vmem:[%s14330_s13 + $0x1ae4] sm:$0xf]  ;;  %v12269_v63 = vld [vmem:[%s14330_s13 + $0x1af0] sm:$0xf0]  ;;  %7431 = vmatpush.bf16.msrb.mxu2 %v11664_v46  ;;  %v12144_v16 = vor.u32 %v13787_v0, %v12141_v18 }
 0x1f3   : > { %v13851_v11 = vld [vmem:[%s14330_s13 + $0x1be4] sm:$0xf]  ;;  %v12397_v6 = vld [vmem:[%s14330_s13 + $0x1bf0] sm:$0xf0]  ;;  %7445 = vmatpush.bf16.msrb.mxu3 %v11792_v26  ;;  %v12272_v12 = vor.u32 %v13819_v61, %v12269_v63 }
 0x1f4   : > { %v13751_v42 = vld [vmem:[%s14330_s13 + $0x18c4] sm:$0xf]  ;;  %v11997_v4 = vld [vmem:[%s14330_s13 + $0x18d0] sm:$0xf0]  ;;  %7404 = vmatpush.bf16.msrb.mxu0 %v11392_v8  ;;  %v12400_v62 = vor.u32 %v13851_v11, %v12397_v6 }
 0x1f5   : > { %v13783_v37 = vld [vmem:[%s14330_s13 + $0x19c4] sm:$0xf]  ;;  %v12125_v46 = vld [vmem:[%s14330_s13 + $0x19d0] sm:$0xf0]  ;;  %7418 = vmatpush.bf16.msrb.mxu1 %v11520_v52  ;;  %v12000_v3 = vor.u32 %v13751_v42, %v11997_v4 }
 0x1f6   : > { %v13815_v9 = vld [vmem:[%s14330_s13 + $0x1ac4] sm:$0xf]  ;;  %v12253_v34 = vld [vmem:[%s14330_s13 + $0x1ad0] sm:$0xf0]  ;;  %7432 = vmatpush.bf16.msrb.mxu2 %v11648_v7  ;;  %v12128_v21 = vor.u32 %v13783_v37, %v12125_v46 }
 0x1f7   : > { %v13847_v24 = vld [vmem:[%s14330_s13 + $0x1bc4] sm:$0xf]  ;;  %v12381_v26 = vld [vmem:[%s14330_s13 + $0x1bd0] sm:$0xf0]  ;;  %7446 = vmatpush.bf16.msrb.mxu3 %v11776_v49  ;;  %v12256_v22 = vor.u32 %v13815_v9, %v12253_v34  ;;  %7405 = vmatmul.bf16.vlgmr.msrb.gmra.mxu0 %v14949_v19 }
 0x1f8   : > { %7453 = vmatpush.bf16.msra.mxu0 %v12016_v14  ;;  %v13747_v30 = vld [vmem:[%s14330_s13 + $0x18a4] sm:$0xf]  ;;  %v11981_v2 = vld [vmem:[%s14330_s13 + $0x18b0] sm:$0xf0]  ;;  %v12384_v8 = vor.u32 %v13847_v24, %v12381_v26  ;;  %7419 = vmatmul.bf16.vlgmr.msrb.gmra.mxu1 %v14956_v25  ;;  %v13118_v25 = vld [vmem:[%s14330_s13 + $0x4f4] sm:$0xf0] }
 0x1f9   : > { %7467 = vmatpush.bf16.msra.mxu1 %v12144_v16  ;;  %v13779_v0 = vld [vmem:[%s14330_s13 + $0x19a4] sm:$0xf]  ;;  %v12109_v18 = vld [vmem:[%s14330_s13 + $0x19b0] sm:$0xf0]  ;;  %7433 = vmatmul.bf16.vlgmr.msrb.gmra.mxu2 %v14954_v23  ;;  %v11984_v11 = vor.u32 %v13747_v30, %v11981_v2  ;;  %v9587_v23 = vld [vmem:[%s14330_s13 + $0x5e8] sm:$0xf] }
 0x1fa   : > { %7481 = vmatpush.bf16.msra.mxu2 %v12272_v12  ;;  %v13811_v61 = vld [vmem:[%s14330_s13 + $0x1aa4] sm:$0xf]  ;;  %v12237_v63 = vld [vmem:[%s14330_s13 + $0x1ab0] sm:$0xf0]  ;;  %7447 = vmatmul.bf16.vlgmr.msrb.gmra.mxu3 %v14962_v29  ;;  %v12112_v6 = vor.u32 %v13779_v0, %v12109_v18  ;;  %v9459_v29 = vld [vmem:[%s14330_s13 + $0x4e8] sm:$0xf] }
 0x1fb   : > { %7495 = vmatpush.bf16.msra.mxu3 %v12400_v62  ;;  %v13843_v52 = vld [vmem:[%s14330_s13 + $0x1ba4] sm:$0xf]  ;;  %v12365_v7 = vld [vmem:[%s14330_s13 + $0x1bb0] sm:$0xf0]  ;;  %v12240_v49 = vor.u32 %v13811_v61, %v12237_v63 }
 0x1fc   : > { %7454 = vmatpush.bf16.msra.mxu0 %v12000_v3  ;;  %v13743_v14 = vld [vmem:[%s14330_s13 + $0x1884] sm:$0xf]  ;;  %v11965_v16 = vld [vmem:[%s14330_s13 + $0x1890] sm:$0xf0]  ;;  %v12368_v42 = vor.u32 %v13843_v52, %v12365_v7 }
 0x1fd   : > { %7468 = vmatpush.bf16.msra.mxu1 %v12128_v21  ;;  %v13775_v12 = vld [vmem:[%s14330_s13 + $0x1984] sm:$0xf]  ;;  %v12093_v4 = vld [vmem:[%s14330_s13 + $0x1990] sm:$0xf0]  ;;  %v11968_v34 = vor.u32 %v13743_v14, %v11965_v16 }
 0x1fe   : > { %7482 = vmatpush.bf16.msra.mxu2 %v12256_v22  ;;  %v13807_v37 = vld [vmem:[%s14330_s13 + $0x1a84] sm:$0xf]  ;;  %v12221_v62 = vld [vmem:[%s14330_s13 + $0x1a90] sm:$0xf0]  ;;  %v12096_v24 = vor.u32 %v13775_v12, %v12093_v4 }
 0x1ff   : > { %7496 = vmatpush.bf16.msra.mxu3 %v12384_v8  ;;  %v13839_v46 = vld [vmem:[%s14330_s13 + $0x1b84] sm:$0xf]  ;;  %v12349_v9 = vld [vmem:[%s14330_s13 + $0x1b90] sm:$0xf0]  ;;  %v12224_v26 = vor.u32 %v13807_v37, %v12221_v62 }
 0x200   : > { %7455 = vmatpush.bf16.msra.mxu0 %v11984_v11  ;;  %v13739_v3 = vld [vmem:[%s14330_s13 + $0x1864] sm:$0xf]  ;;  %v11949_v21 = vld [vmem:[%s14330_s13 + $0x1870] sm:$0xf0]  ;;  %v12352_v30 = vor.u32 %v13839_v46, %v12349_v9 }
 0x201   : > { %7469 = vmatpush.bf16.msra.mxu1 %v12112_v6  ;;  %v13771_v22 = vld [vmem:[%s14330_s13 + $0x1964] sm:$0xf]  ;;  %v12077_v2 = vld [vmem:[%s14330_s13 + $0x1970] sm:$0xf0]  ;;  %v11952_v63 = vor.u32 %v13739_v3, %v11949_v21 }
 0x202   : > { %7483 = vmatpush.bf16.msra.mxu2 %v12240_v49  ;;  %v13803_v0 = vld [vmem:[%s14330_s13 + $0x1a64] sm:$0xf]  ;;  %v12205_v8 = vld [vmem:[%s14330_s13 + $0x1a70] sm:$0xf0]  ;;  %v12080_v52 = vor.u32 %v13771_v22, %v12077_v2 }
 0x203   : > { %7497 = vmatpush.bf16.msra.mxu3 %v12368_v42  ;;  %v13835_v18 = vld [vmem:[%s14330_s13 + $0x1b64] sm:$0xf]  ;;  %v12333_v61 = vld [vmem:[%s14330_s13 + $0x1b70] sm:$0xf0]  ;;  %v12208_v7 = vor.u32 %v13803_v0, %v12205_v8 }
 0x204   : > { %7456 = vmatpush.bf16.msra.mxu0 %v11968_v34  ;;  %v13735_v11 = vld [vmem:[%s14330_s13 + $0x1844] sm:$0xf]  ;;  %v11933_v6 = vld [vmem:[%s14330_s13 + $0x1850] sm:$0xf0]  ;;  %v12336_v14 = vor.u32 %v13835_v18, %v12333_v61 }
 0x205   : > { %7470 = vmatpush.bf16.msra.mxu1 %v12096_v24  ;;  %v13767_v49 = vld [vmem:[%s14330_s13 + $0x1944] sm:$0xf]  ;;  %v12061_v16 = vld [vmem:[%s14330_s13 + $0x1950] sm:$0xf0]  ;;  %v11936_v62 = vor.u32 %v13735_v11, %v11933_v6 }
 0x206   : > { %7484 = vmatpush.bf16.msra.mxu2 %v12224_v26  ;;  %v13799_v12 = vld [vmem:[%s14330_s13 + $0x1a44] sm:$0xf]  ;;  %v12189_v42 = vld [vmem:[%s14330_s13 + $0x1a50] sm:$0xf0]  ;;  %v12064_v46 = vor.u32 %v13767_v49, %v12061_v16 }
 0x207   : > { %7498 = vmatpush.bf16.msra.mxu3 %v12352_v30  ;;  %v13831_v4 = vld [vmem:[%s14330_s13 + $0x1b44] sm:$0xf]  ;;  %v12317_v37 = vld [vmem:[%s14330_s13 + $0x1b50] sm:$0xf0]  ;;  %v12192_v9 = vor.u32 %v13799_v12, %v12189_v42 }
 0x208   : > { %7457 = vmatpush.bf16.msra.mxu0 %v11952_v63  ;;  %v13731_v34 = vld [vmem:[%s14330_s13 + $0x1824] sm:$0xf]  ;;  %v11917_v24 = vld [vmem:[%s14330_s13 + $0x1830] sm:$0xf0]  ;;  %v12320_v3 = vor.u32 %v13831_v4, %v12317_v37 }
 0x209   : > { %7471 = vmatpush.bf16.msra.mxu1 %v12080_v52  ;;  %v13763_v26 = vld [vmem:[%s14330_s13 + $0x1924] sm:$0xf]  ;;  %v12045_v21 = vld [vmem:[%s14330_s13 + $0x1930] sm:$0xf0]  ;;  %v11920_v8 = vor.u32 %v13731_v34, %v11917_v24 }
 0x20a   : > { %7485 = vmatpush.bf16.msra.mxu2 %v12208_v7  ;;  %v13795_v22 = vld [vmem:[%s14330_s13 + $0x1a24] sm:$0xf]  ;;  %v12173_v30 = vld [vmem:[%s14330_s13 + $0x1a30] sm:$0xf0]  ;;  %v12048_v63 = vor.u32 %v13763_v26, %v12045_v21 }
 0x20b   : > { %7499 = vmatpush.bf16.msra.mxu3 %v12336_v14  ;;  %v13827_v2 = vld [vmem:[%s14330_s13 + $0x1b24] sm:$0xf]  ;;  %v12301_v0 = vld [vmem:[%s14330_s13 + $0x1b30] sm:$0xf0]  ;;  %v12176_v52 = vor.u32 %v13795_v22, %v12173_v30 }
 0x20c   : > { %7458 = vmatpush.bf16.msra.mxu0 %v11936_v62  ;;  %v13727_v18 = vld [vmem:[%s14330_s13 + $0x1804] sm:$0xf]  ;;  %v11901_v61 = vld [vmem:[%s14330_s13 + $0x1810] sm:$0xf0]  ;;  %v12304_v49 = vor.u32 %v13827_v2, %v12301_v0 }
 0x20d   : > { %7472 = vmatpush.bf16.msra.mxu1 %v12064_v46  ;;  %v13759_v7 = vld [vmem:[%s14330_s13 + $0x1904] sm:$0xf]  ;;  %v12029_v11 = vld [vmem:[%s14330_s13 + $0x1910] sm:$0xf0]  ;;  %v11904_v62 = vor.u32 %v13727_v18, %v11901_v61 }
 0x20e   : > { %7486 = vmatpush.bf16.msra.mxu2 %v12192_v9  ;;  %v13791_v6 = vld [vmem:[%s14330_s13 + $0x1a04] sm:$0xf]  ;;  %v12157_v14 = vld [vmem:[%s14330_s13 + $0x1a10] sm:$0xf0]  ;;  %v12032_v24 = vor.u32 %v13759_v7, %v12029_v11 }
 0x20f   : > { %7500 = vmatpush.bf16.msra.mxu3 %v12320_v3  ;;  %v13823_v16 = vld [vmem:[%s14330_s13 + $0x1b04] sm:$0xf]  ;;  %v12285_v12 = vld [vmem:[%s14330_s13 + $0x1b10] sm:$0xf0]  ;;  %v12160_v26 = vor.u32 %v13791_v6, %v12157_v14 }
 0x210   : > { %v13883_v42 = vld [vmem:[%s14330_s13 + $0x1ce4] sm:$0xf]  ;;  %v12525_v4 = vld [vmem:[%s14330_s13 + $0x1cf0] sm:$0xf0]  ;;  %7459 = vmatpush.bf16.msra.mxu0 %v11920_v8  ;;  %v12288_v22 = vor.u32 %v13823_v16, %v12285_v12 }
 0x211   : > { %v13915_v37 = vld [vmem:[%s14330_s13 + $0x1de4] sm:$0xf]  ;;  %v12653_v46 = vld [vmem:[%s14330_s13 + $0x1df0] sm:$0xf0]  ;;  %7473 = vmatpush.bf16.msra.mxu1 %v12048_v63  ;;  %v12528_v30 = vor.u32 %v13883_v42, %v12525_v4 }
 0x212   : > { %v13947_v9 = vld [vmem:[%s14330_s13 + $0x1ee4] sm:$0xf]  ;;  %v12781_v34 = vld [vmem:[%s14330_s13 + $0x1ef0] sm:$0xf0]  ;;  %7487 = vmatpush.bf16.msra.mxu2 %v12176_v52  ;;  %v12656_v2 = vor.u32 %v13915_v37, %v12653_v46 }
 0x213   : > { %v13979_v3 = vld [vmem:[%s14330_s13 + $0x1fe4] sm:$0xf]  ;;  %v12909_v21 = vld [vmem:[%s14330_s13 + $0x1ff0] sm:$0xf0]  ;;  %7501 = vmatpush.bf16.msra.mxu3 %v12304_v49  ;;  %v12784_v0 = vor.u32 %v13947_v9, %v12781_v34 }
 0x214   : > { %v13879_v8 = vld [vmem:[%s14330_s13 + $0x1cc4] sm:$0xf]  ;;  %v12509_v18 = vld [vmem:[%s14330_s13 + $0x1cd0] sm:$0xf0]  ;;  %7460 = vmatpush.bf16.msra.mxu0 %v11904_v62  ;;  %v12912_v63 = vor.u32 %v13979_v3, %v12909_v21 }
 0x215   : > { %v13911_v61 = vld [vmem:[%s14330_s13 + $0x1dc4] sm:$0xf]  ;;  %v12637_v52 = vld [vmem:[%s14330_s13 + $0x1dd0] sm:$0xf0]  ;;  %7474 = vmatpush.bf16.msra.mxu1 %v12032_v24  ;;  %v12512_v14 = vor.u32 %v13879_v8, %v12509_v18 }
 0x216   : > { %v13943_v7 = vld [vmem:[%s14330_s13 + $0x1ec4] sm:$0xf]  ;;  %v12765_v11 = vld [vmem:[%s14330_s13 + $0x1ed0] sm:$0xf0]  ;;  %7488 = vmatpush.bf16.msra.mxu2 %v12160_v26  ;;  %v12640_v16 = vor.u32 %v13911_v61, %v12637_v52 }
 0x217   : > { %v13975_v6 = vld [vmem:[%s14330_s13 + $0x1fc4] sm:$0xf]  ;;  %v12893_v49 = vld [vmem:[%s14330_s13 + $0x1fd0] sm:$0xf0]  ;;  %7502 = vmatpush.bf16.msra.mxu3 %v12288_v22  ;;  %v12768_v12 = vor.u32 %v13943_v7, %v12765_v11  ;;  %7461 = vmatmul.bf16.vlgmr.msra.gmra.mxu0 %v15058_v33 }
 0x218   : > { %7509 = vmatpush.bf16.msrb.mxu0 %v12528_v30  ;;  %v13875_v42 = vld [vmem:[%s14330_s13 + $0x1ca4] sm:$0xf]  ;;  %v12493_v4 = vld [vmem:[%s14330_s13 + $0x1cb0] sm:$0xf0]  ;;  %v12896_v62 = vor.u32 %v13975_v6, %v12893_v49  ;;  %7475 = vmatmul.bf16.vlgmr.msra.gmra.mxu1 %v15067_v48  ;;  %v9059_v48 = vld [vmem:[%s14330_s13 + $0x1c8] sm:$0xf] }
 0x219   : > { %7523 = vmatpush.bf16.msrb.mxu1 %v12656_v2  ;;  %v13907_v37 = vld [vmem:[%s14330_s13 + $0x1da4] sm:$0xf]  ;;  %v12621_v46 = vld [vmem:[%s14330_s13 + $0x1db0] sm:$0xf0]  ;;  %7489 = vmatmul.bf16.vlgmr.msra.gmra.mxu2 %v15065_v45  ;;  %v12496_v3 = vor.u32 %v13875_v42, %v12493_v4  ;;  %v15780_v45 = vpop.f32.mrf.mxu2 }
 0x21a   : > { %7537 = vmatpush.bf16.msrb.mxu2 %v12784_v0  ;;  %v13939_v9 = vld [vmem:[%s14330_s13 + $0x1ea4] sm:$0xf]  ;;  %v12749_v34 = vld [vmem:[%s14330_s13 + $0x1eb0] sm:$0xf0]  ;;  %7503 = vmatmul.bf16.vlgmr.msra.gmra.mxu3 %v15073_v53  ;;  %v12624_v21 = vor.u32 %v13907_v37, %v12621_v46  ;;  %v12986_v53 = vld [vmem:[%s14330_s13 + $0xd4] sm:$0xf0] }
 0x21b   : > { %7551 = vmatpush.bf16.msrb.mxu3 %v12912_v63  ;;  %v13971_v24 = vld [vmem:[%s14330_s13 + $0x1fa4] sm:$0xf]  ;;  %v12877_v26 = vld [vmem:[%s14330_s13 + $0x1fb0] sm:$0xf0]  ;;  %v12752_v22 = vor.u32 %v13939_v9, %v12749_v34  ;;  %17290 = vst [vmem:[#allocation57_spill] sm:$0xff] %v15780_v45 }
 0x21c   : > { %7510 = vmatpush.bf16.msrb.mxu0 %v12512_v14  ;;  %v13871_v30 = vld [vmem:[%s14330_s13 + $0x1c84] sm:$0xf]  ;;  %v12477_v2 = vld [vmem:[%s14330_s13 + $0x1c90] sm:$0xf0]  ;;  %v12880_v8 = vor.u32 %v13971_v24, %v12877_v26 }
 0x21d   : > { %7524 = vmatpush.bf16.msrb.mxu1 %v12640_v16  ;;  %v13903_v0 = vld [vmem:[%s14330_s13 + $0x1d84] sm:$0xf]  ;;  %v12605_v18 = vld [vmem:[%s14330_s13 + $0x1d90] sm:$0xf0]  ;;  %v12480_v11 = vor.u32 %v13871_v30, %v12477_v2 }
 0x21e   : > { %7538 = vmatpush.bf16.msrb.mxu2 %v12768_v12  ;;  %v13935_v61 = vld [vmem:[%s14330_s13 + $0x1e84] sm:$0xf]  ;;  %v12733_v63 = vld [vmem:[%s14330_s13 + $0x1e90] sm:$0xf0]  ;;  %v12608_v6 = vor.u32 %v13903_v0, %v12605_v18 }
 0x21f   : > { %7552 = vmatpush.bf16.msrb.mxu3 %v12896_v62  ;;  %v13967_v52 = vld [vmem:[%s14330_s13 + $0x1f84] sm:$0xf]  ;;  %v12861_v7 = vld [vmem:[%s14330_s13 + $0x1f90] sm:$0xf0]  ;;  %v12736_v49 = vor.u32 %v13935_v61, %v12733_v63 }
 0x220   : > { %7511 = vmatpush.bf16.msrb.mxu0 %v12496_v3  ;;  %v13867_v14 = vld [vmem:[%s14330_s13 + $0x1c64] sm:$0xf]  ;;  %v12461_v16 = vld [vmem:[%s14330_s13 + $0x1c70] sm:$0xf0]  ;;  %v12864_v42 = vor.u32 %v13967_v52, %v12861_v7 }
 0x221   : > { %7525 = vmatpush.bf16.msrb.mxu1 %v12624_v21  ;;  %v13899_v12 = vld [vmem:[%s14330_s13 + $0x1d64] sm:$0xf]  ;;  %v12589_v4 = vld [vmem:[%s14330_s13 + $0x1d70] sm:$0xf0]  ;;  %v12464_v34 = vor.u32 %v13867_v14, %v12461_v16 }
 0x222   : > { %7539 = vmatpush.bf16.msrb.mxu2 %v12752_v22  ;;  %v13931_v37 = vld [vmem:[%s14330_s13 + $0x1e64] sm:$0xf]  ;;  %v12717_v62 = vld [vmem:[%s14330_s13 + $0x1e70] sm:$0xf0]  ;;  %v12592_v24 = vor.u32 %v13899_v12, %v12589_v4 }
 0x223   : > { %7553 = vmatpush.bf16.msrb.mxu3 %v12880_v8  ;;  %v13963_v46 = vld [vmem:[%s14330_s13 + $0x1f64] sm:$0xf]  ;;  %v12845_v9 = vld [vmem:[%s14330_s13 + $0x1f70] sm:$0xf0]  ;;  %v12720_v26 = vor.u32 %v13931_v37, %v12717_v62 }
 0x224   : > { %7512 = vmatpush.bf16.msrb.mxu0 %v12480_v11  ;;  %v13863_v3 = vld [vmem:[%s14330_s13 + $0x1c44] sm:$0xf]  ;;  %v12445_v21 = vld [vmem:[%s14330_s13 + $0x1c50] sm:$0xf0]  ;;  %v12848_v30 = vor.u32 %v13963_v46, %v12845_v9 }
 0x225   : > { %7526 = vmatpush.bf16.msrb.mxu1 %v12608_v6  ;;  %v13895_v22 = vld [vmem:[%s14330_s13 + $0x1d44] sm:$0xf]  ;;  %v12573_v2 = vld [vmem:[%s14330_s13 + $0x1d50] sm:$0xf0]  ;;  %v12448_v63 = vor.u32 %v13863_v3, %v12445_v21 }
 0x226   : > { %7540 = vmatpush.bf16.msrb.mxu2 %v12736_v49  ;;  %v13927_v0 = vld [vmem:[%s14330_s13 + $0x1e44] sm:$0xf]  ;;  %v12701_v8 = vld [vmem:[%s14330_s13 + $0x1e50] sm:$0xf0]  ;;  %v12576_v52 = vor.u32 %v13895_v22, %v12573_v2 }
 0x227   : > { %7554 = vmatpush.bf16.msrb.mxu3 %v12864_v42  ;;  %v13959_v18 = vld [vmem:[%s14330_s13 + $0x1f44] sm:$0xf]  ;;  %v12829_v61 = vld [vmem:[%s14330_s13 + $0x1f50] sm:$0xf0]  ;;  %v12704_v7 = vor.u32 %v13927_v0, %v12701_v8 }
 0x228   : > { %7513 = vmatpush.bf16.msrb.mxu0 %v12464_v34  ;;  %v13859_v11 = vld [vmem:[%s14330_s13 + $0x1c24] sm:$0xf]  ;;  %v12429_v6 = vld [vmem:[%s14330_s13 + $0x1c30] sm:$0xf0]  ;;  %v12832_v14 = vor.u32 %v13959_v18, %v12829_v61  ;;  %v15759_v34 = vpop.f32.mrf.mxu0  ;;  %v8947_v61 = vld [vmem:[%s14330_s13 + $0xe8] sm:$0xf] }
 0x229   : > { %7527 = vmatpush.bf16.msrb.mxu1 %v12592_v24  ;;  %v13891_v49 = vld [vmem:[%s14330_s13 + $0x1d24] sm:$0xf]  ;;  %v12557_v16 = vld [vmem:[%s14330_s13 + $0x1d30] sm:$0xf0]  ;;  %v12432_v62 = vor.u32 %v13859_v11, %v12429_v6  ;;  %v13022_v11 = vld [vmem:[%s14330_s13 + $0x1f4] sm:$0xf0] }
 0x22a   : > { %7541 = vmatpush.bf16.msrb.mxu2 %v12720_v26  ;;  %v13923_v12 = vld [vmem:[%s14330_s13 + $0x1e24] sm:$0xf]  ;;  %v12685_v42 = vld [vmem:[%s14330_s13 + $0x1e30] sm:$0xf0]  ;;  %v12560_v24 = vor.u32 %v13891_v49, %v12557_v16  ;;  %v9203_v6 = vld [vmem:[%s14330_s13 + $0x2e8] sm:$0xf] }
 0x22b   : > { %7555 = vmatpush.bf16.msrb.mxu3 %v12848_v30  ;;  %v13955_v4 = vld [vmem:[%s14330_s13 + $0x1f24] sm:$0xf]  ;;  %v12813_v37 = vld [vmem:[%s14330_s13 + $0x1f30] sm:$0xf0]  ;;  %v12688_v26 = vor.u32 %v13923_v12, %v12685_v42  ;;  %v15764_v30 = vpop.f32.mrf.mxu1  ;;  %v13054_v49 = vld [vmem:[%s14330_s13 + $0x2f4] sm:$0xf0] }
 0x22c   : > { %7514 = vmatpush.bf16.msrb.mxu0 %v12448_v63  ;;  %v13855_v46 = vld [vmem:[%s14330_s13 + $0x1c04] sm:$0xf]  ;;  %v12413_v9 = vld [vmem:[%s14330_s13 + $0x1c10] sm:$0xf0]  ;;  %17289 = vst [vmem:[#allocation56_spill] sm:$0xff] %v15764_v30  ;;  %v12816_v2 = vor.u32 %v13955_v4, %v12813_v37 }
 0x22d   : > { %7528 = vmatpush.bf16.msrb.mxu1 %v12576_v52  ;;  %v13887_v3 = vld [vmem:[%s14330_s13 + $0x1d04] sm:$0xf]  ;;  %v12541_v21 = vld [vmem:[%s14330_s13 + $0x1d10] sm:$0xf0]  ;;  %v12990_v63 = vld [vmem:[%s14330_s13 + $0xf4] sm:$0xf0] }
 0x22e   : > { %7542 = vmatpush.bf16.msrb.mxu2 %v12704_v7  ;;  %v13919_v22 = vld [vmem:[%s14330_s13 + $0x1e04] sm:$0xf]  ;;  %v12669_v0 = vld [vmem:[%s14330_s13 + $0x1e10] sm:$0xf0]  ;;  %v9075_v52 = vld [vmem:[%s14330_s13 + $0x1e8] sm:$0xf]  ;;  %v12416_v7 = vor.u32 %v13855_v46, %v12413_v9  ;;  %v8948_v37 = vor.u32 %v12990_v63, %v8947_v61  ;;  %v9204_v46 = vor.u32 %v13054_v49, %v9203_v6 }
 0x22f   : > { %7556 = vmatpush.bf16.msrb.mxu3 %v12832_v14  ;;  %v13951_v8 = vld [vmem:[%s14330_s13 + $0x1f04] sm:$0xf]  ;;  %v12797_v18 = vld [vmem:[%s14330_s13 + $0x1f10] sm:$0xf0]  ;;  %v12544_v14 = vor.u32 %v13887_v3, %v12541_v21  ;;  %v12672_v16 = vor.u32 %v13919_v22, %v12669_v0  ;;  %v9331_v12 = vld [vmem:[%s14330_s13 + $0x3e8] sm:$0xf]  ;;  %v15785_v22 = vpop.f32.mrf.mxu3 }
 0x230   : > { %7515 = vmatpush.bf16.msrb.mxu0 %v12432_v62  ;;  %v13086_v42 = vld [vmem:[%s14330_s13 + $0x3f4] sm:$0xf0]  ;;  %v12800_v4 = vor.u32 %v13951_v8, %v12797_v18  ;;  %v9076_v62 = vor.u32 %v13022_v11, %v9075_v52  ;;  %v8931_v9 = vld [vmem:[%s14330_s13 + $0xc8] sm:$0xf]  ;;  %17291 = vst [vmem:[#allocation58_spill] sm:$0xff] %v15785_v22 }
 0x231   : > { %7529 = vmatpush.bf16.msrb.mxu1 %v12560_v24  ;;  %v9332_v24 = vor.u32 %v13086_v42, %v9331_v12  ;;  %v9187_v3 = vld [vmem:[%s14330_s13 + $0x2c8] sm:$0xf]  ;;  %v13050_v21 = vld [vmem:[%s14330_s13 + $0x2d4] sm:$0xf0]  ;;  %v8932_v61 = vor.u32 %v12986_v53, %v8931_v9 }
 0x232   : > { %7543 = vmatpush.bf16.msrb.mxu2 %v12688_v26  ;;  %v13018_v26 = vld [vmem:[%s14330_s13 + $0x1d4] sm:$0xf0]  ;;  %v9315_v0 = vld [vmem:[%s14330_s13 + $0x3c8] sm:$0xf]  ;;  %v9188_v52 = vor.u32 %v13050_v21, %v9187_v3 }
 0x233   : > { %7557 = vmatpush.bf16.msrb.mxu3 %v12816_v2  ;;  %v15787_v2 = vpop.f32.mrf.mxu0  ;;  %v13082_v8 = vld [vmem:[%s14330_s13 + $0x3d4] sm:$0xf0]  ;;  %v15791_v18 = vpop.f32.mrf.mxu1  ;;  %v9060_v63 = vor.u32 %v13018_v26, %v9059_v48  ;;  %v9043_v6 = vld [vmem:[%s14330_s13 + $0x1a8] sm:$0xf] }
 0x234   : > { %7516 = vmatpush.bf16.msrb.mxu0 %v12416_v7  ;;  %v8915_v7 = vld [vmem:[%s14330_s13 + $0xa8] sm:$0xf]  ;;  %v12982_v11 = vld [vmem:[%s14330_s13 + $0xb4] sm:$0xf0]  ;;  %v9316_v49 = vor.u32 %v13082_v8, %v9315_v0 }
 0x235   : > { %7530 = vmatpush.bf16.msrb.mxu1 %v12544_v14  ;;  %v13014_v14 = vld [vmem:[%s14330_s13 + $0x1b4] sm:$0xf0]  ;;  %v9299_v48 = vld [vmem:[%s14330_s13 + $0x3a8] sm:$0xf]  ;;  %v8916_v42 = vor.u32 %v12982_v11, %v8915_v7 }
 0x236   : > { %7544 = vmatpush.bf16.msrb.mxu2 %v12672_v16  ;;  %v9171_v16 = vld [vmem:[%s14330_s13 + $0x2a8] sm:$0xf]  ;;  %v13046_v12 = vld [vmem:[%s14330_s13 + $0x2b4] sm:$0xf0] }
 0x237   : > { %7558 = vmatpush.bf16.msrb.mxu3 %v12800_v4  ;;  %7517 = vmatmul.bf16.vlgmr.msrb.gmra.mxu0 %v15169_v27  ;;  %v13078_v53 = vld [vmem:[%s14330_s13 + $0x3b4] sm:$0xf0]  ;;  %v9044_v4 = vor.u32 %v13014_v14, %v9043_v6  ;;  %v9027_v9 = vld [vmem:[%s14330_s13 + $0x188] sm:$0xf]  ;;  %v15813_v8 = vpop.f32.mrf.mxu3 }
 0x238   : > { %7565 = vmatpush.bf16.msra.mxu0 %v8948_v37  ;;  %7531 = vmatmul.bf16.vlgmr.msrb.gmra.mxu1 %v15178_v54  ;;  %v9172_v37 = vor.u32 %v13046_v12, %v9171_v16  ;;  %v9300_v26 = vor.u32 %v13078_v53, %v9299_v48  ;;  %v13010_v3 = vld [vmem:[%s14330_s13 + $0x194] sm:$0xf0]  ;;  %v9155_v21 = vld [vmem:[%s14330_s13 + $0x288] sm:$0xf] }
 0x239   : > { %7579 = vmatpush.bf16.msra.mxu1 %v9076_v62  ;;  %7545 = vmatmul.bf16.vlgmr.msrb.gmra.mxu2 %v15176_v50  ;;  %v8899_v62 = vld [vmem:[%s14330_s13 + $0x88] sm:$0xf]  ;;  %v13042_v0 = vld [vmem:[%s14330_s13 + $0x294] sm:$0xf0]  ;;  %v9028_v11 = vor.u32 %v13010_v3, %v9027_v9 }
 0x23a   : > { %7593 = vmatpush.bf16.msra.mxu2 %v9204_v46  ;;  %7559 = vmatmul.bf16.vlgmr.msrb.gmra.mxu3 %v15184_v20  ;;  %v12978_v46 = vld [vmem:[%s14330_s13 + $0x94] sm:$0xf0]  ;;  %v9156_v6 = vor.u32 %v13042_v0, %v9155_v21  ;;  %v9011_v16 = vld [vmem:[%s14330_s13 + $0x168] sm:$0xf] }
 0x23b   : > { %7607 = vmatpush.bf16.msra.mxu3 %v9332_v24  ;;  %v15808_v24 = vpop.f32.mrf.mxu2  ;;  %v15817_v7 = vpop.f32.mrf.mxu0  ;;  %v12974_v14 = vld [vmem:[%s14330_s13 + $0x74] sm:$0xf0]  ;;  %v8867_v21 = vld [vmem:[%s14330_s13 + $0x48] sm:$0xf] }
 0x23c   : > { %7566 = vmatpush.bf16.msra.mxu0 %v8932_v61  ;;  %v9283_v61 = vld [vmem:[%s14330_s13 + $0x388] sm:$0xf]  ;;  %v15822_v12 = vpop.f32.mrf.mxu1  ;;  %v13006_v53 = vld [vmem:[%s14330_s13 + $0x174] sm:$0xf0] }
 0x23d   : > { %7580 = vmatpush.bf16.msra.mxu1 %v9060_v63  ;;  %v13074_v63 = vld [vmem:[%s14330_s13 + $0x394] sm:$0xf0]  ;;  %v9012_v9 = vor.u32 %v13006_v53, %v9011_v16  ;;  %v9123_v20 = vld [vmem:[%s14330_s13 + $0x248] sm:$0xf] }
 0x23e   : > { %7594 = vmatpush.bf16.msra.mxu2 %v9188_v52  ;;  %v8900_v52 = vor.u32 %v12978_v46, %v8899_v62  ;;  %v9284_v48 = vor.u32 %v13074_v63, %v9283_v61  ;;  %v13038_v62 = vld [vmem:[%s14330_s13 + $0x274] sm:$0xf0]  ;;  %v9251_v50 = vld [vmem:[%s14330_s13 + $0x348] sm:$0xf] }
 0x23f   : > { %7608 = vmatpush.bf16.msra.mxu3 %v9316_v49  ;;  %v8883_v49 = vld [vmem:[%s14330_s13 + $0x68] sm:$0xf]  ;;  %v12970_v0 = vld [vmem:[%s14330_s13 + $0x54] sm:$0xf0] }
 0x240   : > { %7567 = vmatpush.bf16.msra.mxu0 %v8916_v42  ;;  %v9139_v42 = vld [vmem:[%s14330_s13 + $0x268] sm:$0xf]  ;;  %v8884_v46 = vor.u32 %v12974_v14, %v8883_v49  ;;  %v13002_v63 = vld [vmem:[%s14330_s13 + $0x154] sm:$0xf0]  ;;  %v15839_v49 = vpop.f32.mrf.mxu3 }
 0x241   : > { %7581 = vmatpush.bf16.msra.mxu1 %v9044_v4  ;;  %v9267_v4 = vld [vmem:[%s14330_s13 + $0x368] sm:$0xf]  ;;  %v9140_v3 = vor.u32 %v13038_v62, %v9139_v42  ;;  %v13034_v54 = vld [vmem:[%s14330_s13 + $0x254] sm:$0xf0] }
 0x242   : > { %7595 = vmatpush.bf16.msra.mxu2 %v9172_v37  ;;  %v13070_v37 = vld [vmem:[%s14330_s13 + $0x374] sm:$0xf0]  ;;  %v9124_v16 = vor.u32 %v13034_v54, %v9123_v20  ;;  %v8979_v42 = vld [vmem:[%s14330_s13 + $0x128] sm:$0xf] }
 0x243   : > { %7609 = vmatpush.bf16.msra.mxu3 %v9300_v26  ;;  %v8995_v26 = vld [vmem:[%s14330_s13 + $0x148] sm:$0xf]  ;;  %v9268_v61 = vor.u32 %v13070_v37, %v9267_v4  ;;  %v12966_v53 = vld [vmem:[%s14330_s13 + $0x34] sm:$0xf0] }
 0x244   : > { %7568 = vmatpush.bf16.msra.mxu0 %v8900_v52  ;;  %v13066_v52 = vld [vmem:[%s14330_s13 + $0x354] sm:$0xf0]  ;;  %v8996_v14 = vor.u32 %v13002_v63, %v8995_v26  ;;  %v9107_v37 = vld [vmem:[%s14330_s13 + $0x228] sm:$0xf] }
 0x245   : > { %7582 = vmatpush.bf16.msra.mxu1 %v9028_v11  ;;  %v15837_v11 = vpop.f32.mrf.mxu2  ;;  %v9252_v62 = vor.u32 %v13066_v52, %v9251_v50  ;;  %v12998_v4 = vld [vmem:[%s14330_s13 + $0x134] sm:$0xf0]  ;;  %v8835_v50 = vld [vmem:[%s14330_s13 + $0x8] sm:$0xf] }
 0x246   : > { %7596 = vmatpush.bf16.msra.mxu2 %v9156_v6  ;;  %v8868_v6 = vor.u32 %v12970_v0, %v8867_v21  ;;  %v15847_v21 = vpop.f32.mrf.mxu0  ;;  %v9235_v0 = vld [vmem:[%s14330_s13 + $0x328] sm:$0xf]  ;;  %v12962_v20 = vld [vmem:[%s14330_s13 + $0x14] sm:$0xf0]  ;;  %v8980_v26 = vor.u32 %v12998_v4, %v8979_v42 }
 0x247   : > { %7610 = vmatpush.bf16.msra.mxu3 %v9284_v48  ;;  %v8851_v48 = vld [vmem:[%s14330_s13 + $0x28] sm:$0xf]  ;;  %v12994_v52 = vld [vmem:[%s14330_s13 + $0x114] sm:$0xf0] }
 0x248   : > { %7569 = vmatpush.bf16.msra.mxu0 %v8884_v46  ;;  %v13030_v46 = vld [vmem:[%s14330_s13 + $0x234] sm:$0xf0]  ;;  %v8852_v54 = vor.u32 %v12966_v53, %v8851_v48  ;;  %v8963_v63 = vld [vmem:[%s14330_s13 + $0x108] sm:$0xf] }
 0x249   : > { %7583 = vmatpush.bf16.msra.mxu1 %v9012_v9  ;;  %v13062_v9 = vld [vmem:[%s14330_s13 + $0x334] sm:$0xf0]  ;;  %v9091_v27 = vld [vmem:[%s14330_s13 + $0x208] sm:$0xf] }
 0x24a   : > { %7597 = vmatpush.bf16.msra.mxu2 %v9140_v3  ;;  %v15851_v3 = vpop.f32.mrf.mxu1  ;;  %v9236_v33 = vor.u32 %v13062_v9, %v9235_v0  ;;  %v9219_v48 = vld [vmem:[%s14330_s13 + $0x308] sm:$0xf]  ;;  %v13058_v53 = vld [vmem:[%s14330_s13 + $0x314] sm:$0xf0] }
 0x24b   : > { %7611 = vmatpush.bf16.msra.mxu3 %v9268_v61  ;;  %v9108_v61 = vor.u32 %v13030_v46, %v9107_v37  ;;  %v9715_v42 = vld [vmem:[%s14330_s13 + $0x6e8] sm:$0xf]  ;;  %v13182_v4 = vld [vmem:[%s14330_s13 + $0x6f4] sm:$0xf0] }
 0x24c   : > { %7570 = vmatpush.bf16.msra.mxu0 %v8868_v6  ;;  %v13026_v6 = vld [vmem:[%s14330_s13 + $0x214] sm:$0xf0]  ;;  %v9843_v46 = vld [vmem:[%s14330_s13 + $0x7e8] sm:$0xf]  ;;  %v9716_v60 = vor.u32 %v13182_v4, %v9715_v42 }
 0x24d   : > { %7584 = vmatpush.bf16.msra.mxu1 %v8996_v14  ;;  %v8836_v14 = vor.u32 %v12962_v20, %v8835_v50  ;;  %v9092_v37 = vor.u32 %v13026_v6, %v9091_v27  ;;  %v13214_v0 = vld [vmem:[%s14330_s13 + $0x7f4] sm:$0xf0]  ;;  %v15869_v9 = vpop.f32.mrf.mxu2  ;;  %v9460_v50 = vor.u32 %v13118_v25, %v9459_v29  ;;  %v15871_v20 = vpop.f32.mrf.mxu3  ;;  %v9699_v6 = vld [vmem:[%s14330_s13 + $0x6c8] sm:$0xf] }
 0x24e   : > { %7598 = vmatpush.bf16.msra.mxu2 %v9124_v16  ;;  %v13150_v16 = vld [vmem:[%s14330_s13 + $0x5f4] sm:$0xf0]  ;;  %v9844_v27 = vor.u32 %v13214_v0, %v9843_v46  ;;  %v9827_v25 = vld [vmem:[%s14330_s13 + $0x7c8] sm:$0xf] }
 0x24f   : > { %7612 = vmatpush.bf16.msra.mxu3 %v9252_v62  ;;  %v8964_v62 = vor.u32 %v12994_v52, %v8963_v63  ;;  %v9588_v19 = vor.u32 %v13150_v16, %v9587_v23  ;;  %v9571_v63 = vld [vmem:[%s14330_s13 + $0x5c8] sm:$0xf]  ;;  %v13146_v52 = vld [vmem:[%s14330_s13 + $0x5d4] sm:$0xf0] }
 0x250   : > { %7571 = vmatpush.bf16.msra.mxu0 %v8852_v54  ;;  %v9220_v54 = vor.u32 %v13058_v53, %v9219_v48  ;;  %v13210_v23 = vld [vmem:[%s14330_s13 + $0x7d4] sm:$0xf0]  ;;  %v9572_v53 = vor.u32 %v13146_v52, %v9571_v63  ;;  %v9427_v16 = vld [vmem:[%s14330_s13 + $0x4a8] sm:$0xf] }
 0x251   : > { %7585 = vmatpush.bf16.msra.mxu1 %v8980_v26  ;;  %v9443_v26 = vld [vmem:[%s14330_s13 + $0x4c8] sm:$0xf]  ;;  %v13110_v42 = vld [vmem:[%s14330_s13 + $0x4b4] sm:$0xf0] }
 0x252   : > { %7599 = vmatpush.bf16.msra.mxu2 %v9108_v61  ;;  %v13114_v61 = vld [vmem:[%s14330_s13 + $0x4d4] sm:$0xf0]  ;;  %v15883_v29 = vpop.f32.mrf.mxu1  ;;  %v9555_v4 = vld [vmem:[%s14330_s13 + $0x5a8] sm:$0xf] }
 0x253   : > { %7613 = vmatpush.bf16.msra.mxu3 %v9236_v33  ;;  %v15879_v33 = vpop.f32.mrf.mxu0  ;;  %v9444_v48 = vor.u32 %v13114_v61, %v9443_v26  ;;  %v9683_v46 = vld [vmem:[%s14330_s13 + $0x6a8] sm:$0xf]  ;;  %v13174_v0 = vld [vmem:[%s14330_s13 + $0x6b4] sm:$0xf0] }
 0x254   : > { %7572 = vmatpush.bf16.msra.mxu0 %v8836_v14  ;;  %v9700_v14 = vor.u32 %v13178_v56, %v9699_v6  ;;  %v9428_v56 = vor.u32 %v13110_v42, %v9427_v16  ;;  %v9411_v26 = vld [vmem:[%s14330_s13 + $0x488] sm:$0xf]  ;;  %v13106_v61 = vld [vmem:[%s14330_s13 + $0x494] sm:$0xf0] }
 0x255   : > { %7586 = vmatpush.bf16.msra.mxu1 %v8964_v62  ;;  %v9828_v62 = vor.u32 %v13210_v23, %v9827_v25  ;;  %v9539_v63 = vld [vmem:[%s14330_s13 + $0x588] sm:$0xf]  ;;  %v13138_v6 = vld [vmem:[%s14330_s13 + $0x594] sm:$0xf0] }
 0x256   : > { %7600 = vmatpush.bf16.msra.mxu2 %v9092_v37  ;;  %v13142_v37 = vld [vmem:[%s14330_s13 + $0x5b4] sm:$0xf0]  ;;  %v9667_v25 = vld [vmem:[%s14330_s13 + $0x688] sm:$0xf] }
 0x257   : > { %7614 = vmatpush.bf16.msra.mxu3 %v9220_v54  ;;  %7573 = vmatmul.bf16.vlgmr.msra.gmra.mxu0 %v14437_v58  ;;  %v9811_v54 = vld [vmem:[%s14330_s13 + $0x7a8] sm:$0xf]  ;;  %v13170_v23 = vld [vmem:[%s14330_s13 + $0x694] sm:$0xf0] }
 0x258   : > { %7621 = vmatpush.bf16.msrb.mxu0 %v9460_v50  ;;  %v13206_v50 = vld [vmem:[%s14330_s13 + $0x7b4] sm:$0xf0]  ;;  %7587 = vmatmul.bf16.vlgmr.msra.gmra.mxu1 %v14461_v10  ;;  %v9651_v10 = vld [vmem:[%s14330_s13 + $0x668] sm:$0xf] }
 0x259   : > { %7635 = vmatpush.bf16.msrb.mxu1 %v9588_v19  ;;  %7601 = vmatmul.bf16.vlgmr.msra.gmra.mxu2 %v14445_v1  ;;  %v9684_v19 = vor.u32 %v13174_v0, %v9683_v46  ;;  %v9812_v52 = vor.u32 %v13206_v50, %v9811_v54  ;;  %v13202_v16 = vld [vmem:[%s14330_s13 + $0x794] sm:$0xf0]  ;;  %v9395_v46 = vld [vmem:[%s14330_s13 + $0x468] sm:$0xf] }
 0x25a   : > { %7649 = vmatpush.bf16.msrb.mxu2 %v9716_v60  ;;  %7615 = vmatmul.bf16.vlgmr.msra.gmra.mxu3 %v14469_v17  ;;  %v9556_v60 = vor.u32 %v13142_v37, %v9555_v4  ;;  %v15911_v42 = vpop.f32.mrf.mxu1  ;;  %v9412_v4 = vor.u32 %v13106_v61, %v9411_v26  ;;  %v9668_v37 = vor.u32 %v13170_v23, %v9667_v25  ;;  %v13102_v0 = vld [vmem:[%s14330_s13 + $0x474] sm:$0xf0]  ;;  %v9523_v54 = vld [vmem:[%s14330_s13 + $0x568] sm:$0xf] }
 0x25b   : > { %7663 = vmatpush.bf16.msrb.mxu3 %v9844_v27  ;;  %v15900_v27 = vpop.f32.mrf.mxu2  ;;  %v13134_v17 = vld [vmem:[%s14330_s13 + $0x574] sm:$0xf0]  ;;  %v9779_v58 = vld [vmem:[%s14330_s13 + $0x768] sm:$0xf] }
 0x25c   : > { %7622 = vmatpush.bf16.msrb.mxu0 %v9444_v48  ;;  %v15905_v48 = vpop.f32.mrf.mxu3  ;;  %v13166_v1 = vld [vmem:[%s14330_s13 + $0x674] sm:$0xf0]  ;;  %v9524_v26 = vor.u32 %v13134_v17, %v9523_v54  ;;  %v10211_v30 = vld [vmem:[%s14330_s13 + $0xac8] sm:$0xf] }
 0x25d   : > { %7636 = vmatpush.bf16.msrb.mxu1 %v9572_v53  ;;  %v15907_v53 = vpop.f32.mrf.mxu0  ;;  %v9652_v61 = vor.u32 %v13166_v1, %v9651_v10  ;;  %v6695_v1 = vadd.f32 %v14960_v28, %v14944_v13  ;;  %v13094_v54 = vld [vmem:[%s14330_s13 + $0x434] sm:$0xf0] }
 0x25e   : > { %7650 = vmatpush.bf16.msrb.mxu2 %v9700_v14  ;;  %v9795_v14 = vld [vmem:[%s14330_s13 + $0x788] sm:$0xf]  ;;  %v17292_v22 = vld [vmem:[#allocation25_spill] sm:$0xff] }
 0x25f   : > { %7664 = vmatpush.bf16.msrb.mxu3 %v9828_v62  ;;  %v9540_v62 = vor.u32 %v13138_v6, %v9539_v63  ;;  %v9796_v50 = vor.u32 %v13202_v16, %v9795_v14  ;;  %v9379_v63 = vld [vmem:[%s14330_s13 + $0x448] sm:$0xf]  ;;  %v13130_v14 = vld [vmem:[%s14330_s13 + $0x554] sm:$0xf0] }
 0x260   : > { %7623 = vmatpush.bf16.msrb.mxu0 %v9428_v56  ;;  %v13198_v56 = vld [vmem:[%s14330_s13 + $0x774] sm:$0xf0]  ;;  %v9507_v6 = vld [vmem:[%s14330_s13 + $0x548] sm:$0xf] }
 0x261   : > { %7637 = vmatpush.bf16.msrb.mxu1 %v9556_v60  ;;  %v9396_v60 = vor.u32 %v13102_v0, %v9395_v46  ;;  %v9780_v23 = vor.u32 %v13198_v56, %v9779_v58  ;;  %v9635_v16 = vld [vmem:[%s14330_s13 + $0x648] sm:$0xf]  ;;  %v13126_v56 = vld [vmem:[%s14330_s13 + $0x534] sm:$0xf0] }
 0x262   : > { %7651 = vmatpush.bf16.msrb.mxu2 %v9684_v19  ;;  %v7141_v19 = vadd.f32 %v15791_v18, %v15787_v2  ;;  %v9763_v2 = vld [vmem:[%s14330_s13 + $0x748] sm:$0xf]  ;;  %v13194_v18 = vld [vmem:[%s14330_s13 + $0x754] sm:$0xf0]  ;;  %v15943_v13 = vpop.f32.mrf.mxu1 }
 0x263   : > { %7665 = vmatpush.bf16.msrb.mxu3 %v9812_v52  ;;  %v13098_v52 = vld [vmem:[%s14330_s13 + $0x454] sm:$0xf0]  ;;  %v15926_v25 = vpop.f32.mrf.mxu2  ;;  %v9363_v0 = vld [vmem:[%s14330_s13 + $0x428] sm:$0xf]  ;;  %v9764_v28 = vor.u32 %v13194_v18, %v9763_v2 }
 0x264   : > { %7624 = vmatpush.bf16.msrb.mxu0 %v9412_v4  ;;  %v13162_v4 = vld [vmem:[%s14330_s13 + $0x654] sm:$0xf0]  ;;  %v15931_v46 = vpop.f32.mrf.mxu3  ;;  %v9380_v10 = vor.u32 %v13098_v52, %v9379_v63  ;;  %v7155_v58 = vadd.f32 %v15808_v24, %v7141_v19  ;;  %v9619_v24 = vld [vmem:[%s14330_s13 + $0x628] sm:$0xf]  ;;  %v9364_v63 = vor.u32 %v13094_v54, %v9363_v0 }
 0x265   : > { %7638 = vmatpush.bf16.msrb.mxu1 %v9540_v62  ;;  %v15938_v17 = vpop.f32.mrf.mxu0  ;;  %v9508_v62 = vor.u32 %v13130_v14, %v9507_v6  ;;  %v9747_v19 = vld [vmem:[%s14330_s13 + $0x728] sm:$0xf]  ;;  %v13090_v6 = vld [vmem:[%s14330_s13 + $0x414] sm:$0xf0] }
 0x266   : > { %7652 = vmatpush.bf16.msrb.mxu2 %v9668_v37  ;;  %v9636_v37 = vor.u32 %v13162_v4, %v9635_v16  ;;  %v9347_v52 = vld [vmem:[%s14330_s13 + $0x408] sm:$0xf]  ;;  %v13122_v2 = vld [vmem:[%s14330_s13 + $0x514] sm:$0xf0] }
 0x267   : > { %7666 = vmatpush.bf16.msrb.mxu3 %v9796_v50  ;;  %v9491_v50 = vld [vmem:[%s14330_s13 + $0x528] sm:$0xf]  ;;  %v13186_v0 = vld [vmem:[%s14330_s13 + $0x714] sm:$0xf0] }
 0x268   : > { %7625 = vmatpush.bf16.msrb.mxu0 %v9396_v60  ;;  %v13158_v60 = vld [vmem:[%s14330_s13 + $0x634] sm:$0xf0]  ;;  %v9492_v14 = vor.u32 %v13126_v56, %v9491_v50  ;;  %v9475_v4 = vld [vmem:[%s14330_s13 + $0x508] sm:$0xf] }
 0x269   : > { %7639 = vmatpush.bf16.msrb.mxu1 %v9524_v26  ;;  %v13190_v26 = vld [vmem:[%s14330_s13 + $0x734] sm:$0xf0]  ;;  %v9620_v16 = vor.u32 %v13158_v60, %v9619_v24  ;;  %v9971_v54 = vld [vmem:[%s14330_s13 + $0x8e8] sm:$0xf] }
 0x26a   : > { %7653 = vmatpush.bf16.msrb.mxu2 %v9652_v61  ;;  %v6709_v61 = vadd.f32 %v14976_v59, %v6695_v1  ;;  %v9603_v59 = vld [vmem:[%s14330_s13 + $0x608] sm:$0xf]  ;;  %v9748_v18 = vor.u32 %v13190_v26, %v9747_v19  ;;  %v13154_v1 = vld [vmem:[%s14330_s13 + $0x614] sm:$0xf0] }
 0x26b   : > { %7667 = vmatpush.bf16.msrb.mxu3 %v9780_v23  ;;  %v7169_v23 = vadd.f32 %v15813_v8, %v7155_v58  ;;  %v7143_v58 = vadd.f32 %v15822_v12, %v15817_v7  ;;  %v13278_v50 = vld [vmem:[%s14330_s13 + $0x9f4] sm:$0xf0]  ;;  %v9604_v7 = vor.u32 %v13154_v1, %v9603_v59  ;;  %v10355_v12 = vld [vmem:[%s14330_s13 + $0xbe8] sm:$0xf] }
 0x26c   : > { %7626 = vmatpush.bf16.msrb.mxu0 %v9380_v10  ;;  %v9731_v10 = vld [vmem:[%s14330_s13 + $0x708] sm:$0xf]  ;;  %v6723_v8 = vadd.f32 %v17292_v22, %v6709_v61  ;;  %v13310_v56 = vld [vmem:[%s14330_s13 + $0xaf4] sm:$0xf0]  ;;  %v15972_v60 = vpop.f32.mrf.mxu3  ;;  %v9476_v22 = vor.u32 %v13122_v2, %v9475_v4 }
 0x26d   : > { %7640 = vmatpush.bf16.msrb.mxu1 %v9508_v62  ;;  %v15966_v62 = vpop.f32.mrf.mxu2  ;;  %v7183_v24 = vadd.f32 %v15847_v21, %v7169_v23  ;;  %v15974_v19 = vpop.f32.mrf.mxu0  ;;  %v13342_v26 = vld [vmem:[%s14330_s13 + $0xbf4] sm:$0xf0]  ;;  %v17293_v61 = vld [vmem:[#allocation27_spill] sm:$0xff]  ;;  %v9732_v21 = vor.u32 %v13186_v0, %v9731_v10  ;;  %v10100_v23 = vor.u32 %v13278_v50, %v10099_v51  ;;  %v7157_v2 = vadd.f32 %v15837_v11, %v7143_v58  ;;  %v17294_v10 = vld [vmem:[#allocation30_spill] sm:$0xff] }
 0x26e   : > { %7654 = vmatpush.bf16.msrb.mxu2 %v9636_v37  ;;  %v9348_v37 = vor.u32 %v13090_v6, %v9347_v52  ;;  %v15979_v52 = vpop.f32.mrf.mxu1  ;;  %v9972_v6 = vor.u32 %v13246_v55, %v9971_v54  ;;  %v10083_v4 = vld [vmem:[%s14330_s13 + $0x9c8] sm:$0xf]  ;;  %v10356_v59 = vor.u32 %v13342_v26, %v10355_v12  ;;  %v13274_v1 = vld [vmem:[%s14330_s13 + $0x9d4] sm:$0xf0] }
 0x26f   : > { %7668 = vmatpush.bf16.msrb.mxu3 %v9764_v28  ;;  %v10227_v28 = vld [vmem:[%s14330_s13 + $0xae8] sm:$0xf]  ;;  %v13338_v51 = vld [vmem:[%s14330_s13 + $0xbd4] sm:$0xf0]  ;;  %v10084_v54 = vor.u32 %v13274_v1, %v10083_v4 }
 0x270   : > { %7627 = vmatpush.bf16.msrb.mxu0 %v9364_v63  ;;  %v6737_v63 = vadd.f32 %v17293_v61, %v6723_v8  ;;  %v10228_v45 = vor.u32 %v13310_v56, %v10227_v28  ;;  %v13306_v8 = vld [vmem:[%s14330_s13 + $0xad4] sm:$0xf0]  ;;  %v10339_v55 = vld [vmem:[%s14330_s13 + $0xbc8] sm:$0xf]  ;;  %v17295_v28 = vld [vmem:[#allocation32_spill] sm:$0xff] }
 0x271   : > { %7641 = vmatpush.bf16.msrb.mxu1 %v9492_v14  ;;  %v9955_v14 = vld [vmem:[%s14330_s13 + $0x8c8] sm:$0xf]  ;;  %v10212_v58 = vor.u32 %v13306_v8, %v10211_v30  ;;  %v13238_v50 = vld [vmem:[%s14330_s13 + $0x8b4] sm:$0xf0] }
 0x272   : > { %7655 = vmatpush.bf16.msrb.mxu2 %v9620_v16  ;;  %v13242_v16 = vld [vmem:[%s14330_s13 + $0x8d4] sm:$0xf0]  ;;  %v6751_v0 = vadd.f32 %v17294_v10, %v6737_v63  ;;  %v10195_v26 = vld [vmem:[%s14330_s13 + $0xaa8] sm:$0xf] }
 0x273   : > { %7669 = vmatpush.bf16.msrb.mxu3 %v9748_v18  ;;  %v7197_v18 = vadd.f32 %v15851_v3, %v7183_v24  ;;  %v9956_v11 = vor.u32 %v13242_v16, %v9955_v14  ;;  %v10067_v3 = vld [vmem:[%s14330_s13 + $0x9a8] sm:$0xf]  ;;  %v7171_v24 = vadd.f32 %v15839_v49, %v7157_v2  ;;  %v13270_v12 = vld [vmem:[%s14330_s13 + $0x9b4] sm:$0xf0] }
 0x274   : > { %7628 = vmatpush.bf16.msrb.mxu0 %v9348_v37  ;;  %v9939_v37 = vld [vmem:[%s14330_s13 + $0x8a8] sm:$0xf]  ;;  %v6765_v56 = vadd.f32 %v17295_v28, %v6751_v0  ;;  %v16004_v61 = vpop.f32.mrf.mxu3  ;;  %v13334_v63 = vld [vmem:[%s14330_s13 + $0xbb4] sm:$0xf0] }
 0x275   : > { %7642 = vmatpush.bf16.msrb.mxu1 %v9476_v22  ;;  %v15997_v22 = vpop.f32.mrf.mxu2  ;;  %v7211_v30 = vadd.f32 %v15869_v9, %v7197_v18  ;;  %v10323_v49 = vld [vmem:[%s14330_s13 + $0xba8] sm:$0xf]  ;;  %v16012_v9 = vpop.f32.mrf.mxu0  ;;  %v13234_v4 = vld [vmem:[%s14330_s13 + $0x894] sm:$0xf0] }
 0x276   : > { %7656 = vmatpush.bf16.msrb.mxu2 %v9604_v7  ;;  %v10340_v7 = vor.u32 %v13338_v51, %v10339_v55  ;;  %v9923_v16 = vld [vmem:[%s14330_s13 + $0x888] sm:$0xf]  ;;  %v16018_v1 = vpop.f32.mrf.mxu1  ;;  %v10324_v8 = vor.u32 %v13334_v63, %v10323_v49  ;;  %v13266_v18 = vld [vmem:[%s14330_s13 + $0x994] sm:$0xf0] }
 0x277   : > { %7670 = vmatpush.bf16.msrb.mxu3 %v9732_v21  ;;  %7629 = vmatmul.bf16.vlgmr.msrb.gmra.mxu0 %v14545_v39  ;;  %v7185_v21 = vadd.f32 %v15879_v33, %v7171_v24  ;;  %v10051_v2 = vld [vmem:[%s14330_s13 + $0x988] sm:$0xf]  ;;  %v13298_v51 = vld [vmem:[%s14330_s13 + $0xa94] sm:$0xf0]  ;;  %v7225_v10 = vadd.f32 %v15871_v20, %v7211_v30 }
 0x278   : > { %7677 = vmatpush.bf16.msra.mxu0 %v9972_v6  ;;  %7643 = vmatmul.bf16.vlgmr.msrb.gmra.mxu1 %v14552_v44  ;;  %v9940_v6 = vor.u32 %v13238_v50, %v9939_v37  ;;  %v10179_v55 = vld [vmem:[%s14330_s13 + $0xa88] sm:$0xf]  ;;  %v9924_v50 = vor.u32 %v13234_v4, %v9923_v16  ;;  %v10052_v28 = vor.u32 %v13266_v18, %v10051_v2  ;;  %v13230_v24 = vld [vmem:[%s14330_s13 + $0x874] sm:$0xf0]  ;;  %v17299_v18 = vld [vmem:[#allocation40_spill] sm:$0xff] }
 0x279   : > { %7691 = vmatpush.bf16.msra.mxu1 %v10100_v23  ;;  %7657 = vmatmul.bf16.vlgmr.msrb.gmra.mxu2 %v14550_v43  ;;  %v10068_v23 = vor.u32 %v13270_v12, %v10067_v3  ;;  %v10307_v0 = vld [vmem:[%s14330_s13 + $0xb88] sm:$0xf]  ;;  %v7199_v37 = vadd.f32 %v15883_v29, %v7185_v21  ;;  %v7239_v3 = vadd.f32 %v15907_v53, %v7225_v10  ;;  %v13294_v30 = vld [vmem:[%s14330_s13 + $0xa74] sm:$0xf0]  ;;  %v17298_v53 = vld [vmem:[#allocation38_spill] sm:$0xff] }
 0x27a   : > { %7705 = vmatpush.bf16.msra.mxu2 %v10228_v45  ;;  %v13302_v45 = vld [vmem:[%s14330_s13 + $0xab4] sm:$0xf0]  ;;  %7671 = vmatmul.bf16.vlgmr.msrb.gmra.mxu3 %v14556_v47  ;;  %v9907_v20 = vld [vmem:[%s14330_s13 + $0x868] sm:$0xf] }
 0x27b   : > { %7719 = vmatpush.bf16.msra.mxu3 %v10356_v59  ;;  %v10196_v14 = vor.u32 %v13302_v45, %v10195_v26  ;;  %v17296_v59 = vld [vmem:[#allocation33_spill] sm:$0xff]  ;;  %v7213_v12 = vadd.f32 %v15900_v27, %v7199_v37  ;;  %v10163_v29 = vld [vmem:[%s14330_s13 + $0xa68] sm:$0xf] }
 0x27c   : > { %7678 = vmatpush.bf16.msra.mxu0 %v9956_v11  ;;  %v6779_v33 = vadd.f32 %v17296_v59, %v6765_v56  ;;  %v13330_v11 = vld [vmem:[%s14330_s13 + $0xb94] sm:$0xf0]  ;;  %v10180_v56 = vor.u32 %v13298_v51, %v10179_v55  ;;  %v10291_v49 = vld [vmem:[%s14330_s13 + $0xb68] sm:$0xf]  ;;  %v16042_v27 = vpop.f32.mrf.mxu3  ;;  %v10164_v2 = vor.u32 %v13294_v30, %v10163_v29 }
 0x27d   : > { %7692 = vmatpush.bf16.msra.mxu1 %v10084_v54  ;;  %v17297_v54 = vld [vmem:[#allocation35_spill] sm:$0xff]  ;;  %v10308_v26 = vor.u32 %v13330_v11, %v10307_v0  ;;  %v13262_v45 = vld [vmem:[%s14330_s13 + $0x974] sm:$0xf0]  ;;  %v16044_v16 = vpop.f32.mrf.mxu0  ;;  %v7227_v51 = vadd.f32 %v15905_v48, %v7213_v12 }
 0x27e   : > { %7706 = vmatpush.bf16.msra.mxu2 %v10212_v58  ;;  %v6793_v58 = vadd.f32 %v17297_v54, %v6779_v33  ;;  %v13326_v63 = vld [vmem:[%s14330_s13 + $0xb74] sm:$0xf0]  ;;  %v9891_v59 = vld [vmem:[%s14330_s13 + $0x848] sm:$0xf] }
 0x27f   : > { %7720 = vmatpush.bf16.msra.mxu3 %v10340_v7  ;;  %v10035_v7 = vld [vmem:[%s14330_s13 + $0x968] sm:$0xf]  ;;  %v13226_v33 = vld [vmem:[%s14330_s13 + $0x854] sm:$0xf0]  ;;  %v10292_v10 = vor.u32 %v13326_v63, %v10291_v49 }
 0x280   : > { %7679 = vmatpush.bf16.msra.mxu0 %v9940_v6  ;;  %v6807_v21 = vadd.f32 %v17298_v53, %v6793_v58  ;;  %v16039_v6 = vpop.f32.mrf.mxu2  ;;  %v10036_v4 = vor.u32 %v13262_v45, %v10035_v7  ;;  %v13258_v0 = vld [vmem:[%s14330_s13 + $0x954] sm:$0xf0]  ;;  %v10147_v11 = vld [vmem:[%s14330_s13 + $0xa48] sm:$0xf]  ;;  %v9892_v48 = vor.u32 %v13226_v33, %v9891_v59  ;;  %v17301_v53 = vld [vmem:[#allocation42_spill] sm:$0xff] }
 0x281   : > { %7693 = vmatpush.bf16.msra.mxu1 %v10068_v23  ;;  %v9908_v23 = vor.u32 %v13230_v24, %v9907_v20  ;;  %v13290_v54 = vld [vmem:[%s14330_s13 + $0xa54] sm:$0xf0]  ;;  %v10275_v37 = vld [vmem:[%s14330_s13 + $0xb48] sm:$0xf] }
 0x282   : > { %7707 = vmatpush.bf16.msra.mxu2 %v10196_v14  ;;  %v7253_v14 = vadd.f32 %v15911_v42, %v7239_v3  ;;  %v6821_v55 = vadd.f32 %v17299_v18, %v6807_v21  ;;  %v16051_v42 = vpop.f32.mrf.mxu1  ;;  %v7241_v3 = vadd.f32 %v15938_v17, %v7227_v51  ;;  %v9875_v20 = vld [vmem:[%s14330_s13 + $0x828] sm:$0xf]  ;;  %v13222_v24 = vld [vmem:[%s14330_s13 + $0x834] sm:$0xf0] }
 0x283   : > { %7721 = vmatpush.bf16.msra.mxu3 %v10324_v8  ;;  %v10019_v8 = vld [vmem:[%s14330_s13 + $0x948] sm:$0xf]  ;;  %v13254_v45 = vld [vmem:[%s14330_s13 + $0x934] sm:$0xf0] }
 0x284   : > { %7680 = vmatpush.bf16.msra.mxu0 %v9924_v50  ;;  %v7267_v58 = vadd.f32 %v15926_v25, %v7253_v14  ;;  %v13322_v50 = vld [vmem:[%s14330_s13 + $0xb54] sm:$0xf0]  ;;  %v10003_v7 = vld [vmem:[%s14330_s13 + $0x928] sm:$0xf]  ;;  %v16077_v33 = vpop.f32.mrf.mxu3 }
 0x285   : > { %7694 = vmatpush.bf16.msra.mxu1 %v10052_v28  ;;  %v10020_v28 = vor.u32 %v13258_v0, %v10019_v8  ;;  %v17300_v25 = vld [vmem:[#allocation41_spill] sm:$0xff]  ;;  %v10131_v29 = vld [vmem:[%s14330_s13 + $0xa28] sm:$0xf]  ;;  %v10004_v8 = vor.u32 %v13254_v45, %v10003_v7 }
 0x286   : > { %7708 = vmatpush.bf16.msra.mxu2 %v10180_v56  ;;  %v10148_v56 = vor.u32 %v13290_v54, %v10147_v11  ;;  %v6835_v12 = vadd.f32 %v17300_v25, %v6821_v55  ;;  %v13286_v17 = vld [vmem:[%s14330_s13 + $0xa34] sm:$0xf0]  ;;  %v7281_v30 = vadd.f32 %v15931_v46, %v7267_v58  ;;  %v10259_v49 = vld [vmem:[%s14330_s13 + $0xb28] sm:$0xf]  ;;  %v16086_v58 = vpop.f32.mrf.mxu0 }
 0x287   : > { %7722 = vmatpush.bf16.msra.mxu3 %v10308_v26  ;;  %v10276_v26 = vor.u32 %v13322_v50, %v10275_v37  ;;  %v13318_v63 = vld [vmem:[%s14330_s13 + $0xb34] sm:$0xf0]  ;;  %v9987_v18 = vld [vmem:[%s14330_s13 + $0x908] sm:$0xf] }
 0x288   : > { %7681 = vmatpush.bf16.msra.mxu0 %v9908_v23  ;;  %v6849_v21 = vadd.f32 %v17301_v53, %v6835_v12  ;;  %v7255_v23 = vadd.f32 %v15943_v13, %v7241_v3  ;;  %v16072_v14 = vpop.f32.mrf.mxu2  ;;  %v13218_v59 = vld [vmem:[%s14330_s13 + $0x814] sm:$0xf0]  ;;  %v7295_v46 = vadd.f32 %v15974_v19, %v7281_v30  ;;  %v10132_v13 = vor.u32 %v13286_v17, %v10131_v29  ;;  %v10115_v51 = vld [vmem:[%s14330_s13 + $0xa08] sm:$0xf]  ;;  %v17303_v17 = vld [vmem:[#allocation44_spill] sm:$0xff] }
 0x289   : > { %7695 = vmatpush.bf16.msra.mxu1 %v10036_v4  ;;  %v9876_v4 = vor.u32 %v13222_v24, %v9875_v20  ;;  %v13250_v55 = vld [vmem:[%s14330_s13 + $0x914] sm:$0xf0]  ;;  %v10260_v0 = vor.u32 %v13318_v63, %v10259_v49  ;;  %v10243_v11 = vld [vmem:[%s14330_s13 + $0xb08] sm:$0xf] }
 0x28a   : > { %7709 = vmatpush.bf16.msra.mxu2 %v10164_v2  ;;  %v9859_v2 = vld [vmem:[%s14330_s13 + $0x808] sm:$0xf]  ;;  %v13282_v19 = vld [vmem:[%s14330_s13 + $0xa14] sm:$0xf0]  ;;  %v7309_v25 = vadd.f32 %v15979_v52, %v7295_v46  ;;  %v9988_v12 = vor.u32 %v13250_v55, %v9987_v18 }
 0x28b   : > { %7723 = vmatpush.bf16.msra.mxu3 %v10292_v10  ;;  %v7269_v10 = vadd.f32 %v15966_v62, %v7255_v23  ;;  %v13314_v54 = vld [vmem:[%s14330_s13 + $0xb14] sm:$0xf0]  ;;  %v10483_v37 = vld [vmem:[%s14330_s13 + $0xce8] sm:$0xf]  ;;  %v9860_v20 = vor.u32 %v13218_v59, %v9859_v2 }
 0x28c   : > { %7682 = vmatpush.bf16.msra.mxu0 %v9892_v48  ;;  %v13374_v50 = vld [vmem:[%s14330_s13 + $0xcf4] sm:$0xf0]  ;;  %v10611_v3 = vld [vmem:[%s14330_s13 + $0xde8] sm:$0xf]  ;;  %v10244_v63 = vor.u32 %v13314_v54, %v10243_v11  ;;  %v7323_v52 = vadd.f32 %v15997_v22, %v7309_v25  ;;  %v16116_v11 = vpop.f32.mrf.mxu3 }
 0x28d   : > { %7696 = vmatpush.bf16.msra.mxu1 %v10020_v28  ;;  %v17302_v48 = vld [vmem:[#allocation43_spill] sm:$0xff]  ;;  %v13406_v62 = vld [vmem:[%s14330_s13 + $0xdf4] sm:$0xf0]  ;;  %v7283_v49 = vadd.f32 %v15972_v60, %v7269_v10  ;;  %v10484_v53 = vor.u32 %v13374_v50, %v10483_v37 }
 0x28e   : > { %7710 = vmatpush.bf16.msra.mxu2 %v10148_v56  ;;  %v6863_v28 = vadd.f32 %v17302_v48, %v6849_v21  ;;  %v16092_v56 = vpop.f32.mrf.mxu1  ;;  %v10739_v24 = vld [vmem:[%s14330_s13 + $0xee8] sm:$0xf]  ;;  %v13438_v7 = vld [vmem:[%s14330_s13 + $0xef4] sm:$0xf0]  ;;  %v10612_v21 = vor.u32 %v13406_v62, %v10611_v3  ;;  %v16118_v54 = vpop.f32.mrf.mxu0 }
 0x28f   : > { %7724 = vmatpush.bf16.msra.mxu3 %v10276_v26  ;;  %v10116_v26 = vor.u32 %v13282_v19, %v10115_v51  ;;  %v10867_v45 = vld [vmem:[%s14330_s13 + $0xfe8] sm:$0xf]  ;;  %v13470_v29 = vld [vmem:[%s14330_s13 + $0xff4] sm:$0xf0]  ;;  %v10740_v23 = vor.u32 %v13438_v7, %v10739_v24  ;;  %v7297_v46 = vadd.f32 %v16012_v9, %v7283_v49  ;;  %v7337_v9 = vadd.f32 %v16004_v61, %v7323_v52 }
 0x290   : > { %7683 = vmatpush.bf16.msra.mxu0 %v9876_v4  ;;  %v6877_v30 = vadd.f32 %v17303_v17, %v6863_v28  ;;  %v10467_v4 = vld [vmem:[%s14330_s13 + $0xcc8] sm:$0xf]  ;;  %v13370_v2 = vld [vmem:[%s14330_s13 + $0xcd4] sm:$0xf0] }
 0x291   : > { %7697 = vmatpush.bf16.msra.mxu1 %v10004_v8  ;;  %v10595_v59 = vld [vmem:[%s14330_s13 + $0xdc8] sm:$0xf]  ;;  %v10868_v8 = vor.u32 %v13470_v29, %v10867_v45  ;;  %v13434_v55 = vld [vmem:[%s14330_s13 + $0xed4] sm:$0xf0]  ;;  %v10468_v19 = vor.u32 %v13370_v2, %v10467_v4  ;;  %v7311_v61 = vadd.f32 %v16018_v1, %v7297_v46  ;;  %v7351_v45 = vadd.f32 %v16044_v16, %v7337_v9 }
 0x292   : > { %7711 = vmatpush.bf16.msra.mxu2 %v10132_v13  ;;  %v13402_v13 = vld [vmem:[%s14330_s13 + $0xdd4] sm:$0xf0]  ;;  %v10723_v18 = vld [vmem:[%s14330_s13 + $0xec8] sm:$0xf] }
 0x293   : > { %7725 = vmatpush.bf16.msra.mxu3 %v10260_v0  ;;  %v10851_v60 = vld [vmem:[%s14330_s13 + $0xfc8] sm:$0xf]  ;;  %v13466_v51 = vld [vmem:[%s14330_s13 + $0xfd4] sm:$0xf0]  ;;  %v16113_v0 = vpop.f32.mrf.mxu2  ;;  %v10596_v37 = vor.u32 %v13402_v13, %v10595_v59  ;;  %v10724_v50 = vor.u32 %v13434_v55, %v10723_v18  ;;  %v7325_v17 = vadd.f32 %v16039_v6, %v7311_v61  ;;  %v7365_v46 = vadd.f32 %v16051_v42, %v7351_v45  ;;  %v17307_v18 = vld [vmem:[#allocation48_spill] sm:$0xff] }
 0x294   : > { %7684 = vmatpush.bf16.msra.mxu0 %v9860_v20  ;;  %v17304_v22 = vld [vmem:[#allocation45_spill] sm:$0xff]  ;;  %v10451_v3 = vld [vmem:[%s14330_s13 + $0xca8] sm:$0xf]  ;;  %v17305_v20 = vld [vmem:[#allocation46_spill] sm:$0xff]  ;;  %v10852_v7 = vor.u32 %v13466_v51, %v10851_v60 }
 0x295   : > { %7698 = vmatpush.bf16.msra.mxu1 %v9988_v12  ;;  %v6891_v10 = vadd.f32 %v17304_v22, %v6877_v30  ;;  %v13366_v48 = vld [vmem:[%s14330_s13 + $0xcb4] sm:$0xf0]  ;;  %v10579_v28 = vld [vmem:[%s14330_s13 + $0xda8] sm:$0xf]  ;;  %v7339_v60 = vadd.f32 %v16042_v27, %v7325_v17 }
 0x296   : > { %7712 = vmatpush.bf16.msra.mxu2 %v10116_v26  ;;  %v16125_v24 = vpop.f32.mrf.mxu1  ;;  %v13398_v25 = vld [vmem:[%s14330_s13 + $0xdb4] sm:$0xf0]  ;;  %v10707_v12 = vld [vmem:[%s14330_s13 + $0xea8] sm:$0xf]  ;;  %v10452_v30 = vor.u32 %v13366_v48, %v10451_v3 }
 0x297   : > { %7726 = vmatpush.bf16.msra.mxu3 %v10244_v63  ;;  %v6905_v62 = vadd.f32 %v17305_v20, %v6891_v10  ;;  %7685 = vmatmul.bf16.vlgmr.msra.gmra.mxu0 %v14645_v31  ;;  %v13430_v26 = vld [vmem:[%s14330_s13 + $0xeb4] sm:$0xf0]  ;;  %v10835_v29 = vld [vmem:[%s14330_s13 + $0xfa8] sm:$0xf]  ;;  %v10580_v16 = vor.u32 %v13398_v25, %v10579_v28  ;;  %v7379_v10 = vadd.f32 %v16072_v14, %v7365_v46 }
 0x298   : > { %7733 = vmatpush.bf16.msrb.mxu0 %v10484_v53  ;;  %7699 = vmatmul.bf16.vlgmr.msra.gmra.mxu1 %v14652_v36  ;;  %v13462_v1 = vld [vmem:[%s14330_s13 + $0xfb4] sm:$0xf0]  ;;  %v10708_v49 = vor.u32 %v13430_v26, %v10707_v12  ;;  %v10435_v63 = vld [vmem:[%s14330_s13 + $0xc88] sm:$0xf]  ;;  %v7353_v3 = vadd.f32 %v16086_v58, %v7339_v60 }
 0x299   : > { %7747 = vmatpush.bf16.msrb.mxu1 %v10612_v21  ;;  %7713 = vmatmul.bf16.vlgmr.msra.gmra.mxu2 %v14650_v35  ;;  %v13362_v53 = vld [vmem:[%s14330_s13 + $0xc94] sm:$0xf0]  ;;  %v10563_v52 = vld [vmem:[%s14330_s13 + $0xd88] sm:$0xf]  ;;  %v10836_v4 = vor.u32 %v13462_v1, %v10835_v29  ;;  %v7393_v45 = vadd.f32 %v16077_v33, %v7379_v10 }
 0x29a   : > { %7761 = vmatpush.bf16.msrb.mxu2 %v10740_v23  ;;  %7727 = vmatmul.bf16.vlgmr.msra.gmra.mxu3 %v14656_v40  ;;  %v17306_v21 = vld [vmem:[#allocation47_spill] sm:$0xff]  ;;  %v13394_v2 = vld [vmem:[%s14330_s13 + $0xd94] sm:$0xf0]  ;;  %v10436_v22 = vor.u32 %v13362_v53, %v10435_v63  ;;  %v7367_v53 = vadd.f32 %v16092_v56, %v7353_v3 }
 0x29b   : > { %7775 = vmatpush.bf16.msrb.mxu3 %v10868_v8  ;;  %v6919_v23 = vadd.f32 %v17306_v21, %v6905_v62  ;;  %v10691_v6 = vld [vmem:[%s14330_s13 + $0xe88] sm:$0xf]  ;;  %v13426_v59 = vld [vmem:[%s14330_s13 + $0xe94] sm:$0xf0]  ;;  %v16150_v51 = vpop.f32.mrf.mxu2  ;;  %v10564_v42 = vor.u32 %v13394_v2, %v10563_v52  ;;  %v16162_v62 = vpop.f32.mrf.mxu0 }
 0x29c   : > { %7734 = vmatpush.bf16.msrb.mxu0 %v10468_v19  ;;  %v10819_v8 = vld [vmem:[%s14330_s13 + $0xf88] sm:$0xf]  ;;  %v13458_v13 = vld [vmem:[%s14330_s13 + $0xf94] sm:$0xf0]  ;;  %v16153_v19 = vpop.f32.mrf.mxu3  ;;  %v10692_v9 = vor.u32 %v13426_v59, %v10691_v6  ;;  %v7381_v59 = vadd.f32 %v16113_v0, %v7367_v53 }
 0x29d   : > { %7748 = vmatpush.bf16.msrb.mxu1 %v10596_v37  ;;  %v6933_v55 = vadd.f32 %v17307_v18, %v6919_v23  ;;  %v10419_v37 = vld [vmem:[%s14330_s13 + $0xc68] sm:$0xf]  ;;  %v10820_v48 = vor.u32 %v13458_v13, %v10819_v8  ;;  %v13390_v28 = vld [vmem:[%s14330_s13 + $0xd74] sm:$0xf0] }
 0x29e   : > { %7762 = vmatpush.bf16.msrb.mxu2 %v10724_v50  ;;  %v13358_v50 = vld [vmem:[%s14330_s13 + $0xc74] sm:$0xf0]  ;;  %v10547_v27 = vld [vmem:[%s14330_s13 + $0xd68] sm:$0xf]  ;;  %v16167_v26 = vpop.f32.mrf.mxu1 }
 0x29f   : > { %7776 = vmatpush.bf16.msrb.mxu3 %v10852_v7  ;;  %v10675_v20 = vld [vmem:[%s14330_s13 + $0xe68] sm:$0xf]  ;;  %v13422_v14 = vld [vmem:[%s14330_s13 + $0xe74] sm:$0xf0]  ;;  %v10420_v58 = vor.u32 %v13358_v50, %v10419_v37  ;;  %v10548_v29 = vor.u32 %v13390_v28, %v10547_v27  ;;  %v17311_v28 = vld [vmem:[#allocation52_spill] sm:$0xff] }
 0x2a0   : > { %7735 = vmatpush.bf16.msrb.mxu0 %v10452_v30  ;;  %v10803_v61 = vld [vmem:[%s14330_s13 + $0xf68] sm:$0xf]  ;;  %v13454_v7 = vld [vmem:[%s14330_s13 + $0xf74] sm:$0xf0]  ;;  %v10676_v1 = vor.u32 %v13422_v14, %v10675_v20  ;;  %v7395_v14 = vadd.f32 %v16116_v11, %v7381_v59 }
 0x2a1   : > { %7749 = vmatpush.bf16.msrb.mxu1 %v10580_v16  ;;  %v17308_v25 = vld [vmem:[#allocation49_spill] sm:$0xff]  ;;  %v10403_v17 = vld [vmem:[%s14330_s13 + $0xc48] sm:$0xf]  ;;  %v10804_v52 = vor.u32 %v13454_v7, %v10803_v61 }
 0x2a2   : > { %7763 = vmatpush.bf16.msrb.mxu2 %v10708_v49  ;;  %v6947_v12 = vadd.f32 %v17308_v25, %v6933_v55  ;;  %v13354_v30 = vld [vmem:[%s14330_s13 + $0xc54] sm:$0xf0]  ;;  %v10531_v16 = vld [vmem:[%s14330_s13 + $0xd48] sm:$0xf]  ;;  %v17309_v49 = vld [vmem:[#allocation50_spill] sm:$0xff] }
 0x2a3   : > { %7777 = vmatpush.bf16.msrb.mxu3 %v10836_v4  ;;  %v13386_v21 = vld [vmem:[%s14330_s13 + $0xd54] sm:$0xf0]  ;;  %v10659_v33 = vld [vmem:[%s14330_s13 + $0xe48] sm:$0xf]  ;;  %v7407_v4 = vadd.f32 %v16118_v54, %v7393_v45  ;;  %v10404_v46 = vor.u32 %v13354_v30, %v10403_v17  ;;  %v7462_v27 = vpop.f32.mrf.mxu0 }
 0x2a4   : > { %7736 = vmatpush.bf16.msrb.mxu0 %v10436_v22  ;;  %v6961_v63 = vadd.f32 %v17309_v49, %v6947_v12  ;;  %v13418_v23 = vld [vmem:[%s14330_s13 + $0xe54] sm:$0xf0]  ;;  %v10787_v2 = vld [vmem:[%s14330_s13 + $0xf48] sm:$0xf]  ;;  %v10532_v56 = vor.u32 %v13386_v21, %v10531_v16  ;;  %v16186_v22 = vpop.f32.mrf.mxu2  ;;  %v16192_v50 = vpop.f32.mrf.mxu3 }
 0x2a5   : > { %7750 = vmatpush.bf16.msrb.mxu1 %v10564_v42  ;;  %v13450_v6 = vld [vmem:[%s14330_s13 + $0xf54] sm:$0xf0]  ;;  %v10660_v8 = vor.u32 %v13418_v23, %v10659_v33  ;;  %v10387_v13 = vld [vmem:[%s14330_s13 + $0xc28] sm:$0xf]  ;;  %v7421_v37 = vadd.f32 %v16125_v24, %v7407_v4 }
 0x2a6   : > { %7764 = vmatpush.bf16.msrb.mxu2 %v10692_v9  ;;  %v13350_v18 = vld [vmem:[%s14330_s13 + $0xc34] sm:$0xf0]  ;;  %v10515_v55 = vld [vmem:[%s14330_s13 + $0xd28] sm:$0xf]  ;;  %v10788_v0 = vor.u32 %v13450_v6, %v10787_v2  ;;  %v16198_v61 = vpop.f32.mrf.mxu1 }
 0x2a7   : > { %7778 = vmatpush.bf16.msrb.mxu3 %v10820_v48  ;;  %v17310_v60 = vld [vmem:[#allocation51_spill] sm:$0xff]  ;;  %v13382_v10 = vld [vmem:[%s14330_s13 + $0xd34] sm:$0xf0]  ;;  %v10388_v7 = vor.u32 %v13350_v18, %v10387_v13  ;;  %v7435_v12 = vadd.f32 %v16150_v51, %v7421_v37 }
 0x2a8   : > { %7737 = vmatpush.bf16.msrb.mxu0 %v10420_v58  ;;  %v6975_v54 = vadd.f32 %v17310_v60, %v6961_v63  ;;  %v10643_v42 = vld [vmem:[%s14330_s13 + $0xe28] sm:$0xf]  ;;  %v13414_v9 = vld [vmem:[%s14330_s13 + $0xe34] sm:$0xf0]  ;;  %v10516_v58 = vor.u32 %v13382_v10, %v10515_v55  ;;  %v7409_v63 = vadd.f32 %v16162_v62, %v7395_v14 }
 0x2a9   : > { %7751 = vmatpush.bf16.msrb.mxu1 %v10548_v29  ;;  %v10771_v3 = vld [vmem:[%s14330_s13 + $0xf28] sm:$0xf]  ;;  %v13446_v48 = vld [vmem:[%s14330_s13 + $0xf34] sm:$0xf0]  ;;  %v10644_v45 = vor.u32 %v13414_v9, %v10643_v42  ;;  %v7449_v59 = vadd.f32 %v16153_v19, %v7435_v12 }
 0x2aa   : > { %7765 = vmatpush.bf16.msrb.mxu2 %v10676_v1  ;;  %v6989_v20 = vadd.f32 %v17311_v28, %v6975_v54  ;;  %v10371_v24 = vld [vmem:[%s14330_s13 + $0xc08] sm:$0xf]  ;;  %v13346_v25 = vld [vmem:[%s14330_s13 + $0xc14] sm:$0xf0]  ;;  %v10772_v17 = vor.u32 %v13446_v48, %v10771_v3  ;;  %v7423_v19 = vadd.f32 %v16167_v26, %v7409_v63 }
 0x2ab   : > { %7779 = vmatpush.bf16.msrb.mxu3 %v10804_v52  ;;  %v10499_v11 = vld [vmem:[%s14330_s13 + $0xd08] sm:$0xf]  ;;  %v13378_v29 = vld [vmem:[%s14330_s13 + $0xd14] sm:$0xf0]  ;;  %v10372_v23 = vor.u32 %v13346_v25, %v10371_v24  ;;  %v7463_v54 = vadd.f32 %v7462_v27, %v7449_v59 }
 0x2ac   : > { %7738 = vmatpush.bf16.msrb.mxu0 %v10404_v46  ;;  %v10627_v1 = vld [vmem:[%s14330_s13 + $0xe08] sm:$0xf]  ;;  %v13410_v30 = vld [vmem:[%s14330_s13 + $0xe14] sm:$0xf0]  ;;  %v10500_v46 = vor.u32 %v13378_v29, %v10499_v11  ;;  %v7490_v18 = vpop.f32.mrf.mxu2  ;;  %v7437_v14 = vadd.f32 %v16186_v22, %v7423_v19 }
 0x2ad   : > { %7752 = vmatpush.bf16.msrb.mxu1 %v10532_v56  ;;  %v10755_v16 = vld [vmem:[%s14330_s13 + $0xf08] sm:$0xf]  ;;  %v13442_v49 = vld [vmem:[%s14330_s13 + $0xf14] sm:$0xf0]  ;;  %v10628_v62 = vor.u32 %v13410_v30, %v10627_v1  ;;  %v7477_v22 = vadd.f32 %v16198_v61, %v7463_v54 }
 0x2ae   : > { %7766 = vmatpush.bf16.msrb.mxu2 %v10660_v8  ;;  %v10995_v51 = vld [vmem:[%s14330_s13 + $0x10e8] sm:$0xf]  ;;  %v13502_v53 = vld [vmem:[%s14330_s13 + $0x10f4] sm:$0xf0]  ;;  %v10756_v55 = vor.u32 %v13442_v49, %v10755_v16  ;;  %v7478_v25 = vpop.f32.mrf.mxu1  ;;  %v16244_v49 = vld [vmem:[%s14340_s8] sm:$0xf]  ;;  %v7451_v63 = vadd.f32 %v16192_v50, %v7437_v14 }
 0x2af   : > { %7780 = vmatpush.bf16.msrb.mxu3 %v10788_v0  ;;  %v11123_v52 = vld [vmem:[%s14330_s13 + $0x11e8] sm:$0xf]  ;;  %v17312_v21 = vld [vmem:[#allocation53_spill] sm:$0xff]  ;;  %v10996_v60 = vor.u32 %v13502_v53, %v10995_v51  ;;  %v16222_v0 = vpop.f32.mrf.mxu3  ;;  %v7491_v51 = vadd.f32 %v7490_v18, %v7477_v22 }
 0x2b0   : > { %v7003_v33 = vadd.f32 %v17312_v21, %v6989_v20  ;;  %7739 = vmatpush.bf16.msrb.mxu0 %v10388_v7  ;;  %v13534_v4 = vld [vmem:[%s14330_s13 + $0x11f4] sm:$0xf0]  ;;  %v11251_v2 = vld [vmem:[%s14330_s13 + $0x12e8] sm:$0xf]  ;;  %v7464_v7 = vpop.f32.mrf.mxu0  ;;  %v17313_v21 = vld [vmem:[#allocation16_spill] sm:$0xff] }
 0x2b1   : > { %v13566_v6 = vld [vmem:[%s14330_s13 + $0x12f4] sm:$0xf0]  ;;  %7753 = vmatpush.bf16.msrb.mxu1 %v10516_v58  ;;  %v11379_v56 = vld [vmem:[%s14330_s13 + $0x13e8] sm:$0xf]  ;;  %v11124_v10 = vor.u32 %v13534_v4, %v11123_v52  ;;  %v7505_v19 = vadd.f32 %v16222_v0, %v7491_v51 }
 0x2b2   : > { %7767 = vmatpush.bf16.msrb.mxu2 %v10644_v45  ;;  %v13598_v8 = vld [vmem:[%s14330_s13 + $0x13f4] sm:$0xf0]  ;;  %v7017_v13 = vadd.f32 %v15496_v15, %v7003_v33  ;;  %v11252_v42 = vor.u32 %v13566_v6, %v11251_v2  ;;  %v10979_v9 = vld [vmem:[%s14330_s13 + $0x10c8] sm:$0xf] }
 0x2b3   : > { %7781 = vmatpush.bf16.msrb.mxu3 %v10772_v17  ;;  %v13498_v37 = vld [vmem:[%s14330_s13 + $0x10d4] sm:$0xf0]  ;;  %v11107_v3 = vld [vmem:[%s14330_s13 + $0x11c8] sm:$0xf]  ;;  %v11380_v15 = vor.u32 %v13598_v8, %v11379_v56  ;;  %v8463_v8 = vperm.slane %v16244_v49, 0 }
 0x2b4   : > { %7740 = vmatpush.bf16.msrb.mxu0 %v10372_v23  ;;  %v13530_v48 = vld [vmem:[%s14330_s13 + $0x11d4] sm:$0xf0]  ;;  %v11235_v28 = vld [vmem:[%s14330_s13 + $0x12c8] sm:$0xf]  ;;  %v7031_v24 = vadd.f32 %v15500_v5, %v7017_v13  ;;  %v10980_v12 = vor.u32 %v13498_v37, %v10979_v9  ;;  %v7465_v23 = vadd.f32 %v7464_v7, %v7451_v63  ;;  %v7492_v13 = vpop.f32.mrf.mxu2 }
 0x2b5   : > { %v13562_v20 = vld [vmem:[%s14330_s13 + $0x12d4] sm:$0xf0]  ;;  %7754 = vmatpush.bf16.msrb.mxu1 %v10500_v46  ;;  %v11363_v26 = vld [vmem:[%s14330_s13 + $0x13c8] sm:$0xf]  ;;  %v11108_v58 = vor.u32 %v13530_v48, %v11107_v3 }
 0x2b6   : > { %7768 = vmatpush.bf16.msrb.mxu2 %v10628_v62  ;;  %v13594_v27 = vld [vmem:[%s14330_s13 + $0x13d4] sm:$0xf0]  ;;  %v11236_v45 = vor.u32 %v13562_v20, %v11235_v28  ;;  %v10963_v11 = vld [vmem:[%s14330_s13 + $0x10a8] sm:$0xf]  ;;  %v7045_v1 = vadd.f32 %v15517_v57, %v7031_v24  ;;  %v17314_v62 = vld [vmem:[#allocation54_spill] sm:$0xff]  ;;  %v7532_v28 = vpop.f32.mrf.mxu1  ;;  %v7479_v0 = vadd.f32 %v7478_v25, %v7465_v23 }
 0x2b7   : > { %7782 = vmatpush.bf16.msrb.mxu3 %v10756_v55  ;;  %v13494_v29 = vld [vmem:[%s14330_s13 + $0x10b4] sm:$0xf0]  ;;  %v11091_v5 = vld [vmem:[%s14330_s13 + $0x11a8] sm:$0xf]  ;;  %7741 = vmatmul.bf16.vlgmr.msrb.gmra.mxu0 %v14745_v32  ;;  %v11364_v17 = vor.u32 %v13594_v27, %v11363_v26  ;;  %v7506_v54 = vpop.f32.mrf.mxu3 }
 0x2b8   : > { %7789 = vmatpush.bf16.msra.mxu0 %v10996_v60  ;;  %v13526_v30 = vld [vmem:[%s14330_s13 + $0x11b4] sm:$0xf0]  ;;  %v11219_v16 = vld [vmem:[%s14330_s13 + $0x12a8] sm:$0xf]  ;;  %7755 = vmatmul.bf16.vlgmr.msrb.gmra.mxu1 %v14752_v41  ;;  %v10964_v50 = vor.u32 %v13494_v29, %v10963_v11  ;;  %v7059_v56 = vadd.f32 %v17314_v62, %v7045_v1 }
 0x2b9   : > { %7803 = vmatpush.bf16.msra.mxu1 %v11124_v10  ;;  %v13558_v61 = vld [vmem:[%s14330_s13 + $0x12b4] sm:$0xf0]  ;;  %7769 = vmatmul.bf16.vlgmr.msrb.gmra.mxu2 %v14750_v38  ;;  %v11347_v57 = vld [vmem:[%s14330_s13 + $0x13a8] sm:$0xf]  ;;  %v11092_v4 = vor.u32 %v13526_v30, %v11091_v5  ;;  %v7518_v10 = vpop.f32.mrf.mxu0  ;;  %v17316_v5 = vld [vmem:[#allocation56_spill] sm:$0xff] }
 0x2ba   : > { %7817 = vmatpush.bf16.msra.mxu2 %v11252_v42  ;;  %v13590_v53 = vld [vmem:[%s14330_s13 + $0x13b4] sm:$0xf0]  ;;  %v16256_v52 = vld [vmem:[%s16253_s23] sm:$0xf]  ;;  %7783 = vmatmul.bf16.vlgmr.msrb.gmra.mxu3 %v17313_v21  ;;  %v11220_v2 = vor.u32 %v13558_v61, %v11219_v16  ;;  %v7073_v37 = vadd.f32 %v15759_v34, %v7059_v56  ;;  %v7519_v20 = vadd.f32 %v7518_v10, %v7505_v19 }
 0x2bb   : > { %7831 = vmatpush.bf16.msra.mxu3 %v11380_v15  ;;  %v10947_v33 = vld [vmem:[%s14330_s13 + $0x1088] sm:$0xf]  ;;  %v13490_v6 = vld [vmem:[%s14330_s13 + $0x1094] sm:$0xf0]  ;;  %v11348_v18 = vor.u32 %v13590_v53, %v11347_v57  ;;  %v8481_v3 = vperm.slane %v16256_v52, 0  ;;  %v8482_v19 = vperm.slane %v16256_v52, 1 }
 0x2bc   : > { %7790 = vmatpush.bf16.msra.mxu0 %v10980_v12  ;;  %v11075_v59 = vld [vmem:[%s14330_s13 + $0x1188] sm:$0xf]  ;;  %v13522_v46 = vld [vmem:[%s14330_s13 + $0x1194] sm:$0xf0]  ;;  %v10948_v15 = vor.u32 %v13490_v6, %v10947_v33  ;;  %v7087_v1 = vadd.f32 %v17316_v5, %v7073_v37  ;;  %v7533_v16 = vadd.f32 %v7532_v28, %v7519_v20  ;;  %v7546_v23 = vpop.f32.mrf.mxu2 }
 0x2bd   : > { %7804 = vmatpush.bf16.msra.mxu1 %v11108_v58  ;;  %v11203_v55 = vld [vmem:[%s14330_s13 + $0x1288] sm:$0xf]  ;;  %v13554_v60 = vld [vmem:[%s14330_s13 + $0x1294] sm:$0xf0]  ;;  %v11076_v48 = vor.u32 %v13522_v46, %v11075_v59 }
 0x2be   : > { %7818 = vmatpush.bf16.msra.mxu2 %v11236_v45  ;;  %v11331_v42 = vld [vmem:[%s14330_s13 + $0x1388] sm:$0xf]  ;;  %v13586_v9 = vld [vmem:[%s14330_s13 + $0x1394] sm:$0xf0]  ;;  %v11204_v14 = vor.u32 %v13554_v60, %v11203_v55  ;;  %v7493_v45 = vadd.f32 %v7492_v13, %v7479_v0  ;;  %v7547_v62 = vadd.f32 %v7546_v23, %v7533_v16 }
 0x2bf   : > { %7832 = vmatpush.bf16.msra.mxu3 %v11364_v17  ;;  %v10931_v7 = vld [vmem:[%s14330_s13 + $0x1068] sm:$0xf]  ;;  %v13486_v26 = vld [vmem:[%s14330_s13 + $0x1074] sm:$0xf0]  ;;  %v11332_v12 = vor.u32 %v13586_v9, %v11331_v42  ;;  %v7560_v13 = vpop.f32.mrf.mxu3 }
 0x2c0   : > { %7791 = vmatpush.bf16.msra.mxu0 %v10964_v50  ;;  %v11059_v34 = vld [vmem:[%s14330_s13 + $0x1168] sm:$0xf]  ;;  %v13518_v22 = vld [vmem:[%s14330_s13 + $0x1174] sm:$0xf0]  ;;  %v10932_v17 = vor.u32 %v13486_v26, %v10931_v7  ;;  %v7507_v46 = vadd.f32 %v7506_v54, %v7493_v45  ;;  %v7561_v37 = vadd.f32 %v7560_v13, %v7547_v62 }
 0x2c1   : > { %7805 = vmatpush.bf16.msra.mxu1 %v11092_v4  ;;  %v17315_v27 = vld [vmem:[#allocation55_spill] sm:$0xff]  ;;  %v13550_v25 = vld [vmem:[%s14330_s13 + $0x1274] sm:$0xf0]  ;;  %v11060_v61 = vor.u32 %v13518_v22, %v11059_v34  ;;  %v7520_v56 = vpop.f32.mrf.mxu0 }
 0x2c2   : > { %7819 = vmatpush.bf16.msra.mxu2 %v11220_v2  ;;  %v8471_v24 = vmul.f32 %v8463_v8, %v17315_v27  ;;  %v11187_v58 = vld [vmem:[%s14330_s13 + $0x1268] sm:$0xf]  ;;  %v13582_v29 = vld [vmem:[%s14330_s13 + $0x1374] sm:$0xf0]  ;;  %v7521_v54 = vadd.f32 %v7520_v56, %v7507_v46  ;;  %v17318_v27 = vld [vmem:[#allocation58_spill] sm:$0xff] }
 0x2c3   : > { %7833 = vmatpush.bf16.msra.mxu3 %v11348_v18  ;;  %v11315_v11 = vld [vmem:[%s14330_s13 + $0x1368] sm:$0xf]  ;;  %v11188_v63 = vor.u32 %v13550_v25, %v11187_v58  ;;  %v13482_v51 = vld [vmem:[%s14330_s13 + $0x1054] sm:$0xf0]  ;;  %v8464_v18 = vperm.slane %v16244_v49, 1 }
 0x2c4   : > { %7792 = vmatpush.bf16.msra.mxu0 %v10948_v15  ;;  %v10915_v30 = vld [vmem:[%s14330_s13 + $0x1048] sm:$0xf]  ;;  %v13514_v53 = vld [vmem:[%s14330_s13 + $0x1154] sm:$0xf0]  ;;  %v16290_v50 = vadd.f32 %v8481_v3, %v8471_v24  ;;  %v11316_v33 = vor.u32 %v13582_v29, %v11315_v11 }
 0x2c5   : > { %7806 = vmatpush.bf16.msra.mxu1 %v11076_v48  ;;  %v11043_v57 = vld [vmem:[%s14330_s13 + $0x1148] sm:$0xf]  ;;  %v13546_v2 = vld [vmem:[%s14330_s13 + $0x1254] sm:$0xf0]  ;;  %v10916_v10 = vor.u32 %v13482_v51, %v10915_v30 }
 0x2c6   : > { %7820 = vmatpush.bf16.msra.mxu2 %v11204_v14  ;;  %v11171_v4 = vld [vmem:[%s14330_s13 + $0x1248] sm:$0xf]  ;;  %v17317_v6 = vld [vmem:[#allocation57_spill] sm:$0xff]  ;;  %v11044_v42 = vor.u32 %v13514_v53, %v11043_v57  ;;  %v7534_v14 = vpop.f32.mrf.mxu1  ;;  %v8497_v34 = vmax.f32 %v16290_v50, 0.0  ;;  %v7548_v57 = vpop.f32.mrf.mxu2 }
 0x2c7   : > { %7834 = vmatpush.bf16.msra.mxu3 %v11332_v12  ;;  %v7101_v59 = vadd.f32 %v17317_v6, %v7087_v1  ;;  %v11299_v55 = vld [vmem:[%s14330_s13 + $0x1348] sm:$0xf]  ;;  %v13578_v60 = vld [vmem:[%s14330_s13 + $0x1354] sm:$0xf0]  ;;  %v11172_v15 = vor.u32 %v13546_v2, %v11171_v4  ;;  %v8472_v12 = vmul.f32 %v8464_v18, %v7561_v37  ;;  %v7562_v6 = vpop.f32.mrf.mxu3 }
 0x2c8   : > { %7793 = vmatpush.bf16.msra.mxu0 %v10932_v17  ;;  %v10899_v9 = vld [vmem:[%s14330_s13 + $0x1028] sm:$0xf]  ;;  %v13478_v48 = vld [vmem:[%s14330_s13 + $0x1034] sm:$0xf0]  ;;  %v11300_v20 = vor.u32 %v13578_v60, %v11299_v55  ;;  %v7535_v17 = vadd.f32 %v7534_v14, %v7521_v54 }
 0x2c9   : > { %7807 = vmatpush.bf16.msra.mxu1 %v11060_v61  ;;  %v11027_v28 = vld [vmem:[%s14330_s13 + $0x1128] sm:$0xf]  ;;  %v13510_v0 = vld [vmem:[%s14330_s13 + $0x1134] sm:$0xf0]  ;;  %v7115_v24 = vadd.f32 %v17318_v27, %v7101_v59  ;;  %v10900_v25 = vor.u32 %v13478_v48, %v10899_v9  ;;  %v8490_v1 = vadd.f32 %v8482_v19, %v8472_v12 }
 0x2ca   : > { %7821 = vmatpush.bf16.msra.mxu2 %v11188_v63  ;;  %v11155_v7 = vld [vmem:[%s14330_s13 + $0x1228] sm:$0xf]  ;;  %v13542_v26 = vld [vmem:[%s14330_s13 + $0x1234] sm:$0xf0]  ;;  %v11028_v45 = vor.u32 %v13510_v0, %v11027_v28  ;;  %v7549_v2 = vadd.f32 %v7548_v57, %v7535_v17 }
 0x2cb   : > { %7835 = vmatpush.bf16.msra.mxu3 %v11316_v33  ;;  %v11283_v22 = vld [vmem:[%s14330_s13 + $0x1328] sm:$0xf]  ;;  %v13574_v58 = vld [vmem:[%s14330_s13 + $0x1334] sm:$0xf0]  ;;  %v11156_v30 = vor.u32 %v13542_v26, %v11155_v7  ;;  %v8475_v23 = vmul.f32 %v8463_v8, %v7115_v24  ;;  %v8498_v4 = vmax.f32 %v8490_v1, 0.0 }
 0x2cc   : > { %7794 = vmatpush.bf16.msra.mxu0 %v10916_v10  ;;  %v10883_v11 = vld [vmem:[%s14330_s13 + $0x1008] sm:$0xf]  ;;  %v13474_v29 = vld [vmem:[%s14330_s13 + $0x1014] sm:$0xf0]  ;;  %v11284_v51 = vor.u32 %v13574_v58, %v11283_v22  ;;  %v7563_v8 = vadd.f32 %v7562_v6, %v7549_v2 }
 0x2cd   : > { %v11011_v5 = vld [vmem:[%s14330_s13 + $0x1108] sm:$0xf]  ;;  %7808 = vmatpush.bf16.msra.mxu1 %v11044_v42  ;;  %v13506_v16 = vld [vmem:[%s14330_s13 + $0x1114] sm:$0xf0]  ;;  %v10884_v62 = vor.u32 %v13474_v29, %v10883_v11  ;;  %v8505_v10 = vpack.c.bf16 %v8498_v4, %v8497_v34  ;;  %v8493_v48 = vadd.f32 %v8481_v3, %v8475_v23 }
 0x2ce   : > { %7822 = vmatpush.bf16.msra.mxu2 %v11172_v15  ;;  %v11139_v61 = vld [vmem:[%s14330_s13 + $0x1208] sm:$0xf]  ;;  %v13538_v63 = vld [vmem:[%s14330_s13 + $0x1214] sm:$0xf0]  ;;  %v11012_v56 = vor.u32 %v13506_v16, %v11011_v5  ;;  %v8476_v28 = vmul.f32 %v8464_v18, %v7563_v8 }
 0x2cf   : > { %7836 = vmatpush.bf16.msra.mxu3 %v11300_v20  ;;  %v11267_v53 = vld [vmem:[%s14330_s13 + $0x1308] sm:$0xf]  ;;  %v13570_v50 = vld [vmem:[%s14330_s13 + $0x1314] sm:$0xf0]  ;;  %v11140_v42 = vor.u32 %v13538_v63, %v11139_v61  ;;  %8509 = vst [vmem:[%s16336_s10] sm:$0xff] %v8505_v10  ;;  %v17320_v63 = vld [vmem:[#allocation18_spill] sm:$0xff] }
 0x2d0   : > { %v11507_v33 = vld [vmem:[%s14330_s13 + $0x14e8] sm:$0xf]  ;;  %v13630_v59 = vld [vmem:[%s14330_s13 + $0x14f4] sm:$0xf0]  ;;  %7795 = vmatpush.bf16.msra.mxu0 %v10900_v25  ;;  %v11268_v37 = vor.u32 %v13570_v50, %v11267_v53  ;;  %v8494_v12 = vadd.f32 %v8482_v19, %v8476_v28  ;;  %v8501_v25 = vmax.f32 %v8493_v48, 0.0  ;;  %v17322_v50 = vld [vmem:[#allocation20_spill] sm:$0xff] }
 0x2d1   : > { %v11635_v46 = vld [vmem:[%s14330_s13 + $0x15e8] sm:$0xf]  ;;  %v13662_v13 = vld [vmem:[%s14330_s13 + $0x15f4] sm:$0xf0]  ;;  %7809 = vmatpush.bf16.msra.mxu1 %v11028_v45  ;;  %v11508_v15 = vor.u32 %v13630_v59, %v11507_v33 }
 0x2d2   : > { %v11763_v55 = vld [vmem:[%s14330_s13 + $0x16e8] sm:$0xf]  ;;  %v13694_v60 = vld [vmem:[%s14330_s13 + $0x16f4] sm:$0xf0]  ;;  %7823 = vmatpush.bf16.msra.mxu2 %v11156_v30  ;;  %v11636_v0 = vor.u32 %v13662_v13, %v11635_v46  ;;  %v8502_v45 = vmax.f32 %v8494_v12, 0.0 }
 0x2d3   : > { %v11891_v9 = vld [vmem:[%s14330_s13 + $0x17e8] sm:$0xf]  ;;  %v13726_v54 = vld [vmem:[%s14330_s13 + $0x17f4] sm:$0xf0]  ;;  %7837 = vmatpush.bf16.msra.mxu3 %v11284_v51  ;;  %v11764_v20 = vor.u32 %v13694_v60, %v11763_v55 }
 0x2d4   : > { %v11491_v14 = vld [vmem:[%s14330_s13 + $0x14c8] sm:$0xf]  ;;  %v13626_v7 = vld [vmem:[%s14330_s13 + $0x14d4] sm:$0xf0]  ;;  %7796 = vmatpush.bf16.msra.mxu0 %v10884_v62  ;;  %v11892_v34 = vor.u32 %v13726_v54, %v11891_v9  ;;  %v8507_v61 = vpack.c.bf16 %v8502_v45, %v8501_v25  ;;  %v7574_v8 = vpop.f32.mrf.mxu0 }
 0x2d5   : > { %v11619_v26 = vld [vmem:[%s14330_s13 + $0x15c8] sm:$0xf]  ;;  %v13658_v27 = vld [vmem:[%s14330_s13 + $0x15d4] sm:$0xf0]  ;;  %7810 = vmatpush.bf16.msra.mxu1 %v11012_v56  ;;  %v11492_v22 = vor.u32 %v13626_v7, %v11491_v14 }
 0x2d6   : > { %v11747_v3 = vld [vmem:[%s14330_s13 + $0x16c8] sm:$0xf]  ;;  %v13690_v24 = vld [vmem:[%s14330_s13 + $0x16d4] sm:$0xf0]  ;;  %7824 = vmatpush.bf16.msra.mxu2 %v11140_v42  ;;  %v11620_v52 = vor.u32 %v13658_v27, %v11619_v26  ;;  %8511 = vst [vmem:[%s16336_s10 + $0x10] sm:$0xff] %v8507_v61  ;;  %v7588_v42 = vpop.f32.mrf.mxu1 }
 0x2d7   : > { %v11875_v49 = vld [vmem:[%s14330_s13 + $0x17c8] sm:$0xf]  ;;  %v13722_v18 = vld [vmem:[%s14330_s13 + $0x17d4] sm:$0xf0]  ;;  %7838 = vmatpush.bf16.msra.mxu3 %v11268_v37  ;;  %v11748_v19 = vor.u32 %v13690_v24, %v11747_v3  ;;  %v7589_v28 = vadd.f32 %v7588_v42, %v7574_v8 }
 0x2d8   : > { %7845 = vmatpush.bf16.msrb.mxu0 %v11508_v15  ;;  %v11475_v58 = vld [vmem:[%s14330_s13 + $0x14a8] sm:$0xf]  ;;  %v13622_v11 = vld [vmem:[%s14330_s13 + $0x14b4] sm:$0xf0]  ;;  %v11876_v1 = vor.u32 %v13722_v18, %v11875_v49 }
 0x2d9   : > { %7859 = vmatpush.bf16.msrb.mxu1 %v11636_v0  ;;  %v11603_v29 = vld [vmem:[%s14330_s13 + $0x15a8] sm:$0xf]  ;;  %v17319_v5 = vld [vmem:[#allocation17_spill] sm:$0xff]  ;;  %7825 = vmatmul.bf16.vlgmr.msra.gmra.mxu2 %v17320_v63  ;;  %v11476_v33 = vor.u32 %v13622_v11, %v11475_v58 }
 0x2da   : > { %7873 = vmatpush.bf16.msrb.mxu2 %v11764_v20  ;;  %7797 = vmatmul.bf16.vlgmr.msra.gmra.mxu0 %v17319_v5  ;;  %v13654_v17 = vld [vmem:[%s14330_s13 + $0x15b4] sm:$0xf0]  ;;  %v11731_v30 = vld [vmem:[%s14330_s13 + $0x16a8] sm:$0xf] }
 0x2db   : > { %7887 = vmatpush.bf16.msrb.mxu3 %v11892_v34  ;;  %v13686_v16 = vld [vmem:[%s14330_s13 + $0x16b4] sm:$0xf0]  ;;  %v17321_v51 = vld [vmem:[#allocation19_spill] sm:$0xff]  ;;  %v11604_v4 = vor.u32 %v13654_v17, %v11603_v29 }
 0x2dc   : > { %7811 = vmatmul.bf16.vlgmr.msra.gmra.mxu1 %v17321_v51  ;;  %v11859_v57 = vld [vmem:[%s14330_s13 + $0x17a8] sm:$0xf]  ;;  %v13718_v53 = vld [vmem:[%s14330_s13 + $0x17b4] sm:$0xf0]  ;;  %7839 = vmatmul.bf16.vlgmr.msra.gmra.mxu3 %v17322_v50  ;;  %v11732_v2 = vor.u32 %v13686_v16, %v11731_v30 }
 0x2dd   : > { %7846 = vmatpush.bf16.msrb.mxu0 %v11492_v22  ;;  %v11459_v23 = vld [vmem:[%s14330_s13 + $0x1488] sm:$0xf]  ;;  %7860 = vmatpush.bf16.msrb.mxu1 %v11620_v52  ;;  %v13618_v6 = vld [vmem:[%s14330_s13 + $0x1494] sm:$0xf0]  ;;  %v11860_v46 = vor.u32 %v13718_v53, %v11859_v57  ;;  %v7602_v52 = vpop.f32.mrf.mxu2  ;;  %v7616_v17 = vpop.f32.mrf.mxu3 }
 0x2de   : > { %7874 = vmatpush.bf16.msrb.mxu2 %v11748_v19  ;;  %v11587_v59 = vld [vmem:[%s14330_s13 + $0x1588] sm:$0xf]  ;;  %v13650_v62 = vld [vmem:[%s14330_s13 + $0x1594] sm:$0xf0]  ;;  %v11460_v10 = vor.u32 %v13618_v6, %v11459_v23  ;;  %v7603_v29 = vadd.f32 %v7602_v52, %v7589_v28 }
 0x2df   : > { %7888 = vmatpush.bf16.msrb.mxu3 %v11876_v1  ;;  %v11715_v56 = vld [vmem:[%s14330_s13 + $0x1688] sm:$0xf]  ;;  %v13682_v13 = vld [vmem:[%s14330_s13 + $0x1694] sm:$0xf0]  ;;  %v11588_v9 = vor.u32 %v13650_v62, %v11587_v59 }
 0x2e0   : > { %v11843_v55 = vld [vmem:[%s14330_s13 + $0x1788] sm:$0xf]  ;;  %v13714_v60 = vld [vmem:[%s14330_s13 + $0x1794] sm:$0xf0]  ;;  %v11716_v54 = vor.u32 %v13682_v13, %v11715_v56 }
 0x2e1   : > { %7847 = vmatpush.bf16.msrb.mxu0 %v11476_v33  ;;  %7861 = vmatpush.bf16.msrb.mxu1 %v11604_v4  ;;  %v11443_v37 = vld [vmem:[%s14330_s13 + $0x1468] sm:$0xf]  ;;  %v13614_v15 = vld [vmem:[%s14330_s13 + $0x1474] sm:$0xf0]  ;;  %v11844_v0 = vor.u32 %v13714_v60, %v11843_v55  ;;  %v16391_v33 = vadd.f32 %v7616_v17, %v7603_v29 }
 0x2e2   : > { %7875 = vmatpush.bf16.msrb.mxu2 %v11732_v2  ;;  %v11571_v48 = vld [vmem:[%s14330_s13 + $0x1568] sm:$0xf]  ;;  %v13646_v20 = vld [vmem:[%s14330_s13 + $0x1574] sm:$0xf0]  ;;  %v11444_v27 = vor.u32 %v13614_v15, %v11443_v37 }
 0x2e3   : > { %7889 = vmatpush.bf16.msrb.mxu3 %v11860_v46  ;;  %v11699_v14 = vld [vmem:[%s14330_s13 + $0x1668] sm:$0xf]  ;;  %v13678_v7 = vld [vmem:[%s14330_s13 + $0x1674] sm:$0xf0]  ;;  %v11572_v3 = vor.u32 %v13646_v20, %v11571_v48 }
 0x2e4   : > { %v11827_v26 = vld [vmem:[%s14330_s13 + $0x1768] sm:$0xf]  ;;  %v13710_v34 = vld [vmem:[%s14330_s13 + $0x1774] sm:$0xf0]  ;;  %v11700_v24 = vor.u32 %v13678_v7, %v11699_v14 }
 0x2e5   : > { %7848 = vmatpush.bf16.msrb.mxu0 %v11460_v10  ;;  %7862 = vmatpush.bf16.msrb.mxu1 %v11588_v9  ;;  %v11427_v12 = vld [vmem:[%s14330_s13 + $0x1448] sm:$0xf]  ;;  %v13610_v49 = vld [vmem:[%s14330_s13 + $0x1454] sm:$0xf0]  ;;  %v11828_v22 = vor.u32 %v13710_v34, %v11827_v26 }
 0x2e6   : > { %7876 = vmatpush.bf16.msrb.mxu2 %v11716_v54  ;;  %v11555_v18 = vld [vmem:[%s14330_s13 + $0x1548] sm:$0xf]  ;;  %v13642_v58 = vld [vmem:[%s14330_s13 + $0x1554] sm:$0xf0]  ;;  %v11428_v1 = vor.u32 %v13610_v49, %v11427_v12 }
 0x2e7   : > { %7890 = vmatpush.bf16.msrb.mxu3 %v11844_v0  ;;  %v11683_v25 = vld [vmem:[%s14330_s13 + $0x1648] sm:$0xf]  ;;  %v13674_v45 = vld [vmem:[%s14330_s13 + $0x1654] sm:$0xf0]  ;;  %v11556_v30 = vor.u32 %v13642_v58, %v11555_v18  ;;  %v16414_v58 = vpop.f32.mrf.mxu0 }
 0x2e8   : > { %v11811_v19 = vld [vmem:[%s14330_s13 + $0x1748] sm:$0xf]  ;;  %v13706_v11 = vld [vmem:[%s14330_s13 + $0x1754] sm:$0xf0]  ;;  %v11684_v16 = vor.u32 %v13674_v45, %v11683_v25 }
 0x2e9   : > { %7849 = vmatpush.bf16.msrb.mxu0 %v11444_v27  ;;  %7863 = vmatpush.bf16.msrb.mxu1 %v11572_v3  ;;  %v11411_v61 = vld [vmem:[%s14330_s13 + $0x1428] sm:$0xf]  ;;  %v13606_v57 = vld [vmem:[%s14330_s13 + $0x1434] sm:$0xf0]  ;;  %v11812_v23 = vor.u32 %v13706_v11, %v11811_v19 }
 0x2ea   : > { %7877 = vmatpush.bf16.msrb.mxu2 %v11700_v24  ;;  %v11539_v53 = vld [vmem:[%s14330_s13 + $0x1528] sm:$0xf]  ;;  %v13638_v4 = vld [vmem:[%s14330_s13 + $0x1534] sm:$0xf0]  ;;  %v11412_v62 = vor.u32 %v13606_v57, %v11411_v61 }
 0x2eb   : > { %7891 = vmatpush.bf16.msrb.mxu3 %v11828_v22  ;;  %v11667_v2 = vld [vmem:[%s14330_s13 + $0x1628] sm:$0xf]  ;;  %v13670_v6 = vld [vmem:[%s14330_s13 + $0x1634] sm:$0xf0]  ;;  %v11540_v55 = vor.u32 %v13638_v4, %v11539_v53 }
 0x2ec   : > { %v11795_v59 = vld [vmem:[%s14330_s13 + $0x1728] sm:$0xf]  ;;  %v13702_v46 = vld [vmem:[%s14330_s13 + $0x1734] sm:$0xf0]  ;;  %v11668_v60 = vor.u32 %v13670_v6, %v11667_v2 }
 0x2ed   : > { %7850 = vmatpush.bf16.msrb.mxu0 %v11428_v1  ;;  %v11395_v56 = vld [vmem:[%s14330_s13 + $0x1408] sm:$0xf]  ;;  %v13602_v13 = vld [vmem:[%s14330_s13 + $0x1414] sm:$0xf0]  ;;  %7864 = vmatpush.bf16.msrb.mxu1 %v11556_v30  ;;  %v11796_v9 = vor.u32 %v13702_v46, %v11795_v59 }
 0x2ee   : > { %7878 = vmatpush.bf16.msrb.mxu2 %v11684_v16  ;;  %v11523_v10 = vld [vmem:[%s14330_s13 + $0x1508] sm:$0xf]  ;;  %v13634_v8 = vld [vmem:[%s14330_s13 + $0x1514] sm:$0xf0]  ;;  %v11396_v20 = vor.u32 %v13602_v13, %v11395_v56  ;;  %v16424_v16 = vpop.f32.mrf.mxu1  ;;  %v17324_v13 = vld [vmem:[#allocation22_spill] sm:$0xff] }
 0x2ef   : > { %v11651_v42 = vld [vmem:[%s14330_s13 + $0x1608] sm:$0xf]  ;;  %7892 = vmatpush.bf16.msrb.mxu3 %v11812_v23  ;;  %v13666_v54 = vld [vmem:[%s14330_s13 + $0x1614] sm:$0xf0]  ;;  %v11524_v34 = vor.u32 %v13634_v8, %v11523_v10  ;;  %v17326_v8 = vld [vmem:[#allocation24_spill] sm:$0xff] }
 0x2f0   : > { %v11779_v37 = vld [vmem:[%s14330_s13 + $0x1708] sm:$0xf]  ;;  %v13698_v15 = vld [vmem:[%s14330_s13 + $0x1714] sm:$0xf0]  ;;  %v11652_v27 = vor.u32 %v13666_v54, %v11651_v42 }
 0x2f1   : > { %v12019_v48 = vld [vmem:[%s14330_s13 + $0x18e8] sm:$0xf]  ;;  %v13758_v28 = vld [vmem:[%s14330_s13 + $0x18f4] sm:$0xf0]  ;;  %7851 = vmatpush.bf16.msrb.mxu0 %v11412_v62  ;;  %7865 = vmatpush.bf16.msrb.mxu1 %v11540_v55  ;;  %v11780_v12 = vor.u32 %v13698_v15, %v11779_v37 }
 0x2f2   : > { %v12147_v0 = vld [vmem:[%s14330_s13 + $0x19e8] sm:$0xf]  ;;  %v13790_v14 = vld [vmem:[%s14330_s13 + $0x19f4] sm:$0xf0]  ;;  %7879 = vmatpush.bf16.msrb.mxu2 %v11668_v60  ;;  %v12020_v49 = vor.u32 %v13758_v28, %v12019_v48 }
 0x2f3   : > { %v12275_v7 = vld [vmem:[%s14330_s13 + $0x1ae8] sm:$0xf]  ;;  %v13822_v26 = vld [vmem:[%s14330_s13 + $0x1af4] sm:$0xf0]  ;;  %7893 = vmatpush.bf16.msrb.mxu3 %v11796_v9  ;;  %v12148_v18 = vor.u32 %v13790_v14, %v12147_v0  ;;  %v16438_v9 = vpop.f32.mrf.mxu2 }
 0x2f4   : > { %v12403_v3 = vld [vmem:[%s14330_s13 + $0x1be8] sm:$0xf]  ;;  %v13854_v24 = vld [vmem:[%s14330_s13 + $0x1bf4] sm:$0xf0]  ;;  %v12276_v22 = vor.u32 %v13822_v26, %v12275_v7 }
 0x2f5   : > { %v12003_v25 = vld [vmem:[%s14330_s13 + $0x18c8] sm:$0xf]  ;;  %v13754_v45 = vld [vmem:[%s14330_s13 + $0x18d4] sm:$0xf0]  ;;  %7852 = vmatpush.bf16.msrb.mxu0 %v11396_v20  ;;  %v12404_v19 = vor.u32 %v13854_v24, %v12403_v3  ;;  %7866 = vmatpush.bf16.msrb.mxu1 %v11524_v34  ;;  %v16443_v20 = vpop.f32.mrf.mxu3  ;;  %v7630_v34 = vpop.f32.mrf.mxu0 }
 0x2f6   : > { %v12131_v52 = vld [vmem:[%s14330_s13 + $0x19c8] sm:$0xf]  ;;  %v13786_v11 = vld [vmem:[%s14330_s13 + $0x19d4] sm:$0xf0]  ;;  %7880 = vmatpush.bf16.msrb.mxu2 %v11652_v27  ;;  %v12004_v61 = vor.u32 %v13754_v45, %v12003_v25  ;;  %v7631_v24 = vadd.f32 %v7630_v34, %v16391_v33 }
 0x2f7   : > { %v12259_v29 = vld [vmem:[%s14330_s13 + $0x1ac8] sm:$0xf]  ;;  %v13818_v1 = vld [vmem:[%s14330_s13 + $0x1ad4] sm:$0xf0]  ;;  %7894 = vmatpush.bf16.msrb.mxu3 %v11780_v12  ;;  %v12132_v57 = vor.u32 %v13786_v11, %v12131_v52 }
 0x2f8   : > { %v12387_v17 = vld [vmem:[%s14330_s13 + $0x1bc8] sm:$0xf]  ;;  %v13850_v30 = vld [vmem:[%s14330_s13 + $0x1bd4] sm:$0xf0]  ;;  %v12260_v53 = vor.u32 %v13818_v1, %v12259_v29 }
 0x2f9   : > { %7901 = vmatpush.bf16.msra.mxu0 %v12020_v49  ;;  %7915 = vmatpush.bf16.msra.mxu1 %v12148_v18  ;;  %v11987_v23 = vld [vmem:[%s14330_s13 + $0x18a8] sm:$0xf]  ;;  %v13750_v4 = vld [vmem:[%s14330_s13 + $0x18b4] sm:$0xf0]  ;;  %v12388_v59 = vor.u32 %v13850_v30, %v12387_v17 }
 0x2fa   : > { %7929 = vmatpush.bf16.msra.mxu2 %v12276_v22  ;;  %v12115_v2 = vld [vmem:[%s14330_s13 + $0x19a8] sm:$0xf]  ;;  %v17323_v6 = vld [vmem:[#allocation21_spill] sm:$0xff]  ;;  %7895 = vmatmul.bf16.vlgmr.msrb.gmra.mxu3 %v17326_v8  ;;  %v11988_v42 = vor.u32 %v13750_v4, %v11987_v23  ;;  %v7644_v22 = vpop.f32.mrf.mxu1 }
 0x2fb   : > { %7943 = vmatpush.bf16.msra.mxu3 %v12404_v19  ;;  %7853 = vmatmul.bf16.vlgmr.msrb.gmra.mxu0 %v17323_v6  ;;  %v13782_v46 = vld [vmem:[%s14330_s13 + $0x19b4] sm:$0xf0]  ;;  %v12243_v62 = vld [vmem:[%s14330_s13 + $0x1aa8] sm:$0xf]  ;;  %v7645_v11 = vadd.f32 %v7644_v22, %v7631_v24 }
 0x2fc   : > { %v13814_v56 = vld [vmem:[%s14330_s13 + $0x1ab4] sm:$0xf0]  ;;  %7881 = vmatmul.bf16.vlgmr.msrb.gmra.mxu2 %v17324_v13  ;;  %v17325_v55 = vld [vmem:[#allocation23_spill] sm:$0xff]  ;;  %v12116_v54 = vor.u32 %v13782_v46, %v12115_v2  ;;  %v7658_v46 = vpop.f32.mrf.mxu2 }
 0x2fd   : > { %7867 = vmatmul.bf16.vlgmr.msrb.gmra.mxu1 %v17325_v55  ;;  %v12371_v60 = vld [vmem:[%s14330_s13 + $0x1ba8] sm:$0xf]  ;;  %v13846_v10 = vld [vmem:[%s14330_s13 + $0x1bb4] sm:$0xf0]  ;;  %7902 = vmatpush.bf16.msra.mxu0 %v12004_v61  ;;  %v12244_v37 = vor.u32 %v13814_v56, %v12243_v62 }
 0x2fe   : > { %7916 = vmatpush.bf16.msra.mxu1 %v12132_v57  ;;  %7930 = vmatpush.bf16.msra.mxu2 %v12260_v53  ;;  %v11971_v15 = vld [vmem:[%s14330_s13 + $0x1888] sm:$0xf]  ;;  %v13746_v48 = vld [vmem:[%s14330_s13 + $0x1894] sm:$0xf0]  ;;  %v12372_v0 = vor.u32 %v13846_v10, %v12371_v60  ;;  %v7659_v10 = vadd.f32 %v7658_v46, %v7645_v11 }
 0x2ff   : > { %v12099_v28 = vld [vmem:[%s14330_s13 + $0x1988] sm:$0xf]  ;;  %7944 = vmatpush.bf16.msra.mxu3 %v12388_v59  ;;  %v13778_v14 = vld [vmem:[%s14330_s13 + $0x1994] sm:$0xf0]  ;;  %v11972_v12 = vor.u32 %v13746_v48, %v11971_v15 }
 0x300   : > { %v12227_v7 = vld [vmem:[%s14330_s13 + $0x1a88] sm:$0xf]  ;;  %v13810_v26 = vld [vmem:[%s14330_s13 + $0x1a94] sm:$0xf0]  ;;  %v12100_v49 = vor.u32 %v13778_v14, %v12099_v28 }
 0x301   : > { %v12355_v27 = vld [vmem:[%s14330_s13 + $0x1b88] sm:$0xf]  ;;  %v13842_v3 = vld [vmem:[%s14330_s13 + $0x1b94] sm:$0xf0]  ;;  %7903 = vmatpush.bf16.msra.mxu0 %v11988_v42  ;;  %v12228_v18 = vor.u32 %v13810_v26, %v12227_v7 }
 0x302   : > { %7917 = vmatpush.bf16.msra.mxu1 %v12116_v54  ;;  %7931 = vmatpush.bf16.msra.mxu2 %v12244_v37  ;;  %v11955_v25 = vld [vmem:[%s14330_s13 + $0x1868] sm:$0xf]  ;;  %v13742_v45 = vld [vmem:[%s14330_s13 + $0x1874] sm:$0xf0]  ;;  %v12356_v19 = vor.u32 %v13842_v3, %v12355_v27  ;;  %v7672_v37 = vpop.f32.mrf.mxu3 }
 0x303   : > { %v12083_v52 = vld [vmem:[%s14330_s13 + $0x1968] sm:$0xf]  ;;  %7945 = vmatpush.bf16.msra.mxu3 %v12372_v0  ;;  %v13774_v29 = vld [vmem:[%s14330_s13 + $0x1974] sm:$0xf0]  ;;  %v11956_v61 = vor.u32 %v13742_v45, %v11955_v25  ;;  %v16467_v48 = vadd.f32 %v7672_v37, %v7659_v10 }
 0x304   : > { %v12211_v1 = vld [vmem:[%s14330_s13 + $0x1a68] sm:$0xf]  ;;  %v13806_v33 = vld [vmem:[%s14330_s13 + $0x1a74] sm:$0xf0]  ;;  %v12084_v57 = vor.u32 %v13774_v29, %v12083_v52 }
 0x305   : > { %v12339_v17 = vld [vmem:[%s14330_s13 + $0x1b68] sm:$0xf]  ;;  %v13838_v30 = vld [vmem:[%s14330_s13 + $0x1b74] sm:$0xf0]  ;;  %7904 = vmatpush.bf16.msra.mxu0 %v11972_v12  ;;  %v12212_v53 = vor.u32 %v13806_v33, %v12211_v1 }
 0x306   : > { %7918 = vmatpush.bf16.msra.mxu1 %v12100_v49  ;;  %7932 = vmatpush.bf16.msra.mxu2 %v12228_v18  ;;  %v11939_v23 = vld [vmem:[%s14330_s13 + $0x1848] sm:$0xf]  ;;  %v13738_v4 = vld [vmem:[%s14330_s13 + $0x1854] sm:$0xf0]  ;;  %v12340_v59 = vor.u32 %v13838_v30, %v12339_v17 }
 0x307   : > { %v12067_v2 = vld [vmem:[%s14330_s13 + $0x1948] sm:$0xf]  ;;  %7946 = vmatpush.bf16.msra.mxu3 %v12356_v19  ;;  %v13770_v62 = vld [vmem:[%s14330_s13 + $0x1954] sm:$0xf0]  ;;  %v11940_v15 = vor.u32 %v13738_v4, %v11939_v23 }
 0x308   : > { %v12195_v56 = vld [vmem:[%s14330_s13 + $0x1a48] sm:$0xf]  ;;  %v13802_v60 = vld [vmem:[%s14330_s13 + $0x1a54] sm:$0xf0]  ;;  %v12068_v28 = vor.u32 %v13770_v62, %v12067_v2 }
 0x309   : > { %v12323_v42 = vld [vmem:[%s14330_s13 + $0x1b48] sm:$0xf]  ;;  %v13834_v54 = vld [vmem:[%s14330_s13 + $0x1b54] sm:$0xf0]  ;;  %7905 = vmatpush.bf16.msra.mxu0 %v11956_v61  ;;  %v12196_v0 = vor.u32 %v13802_v60, %v12195_v56 }
 0x30a   : > { %7919 = vmatpush.bf16.msra.mxu1 %v12084_v57  ;;  %7933 = vmatpush.bf16.msra.mxu2 %v12212_v53  ;;  %v11923_v14 = vld [vmem:[%s14330_s13 + $0x1828] sm:$0xf]  ;;  %v13734_v7 = vld [vmem:[%s14330_s13 + $0x1834] sm:$0xf0]  ;;  %v12324_v34 = vor.u32 %v13834_v54, %v12323_v42 }
 0x30b   : > { %v12051_v26 = vld [vmem:[%s14330_s13 + $0x1928] sm:$0xf]  ;;  %7947 = vmatpush.bf16.msra.mxu3 %v12340_v59  ;;  %v13766_v27 = vld [vmem:[%s14330_s13 + $0x1934] sm:$0xf0]  ;;  %v11924_v18 = vor.u32 %v13734_v7, %v11923_v14 }
 0x30c   : > { %v12179_v3 = vld [vmem:[%s14330_s13 + $0x1a28] sm:$0xf]  ;;  %v13798_v24 = vld [vmem:[%s14330_s13 + $0x1a34] sm:$0xf0]  ;;  %v12052_v45 = vor.u32 %v13766_v27, %v12051_v26  ;;  %v16499_v27 = vpop.f32.mrf.mxu0 }
 0x30d   : > { %v12307_v12 = vld [vmem:[%s14330_s13 + $0x1b28] sm:$0xf]  ;;  %v13830_v49 = vld [vmem:[%s14330_s13 + $0x1b34] sm:$0xf0]  ;;  %7906 = vmatpush.bf16.msra.mxu0 %v11940_v15  ;;  %v12180_v52 = vor.u32 %v13798_v24, %v12179_v3 }
 0x30e   : > { %v11907_v22 = vld [vmem:[%s14330_s13 + $0x1808] sm:$0xf]  ;;  %v13730_v25 = vld [vmem:[%s14330_s13 + $0x1814] sm:$0xf0]  ;;  %7920 = vmatpush.bf16.msra.mxu1 %v12068_v28  ;;  %7934 = vmatpush.bf16.msra.mxu2 %v12196_v0  ;;  %v12308_v1 = vor.u32 %v13830_v49, %v12307_v12  ;;  %v16503_v12 = vpop.f32.mrf.mxu1 }
 0x30f   : > { %v12035_v19 = vld [vmem:[%s14330_s13 + $0x1908] sm:$0xf]  ;;  %v13762_v11 = vld [vmem:[%s14330_s13 + $0x1914] sm:$0xf0]  ;;  %7948 = vmatpush.bf16.msra.mxu3 %v12324_v34  ;;  %v11908_v23 = vor.u32 %v13730_v25, %v11907_v22 }
 0x310   : > { %v12163_v29 = vld [vmem:[%s14330_s13 + $0x1a08] sm:$0xf]  ;;  %v13794_v33 = vld [vmem:[%s14330_s13 + $0x1a14] sm:$0xf0]  ;;  %v12036_v46 = vor.u32 %v13762_v11, %v12035_v19  ;;  %v17327_v19 = vld [vmem:[#allocation26_spill] sm:$0xff] }
 0x311   : > { %v12291_v17 = vld [vmem:[%s14330_s13 + $0x1b08] sm:$0xf]  ;;  %v13826_v30 = vld [vmem:[%s14330_s13 + $0x1b14] sm:$0xf0]  ;;  %7907 = vmatpush.bf16.msra.mxu0 %v11924_v18  ;;  %v12164_v62 = vor.u32 %v13794_v33, %v12163_v29 }
 0x312   : > { %v12531_v61 = vld [vmem:[%s14330_s13 + $0x1ce8] sm:$0xf]  ;;  %v13886_v57 = vld [vmem:[%s14330_s13 + $0x1cf4] sm:$0xf0]  ;;  %7921 = vmatpush.bf16.msra.mxu1 %v12052_v45  ;;  %7935 = vmatpush.bf16.msra.mxu2 %v12180_v52  ;;  %v12292_v10 = vor.u32 %v13826_v30, %v12291_v17  ;;  %v17328_v17 = vld [vmem:[#allocation28_spill] sm:$0xff] }
 0x313   : > { %v12659_v53 = vld [vmem:[%s14330_s13 + $0x1de8] sm:$0xf]  ;;  %v13918_v4 = vld [vmem:[%s14330_s13 + $0x1df4] sm:$0xf0]  ;;  %7949 = vmatpush.bf16.msra.mxu3 %v12308_v1  ;;  %v12532_v42 = vor.u32 %v13886_v57, %v12531_v61 }
 0x314   : > { %v12787_v2 = vld [vmem:[%s14330_s13 + $0x1ee8] sm:$0xf]  ;;  %v13950_v59 = vld [vmem:[%s14330_s13 + $0x1ef4] sm:$0xf0]  ;;  %v12660_v54 = vor.u32 %v13918_v4, %v12659_v53 }
 0x315   : > { %v12915_v56 = vld [vmem:[%s14330_s13 + $0x1fe8] sm:$0xf]  ;;  %v13982_v60 = vld [vmem:[%s14330_s13 + $0x1ff4] sm:$0xf0]  ;;  %v12788_v37 = vor.u32 %v13950_v59, %v12787_v2  ;;  %7908 = vmatpush.bf16.msra.mxu0 %v11908_v23 }
 0x316   : > { %v12515_v15 = vld [vmem:[%s14330_s13 + $0x1cc8] sm:$0xf]  ;;  %v13882_v28 = vld [vmem:[%s14330_s13 + $0x1cd4] sm:$0xf0]  ;;  %v12916_v14 = vor.u32 %v13982_v60, %v12915_v56  ;;  %7922 = vmatpush.bf16.msra.mxu1 %v12036_v46  ;;  %7936 = vmatpush.bf16.msra.mxu2 %v12164_v62  ;;  %v16520_v56 = vpop.f32.mrf.mxu2 }
 0x317   : > { %v12643_v0 = vld [vmem:[%s14330_s13 + $0x1dc8] sm:$0xf]  ;;  %v13914_v7 = vld [vmem:[%s14330_s13 + $0x1dd4] sm:$0xf0]  ;;  %7950 = vmatpush.bf16.msra.mxu3 %v12292_v10  ;;  %v12516_v49 = vor.u32 %v13882_v28, %v12515_v15  ;;  %v7686_v15 = vpop.f32.mrf.mxu0 }
 0x318   : > { %v12771_v26 = vld [vmem:[%s14330_s13 + $0x1ec8] sm:$0xf]  ;;  %v13946_v34 = vld [vmem:[%s14330_s13 + $0x1ed4] sm:$0xf0]  ;;  %v12644_v18 = vor.u32 %v13914_v7, %v12643_v0  ;;  %7909 = vmatmul.bf16.vlgmr.msra.gmra.mxu0 %v17327_v19 }
 0x319   : > { %v12899_v3 = vld [vmem:[%s14330_s13 + $0x1fc8] sm:$0xf]  ;;  %v13978_v24 = vld [vmem:[%s14330_s13 + $0x1fd4] sm:$0xf0]  ;;  %7957 = vmatpush.bf16.msrb.mxu0 %v12532_v42  ;;  %v12772_v22 = vor.u32 %v13946_v34, %v12771_v26  ;;  %7937 = vmatmul.bf16.vlgmr.msra.gmra.mxu2 %v17328_v17  ;;  %v7700_v26 = vpop.f32.mrf.mxu1 }
 0x31a   : > { %7971 = vmatpush.bf16.msrb.mxu1 %v12660_v54  ;;  %7985 = vmatpush.bf16.msrb.mxu2 %v12788_v37  ;;  %v12499_v25 = vld [vmem:[%s14330_s13 + $0x1ca8] sm:$0xf]  ;;  %v13878_v45 = vld [vmem:[%s14330_s13 + $0x1cb4] sm:$0xf0]  ;;  %v12900_v11 = vor.u32 %v13978_v24, %v12899_v3  ;;  %v16525_v37 = vpop.f32.mrf.mxu3 }
 0x31b   : > { %v12627_v52 = vld [vmem:[%s14330_s13 + $0x1da8] sm:$0xf]  ;;  %7999 = vmatpush.bf16.msrb.mxu3 %v12916_v14  ;;  %v13910_v29 = vld [vmem:[%s14330_s13 + $0x1db4] sm:$0xf0]  ;;  %v12500_v23 = vor.u32 %v13878_v45, %v12499_v25  ;;  %v7687_v14 = vadd.f32 %v7686_v15, %v16467_v48 }
 0x31c   : > { %v12755_v1 = vld [vmem:[%s14330_s13 + $0x1ea8] sm:$0xf]  ;;  %v13942_v33 = vld [vmem:[%s14330_s13 + $0x1eb4] sm:$0xf0]  ;;  %v12628_v4 = vor.u32 %v13910_v29, %v12627_v52 }
 0x31d   : > { %v17329_v30 = vld [vmem:[#allocation29_spill] sm:$0xff]  ;;  %v12883_v61 = vld [vmem:[%s14330_s13 + $0x1fa8] sm:$0xf]  ;;  %7958 = vmatpush.bf16.msrb.mxu0 %v12516_v49  ;;  %v12756_v2 = vor.u32 %v13942_v33, %v12755_v1  ;;  %v7701_v25 = vadd.f32 %v7700_v26, %v7687_v14 }
 0x31e   : > { %7923 = vmatmul.bf16.vlgmr.msra.gmra.mxu1 %v17329_v30  ;;  %v13974_v57 = vld [vmem:[%s14330_s13 + $0x1fb4] sm:$0xf0]  ;;  %v17330_v53 = vld [vmem:[#allocation31_spill] sm:$0xff]  ;;  %7986 = vmatpush.bf16.msrb.mxu2 %v12772_v22 }
 0x31f   : > { %7951 = vmatmul.bf16.vlgmr.msra.gmra.mxu3 %v17330_v53  ;;  %7972 = vmatpush.bf16.msrb.mxu1 %v12644_v18  ;;  %v12483_v59 = vld [vmem:[%s14330_s13 + $0x1c88] sm:$0xf]  ;;  %v13874_v46 = vld [vmem:[%s14330_s13 + $0x1c94] sm:$0xf0]  ;;  %v12884_v60 = vor.u32 %v13974_v57, %v12883_v61 }
 0x320   : > { %v12611_v62 = vld [vmem:[%s14330_s13 + $0x1d88] sm:$0xf]  ;;  %8000 = vmatpush.bf16.msrb.mxu3 %v12900_v11  ;;  %v13906_v10 = vld [vmem:[%s14330_s13 + $0x1d94] sm:$0xf0]  ;;  %v12484_v7 = vor.u32 %v13874_v46, %v12483_v59  ;;  %v7714_v59 = vpop.f32.mrf.mxu2 }
 0x321   : > { %v12739_v42 = vld [vmem:[%s14330_s13 + $0x1e88] sm:$0xf]  ;;  %v13938_v54 = vld [vmem:[%s14330_s13 + $0x1e94] sm:$0xf0]  ;;  %7959 = vmatpush.bf16.msrb.mxu0 %v12500_v23  ;;  %v12612_v34 = vor.u32 %v13906_v10, %v12611_v62  ;;  %v7715_v10 = vadd.f32 %v7714_v59, %v7701_v25 }
 0x322   : > { %v12867_v28 = vld [vmem:[%s14330_s13 + $0x1f88] sm:$0xf]  ;;  %v13970_v0 = vld [vmem:[%s14330_s13 + $0x1f94] sm:$0xf0]  ;;  %7987 = vmatpush.bf16.msrb.mxu2 %v12756_v2  ;;  %v12740_v3 = vor.u32 %v13938_v54, %v12739_v42  ;;  %v7728_v42 = vpop.f32.mrf.mxu3 }
 0x323   : > { %7973 = vmatpush.bf16.msrb.mxu1 %v12628_v4  ;;  %v12467_v24 = vld [vmem:[%s14330_s13 + $0x1c68] sm:$0xf]  ;;  %v13870_v49 = vld [vmem:[%s14330_s13 + $0x1c74] sm:$0xf0]  ;;  %v12868_v22 = vor.u32 %v13970_v0, %v12867_v28  ;;  %v16546_v0 = vadd.f32 %v7728_v42, %v7715_v10  ;;  %v9077_v42 = vld [vmem:[%s14330_s13 + $0x1f8] sm:$0xf0] }
 0x324   : > { %v12595_v18 = vld [vmem:[%s14330_s13 + $0x1d68] sm:$0xf]  ;;  %8001 = vmatpush.bf16.msrb.mxu3 %v12884_v60  ;;  %v13902_v45 = vld [vmem:[%s14330_s13 + $0x1d74] sm:$0xf0]  ;;  %v12468_v1 = vor.u32 %v13870_v49, %v12467_v24 }
 0x325   : > { %v12723_v52 = vld [vmem:[%s14330_s13 + $0x1e68] sm:$0xf]  ;;  %v13934_v48 = vld [vmem:[%s14330_s13 + $0x1e74] sm:$0xf0]  ;;  %7960 = vmatpush.bf16.msrb.mxu0 %v12484_v7  ;;  %v12596_v33 = vor.u32 %v13902_v45, %v12595_v18 }
 0x326   : > { %v12851_v11 = vld [vmem:[%s14330_s13 + $0x1f68] sm:$0xf]  ;;  %v13966_v29 = vld [vmem:[%s14330_s13 + $0x1f74] sm:$0xf0]  ;;  %7988 = vmatpush.bf16.msrb.mxu2 %v12740_v3  ;;  %v12724_v61 = vor.u32 %v13934_v48, %v12723_v52 }
 0x327   : > { %7974 = vmatpush.bf16.msrb.mxu1 %v12612_v34  ;;  %v12451_v57 = vld [vmem:[%s14330_s13 + $0x1c48] sm:$0xf]  ;;  %v13866_v23 = vld [vmem:[%s14330_s13 + $0x1c54] sm:$0xf0]  ;;  %v12852_v2 = vor.u32 %v13966_v29, %v12851_v11 }
 0x328   : > { %v12579_v4 = vld [vmem:[%s14330_s13 + $0x1d48] sm:$0xf]  ;;  %8002 = vmatpush.bf16.msrb.mxu3 %v12868_v22  ;;  %v13898_v46 = vld [vmem:[%s14330_s13 + $0x1d54] sm:$0xf0]  ;;  %v12452_v28 = vor.u32 %v13866_v23, %v12451_v57 }
 0x329   : > { %v12707_v62 = vld [vmem:[%s14330_s13 + $0x1e48] sm:$0xf]  ;;  %v13930_v60 = vld [vmem:[%s14330_s13 + $0x1e54] sm:$0xf0]  ;;  %7961 = vmatpush.bf16.msrb.mxu0 %v12468_v1  ;;  %v12580_v14 = vor.u32 %v13898_v46, %v12579_v4  ;;  %v12988_v46 = vld [vmem:[%s14330_s13 + $0xec] sm:$0xf] }
 0x32a   : > { %v12835_v54 = vld [vmem:[%s14330_s13 + $0x1f48] sm:$0xf]  ;;  %v13962_v15 = vld [vmem:[%s14330_s13 + $0x1f54] sm:$0xf0]  ;;  %7989 = vmatpush.bf16.msrb.mxu2 %v12724_v61  ;;  %v12708_v7 = vor.u32 %v13930_v60, %v12707_v62  ;;  %v8949_v62 = vld [vmem:[%s14330_s13 + $0xf8] sm:$0xf0] }
 0x32b   : > { %7975 = vmatpush.bf16.msrb.mxu1 %v12596_v33  ;;  %v12435_v26 = vld [vmem:[%s14330_s13 + $0x1c28] sm:$0xf]  ;;  %v13862_v34 = vld [vmem:[%s14330_s13 + $0x1c34] sm:$0xf0]  ;;  %v12836_v24 = vor.u32 %v13962_v15, %v12835_v54  ;;  %v13020_v60 = vld [vmem:[%s14330_s13 + $0x1ec] sm:$0xf] }
 0x32c   : > { %v12563_v3 = vld [vmem:[%s14330_s13 + $0x1d28] sm:$0xf]  ;;  %8003 = vmatpush.bf16.msrb.mxu3 %v12852_v2  ;;  %v13894_v49 = vld [vmem:[%s14330_s13 + $0x1d34] sm:$0xf0]  ;;  %v12436_v52 = vor.u32 %v13862_v34, %v12435_v26  ;;  %v13052_v54 = vld [vmem:[%s14330_s13 + $0x2ec] sm:$0xf] }
 0x32d   : > { %v12691_v18 = vld [vmem:[%s14330_s13 + $0x1e28] sm:$0xf]  ;;  %v13926_v22 = vld [vmem:[%s14330_s13 + $0x1e34] sm:$0xf0]  ;;  %7962 = vmatpush.bf16.msrb.mxu0 %v12452_v28  ;;  %v12564_v29 = vor.u32 %v13894_v49, %v12563_v3  ;;  %v9205_v15 = vld [vmem:[%s14330_s13 + $0x2f8] sm:$0xf0]  ;;  %v8952_v3 = vor.u32 %v12988_v46, %v8949_v62 }
 0x32e   : > { %v12819_v25 = vld [vmem:[%s14330_s13 + $0x1f28] sm:$0xf]  ;;  %v13958_v45 = vld [vmem:[%s14330_s13 + $0x1f34] sm:$0xf0]  ;;  %7990 = vmatpush.bf16.msrb.mxu2 %v12708_v7  ;;  %v12692_v1 = vor.u32 %v13926_v22, %v12691_v18  ;;  %v13084_v7 = vld [vmem:[%s14330_s13 + $0x3ec] sm:$0xf]  ;;  %v9208_v49 = vor.u32 %v13052_v54, %v9205_v15 }
 0x32f   : > { %v12419_v48 = vld [vmem:[%s14330_s13 + $0x1c08] sm:$0xf]  ;;  %v13858_v11 = vld [vmem:[%s14330_s13 + $0x1c14] sm:$0xf0]  ;;  %7976 = vmatpush.bf16.msrb.mxu1 %v12580_v14  ;;  %v12820_v23 = vor.u32 %v13958_v45, %v12819_v25  ;;  %v9333_v26 = vld [vmem:[%s14330_s13 + $0x3f8] sm:$0xf0] }
 0x330   : > { %v12547_v33 = vld [vmem:[%s14330_s13 + $0x1d08] sm:$0xf]  ;;  %v13890_v61 = vld [vmem:[%s14330_s13 + $0x1d14] sm:$0xf0]  ;;  %8004 = vmatpush.bf16.msrb.mxu3 %v12836_v24  ;;  %v12420_v10 = vor.u32 %v13858_v11, %v12419_v48  ;;  %v9080_v24 = vor.u32 %v13020_v60, %v9077_v42  ;;  %v12984_v18 = vld [vmem:[%s14330_s13 + $0xcc] sm:$0xf]  ;;  %v9336_v45 = vor.u32 %v13084_v7, %v9333_v26 }
 0x331   : > { %v12675_v57 = vld [vmem:[%s14330_s13 + $0x1e08] sm:$0xf]  ;;  %v13922_v4 = vld [vmem:[%s14330_s13 + $0x1e14] sm:$0xf0]  ;;  %7963 = vmatpush.bf16.msrb.mxu0 %v12436_v52  ;;  %v12548_v28 = vor.u32 %v13890_v61, %v12547_v33  ;;  %v8933_v22 = vld [vmem:[%s14330_s13 + $0xd8] sm:$0xf0]  ;;  %v7591_v61 = vadd.f32 %v16424_v16, %v16414_v58 }
 0x332   : > { %v12803_v2 = vld [vmem:[%s14330_s13 + $0x1f08] sm:$0xf]  ;;  %v13954_v59 = vld [vmem:[%s14330_s13 + $0x1f14] sm:$0xf0]  ;;  %7991 = vmatpush.bf16.msrb.mxu2 %v12692_v1  ;;  %v12676_v14 = vor.u32 %v13922_v4, %v12675_v57  ;;  %v13016_v25 = vld [vmem:[%s14330_s13 + $0x1cc] sm:$0xf]  ;;  %v16584_v57 = vpop.f32.mrf.mxu1 }
 0x333   : > { %7977 = vmatpush.bf16.msrb.mxu1 %v12564_v29  ;;  %v12804_v34 = vor.u32 %v13954_v59, %v12803_v2  ;;  %v9061_v52 = vld [vmem:[%s14330_s13 + $0x1d8] sm:$0xf0]  ;;  %v13048_v48 = vld [vmem:[%s14330_s13 + $0x2cc] sm:$0xf]  ;;  %v16578_v29 = vpop.f32.mrf.mxu0  ;;  %v17331_v60 = vld [vmem:[#allocation34_spill] sm:$0xff]  ;;  %v7605_v7 = vadd.f32 %v16438_v9, %v7591_v61 }
 0x334   : > { %8005 = vmatpush.bf16.msrb.mxu3 %v12820_v23  ;;  %v9189_v11 = vld [vmem:[%s14330_s13 + $0x2d8] sm:$0xf0]  ;;  %v13080_v1 = vld [vmem:[%s14330_s13 + $0x3cc] sm:$0xf]  ;;  %v8936_v23 = vor.u32 %v12984_v18, %v8933_v22  ;;  %v9064_v4 = vor.u32 %v13016_v25, %v9061_v52  ;;  %v17332_v54 = vld [vmem:[#allocation36_spill] sm:$0xff]  ;;  %v16602_v25 = vpop.f32.mrf.mxu2 }
 0x335   : > { %7964 = vmatpush.bf16.msrb.mxu0 %v12420_v10  ;;  %v9317_v33 = vld [vmem:[%s14330_s13 + $0x3d8] sm:$0xf0]  ;;  %v9192_v2 = vor.u32 %v13048_v48, %v9189_v11  ;;  %v12980_v59 = vld [vmem:[%s14330_s13 + $0xac] sm:$0xf]  ;;  %v16607_v11 = vpop.f32.mrf.mxu3 }
 0x336   : > { %7992 = vmatpush.bf16.msrb.mxu2 %v12676_v14  ;;  %v8917_v46 = vld [vmem:[%s14330_s13 + $0xb8] sm:$0xf0]  ;;  %v13012_v62 = vld [vmem:[%s14330_s13 + $0x1ac] sm:$0xf]  ;;  %v9320_v58 = vor.u32 %v13080_v1, %v9317_v33 }
 0x337   : > { %7978 = vmatpush.bf16.msrb.mxu1 %v12548_v28  ;;  %v9045_v16 = vld [vmem:[%s14330_s13 + $0x1b8] sm:$0xf0]  ;;  %v13044_v10 = vld [vmem:[%s14330_s13 + $0x2ac] sm:$0xf] }
 0x338   : > { %8006 = vmatpush.bf16.msrb.mxu3 %v12804_v34  ;;  %7965 = vmatmul.bf16.vlgmr.msrb.gmra.mxu0 %v17331_v60  ;;  %v9173_v42 = vld [vmem:[%s14330_s13 + $0x2b8] sm:$0xf0]  ;;  %v13076_v28 = vld [vmem:[%s14330_s13 + $0x3ac] sm:$0xf]  ;;  %v8920_v34 = vor.u32 %v12980_v59, %v8917_v46 }
 0x339   : > { %8013 = vmatpush.bf16.msra.mxu0 %v8952_v3  ;;  %7993 = vmatmul.bf16.vlgmr.msrb.gmra.mxu2 %v17332_v54  ;;  %v17333_v15 = vld [vmem:[#allocation37_spill] sm:$0xff]  ;;  %v17334_v26 = vld [vmem:[#allocation39_spill] sm:$0xff]  ;;  %v9048_v3 = vor.u32 %v13012_v62, %v9045_v16 }
 0x33a   : > { %8041 = vmatpush.bf16.msra.mxu2 %v9208_v49  ;;  %7979 = vmatmul.bf16.vlgmr.msrb.gmra.mxu1 %v17333_v15  ;;  %v9301_v14 = vld [vmem:[%s14330_s13 + $0x3b8] sm:$0xf0]  ;;  %v12976_v49 = vld [vmem:[%s14330_s13 + $0x8c] sm:$0xf]  ;;  %v7756_v59 = vpop.f32.mrf.mxu1 }
 0x33b   : > { %8027 = vmatpush.bf16.msra.mxu1 %v9080_v24  ;;  %8007 = vmatmul.bf16.vlgmr.msrb.gmra.mxu3 %v17334_v26  ;;  %v9176_v24 = vor.u32 %v13044_v10, %v9173_v42  ;;  %v8901_v18 = vld [vmem:[%s14330_s13 + $0x98] sm:$0xf0]  ;;  %v13008_v22 = vld [vmem:[%s14330_s13 + $0x18c] sm:$0xf]  ;;  %v7742_v1 = vpop.f32.mrf.mxu0 }
 0x33c   : > { %8055 = vmatpush.bf16.msra.mxu3 %v9336_v45  ;;  %v9304_v45 = vor.u32 %v13076_v28, %v9301_v14  ;;  %v9029_v52 = vld [vmem:[%s14330_s13 + $0x198] sm:$0xf0]  ;;  %v13040_v9 = vld [vmem:[%s14330_s13 + $0x28c] sm:$0xf] }
 0x33d   : > { %8014 = vmatpush.bf16.msra.mxu0 %v8936_v23  ;;  %v9157_v48 = vld [vmem:[%s14330_s13 + $0x298] sm:$0xf0]  ;;  %v13072_v33 = vld [vmem:[%s14330_s13 + $0x38c] sm:$0xf]  ;;  %v7619_v23 = vadd.f32 %v16443_v20, %v7605_v7  ;;  %v9032_v46 = vor.u32 %v13008_v22, %v9029_v52 }
 0x33e   : > { %8042 = vmatpush.bf16.msra.mxu2 %v9192_v2  ;;  %v9285_v61 = vld [vmem:[%s14330_s13 + $0x398] sm:$0xf0]  ;;  %v8904_v2 = vor.u32 %v12976_v49, %v8901_v18  ;;  %v9160_v62 = vor.u32 %v13040_v9, %v9157_v48  ;;  %v13004_v10 = vld [vmem:[%s14330_s13 + $0x16c] sm:$0xf]  ;;  %v7770_v48 = vpop.f32.mrf.mxu2 }
 0x33f   : > { %8028 = vmatpush.bf16.msra.mxu1 %v9064_v4  ;;  %v7743_v4 = vadd.f32 %v7742_v1, %v16546_v0  ;;  %v8885_v16 = vld [vmem:[%s14330_s13 + $0x78] sm:$0xf0]  ;;  %v7633_v20 = vadd.f32 %v16499_v27, %v7619_v23  ;;  %v9288_v42 = vor.u32 %v13072_v33, %v9285_v61  ;;  %v13036_v14 = vld [vmem:[%s14330_s13 + $0x26c] sm:$0xf] }
 0x340   : > { %8056 = vmatpush.bf16.msra.mxu3 %v9320_v58  ;;  %v12972_v58 = vld [vmem:[%s14330_s13 + $0x6c] sm:$0xf]  ;;  %v9013_v28 = vld [vmem:[%s14330_s13 + $0x178] sm:$0xf0] }
 0x341   : > { %8015 = vmatpush.bf16.msra.mxu0 %v8920_v34  ;;  %v7757_v0 = vadd.f32 %v7756_v59, %v7743_v4  ;;  %v9141_v7 = vld [vmem:[%s14330_s13 + $0x278] sm:$0xf0]  ;;  %v13068_v34 = vld [vmem:[%s14330_s13 + $0x36c] sm:$0xf]  ;;  %v9016_v27 = vor.u32 %v13004_v10, %v9013_v28  ;;  %v7647_v52 = vadd.f32 %v16503_v12, %v7633_v20  ;;  %v7784_v4 = vpop.f32.mrf.mxu3 }
 0x342   : > { %8043 = vmatpush.bf16.msra.mxu2 %v9176_v24  ;;  %v8888_v24 = vor.u32 %v12972_v58, %v8885_v16  ;;  %v9144_v49 = vor.u32 %v13036_v14, %v9141_v7  ;;  %v12968_v18 = vld [vmem:[%s14330_s13 + $0x4c] sm:$0xf]  ;;  %v8869_v22 = vld [vmem:[%s14330_s13 + $0x58] sm:$0xf0] }
 0x343   : > { %8029 = vmatpush.bf16.msra.mxu1 %v9048_v3  ;;  %v9269_v3 = vld [vmem:[%s14330_s13 + $0x378] sm:$0xf0]  ;;  %v13032_v33 = vld [vmem:[%s14330_s13 + $0x24c] sm:$0xf]  ;;  %v7771_v23 = vadd.f32 %v7770_v48, %v7757_v0  ;;  %v8872_v12 = vor.u32 %v12968_v18, %v8869_v22 }
 0x344   : > { %8057 = vmatpush.bf16.msra.mxu3 %v9304_v45  ;;  %v13000_v45 = vld [vmem:[%s14330_s13 + $0x14c] sm:$0xf]  ;;  %v9272_v9 = vor.u32 %v13068_v34, %v9269_v3  ;;  %v8997_v1 = vld [vmem:[%s14330_s13 + $0x158] sm:$0xf0] }
 0x345   : > { %8016 = vmatpush.bf16.msra.mxu0 %v8904_v2  ;;  %v9125_v61 = vld [vmem:[%s14330_s13 + $0x258] sm:$0xf0]  ;;  %v13064_v2 = vld [vmem:[%s14330_s13 + $0x34c] sm:$0xf]  ;;  %v9000_v58 = vor.u32 %v13000_v45, %v8997_v1 }
 0x346   : > { %8044 = vmatpush.bf16.msra.mxu2 %v9160_v62  ;;  %v9253_v59 = vld [vmem:[%s14330_s13 + $0x358] sm:$0xf0]  ;;  %v16632_v62 = vadd.f32 %v7784_v4, %v7771_v23  ;;  %v9128_v16 = vor.u32 %v13032_v33, %v9125_v61  ;;  %v12964_v10 = vld [vmem:[%s14330_s13 + $0x2c] sm:$0xf] }
 0x347   : > { %8030 = vmatpush.bf16.msra.mxu1 %v9032_v46  ;;  %v7661_v46 = vadd.f32 %v16520_v56, %v7647_v52  ;;  %v8853_v20 = vld [vmem:[%s14330_s13 + $0x38] sm:$0xf0]  ;;  %v9256_v0 = vor.u32 %v13064_v2, %v9253_v59  ;;  %v13028_v28 = vld [vmem:[%s14330_s13 + $0x22c] sm:$0xf] }
 0x348   : > { %8058 = vmatpush.bf16.msra.mxu3 %v9288_v42  ;;  %v12996_v42 = vld [vmem:[%s14330_s13 + $0x12c] sm:$0xf]  ;;  %v8981_v56 = vld [vmem:[%s14330_s13 + $0x138] sm:$0xf0] }
 0x349   : > { %8017 = vmatpush.bf16.msra.mxu0 %v8888_v24  ;;  %v9109_v14 = vld [vmem:[%s14330_s13 + $0x238] sm:$0xf0]  ;;  %v13060_v7 = vld [vmem:[%s14330_s13 + $0x32c] sm:$0xf]  ;;  %v7675_v3 = vadd.f32 %v16525_v37, %v7661_v46  ;;  %v8856_v24 = vor.u32 %v12964_v10, %v8853_v20  ;;  %v8984_v18 = vor.u32 %v12996_v42, %v8981_v56 }
 0x34a   : > { %8045 = vmatpush.bf16.msra.mxu2 %v9144_v49  ;;  %v9237_v34 = vld [vmem:[%s14330_s13 + $0x338] sm:$0xf0]  ;;  %v9112_v22 = vor.u32 %v13028_v28, %v9109_v14  ;;  %v12992_v45 = vld [vmem:[%s14330_s13 + $0x10c] sm:$0xf] }
 0x34b   : > { %8031 = vmatpush.bf16.msra.mxu1 %v9016_v27  ;;  %v12960_v27 = vld [vmem:[%s14330_s13 + $0xc] sm:$0xf]  ;;  %v8837_v49 = vld [vmem:[%s14330_s13 + $0x18] sm:$0xf0]  ;;  %v7689_v37 = vadd.f32 %v16578_v29, %v7675_v3  ;;  %v9240_v48 = vor.u32 %v13060_v7, %v9237_v34 }
 0x34c   : > { %8059 = vmatpush.bf16.msra.mxu3 %v9272_v9  ;;  %v8965_v52 = vld [vmem:[%s14330_s13 + $0x118] sm:$0xf0]  ;;  %v13024_v9 = vld [vmem:[%s14330_s13 + $0x20c] sm:$0xf]  ;;  %v8840_v59 = vor.u32 %v12960_v27, %v8837_v49 }
 0x34d   : > { %8018 = vmatpush.bf16.msra.mxu0 %v8872_v12  ;;  %v9093_v1 = vld [vmem:[%s14330_s13 + $0x218] sm:$0xf0]  ;;  %v13056_v33 = vld [vmem:[%s14330_s13 + $0x30c] sm:$0xf]  ;;  %v8968_v29 = vor.u32 %v12992_v45, %v8965_v52  ;;  %v7703_v42 = vadd.f32 %v16584_v57, %v7689_v37  ;;  %v7744_v57 = vpop.f32.mrf.mxu0 }
 0x34e   : > { %8046 = vmatpush.bf16.msra.mxu2 %v9128_v16  ;;  %v9221_v61 = vld [vmem:[%s14330_s13 + $0x318] sm:$0xf0]  ;;  %v13116_v23 = vld [vmem:[%s14330_s13 + $0x4ec] sm:$0xf]  ;;  %v9096_v16 = vor.u32 %v13024_v9, %v9093_v1  ;;  %v7758_v9 = vpop.f32.mrf.mxu1 }
 0x34f   : > { %8032 = vmatpush.bf16.msra.mxu1 %v9000_v58  ;;  %v9461_v4 = vld [vmem:[%s14330_s13 + $0x4f8] sm:$0xf0]  ;;  %v13148_v2 = vld [vmem:[%s14330_s13 + $0x5ec] sm:$0xf] }
 0x350   : > { %8060 = vmatpush.bf16.msra.mxu3 %v9256_v0  ;;  %v9589_v46 = vld [vmem:[%s14330_s13 + $0x5f8] sm:$0xf0]  ;;  %v13180_v12 = vld [vmem:[%s14330_s13 + $0x6ec] sm:$0xf]  ;;  %v9224_v0 = vor.u32 %v13056_v33, %v9221_v61  ;;  %v9464_v56 = vor.u32 %v13116_v23, %v9461_v4 }
 0x351   : > { %8019 = vmatpush.bf16.msra.mxu0 %v8856_v24  ;;  %v9717_v58 = vld [vmem:[%s14330_s13 + $0x6f8] sm:$0xf0]  ;;  %v13212_v10 = vld [vmem:[%s14330_s13 + $0x7ec] sm:$0xf]  ;;  %v9592_v28 = vor.u32 %v13148_v2, %v9589_v46  ;;  %v7717_v24 = vadd.f32 %v16602_v25, %v7703_v42 }
 0x352   : > { %8047 = vmatpush.bf16.msra.mxu2 %v9112_v22  ;;  %v9845_v20 = vld [vmem:[%s14330_s13 + $0x7f8] sm:$0xf0]  ;;  %v9720_v14 = vor.u32 %v13180_v12, %v9717_v58  ;;  %v13112_v7 = vld [vmem:[%s14330_s13 + $0x4cc] sm:$0xf]  ;;  %v17335_v12 = vld [vmem:[#allocation12_spill] sm:$0xff] }
 0x353   : > { %8033 = vmatpush.bf16.msra.mxu1 %v8984_v18  ;;  %v9445_v34 = vld [vmem:[%s14330_s13 + $0x4d8] sm:$0xf0]  ;;  %v13144_v3 = vld [vmem:[%s14330_s13 + $0x5cc] sm:$0xf]  ;;  %v9848_v27 = vor.u32 %v13212_v10, %v9845_v20  ;;  %v7731_v23 = vadd.f32 %v16607_v11, %v7717_v24  ;;  %v17337_v10 = vld [vmem:[#allocation14_spill] sm:$0xff] }
 0x354   : > { %8061 = vmatpush.bf16.msra.mxu3 %v9240_v48  ;;  %v9573_v49 = vld [vmem:[%s14330_s13 + $0x5d8] sm:$0xf0]  ;;  %v13176_v18 = vld [vmem:[%s14330_s13 + $0x6cc] sm:$0xf]  ;;  %v9448_v25 = vor.u32 %v13112_v7, %v9445_v34  ;;  %v7772_v34 = vpop.f32.mrf.mxu2 }
 0x355   : > { %8020 = vmatpush.bf16.msra.mxu0 %v8840_v59  ;;  %v9701_v22 = vld [vmem:[%s14330_s13 + $0x6d8] sm:$0xf0]  ;;  %v13208_v45 = vld [vmem:[%s14330_s13 + $0x7cc] sm:$0xf]  ;;  %v9576_v37 = vor.u32 %v13144_v3, %v9573_v49  ;;  %v7745_v20 = vadd.f32 %v7744_v57, %v7731_v23 }
 0x356   : > { %8048 = vmatpush.bf16.msra.mxu2 %v9096_v16  ;;  %v9829_v52 = vld [vmem:[%s14330_s13 + $0x7d8] sm:$0xf0]  ;;  %v9704_v48 = vor.u32 %v13176_v18, %v9701_v22  ;;  %v13108_v1 = vld [vmem:[%s14330_s13 + $0x4ac] sm:$0xf]  ;;  %v7786_v18 = vpop.f32.mrf.mxu3 }
 0x357   : > { %8034 = vmatpush.bf16.msra.mxu1 %v8968_v29  ;;  %v9429_v33 = vld [vmem:[%s14330_s13 + $0x4b8] sm:$0xf0]  ;;  %v13140_v61 = vld [vmem:[%s14330_s13 + $0x5ac] sm:$0xf]  ;;  %v9832_v4 = vor.u32 %v13208_v45, %v9829_v52  ;;  %v7798_v22 = vpop.f32.mrf.mxu0  ;;  %v7759_v52 = vadd.f32 %v7758_v9, %v7745_v20 }
 0x358   : > { %8062 = vmatpush.bf16.msra.mxu3 %v9224_v0  ;;  %v9557_v2 = vld [vmem:[%s14330_s13 + $0x5b8] sm:$0xf0]  ;;  %v13172_v59 = vld [vmem:[%s14330_s13 + $0x6ac] sm:$0xf]  ;;  %8021 = vmatmul.bf16.vlgmr.msra.gmra.mxu0 %v17335_v12  ;;  %v9432_v11 = vor.u32 %v13108_v1, %v9429_v33 }
 0x359   : > { %8069 = vmatpush.bf16.msrb.mxu0 %v9464_v56  ;;  %v9685_v46 = vld [vmem:[%s14330_s13 + $0x6b8] sm:$0xf0]  ;;  %v13204_v58 = vld [vmem:[%s14330_s13 + $0x7ac] sm:$0xf]  ;;  %v9560_v0 = vor.u32 %v13140_v61, %v9557_v2  ;;  %v7773_v2 = vadd.f32 %v7772_v34, %v7759_v52 }
 0x35a   : > { %8097 = vmatpush.bf16.msrb.mxu2 %v9720_v14  ;;  %v9813_v29 = vld [vmem:[%s14330_s13 + $0x7b8] sm:$0xf0]  ;;  %8035 = vmatmul.bf16.vlgmr.msra.gmra.mxu1 %v17337_v10  ;;  %v17338_v42 = vld [vmem:[#allocation15_spill] sm:$0xff]  ;;  %v9688_v56 = vor.u32 %v13172_v59, %v9685_v46 }
 0x35b   : > { %8083 = vmatpush.bf16.msrb.mxu1 %v9592_v28  ;;  %v17336_v16 = vld [vmem:[#allocation13_spill] sm:$0xff]  ;;  %8063 = vmatmul.bf16.vlgmr.msra.gmra.mxu3 %v17338_v42  ;;  %v13104_v28 = vld [vmem:[%s14330_s13 + $0x48c] sm:$0xf]  ;;  %v9816_v3 = vor.u32 %v13204_v58, %v9813_v29 }
 0x35c   : > { %8111 = vmatpush.bf16.msrb.mxu3 %v9848_v27  ;;  %8049 = vmatmul.bf16.vlgmr.msra.gmra.mxu2 %v17336_v16  ;;  %v9413_v14 = vld [vmem:[%s14330_s13 + $0x498] sm:$0xf0]  ;;  %v13136_v7 = vld [vmem:[%s14330_s13 + $0x58c] sm:$0xf] }
 0x35d   : > { %8070 = vmatpush.bf16.msrb.mxu0 %v9448_v25  ;;  %v9541_v24 = vld [vmem:[%s14330_s13 + $0x598] sm:$0xf0]  ;;  %v13168_v27 = vld [vmem:[%s14330_s13 + $0x68c] sm:$0xf]  ;;  %v7799_v25 = vadd.f32 %v7798_v22, %v16632_v62 }
 0x35e   : > { %8098 = vmatpush.bf16.msrb.mxu2 %v9704_v48  ;;  %v9669_v49 = vld [vmem:[%s14330_s13 + $0x698] sm:$0xf0]  ;;  %v13200_v57 = vld [vmem:[%s14330_s13 + $0x78c] sm:$0xf]  ;;  %v7812_v48 = vpop.f32.mrf.mxu1  ;;  %v9544_v1 = vor.u32 %v13136_v7, %v9541_v24 }
 0x35f   : > { %8084 = vmatpush.bf16.msrb.mxu1 %v9576_v37  ;;  %v9797_v45 = vld [vmem:[%s14330_s13 + $0x798] sm:$0xf0]  ;;  %v9416_v37 = vor.u32 %v13104_v28, %v9413_v14  ;;  %v9672_v33 = vor.u32 %v13168_v27, %v9669_v49  ;;  %v13100_v61 = vld [vmem:[%s14330_s13 + $0x46c] sm:$0xf]  ;;  %v7813_v59 = vadd.f32 %v7812_v48, %v7799_v25  ;;  %v7826_v14 = vpop.f32.mrf.mxu2  ;;  %v7800_v27 = vpop.f32.mrf.mxu0 }
 0x360   : > { %8112 = vmatpush.bf16.msrb.mxu3 %v9832_v4  ;;  %v9397_v23 = vld [vmem:[%s14330_s13 + $0x478] sm:$0xf0]  ;;  %v13132_v4 = vld [vmem:[%s14330_s13 + $0x56c] sm:$0xf]  ;;  %v9800_v9 = vor.u32 %v13200_v57, %v9797_v45  ;;  %v7840_v49 = vpop.f32.mrf.mxu3 }
 0x361   : > { %8071 = vmatpush.bf16.msrb.mxu0 %v9432_v11  ;;  %v9525_v62 = vld [vmem:[%s14330_s13 + $0x578] sm:$0xf0]  ;;  %v13164_v46 = vld [vmem:[%s14330_s13 + $0x66c] sm:$0xf]  ;;  %v9400_v16 = vor.u32 %v13100_v61, %v9397_v23  ;;  %v7827_v24 = vadd.f32 %v7826_v14, %v7813_v59 }
 0x362   : > { %8099 = vmatpush.bf16.msrb.mxu2 %v9688_v56  ;;  %v9653_v12 = vld [vmem:[%s14330_s13 + $0x678] sm:$0xf0]  ;;  %v13196_v58 = vld [vmem:[%s14330_s13 + $0x76c] sm:$0xf]  ;;  %v9528_v10 = vor.u32 %v13132_v4, %v9525_v62  ;;  %v7787_v56 = vadd.f32 %v7786_v18, %v7773_v2 }
 0x363   : > { %8085 = vmatpush.bf16.msrb.mxu1 %v9560_v0  ;;  %v9781_v29 = vld [vmem:[%s14330_s13 + $0x778] sm:$0xf0]  ;;  %v9656_v20 = vor.u32 %v13164_v46, %v9653_v12  ;;  %v13096_v11 = vld [vmem:[%s14330_s13 + $0x44c] sm:$0xf]  ;;  %v16708_v25 = vadd.f32 %v7840_v49, %v7827_v24 }
 0x364   : > { %8113 = vmatpush.bf16.msrb.mxu3 %v9816_v3  ;;  %v9381_v42 = vld [vmem:[%s14330_s13 + $0x458] sm:$0xf0]  ;;  %v13128_v0 = vld [vmem:[%s14330_s13 + $0x54c] sm:$0xf]  ;;  %v9784_v28 = vor.u32 %v13196_v58, %v9781_v29  ;;  %v7801_v45 = vadd.f32 %v7800_v27, %v7787_v56 }
 0x365   : > { %8072 = vmatpush.bf16.msrb.mxu0 %v9416_v37  ;;  %v9509_v7 = vld [vmem:[%s14330_s13 + $0x558] sm:$0xf0]  ;;  %v13160_v34 = vld [vmem:[%s14330_s13 + $0x64c] sm:$0xf]  ;;  %v9384_v18 = vor.u32 %v13096_v11, %v9381_v42 }
 0x366   : > { %8100 = vmatpush.bf16.msrb.mxu2 %v9672_v33  ;;  %v9637_v3 = vld [vmem:[%s14330_s13 + $0x658] sm:$0xf0]  ;;  %v13192_v22 = vld [vmem:[%s14330_s13 + $0x74c] sm:$0xf]  ;;  %v7814_v52 = vpop.f32.mrf.mxu1  ;;  %v9512_v37 = vor.u32 %v13128_v0, %v9509_v7 }
 0x367   : > { %8086 = vmatpush.bf16.msrb.mxu1 %v9544_v1  ;;  %v9765_v57 = vld [vmem:[%s14330_s13 + $0x758] sm:$0xf0]  ;;  %v9640_v48 = vor.u32 %v13160_v34, %v9637_v3  ;;  %v13092_v1 = vld [vmem:[%s14330_s13 + $0x42c] sm:$0xf]  ;;  %v7815_v4 = vadd.f32 %v7814_v52, %v7801_v45  ;;  %v7828_v56 = vpop.f32.mrf.mxu2 }
 0x368   : > { %8114 = vmatpush.bf16.msrb.mxu3 %v9800_v9  ;;  %v9365_v33 = vld [vmem:[%s14330_s13 + $0x438] sm:$0xf0]  ;;  %v13124_v61 = vld [vmem:[%s14330_s13 + $0x52c] sm:$0xf]  ;;  %v9768_v23 = vor.u32 %v13192_v22, %v9765_v57  ;;  %v7842_v3 = vpop.f32.mrf.mxu3 }
 0x369   : > { %8073 = vmatpush.bf16.msrb.mxu0 %v9400_v16  ;;  %v9493_v2 = vld [vmem:[%s14330_s13 + $0x538] sm:$0xf0]  ;;  %v13156_v9 = vld [vmem:[%s14330_s13 + $0x62c] sm:$0xf]  ;;  %v9368_v12 = vor.u32 %v13092_v1, %v9365_v33  ;;  %v7829_v34 = vadd.f32 %v7828_v56, %v7815_v4 }
 0x36a   : > { %8101 = vmatpush.bf16.msrb.mxu2 %v9656_v20  ;;  %v9621_v59 = vld [vmem:[%s14330_s13 + $0x638] sm:$0xf0]  ;;  %v13188_v62 = vld [vmem:[%s14330_s13 + $0x72c] sm:$0xf]  ;;  %v9496_v16 = vor.u32 %v13124_v61, %v9493_v2 }
 0x36b   : > { %8087 = vmatpush.bf16.msrb.mxu1 %v9528_v10  ;;  %v9749_v46 = vld [vmem:[%s14330_s13 + $0x738] sm:$0xf0]  ;;  %v13088_v58 = vld [vmem:[%s14330_s13 + $0x40c] sm:$0xf]  ;;  %v9624_v10 = vor.u32 %v13156_v9, %v9621_v59  ;;  %v16732_v52 = vadd.f32 %v7842_v3, %v7829_v34 }
 0x36c   : > { %8115 = vmatpush.bf16.msrb.mxu3 %v9784_v28  ;;  %v9349_v29 = vld [vmem:[%s14330_s13 + $0x418] sm:$0xf0]  ;;  %v13120_v20 = vld [vmem:[%s14330_s13 + $0x50c] sm:$0xf]  ;;  %v9752_v0 = vor.u32 %v13188_v62, %v9749_v46 }
 0x36d   : > { %8074 = vmatpush.bf16.msrb.mxu0 %v9384_v18  ;;  %v9477_v11 = vld [vmem:[%s14330_s13 + $0x518] sm:$0xf0]  ;;  %v13152_v42 = vld [vmem:[%s14330_s13 + $0x60c] sm:$0xf]  ;;  %v9352_v22 = vor.u32 %v13088_v58, %v9349_v29 }
 0x36e   : > { %8102 = vmatpush.bf16.msrb.mxu2 %v9640_v48  ;;  %v9605_v28 = vld [vmem:[%s14330_s13 + $0x618] sm:$0xf0]  ;;  %v13184_v14 = vld [vmem:[%s14330_s13 + $0x70c] sm:$0xf] }
 0x36f   : > { %8088 = vmatpush.bf16.msrb.mxu1 %v9512_v37  ;;  %v9733_v7 = vld [vmem:[%s14330_s13 + $0x718] sm:$0xf0]  ;;  %v13244_v24 = vld [vmem:[%s14330_s13 + $0x8ec] sm:$0xf]  ;;  %v9480_v37 = vor.u32 %v13120_v20, %v9477_v11  ;;  %v9608_v48 = vor.u32 %v13152_v42, %v9605_v28 }
 0x370   : > { %8116 = vmatpush.bf16.msrb.mxu3 %v9768_v23  ;;  %v9973_v27 = vld [vmem:[%s14330_s13 + $0x8f8] sm:$0xf0]  ;;  %v13276_v49 = vld [vmem:[%s14330_s13 + $0x9ec] sm:$0xf]  ;;  %v9736_v61 = vor.u32 %v13184_v14, %v9733_v7 }
 0x371   : > { %8075 = vmatpush.bf16.msrb.mxu0 %v9368_v12  ;;  %v10101_v57 = vld [vmem:[%s14330_s13 + $0x9f8] sm:$0xf0]  ;;  %v13308_v45 = vld [vmem:[%s14330_s13 + $0xaec] sm:$0xf]  ;;  %v9976_v23 = vor.u32 %v13244_v24, %v9973_v27 }
 0x372   : > { %v10229_v18 = vld [vmem:[%s14330_s13 + $0xaf8] sm:$0xf0]  ;;  %8103 = vmatpush.bf16.msrb.mxu2 %v9624_v10  ;;  %v13340_v1 = vld [vmem:[%s14330_s13 + $0xbec] sm:$0xf]  ;;  %v10104_v4 = vor.u32 %v13276_v49, %v10101_v57 }
 0x373   : > { %8089 = vmatpush.bf16.msrb.mxu1 %v9496_v16  ;;  %v10357_v33 = vld [vmem:[%s14330_s13 + $0xbf8] sm:$0xf0]  ;;  %v10232_v2 = vor.u32 %v13308_v45, %v10229_v18  ;;  %v13240_v9 = vld [vmem:[%s14330_s13 + $0x8cc] sm:$0xf] }
 0x374   : > { %8117 = vmatpush.bf16.msrb.mxu3 %v9752_v0  ;;  %v9957_v59 = vld [vmem:[%s14330_s13 + $0x8d8] sm:$0xf0]  ;;  %v13272_v62 = vld [vmem:[%s14330_s13 + $0x9cc] sm:$0xf]  ;;  %v10360_v46 = vor.u32 %v13340_v1, %v10357_v33 }
 0x375   : > { %8076 = vmatpush.bf16.msrb.mxu0 %v9352_v22  ;;  %v10085_v12 = vld [vmem:[%s14330_s13 + $0x9d8] sm:$0xf0]  ;;  %v13304_v58 = vld [vmem:[%s14330_s13 + $0xacc] sm:$0xf]  ;;  %v9960_v20 = vor.u32 %v13240_v9, %v9957_v59 }
 0x376   : > { %v10213_v29 = vld [vmem:[%s14330_s13 + $0xad8] sm:$0xf0]  ;;  %8104 = vmatpush.bf16.msrb.mxu2 %v9608_v48  ;;  %v13336_v16 = vld [vmem:[%s14330_s13 + $0xbcc] sm:$0xf]  ;;  %v10088_v11 = vor.u32 %v13272_v62, %v10085_v12 }
 0x377   : > { %8090 = vmatpush.bf16.msrb.mxu1 %v9480_v37  ;;  %v10341_v10 = vld [vmem:[%s14330_s13 + $0xbd8] sm:$0xf0]  ;;  %v10216_v42 = vor.u32 %v13304_v58, %v10213_v29  ;;  %v13236_v0 = vld [vmem:[%s14330_s13 + $0x8ac] sm:$0xf] }
 0x378   : > { %8118 = vmatpush.bf16.msrb.mxu3 %v9736_v61  ;;  %v9941_v56 = vld [vmem:[%s14330_s13 + $0x8b8] sm:$0xf0]  ;;  %v13268_v28 = vld [vmem:[%s14330_s13 + $0x9ac] sm:$0xf]  ;;  %8077 = vmatmul.bf16.vlgmr.msrb.gmra.mxu0 %v14545_v39  ;;  %v10344_v14 = vor.u32 %v13336_v16, %v10341_v10 }
 0x379   : > { %8125 = vmatpush.bf16.msra.mxu0 %v9976_v23  ;;  %v10069_v7 = vld [vmem:[%s14330_s13 + $0x9b8] sm:$0xf0]  ;;  %v13300_v34 = vld [vmem:[%s14330_s13 + $0xaac] sm:$0xf]  ;;  %8105 = vmatmul.bf16.vlgmr.msrb.gmra.mxu2 %v14550_v43  ;;  %v9944_v39 = vor.u32 %v13236_v0, %v9941_v56 }
 0x37a   : > { %8153 = vmatpush.bf16.msra.mxu2 %v10232_v2  ;;  %v10197_v3 = vld [vmem:[%s14330_s13 + $0xab8] sm:$0xf0]  ;;  %8091 = vmatmul.bf16.vlgmr.msrb.gmra.mxu1 %v14552_v44  ;;  %v13332_v24 = vld [vmem:[%s14330_s13 + $0xbac] sm:$0xf]  ;;  %v10072_v49 = vor.u32 %v13268_v28, %v10069_v7 }
 0x37b   : > { %8139 = vmatpush.bf16.msra.mxu1 %v10104_v4  ;;  %v10325_v27 = vld [vmem:[%s14330_s13 + $0xbb8] sm:$0xf0]  ;;  %8119 = vmatmul.bf16.vlgmr.msrb.gmra.mxu3 %v14556_v47  ;;  %v10200_v22 = vor.u32 %v13300_v34, %v10197_v3  ;;  %v13232_v57 = vld [vmem:[%s14330_s13 + $0x88c] sm:$0xf]  ;;  %v7854_v47 = vpop.f32.mrf.mxu0  ;;  %v7868_v4 = vpop.f32.mrf.mxu1 }
 0x37c   : > { %8167 = vmatpush.bf16.msra.mxu3 %v10360_v46  ;;  %v9925_v45 = vld [vmem:[%s14330_s13 + $0x898] sm:$0xf0]  ;;  %v13264_v43 = vld [vmem:[%s14330_s13 + $0x98c] sm:$0xf]  ;;  %v10328_v44 = vor.u32 %v13332_v24, %v10325_v27  ;;  %v7855_v61 = vadd.f32 %v7854_v47, %v16708_v25 }
 0x37d   : > { %8126 = vmatpush.bf16.msra.mxu0 %v9960_v20  ;;  %v10053_v18 = vld [vmem:[%s14330_s13 + $0x998] sm:$0xf0]  ;;  %v13296_v37 = vld [vmem:[%s14330_s13 + $0xa8c] sm:$0xf]  ;;  %v9928_v23 = vor.u32 %v13232_v57, %v9925_v45 }
 0x37e   : > { %8154 = vmatpush.bf16.msra.mxu2 %v10216_v42  ;;  %v10181_v48 = vld [vmem:[%s14330_s13 + $0xa98] sm:$0xf0]  ;;  %v13328_v1 = vld [vmem:[%s14330_s13 + $0xb8c] sm:$0xf]  ;;  %v10056_v2 = vor.u32 %v13264_v43, %v10053_v18  ;;  %v7869_v58 = vadd.f32 %v7868_v4, %v7855_v61 }
 0x37f   : > { %8140 = vmatpush.bf16.msra.mxu1 %v10088_v11  ;;  %v10309_v33 = vld [vmem:[%s14330_s13 + $0xb98] sm:$0xf0]  ;;  %v10184_v9 = vor.u32 %v13296_v37, %v10181_v48  ;;  %v13228_v59 = vld [vmem:[%s14330_s13 + $0x86c] sm:$0xf]  ;;  %v7882_v34 = vpop.f32.mrf.mxu2 }
 0x380   : > { %8168 = vmatpush.bf16.msra.mxu3 %v10344_v14  ;;  %v9909_v62 = vld [vmem:[%s14330_s13 + $0x878] sm:$0xf0]  ;;  %v13260_v46 = vld [vmem:[%s14330_s13 + $0x96c] sm:$0xf]  ;;  %v10312_v12 = vor.u32 %v13328_v1, %v10309_v33 }
 0x381   : > { %8127 = vmatpush.bf16.msra.mxu0 %v9944_v39  ;;  %v10037_v29 = vld [vmem:[%s14330_s13 + $0x978] sm:$0xf0]  ;;  %v13292_v16 = vld [vmem:[%s14330_s13 + $0xa6c] sm:$0xf]  ;;  %v9912_v11 = vor.u32 %v13228_v59, %v9909_v62  ;;  %v7883_v39 = vadd.f32 %v7882_v34, %v7869_v58 }
 0x382   : > { %8155 = vmatpush.bf16.msra.mxu2 %v10200_v22  ;;  %v10165_v25 = vld [vmem:[%s14330_s13 + $0xa78] sm:$0xf0]  ;;  %v13324_v10 = vld [vmem:[%s14330_s13 + $0xb6c] sm:$0xf]  ;;  %v10040_v42 = vor.u32 %v13260_v46, %v10037_v29  ;;  %v7896_v22 = vpop.f32.mrf.mxu3 }
 0x383   : > { %8141 = vmatpush.bf16.msra.mxu1 %v10072_v49  ;;  %v10293_v20 = vld [vmem:[%s14330_s13 + $0xb78] sm:$0xf0]  ;;  %v10168_v0 = vor.u32 %v13292_v16, %v10165_v25  ;;  %v13224_v56 = vld [vmem:[%s14330_s13 + $0x84c] sm:$0xf]  ;;  %v7856_v49 = vpop.f32.mrf.mxu0  ;;  %v7870_v18 = vpop.f32.mrf.mxu1  ;;  %v16782_v37 = vadd.f32 %v7896_v22, %v7883_v39 }
 0x384   : > { %8169 = vmatpush.bf16.msra.mxu3 %v10328_v44  ;;  %v9893_v28 = vld [vmem:[%s14330_s13 + $0x858] sm:$0xf0]  ;;  %v13256_v14 = vld [vmem:[%s14330_s13 + $0x94c] sm:$0xf]  ;;  %v10296_v7 = vor.u32 %v13324_v10, %v10293_v20  ;;  %v7857_v43 = vadd.f32 %v7856_v49, %v16732_v52 }
 0x385   : > { %8128 = vmatpush.bf16.msra.mxu0 %v9928_v23  ;;  %v10021_v3 = vld [vmem:[%s14330_s13 + $0x958] sm:$0xf0]  ;;  %v13288_v24 = vld [vmem:[%s14330_s13 + $0xa4c] sm:$0xf]  ;;  %v9896_v44 = vor.u32 %v13224_v56, %v9893_v28 }
 0x386   : > { %8156 = vmatpush.bf16.msra.mxu2 %v10184_v9  ;;  %v10149_v27 = vld [vmem:[%s14330_s13 + $0xa58] sm:$0xf0]  ;;  %v13320_v57 = vld [vmem:[%s14330_s13 + $0xb4c] sm:$0xf]  ;;  %v10024_v48 = vor.u32 %v13256_v14, %v10021_v3  ;;  %v7871_v52 = vadd.f32 %v7870_v18, %v7857_v43 }
 0x387   : > { %8142 = vmatpush.bf16.msra.mxu1 %v10056_v2  ;;  %v10277_v45 = vld [vmem:[%s14330_s13 + $0xb58] sm:$0xf0]  ;;  %v10152_v47 = vor.u32 %v13288_v24, %v10149_v27  ;;  %v13220_v1 = vld [vmem:[%s14330_s13 + $0x82c] sm:$0xf] }
 0x388   : > { %8170 = vmatpush.bf16.msra.mxu3 %v10312_v12  ;;  %v9877_v33 = vld [vmem:[%s14330_s13 + $0x838] sm:$0xf0]  ;;  %v13252_v61 = vld [vmem:[%s14330_s13 + $0x92c] sm:$0xf]  ;;  %v10280_v23 = vor.u32 %v13320_v57, %v10277_v45 }
 0x389   : > { %8129 = vmatpush.bf16.msra.mxu0 %v9912_v11  ;;  %v10005_v4 = vld [vmem:[%s14330_s13 + $0x938] sm:$0xf0]  ;;  %v13284_v2 = vld [vmem:[%s14330_s13 + $0xa2c] sm:$0xf]  ;;  %v9880_v46 = vor.u32 %v13220_v1, %v9877_v33 }
 0x38a   : > { %8157 = vmatpush.bf16.msra.mxu2 %v10168_v0  ;;  %v10133_v9 = vld [vmem:[%s14330_s13 + $0xa38] sm:$0xf0]  ;;  %v13316_v59 = vld [vmem:[%s14330_s13 + $0xb2c] sm:$0xf]  ;;  %v10008_v29 = vor.u32 %v13252_v61, %v10005_v4 }
 0x38b   : > { %8143 = vmatpush.bf16.msra.mxu1 %v10040_v42  ;;  %v10261_v62 = vld [vmem:[%s14330_s13 + $0xb38] sm:$0xf0]  ;;  %v13216_v12 = vld [vmem:[%s14330_s13 + $0x80c] sm:$0xf]  ;;  %v10136_v16 = vor.u32 %v13284_v2, %v10133_v9  ;;  %v7884_v42 = vpop.f32.mrf.mxu2 }
 0x38c   : > { %8171 = vmatpush.bf16.msra.mxu3 %v10296_v7  ;;  %v9861_v58 = vld [vmem:[%s14330_s13 + $0x818] sm:$0xf0]  ;;  %v13248_v25 = vld [vmem:[%s14330_s13 + $0x90c] sm:$0xf]  ;;  %v10264_v11 = vor.u32 %v13316_v59, %v10261_v62  ;;  %v7885_v14 = vadd.f32 %v7884_v42, %v7871_v52  ;;  %v7898_v7 = vpop.f32.mrf.mxu3 }
 0x38d   : > { %8130 = vmatpush.bf16.msra.mxu0 %v9896_v44  ;;  %v9989_v10 = vld [vmem:[%s14330_s13 + $0x918] sm:$0xf0]  ;;  %v13280_v20 = vld [vmem:[%s14330_s13 + $0xa0c] sm:$0xf]  ;;  %v9864_v27 = vor.u32 %v13216_v12, %v9861_v58 }
 0x38e   : > { %8158 = vmatpush.bf16.msra.mxu2 %v10152_v47  ;;  %v10117_v0 = vld [vmem:[%s14330_s13 + $0xa18] sm:$0xf0]  ;;  %v13312_v56 = vld [vmem:[%s14330_s13 + $0xb0c] sm:$0xf]  ;;  %v16806_v57 = vadd.f32 %v7898_v7, %v7885_v14  ;;  %v9992_v45 = vor.u32 %v13248_v25, %v9989_v10 }
 0x38f   : > { %8144 = vmatpush.bf16.msra.mxu1 %v10024_v48  ;;  %v10245_v28 = vld [vmem:[%s14330_s13 + $0xb18] sm:$0xf0]  ;;  %v13372_v34 = vld [vmem:[%s14330_s13 + $0xcec] sm:$0xf]  ;;  %v10120_v43 = vor.u32 %v13280_v20, %v10117_v0 }
 0x390   : > { %8172 = vmatpush.bf16.msra.mxu3 %v10280_v23  ;;  %v10485_v3 = vld [vmem:[%s14330_s13 + $0xcf8] sm:$0xf0]  ;;  %v13404_v24 = vld [vmem:[%s14330_s13 + $0xdec] sm:$0xf]  ;;  %v10248_v48 = vor.u32 %v13312_v56, %v10245_v28 }
 0x391   : > { %8131 = vmatpush.bf16.msra.mxu0 %v9880_v46  ;;  %v10613_v39 = vld [vmem:[%s14330_s13 + $0xdf8] sm:$0xf0]  ;;  %v13436_v49 = vld [vmem:[%s14330_s13 + $0xeec] sm:$0xf]  ;;  %v10488_v47 = vor.u32 %v13372_v34, %v10485_v3 }
 0x392   : > { %v10741_v22 = vld [vmem:[%s14330_s13 + $0xef8] sm:$0xf0]  ;;  %8159 = vmatpush.bf16.msra.mxu2 %v10136_v16  ;;  %v13468_v44 = vld [vmem:[%s14330_s13 + $0xfec] sm:$0xf]  ;;  %v10616_v1 = vor.u32 %v13404_v24, %v10613_v39 }
 0x393   : > { %8145 = vmatpush.bf16.msra.mxu1 %v10008_v29  ;;  %v10869_v18 = vld [vmem:[%s14330_s13 + $0xff8] sm:$0xf0]  ;;  %v10744_v33 = vor.u32 %v13436_v49, %v10741_v22  ;;  %v13368_v61 = vld [vmem:[%s14330_s13 + $0xccc] sm:$0xf] }
 0x394   : > { %8173 = vmatpush.bf16.msra.mxu3 %v10264_v11  ;;  %v10469_v23 = vld [vmem:[%s14330_s13 + $0xcd8] sm:$0xf0]  ;;  %v13400_v52 = vld [vmem:[%s14330_s13 + $0xdcc] sm:$0xf]  ;;  %v10872_v4 = vor.u32 %v13468_v44, %v10869_v18 }
 0x395   : > { %8132 = vmatpush.bf16.msra.mxu0 %v9864_v27  ;;  %v10597_v2 = vld [vmem:[%s14330_s13 + $0xdd8] sm:$0xf0]  ;;  %v13432_v9 = vld [vmem:[%s14330_s13 + $0xecc] sm:$0xf]  ;;  %v10472_v12 = vor.u32 %v13368_v61, %v10469_v23 }
 0x396   : > { %v10725_v59 = vld [vmem:[%s14330_s13 + $0xed8] sm:$0xf0]  ;;  %8160 = vmatpush.bf16.msra.mxu2 %v10120_v43  ;;  %v13464_v62 = vld [vmem:[%s14330_s13 + $0xfcc] sm:$0xf]  ;;  %v10600_v58 = vor.u32 %v13400_v52, %v10597_v2 }
 0x397   : > { %8146 = vmatpush.bf16.msra.mxu1 %v9992_v45  ;;  %v10853_v46 = vld [vmem:[%s14330_s13 + $0xfd8] sm:$0xf0]  ;;  %v10728_v29 = vor.u32 %v13432_v9, %v10725_v59  ;;  %v13364_v16 = vld [vmem:[%s14330_s13 + $0xcac] sm:$0xf] }
 0x398   : > { %8174 = vmatpush.bf16.msra.mxu3 %v10248_v48  ;;  %v10453_v25 = vld [vmem:[%s14330_s13 + $0xcb8] sm:$0xf0]  ;;  %v13396_v10 = vld [vmem:[%s14330_s13 + $0xdac] sm:$0xf]  ;;  %8133 = vmatmul.bf16.vlgmr.msra.gmra.mxu0 %v14645_v31  ;;  %v10856_v20 = vor.u32 %v13464_v62, %v10853_v46 }
 0x399   : > { %8181 = vmatpush.bf16.msrb.mxu0 %v10488_v47  ;;  %v10581_v11 = vld [vmem:[%s14330_s13 + $0xdb8] sm:$0xf0]  ;;  %v13428_v42 = vld [vmem:[%s14330_s13 + $0xeac] sm:$0xf]  ;;  %8161 = vmatmul.bf16.vlgmr.msra.gmra.mxu2 %v14650_v35  ;;  %v10456_v31 = vor.u32 %v13364_v16, %v10453_v25 }
 0x39a   : > { %8209 = vmatpush.bf16.msrb.mxu2 %v10744_v33  ;;  %v10709_v0 = vld [vmem:[%s14330_s13 + $0xeb8] sm:$0xf0]  ;;  %8147 = vmatmul.bf16.vlgmr.msra.gmra.mxu1 %v14652_v36  ;;  %v13460_v56 = vld [vmem:[%s14330_s13 + $0xfac] sm:$0xf]  ;;  %v10584_v14 = vor.u32 %v13396_v10, %v10581_v11 }
 0x39b   : > { %8195 = vmatpush.bf16.msrb.mxu1 %v10616_v1  ;;  %v10837_v28 = vld [vmem:[%s14330_s13 + $0xfb8] sm:$0xf0]  ;;  %8175 = vmatmul.bf16.vlgmr.msra.gmra.mxu3 %v14656_v40  ;;  %v10712_v7 = vor.u32 %v13428_v42, %v10709_v0  ;;  %v13360_v34 = vld [vmem:[%s14330_s13 + $0xc8c] sm:$0xf]  ;;  %v7910_v40 = vpop.f32.mrf.mxu0  ;;  %v7924_v44 = vpop.f32.mrf.mxu1 }
 0x39c   : > { %8223 = vmatpush.bf16.msrb.mxu3 %v10872_v4  ;;  %v10437_v3 = vld [vmem:[%s14330_s13 + $0xc98] sm:$0xf0]  ;;  %v13392_v35 = vld [vmem:[%s14330_s13 + $0xd8c] sm:$0xf]  ;;  %v10840_v36 = vor.u32 %v13460_v56, %v10837_v28  ;;  %v7911_v45 = vadd.f32 %v7910_v40, %v16782_v37  ;;  %v7938_v25 = vpop.f32.mrf.mxu2 }
 0x39d   : > { %8182 = vmatpush.bf16.msrb.mxu0 %v10472_v12  ;;  %v10565_v24 = vld [vmem:[%s14330_s13 + $0xd98] sm:$0xf0]  ;;  %v13424_v27 = vld [vmem:[%s14330_s13 + $0xe8c] sm:$0xf]  ;;  %v10440_v43 = vor.u32 %v13360_v34, %v10437_v3 }
 0x39e   : > { %8210 = vmatpush.bf16.msrb.mxu2 %v10728_v29  ;;  %v10693_v39 = vld [vmem:[%s14330_s13 + $0xe98] sm:$0xf0]  ;;  %v13456_v49 = vld [vmem:[%s14330_s13 + $0xf8c] sm:$0xf]  ;;  %v10568_v18 = vor.u32 %v13392_v35, %v10565_v24  ;;  %v7925_v23 = vadd.f32 %v7924_v44, %v7911_v45 }
 0x39f   : > { %8196 = vmatpush.bf16.msrb.mxu1 %v10600_v58  ;;  %v10821_v22 = vld [vmem:[%s14330_s13 + $0xf98] sm:$0xf0]  ;;  %v10696_v48 = vor.u32 %v13424_v27, %v10693_v39  ;;  %v13356_v47 = vld [vmem:[%s14330_s13 + $0xc6c] sm:$0xf] }
 0x3a0   : > { %8224 = vmatpush.bf16.msrb.mxu3 %v10856_v20  ;;  %v10421_v1 = vld [vmem:[%s14330_s13 + $0xc78] sm:$0xf0]  ;;  %v13388_v33 = vld [vmem:[%s14330_s13 + $0xd6c] sm:$0xf]  ;;  %v10824_v61 = vor.u32 %v13456_v49, %v10821_v22  ;;  %v7939_v42 = vadd.f32 %v7938_v25, %v7925_v23 }
 0x3a1   : > { %8183 = vmatpush.bf16.msrb.mxu0 %v10456_v31  ;;  %v10549_v52 = vld [vmem:[%s14330_s13 + $0xd78] sm:$0xf0]  ;;  %v13420_v4 = vld [vmem:[%s14330_s13 + $0xe6c] sm:$0xf]  ;;  %v10424_v59 = vor.u32 %v13356_v47, %v10421_v1 }
 0x3a2   : > { %8211 = vmatpush.bf16.msrb.mxu2 %v10712_v7  ;;  %v10677_v37 = vld [vmem:[%s14330_s13 + $0xe78] sm:$0xf0]  ;;  %v13452_v2 = vld [vmem:[%s14330_s13 + $0xf6c] sm:$0xf]  ;;  %v10552_v62 = vor.u32 %v13388_v33, %v10549_v52  ;;  %v7952_v56 = vpop.f32.mrf.mxu3 }
 0x3a3   : > { %8197 = vmatpush.bf16.msrb.mxu1 %v10584_v14  ;;  %v10805_v9 = vld [vmem:[%s14330_s13 + $0xf78] sm:$0xf0]  ;;  %v10680_v46 = vor.u32 %v13420_v4, %v10677_v37  ;;  %v13352_v12 = vld [vmem:[%s14330_s13 + $0xc4c] sm:$0xf]  ;;  %v7912_v0 = vpop.f32.mrf.mxu0  ;;  %v7926_v34 = vpop.f32.mrf.mxu1  ;;  %v16856_v3 = vadd.f32 %v7952_v56, %v7939_v42 }
 0x3a4   : > { %8225 = vmatpush.bf16.msrb.mxu3 %v10840_v36  ;;  %v10405_v58 = vld [vmem:[%s14330_s13 + $0xc58] sm:$0xf0]  ;;  %v13384_v29 = vld [vmem:[%s14330_s13 + $0xd4c] sm:$0xf]  ;;  %v10808_v16 = vor.u32 %v13452_v2, %v10805_v9  ;;  %v7913_v14 = vadd.f32 %v7912_v0, %v16806_v57  ;;  %v7940_v37 = vpop.f32.mrf.mxu2 }
 0x3a5   : > { %8184 = vmatpush.bf16.msrb.mxu0 %v10440_v43  ;;  %v10533_v10 = vld [vmem:[%s14330_s13 + $0xd58] sm:$0xf0]  ;;  %v13416_v20 = vld [vmem:[%s14330_s13 + $0xe4c] sm:$0xf]  ;;  %v10408_v7 = vor.u32 %v13352_v12, %v10405_v58 }
 0x3a6   : > { %8212 = vmatpush.bf16.msrb.mxu2 %v10696_v48  ;;  %v10661_v11 = vld [vmem:[%s14330_s13 + $0xe58] sm:$0xf0]  ;;  %v13448_v28 = vld [vmem:[%s14330_s13 + $0xf4c] sm:$0xf]  ;;  %v10536_v35 = vor.u32 %v13384_v29, %v10533_v10  ;;  %v7927_v57 = vadd.f32 %v7926_v34, %v7913_v14 }
 0x3a7   : > { %8198 = vmatpush.bf16.msrb.mxu1 %v10568_v18  ;;  %v10789_v31 = vld [vmem:[%s14330_s13 + $0xf58] sm:$0xf0]  ;;  %v10664_v36 = vor.u32 %v13416_v20, %v10661_v11  ;;  %v13348_v24 = vld [vmem:[%s14330_s13 + $0xc2c] sm:$0xf] }
 0x3a8   : > { %8226 = vmatpush.bf16.msrb.mxu3 %v10824_v61  ;;  %v10389_v27 = vld [vmem:[%s14330_s13 + $0xc38] sm:$0xf0]  ;;  %v13380_v39 = vld [vmem:[%s14330_s13 + $0xd2c] sm:$0xf]  ;;  %v10792_v40 = vor.u32 %v13448_v28, %v10789_v31 }
 0x3a9   : > { %8185 = vmatpush.bf16.msrb.mxu0 %v10424_v59  ;;  %v10517_v49 = vld [vmem:[%s14330_s13 + $0xd38] sm:$0xf0]  ;;  %v13412_v22 = vld [vmem:[%s14330_s13 + $0xe2c] sm:$0xf]  ;;  %v10392_v18 = vor.u32 %v13348_v24, %v10389_v27 }
 0x3aa   : > { %8213 = vmatpush.bf16.msrb.mxu2 %v10680_v46  ;;  %v10645_v45 = vld [vmem:[%s14330_s13 + $0xe38] sm:$0xf0]  ;;  %v13444_v43 = vld [vmem:[%s14330_s13 + $0xf2c] sm:$0xf]  ;;  %v10520_v1 = vor.u32 %v13380_v39, %v10517_v49  ;;  %v7954_v46 = vpop.f32.mrf.mxu3 }
 0x3ab   : > { %8199 = vmatpush.bf16.msrb.mxu1 %v10552_v62  ;;  %v10773_v44 = vld [vmem:[%s14330_s13 + $0xf38] sm:$0xf0]  ;;  %v13344_v48 = vld [vmem:[%s14330_s13 + $0xc0c] sm:$0xf]  ;;  %v10648_v33 = vor.u32 %v13412_v22, %v10645_v45  ;;  %v7941_v62 = vadd.f32 %v7940_v37, %v7927_v57 }
 0x3ac   : > { %8227 = vmatpush.bf16.msrb.mxu3 %v10808_v16  ;;  %v10373_v47 = vld [vmem:[%s14330_s13 + $0xc18] sm:$0xf0]  ;;  %v13376_v61 = vld [vmem:[%s14330_s13 + $0xd0c] sm:$0xf]  ;;  %v10776_v4 = vor.u32 %v13444_v43, %v10773_v44 }
 0x3ad   : > { %8186 = vmatpush.bf16.msrb.mxu0 %v10408_v7  ;;  %v10501_v23 = vld [vmem:[%s14330_s13 + $0xd18] sm:$0xf0]  ;;  %v13408_v52 = vld [vmem:[%s14330_s13 + $0xe0c] sm:$0xf]  ;;  %v10376_v16 = vor.u32 %v13344_v48, %v10373_v47  ;;  %v16880_v11 = vadd.f32 %v7954_v46, %v7941_v62 }
 0x3ae   : > { %8214 = vmatpush.bf16.msrb.mxu2 %v10664_v36  ;;  %v10629_v2 = vld [vmem:[%s14330_s13 + $0xe18] sm:$0xf0]  ;;  %v13440_v9 = vld [vmem:[%s14330_s13 + $0xf0c] sm:$0xf]  ;;  %v10504_v42 = vor.u32 %v13376_v61, %v10501_v23 }
 0x3af   : > { %8200 = vmatpush.bf16.msrb.mxu1 %v10536_v35  ;;  %v10757_v59 = vld [vmem:[%s14330_s13 + $0xf18] sm:$0xf0]  ;;  %v13500_v12 = vld [vmem:[%s14330_s13 + $0x10ec] sm:$0xf]  ;;  %v10632_v0 = vor.u32 %v13408_v52, %v10629_v2 }
 0x3b0   : > { %8228 = vmatpush.bf16.msrb.mxu3 %v10792_v40  ;;  %v10997_v58 = vld [vmem:[%s14330_s13 + $0x10f8] sm:$0xf0]  ;;  %v13532_v29 = vld [vmem:[%s14330_s13 + $0x11ec] sm:$0xf]  ;;  %v10760_v31 = vor.u32 %v13440_v9, %v10757_v59 }
 0x3b1   : > { %8187 = vmatpush.bf16.msrb.mxu0 %v10392_v18  ;;  %v11125_v25 = vld [vmem:[%s14330_s13 + $0x11f8] sm:$0xf0]  ;;  %v13564_v10 = vld [vmem:[%s14330_s13 + $0x12ec] sm:$0xf]  ;;  %v11000_v14 = vor.u32 %v13500_v12, %v10997_v58 }
 0x3b2   : > { %v11253_v20 = vld [vmem:[%s14330_s13 + $0x12f8] sm:$0xf0]  ;;  %8215 = vmatpush.bf16.msrb.mxu2 %v10648_v33  ;;  %v13596_v56 = vld [vmem:[%s14330_s13 + $0x13ec] sm:$0xf]  ;;  %v11128_v7 = vor.u32 %v13532_v29, %v11125_v25 }
 0x3b3   : > { %8201 = vmatpush.bf16.msrb.mxu1 %v10520_v1  ;;  %v11381_v28 = vld [vmem:[%s14330_s13 + $0x13f8] sm:$0xf0]  ;;  %v11256_v34 = vor.u32 %v13564_v10, %v11253_v20  ;;  %v13496_v35 = vld [vmem:[%s14330_s13 + $0x10cc] sm:$0xf] }
 0x3b4   : > { %8229 = vmatpush.bf16.msrb.mxu3 %v10776_v4  ;;  %v10981_v36 = vld [vmem:[%s14330_s13 + $0x10d8] sm:$0xf0]  ;;  %v13528_v24 = vld [vmem:[%s14330_s13 + $0x11cc] sm:$0xf]  ;;  %v11384_v27 = vor.u32 %v13596_v56, %v11381_v28 }
 0x3b5   : > { %8188 = vmatpush.bf16.msrb.mxu0 %v10376_v16  ;;  %v11109_v39 = vld [vmem:[%s14330_s13 + $0x11d8] sm:$0xf0]  ;;  %v13560_v40 = vld [vmem:[%s14330_s13 + $0x12cc] sm:$0xf]  ;;  %v10984_v45 = vor.u32 %v13496_v35, %v10981_v36 }
 0x3b6   : > { %v11237_v57 = vld [vmem:[%s14330_s13 + $0x12d8] sm:$0xf0]  ;;  %8216 = vmatpush.bf16.msrb.mxu2 %v10632_v0  ;;  %v13592_v49 = vld [vmem:[%s14330_s13 + $0x13cc] sm:$0xf]  ;;  %v11112_v43 = vor.u32 %v13528_v24, %v11109_v39 }
 0x3b7   : > { %8202 = vmatpush.bf16.msrb.mxu1 %v10504_v42  ;;  %v11365_v22 = vld [vmem:[%s14330_s13 + $0x13d8] sm:$0xf0]  ;;  %v11240_v44 = vor.u32 %v13560_v40, %v11237_v57  ;;  %v13492_v18 = vld [vmem:[%s14330_s13 + $0x10ac] sm:$0xf]  ;;  %v7980_v10 = vpop.f32.mrf.mxu1 }
 0x3b8   : > { %8230 = vmatpush.bf16.msrb.mxu3 %v10760_v31  ;;  %v10965_v48 = vld [vmem:[%s14330_s13 + $0x10b8] sm:$0xf0]  ;;  %v13524_v47 = vld [vmem:[%s14330_s13 + $0x11ac] sm:$0xf]  ;;  %8189 = vmatmul.bf16.vlgmr.msrb.gmra.mxu0 %v14745_v32  ;;  %v11368_v1 = vor.u32 %v13592_v49, %v11365_v22 }
 0x3b9   : > { %8237 = vmatpush.bf16.msra.mxu0 %v11000_v14  ;;  %v11093_v33 = vld [vmem:[%s14330_s13 + $0x11b8] sm:$0xf0]  ;;  %v13556_v61 = vld [vmem:[%s14330_s13 + $0x12ac] sm:$0xf]  ;;  %8217 = vmatmul.bf16.vlgmr.msrb.gmra.mxu2 %v14750_v38  ;;  %v10968_v32 = vor.u32 %v13492_v18, %v10965_v48 }
 0x3ba   : > { %8265 = vmatpush.bf16.msra.mxu2 %v11256_v34  ;;  %v11221_v23 = vld [vmem:[%s14330_s13 + $0x12b8] sm:$0xf0]  ;;  %8203 = vmatmul.bf16.vlgmr.msrb.gmra.mxu1 %v14752_v41  ;;  %v13588_v52 = vld [vmem:[%s14330_s13 + $0x13ac] sm:$0xf]  ;;  %v11096_v37 = vor.u32 %v13524_v47, %v11093_v33 }
 0x3bb   : > { %8251 = vmatpush.bf16.msra.mxu1 %v11128_v7  ;;  %v11349_v4 = vld [vmem:[%s14330_s13 + $0x13b8] sm:$0xf0]  ;;  %8231 = vmatmul.bf16.vlgmr.msrb.gmra.mxu3 %v17313_v21  ;;  %v11224_v2 = vor.u32 %v13556_v61, %v11221_v23  ;;  %v13488_v9 = vld [vmem:[%s14330_s13 + $0x108c] sm:$0xf]  ;;  %v7966_v21 = vpop.f32.mrf.mxu0 }
 0x3bc   : > { %8279 = vmatpush.bf16.msra.mxu3 %v11384_v27  ;;  %v10949_v59 = vld [vmem:[%s14330_s13 + $0x1098] sm:$0xf0]  ;;  %v13520_v38 = vld [vmem:[%s14330_s13 + $0x118c] sm:$0xf]  ;;  %v11352_v41 = vor.u32 %v13588_v52, %v11349_v4  ;;  %v7967_v16 = vadd.f32 %v7966_v21, %v16856_v3 }
 0x3bd   : > { %8238 = vmatpush.bf16.msra.mxu0 %v10984_v45  ;;  %v11077_v62 = vld [vmem:[%s14330_s13 + $0x1198] sm:$0xf0]  ;;  %v13552_v46 = vld [vmem:[%s14330_s13 + $0x128c] sm:$0xf]  ;;  %v10952_v25 = vor.u32 %v13488_v9, %v10949_v59  ;;  %v7994_v45 = vpop.f32.mrf.mxu2 }
 0x3be   : > { %8266 = vmatpush.bf16.msra.mxu2 %v11240_v44  ;;  %v11205_v12 = vld [vmem:[%s14330_s13 + $0x1298] sm:$0xf0]  ;;  %v13584_v58 = vld [vmem:[%s14330_s13 + $0x138c] sm:$0xf]  ;;  %v11080_v20 = vor.u32 %v13520_v38, %v11077_v62  ;;  %v7981_v14 = vadd.f32 %v7980_v10, %v7967_v16 }
 0x3bf   : > { %8252 = vmatpush.bf16.msra.mxu1 %v11112_v43  ;;  %v11333_v29 = vld [vmem:[%s14330_s13 + $0x1398] sm:$0xf0]  ;;  %v11208_v42 = vor.u32 %v13552_v46, %v11205_v12  ;;  %v13484_v0 = vld [vmem:[%s14330_s13 + $0x106c] sm:$0xf]  ;;  %v7982_v4 = vpop.f32.mrf.mxu1 }
 0x3c0   : > { %8280 = vmatpush.bf16.msra.mxu3 %v11368_v1  ;;  %v10933_v56 = vld [vmem:[%s14330_s13 + $0x1078] sm:$0xf0]  ;;  %v13516_v28 = vld [vmem:[%s14330_s13 + $0x116c] sm:$0xf]  ;;  %v11336_v31 = vor.u32 %v13584_v58, %v11333_v29  ;;  %v7995_v48 = vadd.f32 %v7994_v45, %v7981_v14  ;;  %v8008_v1 = vpop.f32.mrf.mxu3 }
 0x3c1   : > { %8239 = vmatpush.bf16.msra.mxu0 %v10968_v32  ;;  %v11061_v7 = vld [vmem:[%s14330_s13 + $0x1178] sm:$0xf0]  ;;  %v13548_v34 = vld [vmem:[%s14330_s13 + $0x126c] sm:$0xf]  ;;  %v10936_v24 = vor.u32 %v13484_v0, %v10933_v56 }
 0x3c2   : > { %8267 = vmatpush.bf16.msra.mxu2 %v11224_v2  ;;  %v11189_v3 = vld [vmem:[%s14330_s13 + $0x1278] sm:$0xf0]  ;;  %v13580_v35 = vld [vmem:[%s14330_s13 + $0x136c] sm:$0xf]  ;;  %v11064_v27 = vor.u32 %v13516_v28, %v11061_v7  ;;  %v16930_v32 = vadd.f32 %v8008_v1, %v7995_v48 }
 0x3c3   : > { %8253 = vmatpush.bf16.msra.mxu1 %v11096_v37  ;;  %v11317_v36 = vld [vmem:[%s14330_s13 + $0x1378] sm:$0xf0]  ;;  %v11192_v39 = vor.u32 %v13548_v34, %v11189_v3  ;;  %v13480_v40 = vld [vmem:[%s14330_s13 + $0x104c] sm:$0xf]  ;;  %v7968_v47 = vpop.f32.mrf.mxu0 }
 0x3c4   : > { %8281 = vmatpush.bf16.msra.mxu3 %v11352_v41  ;;  %v10917_v57 = vld [vmem:[%s14330_s13 + $0x1058] sm:$0xf0]  ;;  %v13512_v49 = vld [vmem:[%s14330_s13 + $0x114c] sm:$0xf]  ;;  %v11320_v22 = vor.u32 %v13580_v35, %v11317_v36  ;;  %v7969_v23 = vadd.f32 %v7968_v47, %v16880_v11 }
 0x3c5   : > { %8240 = vmatpush.bf16.msra.mxu0 %v10952_v25  ;;  %v11045_v43 = vld [vmem:[%s14330_s13 + $0x1158] sm:$0xf0]  ;;  %v13544_v44 = vld [vmem:[%s14330_s13 + $0x124c] sm:$0xf]  ;;  %v10920_v52 = vor.u32 %v13480_v40, %v10917_v57 }
 0x3c6   : > { %8268 = vmatpush.bf16.msra.mxu2 %v11208_v42  ;;  %v11173_v18 = vld [vmem:[%s14330_s13 + $0x1258] sm:$0xf0]  ;;  %v13576_v33 = vld [vmem:[%s14330_s13 + $0x134c] sm:$0xf]  ;;  %v11048_v37 = vor.u32 %v13512_v49, %v11045_v43  ;;  %v7983_v11 = vadd.f32 %v7982_v4, %v7969_v23 }
 0x3c7   : > { %8254 = vmatpush.bf16.msra.mxu1 %v11080_v20  ;;  %v11301_v61 = vld [vmem:[%s14330_s13 + $0x1358] sm:$0xf0]  ;;  %v11176_v2 = vor.u32 %v13544_v44, %v11173_v18  ;;  %v13476_v9 = vld [vmem:[%s14330_s13 + $0x102c] sm:$0xf] }
 0x3c8   : > { %8282 = vmatpush.bf16.msra.mxu3 %v11336_v31  ;;  %v10901_v59 = vld [vmem:[%s14330_s13 + $0x1038] sm:$0xf0]  ;;  %v13508_v38 = vld [vmem:[%s14330_s13 + $0x112c] sm:$0xf]  ;;  %v11304_v41 = vor.u32 %v13576_v33, %v11301_v61  ;;  %v7996_v31 = vpop.f32.mrf.mxu2  ;;  %v8010_v35 = vpop.f32.mrf.mxu3 }
 0x3c9   : > { %8241 = vmatpush.bf16.msra.mxu0 %v10936_v24  ;;  %v11029_v62 = vld [vmem:[%s14330_s13 + $0x1138] sm:$0xf0]  ;;  %v13540_v46 = vld [vmem:[%s14330_s13 + $0x122c] sm:$0xf]  ;;  %v10904_v29 = vor.u32 %v13476_v9, %v10901_v59  ;;  %v7997_v3 = vadd.f32 %v7996_v31, %v7983_v11 }
 0x3ca   : > { %8269 = vmatpush.bf16.msra.mxu2 %v11192_v39  ;;  %v11157_v12 = vld [vmem:[%s14330_s13 + $0x1238] sm:$0xf0]  ;;  %v13572_v21 = vld [vmem:[%s14330_s13 + $0x132c] sm:$0xf]  ;;  %v11032_v10 = vor.u32 %v13508_v38, %v11029_v62 }
 0x3cb   : > { %8255 = vmatpush.bf16.msra.mxu1 %v11064_v27  ;;  %v11285_v58 = vld [vmem:[%s14330_s13 + $0x1338] sm:$0xf0]  ;;  %v13472_v16 = vld [vmem:[%s14330_s13 + $0x100c] sm:$0xf]  ;;  %v11160_v20 = vor.u32 %v13540_v46, %v11157_v12 }
 0x3cc   : > { %8283 = vmatpush.bf16.msra.mxu3 %v11320_v22  ;;  %v10885_v25 = vld [vmem:[%s14330_s13 + $0x1018] sm:$0xf0]  ;;  %v13504_v42 = vld [vmem:[%s14330_s13 + $0x110c] sm:$0xf]  ;;  %v11288_v28 = vor.u32 %v13572_v21, %v11285_v58  ;;  %v16954_v22 = vadd.f32 %v8010_v35, %v7997_v3 }
 0x3cd   : > { %8242 = vmatpush.bf16.msra.mxu0 %v10920_v52  ;;  %v11013_v0 = vld [vmem:[%s14330_s13 + $0x1118] sm:$0xf0]  ;;  %v13536_v56 = vld [vmem:[%s14330_s13 + $0x120c] sm:$0xf]  ;;  %v10888_v39 = vor.u32 %v13472_v16, %v10885_v25 }
 0x3ce   : > { %8270 = vmatpush.bf16.msra.mxu2 %v11176_v2  ;;  %v11141_v14 = vld [vmem:[%s14330_s13 + $0x1218] sm:$0xf0]  ;;  %v13568_v7 = vld [vmem:[%s14330_s13 + $0x130c] sm:$0xf]  ;;  %v11016_v45 = vor.u32 %v13504_v42, %v11013_v0 }
 0x3cf   : > { %8256 = vmatpush.bf16.msra.mxu1 %v11048_v37  ;;  %v11269_v34 = vld [vmem:[%s14330_s13 + $0x1318] sm:$0xf0]  ;;  %v13628_v36 = vld [vmem:[%s14330_s13 + $0x14ec] sm:$0xf]  ;;  %v11144_v43 = vor.u32 %v13536_v56, %v11141_v14 }
 0x3d0   : > { %8284 = vmatpush.bf16.msra.mxu3 %v11304_v41  ;;  %v11509_v24 = vld [vmem:[%s14330_s13 + $0x14f8] sm:$0xf0]  ;;  %v13660_v27 = vld [vmem:[%s14330_s13 + $0x15ec] sm:$0xf]  ;;  %v11272_v48 = vor.u32 %v13568_v7, %v11269_v34 }
 0x3d1   : > { %8243 = vmatpush.bf16.msra.mxu0 %v10904_v29  ;;  %v11637_v40 = vld [vmem:[%s14330_s13 + $0x15f8] sm:$0xf0]  ;;  %v13692_v57 = vld [vmem:[%s14330_s13 + $0x16ec] sm:$0xf]  ;;  %v11512_v47 = vor.u32 %v13628_v36, %v11509_v24 }
 0x3d2   : > { %v11765_v49 = vld [vmem:[%s14330_s13 + $0x16f8] sm:$0xf0]  ;;  %8271 = vmatpush.bf16.msra.mxu2 %v11160_v20  ;;  %v13724_v44 = vld [vmem:[%s14330_s13 + $0x17ec] sm:$0xf]  ;;  %v11640_v1 = vor.u32 %v13660_v27, %v11637_v40 }
 0x3d3   : > { %8257 = vmatpush.bf16.msra.mxu1 %v11032_v10  ;;  %v11893_v18 = vld [vmem:[%s14330_s13 + $0x17f8] sm:$0xf0]  ;;  %v11768_v33 = vor.u32 %v13692_v57, %v11765_v49  ;;  %v13624_v61 = vld [vmem:[%s14330_s13 + $0x14cc] sm:$0xf] }
 0x3d4   : > { %8285 = vmatpush.bf16.msra.mxu3 %v11288_v28  ;;  %v11493_v23 = vld [vmem:[%s14330_s13 + $0x14d8] sm:$0xf0]  ;;  %v13656_v52 = vld [vmem:[%s14330_s13 + $0x15cc] sm:$0xf]  ;;  %v11896_v4 = vor.u32 %v13724_v44, %v11893_v18 }
 0x3d5   : > { %8244 = vmatpush.bf16.msra.mxu0 %v10888_v39  ;;  %v11621_v37 = vld [vmem:[%s14330_s13 + $0x15d8] sm:$0xf0]  ;;  %v13688_v2 = vld [vmem:[%s14330_s13 + $0x16cc] sm:$0xf]  ;;  %v11496_v41 = vor.u32 %v13624_v61, %v11493_v23 }
 0x3d6   : > { %v11749_v9 = vld [vmem:[%s14330_s13 + $0x16d8] sm:$0xf0]  ;;  %8272 = vmatpush.bf16.msra.mxu2 %v11144_v43  ;;  %v13720_v59 = vld [vmem:[%s14330_s13 + $0x17cc] sm:$0xf]  ;;  %v11624_v11 = vor.u32 %v13656_v52, %v11621_v37 }
 0x3d7   : > { %8258 = vmatpush.bf16.msra.mxu1 %v11016_v45  ;;  %v11877_v38 = vld [vmem:[%s14330_s13 + $0x17d8] sm:$0xf0]  ;;  %v11752_v62 = vor.u32 %v13688_v2, %v11749_v9  ;;  %v13620_v46 = vld [vmem:[%s14330_s13 + $0x14ac] sm:$0xf] }
 0x3d8   : > { %8286 = vmatpush.bf16.msra.mxu3 %v11272_v48  ;;  %v11477_v12 = vld [vmem:[%s14330_s13 + $0x14b8] sm:$0xf0]  ;;  %v13652_v21 = vld [vmem:[%s14330_s13 + $0x15ac] sm:$0xf]  ;;  %8245 = vmatmul.bf16.vlgmr.msra.gmra.mxu0 %v17319_v5  ;;  %v11880_v58 = vor.u32 %v13720_v59, %v11877_v38 }
 0x3d9   : > { %8293 = vmatpush.bf16.msrb.mxu0 %v11512_v47  ;;  %v11605_v29 = vld [vmem:[%s14330_s13 + $0x15b8] sm:$0xf0]  ;;  %v13684_v16 = vld [vmem:[%s14330_s13 + $0x16ac] sm:$0xf]  ;;  %8273 = vmatmul.bf16.vlgmr.msra.gmra.mxu2 %v17320_v63  ;;  %v11480_v5 = vor.u32 %v13620_v46, %v11477_v12 }
 0x3da   : > { %8321 = vmatpush.bf16.msrb.mxu2 %v11768_v33  ;;  %v11733_v25 = vld [vmem:[%s14330_s13 + $0x16b8] sm:$0xf0]  ;;  %8259 = vmatmul.bf16.vlgmr.msra.gmra.mxu1 %v17321_v51  ;;  %v13716_v10 = vld [vmem:[%s14330_s13 + $0x17ac] sm:$0xf]  ;;  %v11608_v42 = vor.u32 %v13652_v21, %v11605_v29 }
 0x3db   : > { %8307 = vmatpush.bf16.msrb.mxu1 %v11640_v1  ;;  %v11861_v20 = vld [vmem:[%s14330_s13 + $0x17b8] sm:$0xf0]  ;;  %8287 = vmatmul.bf16.vlgmr.msra.gmra.mxu3 %v17322_v50  ;;  %v11736_v0 = vor.u32 %v13684_v16, %v11733_v25  ;;  %v13616_v56 = vld [vmem:[%s14330_s13 + $0x148c] sm:$0xf] }
 0x3dc   : > { %8335 = vmatpush.bf16.msrb.mxu3 %v11896_v4  ;;  %v11461_v63 = vld [vmem:[%s14330_s13 + $0x1498] sm:$0xf0]  ;;  %v13648_v28 = vld [vmem:[%s14330_s13 + $0x158c] sm:$0xf]  ;;  %v11864_v51 = vor.u32 %v13716_v10, %v11861_v20 }
 0x3dd   : > { %8294 = vmatpush.bf16.msrb.mxu0 %v11496_v41  ;;  %v11589_v31 = vld [vmem:[%s14330_s13 + $0x1598] sm:$0xf0]  ;;  %v13680_v14 = vld [vmem:[%s14330_s13 + $0x168c] sm:$0xf]  ;;  %v11464_v3 = vor.u32 %v13616_v56, %v11461_v63 }
 0x3de   : > { %8322 = vmatpush.bf16.msrb.mxu2 %v11752_v62  ;;  %v11717_v50 = vld [vmem:[%s14330_s13 + $0x1698] sm:$0xf0]  ;;  %v13712_v7 = vld [vmem:[%s14330_s13 + $0x178c] sm:$0xf]  ;;  %v11592_v35 = vor.u32 %v13648_v28, %v11589_v31 }
 0x3df   : > { %8308 = vmatpush.bf16.msrb.mxu1 %v11624_v11  ;;  %v11845_v34 = vld [vmem:[%s14330_s13 + $0x1798] sm:$0xf0]  ;;  %v11720_v36 = vor.u32 %v13680_v14, %v11717_v50  ;;  %v13612_v24 = vld [vmem:[%s14330_s13 + $0x146c] sm:$0xf] }
 0x3e0   : > { %8336 = vmatpush.bf16.msrb.mxu3 %v11880_v58  ;;  %v11445_v27 = vld [vmem:[%s14330_s13 + $0x1478] sm:$0xf0]  ;;  %v13644_v39 = vld [vmem:[%s14330_s13 + $0x156c] sm:$0xf]  ;;  %v11848_v40 = vor.u32 %v13712_v7, %v11845_v34 }
 0x3e1   : > { %8295 = vmatpush.bf16.msrb.mxu0 %v11480_v5  ;;  %v11573_v57 = vld [vmem:[%s14330_s13 + $0x1578] sm:$0xf0]  ;;  %v13676_v49 = vld [vmem:[%s14330_s13 + $0x166c] sm:$0xf]  ;;  %v11448_v18 = vor.u32 %v13612_v24, %v11445_v27 }
 0x3e2   : > { %8323 = vmatpush.bf16.msrb.mxu2 %v11736_v0  ;;  %v11701_v45 = vld [vmem:[%s14330_s13 + $0x1678] sm:$0xf0]  ;;  %v13708_v43 = vld [vmem:[%s14330_s13 + $0x176c] sm:$0xf]  ;;  %v11576_v48 = vor.u32 %v13644_v39, %v11573_v57 }
 0x3e3   : > { %8309 = vmatpush.bf16.msrb.mxu1 %v11608_v42  ;;  %v11829_v44 = vld [vmem:[%s14330_s13 + $0x1778] sm:$0xf0]  ;;  %v11704_v47 = vor.u32 %v13676_v49, %v11701_v45  ;;  %v13608_v1 = vld [vmem:[%s14330_s13 + $0x144c] sm:$0xf] }
 0x3e4   : > { %8337 = vmatpush.bf16.msrb.mxu3 %v11864_v51  ;;  %v11429_v33 = vld [vmem:[%s14330_s13 + $0x1458] sm:$0xf0]  ;;  %v13640_v61 = vld [vmem:[%s14330_s13 + $0x154c] sm:$0xf]  ;;  %v11832_v23 = vor.u32 %v13708_v43, %v11829_v44 }
 0x3e5   : > { %8296 = vmatpush.bf16.msrb.mxu0 %v11464_v3  ;;  %v11557_v52 = vld [vmem:[%s14330_s13 + $0x1558] sm:$0xf0]  ;;  %v13672_v4 = vld [vmem:[%s14330_s13 + $0x164c] sm:$0xf]  ;;  %v11432_v59 = vor.u32 %v13608_v1, %v11429_v33 }
 0x3e6   : > { %8324 = vmatpush.bf16.msrb.mxu2 %v11720_v36  ;;  %v11685_v37 = vld [vmem:[%s14330_s13 + $0x1658] sm:$0xf0]  ;;  %v13704_v2 = vld [vmem:[%s14330_s13 + $0x174c] sm:$0xf]  ;;  %v11560_v38 = vor.u32 %v13640_v61, %v11557_v52 }
 0x3e7   : > { %8310 = vmatpush.bf16.msrb.mxu1 %v11592_v35  ;;  %v11813_v9 = vld [vmem:[%s14330_s13 + $0x1758] sm:$0xf0]  ;;  %v11688_v41 = vor.u32 %v13672_v4, %v11685_v37  ;;  %v13604_v11 = vld [vmem:[%s14330_s13 + $0x142c] sm:$0xf] }
 0x3e8   : > { %8338 = vmatpush.bf16.msrb.mxu3 %v11848_v40  ;;  %v11413_v62 = vld [vmem:[%s14330_s13 + $0x1438] sm:$0xf0]  ;;  %v13636_v46 = vld [vmem:[%s14330_s13 + $0x152c] sm:$0xf]  ;;  %v11816_v12 = vor.u32 %v13704_v2, %v11813_v9 }
 0x3e9   : > { %8297 = vmatpush.bf16.msrb.mxu0 %v11448_v18  ;;  %v11541_v21 = vld [vmem:[%s14330_s13 + $0x1538] sm:$0xf0]  ;;  %v13668_v58 = vld [vmem:[%s14330_s13 + $0x162c] sm:$0xf]  ;;  %v11416_v10 = vor.u32 %v13604_v11, %v11413_v62 }
 0x3ea   : > { %8325 = vmatpush.bf16.msrb.mxu2 %v11704_v47  ;;  %v11669_v29 = vld [vmem:[%s14330_s13 + $0x1638] sm:$0xf0]  ;;  %v13700_v16 = vld [vmem:[%s14330_s13 + $0x172c] sm:$0xf]  ;;  %v11544_v42 = vor.u32 %v13636_v46, %v11541_v21 }
 0x3eb   : > { %8311 = vmatpush.bf16.msrb.mxu1 %v11576_v48  ;;  %v11797_v25 = vld [vmem:[%s14330_s13 + $0x1738] sm:$0xf0]  ;;  %v13600_v20 = vld [vmem:[%s14330_s13 + $0x140c] sm:$0xf]  ;;  %v11672_v0 = vor.u32 %v13668_v58, %v11669_v29 }
 0x3ec   : > { %8339 = vmatpush.bf16.msrb.mxu3 %v11832_v23  ;;  %v11397_v5 = vld [vmem:[%s14330_s13 + $0x1418] sm:$0xf0]  ;;  %v13632_v56 = vld [vmem:[%s14330_s13 + $0x150c] sm:$0xf]  ;;  %v11800_v51 = vor.u32 %v13700_v16, %v11797_v25 }
 0x3ed   : > { %8298 = vmatpush.bf16.msrb.mxu0 %v11432_v59  ;;  %v11525_v63 = vld [vmem:[%s14330_s13 + $0x1518] sm:$0xf0]  ;;  %v13664_v28 = vld [vmem:[%s14330_s13 + $0x160c] sm:$0xf]  ;;  %v11400_v35 = vor.u32 %v13600_v20, %v11397_v5 }
 0x3ee   : > { %8326 = vmatpush.bf16.msrb.mxu2 %v11688_v41  ;;  %v11653_v31 = vld [vmem:[%s14330_s13 + $0x1618] sm:$0xf0]  ;;  %v13696_v14 = vld [vmem:[%s14330_s13 + $0x170c] sm:$0xf]  ;;  %v11528_v39 = vor.u32 %v13632_v56, %v11525_v63 }
 0x3ef   : > { %8312 = vmatpush.bf16.msrb.mxu1 %v11560_v38  ;;  %v11781_v50 = vld [vmem:[%s14330_s13 + $0x1718] sm:$0xf0]  ;;  %v13756_v7 = vld [vmem:[%s14330_s13 + $0x18ec] sm:$0xf]  ;;  %v11656_v40 = vor.u32 %v13664_v28, %v11653_v31 }
 0x3f0   : > { %8340 = vmatpush.bf16.msrb.mxu3 %v11816_v12  ;;  %v12021_v34 = vld [vmem:[%s14330_s13 + $0x18f8] sm:$0xf0]  ;;  %v13788_v3 = vld [vmem:[%s14330_s13 + $0x19ec] sm:$0xf]  ;;  %v11784_v45 = vor.u32 %v13696_v14, %v11781_v50 }
 0x3f1   : > { %8299 = vmatpush.bf16.msrb.mxu0 %v11416_v10  ;;  %v12149_v36 = vld [vmem:[%s14330_s13 + $0x19f8] sm:$0xf0]  ;;  %v13820_v24 = vld [vmem:[%s14330_s13 + $0x1aec] sm:$0xf]  ;;  %v12024_v43 = vor.u32 %v13756_v7, %v12021_v34 }
 0x3f2   : > { %v12277_v27 = vld [vmem:[%s14330_s13 + $0x1af8] sm:$0xf0]  ;;  %8327 = vmatpush.bf16.msrb.mxu2 %v11672_v0  ;;  %v13852_v57 = vld [vmem:[%s14330_s13 + $0x1bec] sm:$0xf]  ;;  %v12152_v44 = vor.u32 %v13788_v3, %v12149_v36 }
 0x3f3   : > { %8313 = vmatpush.bf16.msrb.mxu1 %v11544_v42  ;;  %v12405_v49 = vld [vmem:[%s14330_s13 + $0x1bf8] sm:$0xf0]  ;;  %v12280_v18 = vor.u32 %v13820_v24, %v12277_v27  ;;  %v13752_v48 = vld [vmem:[%s14330_s13 + $0x18cc] sm:$0xf] }
 0x3f4   : > { %8341 = vmatpush.bf16.msrb.mxu3 %v11800_v51  ;;  %v12005_v47 = vld [vmem:[%s14330_s13 + $0x18d8] sm:$0xf0]  ;;  %v13784_v1 = vld [vmem:[%s14330_s13 + $0x19cc] sm:$0xf]  ;;  %v12408_v33 = vor.u32 %v13852_v57, %v12405_v49 }
 0x3f5   : > { %8300 = vmatpush.bf16.msrb.mxu0 %v11400_v35  ;;  %v12133_v61 = vld [vmem:[%s14330_s13 + $0x19d8] sm:$0xf0]  ;;  %v13816_v23 = vld [vmem:[%s14330_s13 + $0x1acc] sm:$0xf]  ;;  %v12008_v2 = vor.u32 %v13752_v48, %v12005_v47 }
 0x3f6   : > { %v12261_v52 = vld [vmem:[%s14330_s13 + $0x1ad8] sm:$0xf0]  ;;  %8328 = vmatpush.bf16.msrb.mxu2 %v11656_v40  ;;  %v13848_v4 = vld [vmem:[%s14330_s13 + $0x1bcc] sm:$0xf]  ;;  %v12136_v9 = vor.u32 %v13784_v1, %v12133_v61 }
 0x3f7   : > { %8314 = vmatpush.bf16.msrb.mxu1 %v11528_v39  ;;  %v12389_v37 = vld [vmem:[%s14330_s13 + $0x1bd8] sm:$0xf0]  ;;  %v12264_v59 = vor.u32 %v13816_v23, %v12261_v52  ;;  %v13748_v38 = vld [vmem:[%s14330_s13 + $0x18ac] sm:$0xf] }
 0x3f8   : > { %8342 = vmatpush.bf16.msrb.mxu3 %v11784_v45  ;;  %v11989_v41 = vld [vmem:[%s14330_s13 + $0x18b8] sm:$0xf0]  ;;  %v13780_v11 = vld [vmem:[%s14330_s13 + $0x19ac] sm:$0xf]  ;;  %8301 = vmatmul.bf16.vlgmr.msrb.gmra.mxu0 %v17323_v6  ;;  %v12392_v62 = vor.u32 %v13848_v4, %v12389_v37 }
 0x3f9   : > { %8349 = vmatpush.bf16.msra.mxu0 %v12024_v43  ;;  %v12117_v46 = vld [vmem:[%s14330_s13 + $0x19b8] sm:$0xf0]  ;;  %v13812_v12 = vld [vmem:[%s14330_s13 + $0x1aac] sm:$0xf]  ;;  %8329 = vmatmul.bf16.vlgmr.msrb.gmra.mxu2 %v17324_v13  ;;  %v11992_v6 = vor.u32 %v13748_v38, %v11989_v41 }
 0x3fa   : > { %8377 = vmatpush.bf16.msra.mxu2 %v12280_v18  ;;  %v12245_v21 = vld [vmem:[%s14330_s13 + $0x1ab8] sm:$0xf0]  ;;  %8315 = vmatmul.bf16.vlgmr.msrb.gmra.mxu1 %v17325_v55  ;;  %v13844_v58 = vld [vmem:[%s14330_s13 + $0x1bac] sm:$0xf]  ;;  %v12120_v16 = vor.u32 %v13780_v11, %v12117_v46 }
 0x3fb   : > { %8363 = vmatpush.bf16.msra.mxu1 %v12152_v44  ;;  %v12373_v29 = vld [vmem:[%s14330_s13 + $0x1bb8] sm:$0xf0]  ;;  %8343 = vmatmul.bf16.vlgmr.msrb.gmra.mxu3 %v17326_v8  ;;  %v12248_v25 = vor.u32 %v13812_v12, %v12245_v21  ;;  %v13744_v10 = vld [vmem:[%s14330_s13 + $0x188c] sm:$0xf] }
 0x3fc   : > { %8391 = vmatpush.bf16.msra.mxu3 %v12408_v33  ;;  %v11973_v13 = vld [vmem:[%s14330_s13 + $0x1898] sm:$0xf0]  ;;  %v13776_v20 = vld [vmem:[%s14330_s13 + $0x198c] sm:$0xf]  ;;  %v12376_v55 = vor.u32 %v13844_v58, %v12373_v29 }
 0x3fd   : > { %8350 = vmatpush.bf16.msra.mxu0 %v12008_v2  ;;  %v12101_v5 = vld [vmem:[%s14330_s13 + $0x1998] sm:$0xf0]  ;;  %v13808_v42 = vld [vmem:[%s14330_s13 + $0x1a8c] sm:$0xf]  ;;  %v11976_v63 = vor.u32 %v13744_v10, %v11973_v13 }
 0x3fe   : > { %8378 = vmatpush.bf16.msra.mxu2 %v12264_v59  ;;  %v12229_v8 = vld [vmem:[%s14330_s13 + $0x1a98] sm:$0xf0]  ;;  %v13840_v0 = vld [vmem:[%s14330_s13 + $0x1b8c] sm:$0xf]  ;;  %v12104_v28 = vor.u32 %v13776_v20, %v12101_v5 }
 0x3ff   : > { %8364 = vmatpush.bf16.msra.mxu1 %v12136_v9  ;;  %v12357_v56 = vld [vmem:[%s14330_s13 + $0x1b98] sm:$0xf0]  ;;  %v12232_v51 = vor.u32 %v13808_v42, %v12229_v8  ;;  %v13740_v31 = vld [vmem:[%s14330_s13 + $0x186c] sm:$0xf] }
 0x400   : > { %8392 = vmatpush.bf16.msra.mxu3 %v12392_v62  ;;  %v11957_v14 = vld [vmem:[%s14330_s13 + $0x1878] sm:$0xf0]  ;;  %v13772_v50 = vld [vmem:[%s14330_s13 + $0x196c] sm:$0xf]  ;;  %v12360_v7 = vor.u32 %v13840_v0, %v12357_v56 }
 0x401   : > { %8351 = vmatpush.bf16.msra.mxu0 %v11992_v6  ;;  %v12085_v34 = vld [vmem:[%s14330_s13 + $0x1978] sm:$0xf0]  ;;  %v13804_v3 = vld [vmem:[%s14330_s13 + $0x1a6c] sm:$0xf]  ;;  %v11960_v27 = vor.u32 %v13740_v31, %v11957_v14 }
 0x402   : > { %8379 = vmatpush.bf16.msra.mxu2 %v12248_v25  ;;  %v12213_v35 = vld [vmem:[%s14330_s13 + $0x1a78] sm:$0xf0]  ;;  %v13836_v36 = vld [vmem:[%s14330_s13 + $0x1b6c] sm:$0xf]  ;;  %v12088_v39 = vor.u32 %v13772_v50, %v12085_v34 }
 0x403   : > { %8365 = vmatpush.bf16.msra.mxu1 %v12120_v16  ;;  %v12341_v24 = vld [vmem:[%s14330_s13 + $0x1b78] sm:$0xf0]  ;;  %v12216_v40 = vor.u32 %v13804_v3, %v12213_v35  ;;  %v13736_v57 = vld [vmem:[%s14330_s13 + $0x184c] sm:$0xf] }
 0x404   : > { %8393 = vmatpush.bf16.msra.mxu3 %v12376_v55  ;;  %v11941_v49 = vld [vmem:[%s14330_s13 + $0x1858] sm:$0xf0]  ;;  %v13768_v45 = vld [vmem:[%s14330_s13 + $0x194c] sm:$0xf]  ;;  %v12344_v43 = vor.u32 %v13836_v36, %v12341_v24 }
 0x405   : > { %8352 = vmatpush.bf16.msra.mxu0 %v11976_v63  ;;  %v12069_v44 = vld [vmem:[%s14330_s13 + $0x1958] sm:$0xf0]  ;;  %v13800_v18 = vld [vmem:[%s14330_s13 + $0x1a4c] sm:$0xf]  ;;  %v11944_v33 = vor.u32 %v13736_v57, %v11941_v49 }
 0x406   : > { %8380 = vmatpush.bf16.msra.mxu2 %v12232_v51  ;;  %v12197_v48 = vld [vmem:[%s14330_s13 + $0x1a58] sm:$0xf0]  ;;  %v13832_v47 = vld [vmem:[%s14330_s13 + $0x1b4c] sm:$0xf]  ;;  %v12072_v61 = vor.u32 %v13768_v45, %v12069_v44 }
 0x407   : > { %8366 = vmatpush.bf16.msra.mxu1 %v12104_v28  ;;  %v12325_v1 = vld [vmem:[%s14330_s13 + $0x1b58] sm:$0xf0]  ;;  %v12200_v23 = vor.u32 %v13800_v18, %v12197_v48  ;;  %v13732_v52 = vld [vmem:[%s14330_s13 + $0x182c] sm:$0xf] }
 0x408   : > { %8394 = vmatpush.bf16.msra.mxu3 %v12360_v7  ;;  %v11925_v4 = vld [vmem:[%s14330_s13 + $0x1838] sm:$0xf0]  ;;  %v13764_v37 = vld [vmem:[%s14330_s13 + $0x192c] sm:$0xf]  ;;  %v12328_v2 = vor.u32 %v13832_v47, %v12325_v1 }
 0x409   : > { %8353 = vmatpush.bf16.msra.mxu0 %v11960_v27  ;;  %v12053_v9 = vld [vmem:[%s14330_s13 + $0x1938] sm:$0xf0]  ;;  %v13796_v59 = vld [vmem:[%s14330_s13 + $0x1a2c] sm:$0xf]  ;;  %v11928_v62 = vor.u32 %v13732_v52, %v11925_v4 }
 0x40a   : > { %8381 = vmatpush.bf16.msra.mxu2 %v12216_v40  ;;  %v12181_v38 = vld [vmem:[%s14330_s13 + $0x1a38] sm:$0xf0]  ;;  %v13828_v41 = vld [vmem:[%s14330_s13 + $0x1b2c] sm:$0xf]  ;;  %v12056_v21 = vor.u32 %v13764_v37, %v12053_v9 }
 0x40b   : > { %8367 = vmatpush.bf16.msra.mxu1 %v12088_v39  ;;  %v12309_v11 = vld [vmem:[%s14330_s13 + $0x1b38] sm:$0xf0]  ;;  %v13728_v46 = vld [vmem:[%s14330_s13 + $0x180c] sm:$0xf]  ;;  %v12184_v58 = vor.u32 %v13796_v59, %v12181_v38 }
 0x40c   : > { %8395 = vmatpush.bf16.msra.mxu3 %v12344_v43  ;;  %v11909_v12 = vld [vmem:[%s14330_s13 + $0x1818] sm:$0xf0]  ;;  %v13760_v29 = vld [vmem:[%s14330_s13 + $0x190c] sm:$0xf]  ;;  %v12312_v25 = vor.u32 %v13828_v41, %v12309_v11 }
 0x40d   : > { %8354 = vmatpush.bf16.msra.mxu0 %v11944_v33  ;;  %v12037_v6 = vld [vmem:[%s14330_s13 + $0x1918] sm:$0xf0]  ;;  %v13792_v16 = vld [vmem:[%s14330_s13 + $0x1a0c] sm:$0xf]  ;;  %v11912_v8 = vor.u32 %v13728_v46, %v11909_v12 }
 0x40e   : > { %8382 = vmatpush.bf16.msra.mxu2 %v12200_v23  ;;  %v12165_v10 = vld [vmem:[%s14330_s13 + $0x1a18] sm:$0xf0]  ;;  %v13824_v13 = vld [vmem:[%s14330_s13 + $0x1b0c] sm:$0xf]  ;;  %v12040_v28 = vor.u32 %v13760_v29, %v12037_v6 }
 0x40f   : > { %8368 = vmatpush.bf16.msra.mxu1 %v12072_v61  ;;  %v12293_v20 = vld [vmem:[%s14330_s13 + $0x1b18] sm:$0xf0]  ;;  %v13884_v55 = vld [vmem:[%s14330_s13 + $0x1cec] sm:$0xf]  ;;  %v12168_v51 = vor.u32 %v13792_v16, %v12165_v10 }
 0x410   : > { %8396 = vmatpush.bf16.msra.mxu3 %v12328_v2  ;;  %v12533_v5 = vld [vmem:[%s14330_s13 + $0x1cf8] sm:$0xf0]  ;;  %v13916_v42 = vld [vmem:[%s14330_s13 + $0x1dec] sm:$0xf]  ;;  %v12296_v50 = vor.u32 %v13824_v13, %v12293_v20 }
 0x411   : > { %8355 = vmatpush.bf16.msra.mxu0 %v11928_v62  ;;  %v12661_v0 = vld [vmem:[%s14330_s13 + $0x1df8] sm:$0xf0]  ;;  %v13948_v56 = vld [vmem:[%s14330_s13 + $0x1eec] sm:$0xf]  ;;  %v12536_v7 = vor.u32 %v13884_v55, %v12533_v5 }
 0x412   : > { %v12789_v63 = vld [vmem:[%s14330_s13 + $0x1ef8] sm:$0xf0]  ;;  %8383 = vmatpush.bf16.msra.mxu2 %v12184_v58  ;;  %v13980_v31 = vld [vmem:[%s14330_s13 + $0x1fec] sm:$0xf]  ;;  %v12664_v34 = vor.u32 %v13916_v42, %v12661_v0 }
 0x413   : > { %8369 = vmatpush.bf16.msra.mxu1 %v12056_v21  ;;  %v12917_v14 = vld [vmem:[%s14330_s13 + $0x1ff8] sm:$0xf0]  ;;  %v12792_v3 = vor.u32 %v13948_v56, %v12789_v63  ;;  %v13880_v35 = vld [vmem:[%s14330_s13 + $0x1ccc] sm:$0xf] }
 0x414   : > { %8397 = vmatpush.bf16.msra.mxu3 %v12312_v25  ;;  %v12517_v36 = vld [vmem:[%s14330_s13 + $0x1cd8] sm:$0xf0]  ;;  %v13912_v24 = vld [vmem:[%s14330_s13 + $0x1dcc] sm:$0xf]  ;;  %v12920_v27 = vor.u32 %v13980_v31, %v12917_v14 }
 0x415   : > { %8356 = vmatpush.bf16.msra.mxu0 %v11912_v8  ;;  %v12645_v39 = vld [vmem:[%s14330_s13 + $0x1dd8] sm:$0xf0]  ;;  %v13944_v40 = vld [vmem:[%s14330_s13 + $0x1ecc] sm:$0xf]  ;;  %v12520_v43 = vor.u32 %v13880_v35, %v12517_v36 }
 0x416   : > { %v12773_v57 = vld [vmem:[%s14330_s13 + $0x1ed8] sm:$0xf0]  ;;  %8384 = vmatpush.bf16.msra.mxu2 %v12168_v51  ;;  %v13976_v49 = vld [vmem:[%s14330_s13 + $0x1fcc] sm:$0xf]  ;;  %v12648_v44 = vor.u32 %v13912_v24, %v12645_v39 }
 0x417   : > { %8370 = vmatpush.bf16.msra.mxu1 %v12040_v28  ;;  %v12901_v45 = vld [vmem:[%s14330_s13 + $0x1fd8] sm:$0xf0]  ;;  %v12776_v18 = vor.u32 %v13944_v40, %v12773_v57  ;;  %v13876_v48 = vld [vmem:[%s14330_s13 + $0x1cac] sm:$0xf] }
 0x418   : > { %8398 = vmatpush.bf16.msra.mxu3 %v12296_v50  ;;  %v12501_v47 = vld [vmem:[%s14330_s13 + $0x1cb8] sm:$0xf0]  ;;  %v13908_v1 = vld [vmem:[%s14330_s13 + $0x1dac] sm:$0xf]  ;;  %8357 = vmatmul.bf16.vlgmr.msra.gmra.mxu0 %v17327_v19  ;;  %v12904_v33 = vor.u32 %v13976_v49, %v12901_v45 }
 0x419   : > { %8405 = vmatpush.bf16.msrb.mxu0 %v12536_v7  ;;  %v12629_v61 = vld [vmem:[%s14330_s13 + $0x1db8] sm:$0xf0]  ;;  %v13940_v23 = vld [vmem:[%s14330_s13 + $0x1eac] sm:$0xf]  ;;  %8385 = vmatmul.bf16.vlgmr.msra.gmra.mxu2 %v17328_v17  ;;  %v12504_v19 = vor.u32 %v13876_v48, %v12501_v47 }
 0x41a   : > { %8433 = vmatpush.bf16.msrb.mxu2 %v12792_v3  ;;  %v12757_v52 = vld [vmem:[%s14330_s13 + $0x1eb8] sm:$0xf0]  ;;  %8371 = vmatmul.bf16.vlgmr.msra.gmra.mxu1 %v17329_v30  ;;  %v13972_v4 = vld [vmem:[%s14330_s13 + $0x1fac] sm:$0xf]  ;;  %v12632_v2 = vor.u32 %v13908_v1, %v12629_v61 }
 0x41b   : > { %8419 = vmatpush.bf16.msrb.mxu1 %v12664_v34  ;;  %v12885_v37 = vld [vmem:[%s14330_s13 + $0x1fb8] sm:$0xf0]  ;;  %8399 = vmatmul.bf16.vlgmr.msra.gmra.mxu3 %v17330_v53  ;;  %v12760_v9 = vor.u32 %v13940_v23, %v12757_v52  ;;  %v13872_v59 = vld [vmem:[%s14330_s13 + $0x1c8c] sm:$0xf] }
 0x41c   : > { %8447 = vmatpush.bf16.msrb.mxu3 %v12920_v27  ;;  %v12485_v17 = vld [vmem:[%s14330_s13 + $0x1c98] sm:$0xf0]  ;;  %v13904_v38 = vld [vmem:[%s14330_s13 + $0x1d8c] sm:$0xf]  ;;  %v12888_v30 = vor.u32 %v13972_v4, %v12885_v37 }
 0x41d   : > { %8406 = vmatpush.bf16.msrb.mxu0 %v12520_v43  ;;  %v12613_v41 = vld [vmem:[%s14330_s13 + $0x1d98] sm:$0xf0]  ;;  %v13936_v11 = vld [vmem:[%s14330_s13 + $0x1e8c] sm:$0xf]  ;;  %v12488_v12 = vor.u32 %v13872_v59, %v12485_v17 }
 0x41e   : > { %8434 = vmatpush.bf16.msrb.mxu2 %v12776_v18  ;;  %v12741_v53 = vld [vmem:[%s14330_s13 + $0x1e98] sm:$0xf0]  ;;  %v13968_v62 = vld [vmem:[%s14330_s13 + $0x1f8c] sm:$0xf]  ;;  %v12616_v21 = vor.u32 %v13904_v38, %v12613_v41  ;;  %v8036_v41 = vpop.f32.mrf.mxu1 }
 0x41f   : > { %8420 = vmatpush.bf16.msrb.mxu1 %v12648_v44  ;;  %v12869_v46 = vld [vmem:[%s14330_s13 + $0x1f98] sm:$0xf0]  ;;  %v12744_v58 = vor.u32 %v13936_v11, %v12741_v53  ;;  %v13868_v29 = vld [vmem:[%s14330_s13 + $0x1c6c] sm:$0xf]  ;;  %v8050_v11 = vpop.f32.mrf.mxu2  ;;  %v8064_v53 = vpop.f32.mrf.mxu3 }
 0x420   : > { %8448 = vmatpush.bf16.msrb.mxu3 %v12904_v33  ;;  %v12469_v6 = vld [vmem:[%s14330_s13 + $0x1c78] sm:$0xf0]  ;;  %v13900_v16 = vld [vmem:[%s14330_s13 + $0x1d6c] sm:$0xf]  ;;  %v12872_v25 = vor.u32 %v13968_v62, %v12869_v46 }
 0x421   : > { %8407 = vmatpush.bf16.msrb.mxu0 %v12504_v19  ;;  %v12597_v10 = vld [vmem:[%s14330_s13 + $0x1d78] sm:$0xf0]  ;;  %v13932_v13 = vld [vmem:[%s14330_s13 + $0x1e6c] sm:$0xf]  ;;  %v12472_v42 = vor.u32 %v13868_v29, %v12469_v6 }
 0x422   : > { %8435 = vmatpush.bf16.msrb.mxu2 %v12760_v9  ;;  %v12725_v20 = vld [vmem:[%s14330_s13 + $0x1e78] sm:$0xf0]  ;;  %v13964_v55 = vld [vmem:[%s14330_s13 + $0x1f6c] sm:$0xf]  ;;  %v12600_v8 = vor.u32 %v13900_v16, %v12597_v10 }
 0x423   : > { %8421 = vmatpush.bf16.msrb.mxu1 %v12632_v2  ;;  %v12853_v5 = vld [vmem:[%s14330_s13 + $0x1f78] sm:$0xf0]  ;;  %v12728_v0 = vor.u32 %v13932_v13, %v12725_v20  ;;  %v13864_v56 = vld [vmem:[%s14330_s13 + $0x1c4c] sm:$0xf] }
 0x424   : > { %8449 = vmatpush.bf16.msrb.mxu3 %v12888_v30  ;;  %v12453_v63 = vld [vmem:[%s14330_s13 + $0x1c58] sm:$0xf0]  ;;  %v13896_v28 = vld [vmem:[%s14330_s13 + $0x1d4c] sm:$0xf]  ;;  %v12856_v51 = vor.u32 %v13964_v55, %v12853_v5  ;;  %v8022_v30 = vpop.f32.mrf.mxu0 }
 0x425   : > { %8408 = vmatpush.bf16.msrb.mxu0 %v12488_v12  ;;  %v12581_v31 = vld [vmem:[%s14330_s13 + $0x1d58] sm:$0xf0]  ;;  %v13928_v14 = vld [vmem:[%s14330_s13 + $0x1e4c] sm:$0xf]  ;;  %v12456_v3 = vor.u32 %v13864_v56, %v12453_v63  ;;  %v8037_v55 = vadd.f32 %v8036_v41, %v8022_v30 }
 0x426   : > { %8436 = vmatpush.bf16.msrb.mxu2 %v12744_v58  ;;  %v12709_v50 = vld [vmem:[%s14330_s13 + $0x1e58] sm:$0xf0]  ;;  %v13960_v7 = vld [vmem:[%s14330_s13 + $0x1f4c] sm:$0xf]  ;;  %v12584_v35 = vor.u32 %v13896_v28, %v12581_v31  ;;  %v8038_v46 = vpop.f32.mrf.mxu1 }
 0x427   : > { %8422 = vmatpush.bf16.msrb.mxu1 %v12616_v21  ;;  %v12837_v34 = vld [vmem:[%s14330_s13 + $0x1f58] sm:$0xf0]  ;;  %v12712_v36 = vor.u32 %v13928_v14, %v12709_v50  ;;  %v13860_v24 = vld [vmem:[%s14330_s13 + $0x1c2c] sm:$0xf]  ;;  %v8052_v12 = vpop.f32.mrf.mxu2  ;;  %v8066_v21 = vpop.f32.mrf.mxu3 }
 0x428   : > { %8450 = vmatpush.bf16.msrb.mxu3 %v12872_v25  ;;  %v12437_v27 = vld [vmem:[%s14330_s13 + $0x1c38] sm:$0xf0]  ;;  %v13892_v39 = vld [vmem:[%s14330_s13 + $0x1d2c] sm:$0xf]  ;;  %v12840_v40 = vor.u32 %v13960_v7, %v12837_v34 }
 0x429   : > { %8409 = vmatpush.bf16.msrb.mxu0 %v12472_v42  ;;  %v12565_v57 = vld [vmem:[%s14330_s13 + $0x1d38] sm:$0xf0]  ;;  %v13924_v49 = vld [vmem:[%s14330_s13 + $0x1e2c] sm:$0xf]  ;;  %v12440_v18 = vor.u32 %v13860_v24, %v12437_v27 }
 0x42a   : > { %8437 = vmatpush.bf16.msrb.mxu2 %v12728_v0  ;;  %v12693_v45 = vld [vmem:[%s14330_s13 + $0x1e38] sm:$0xf0]  ;;  %v13956_v43 = vld [vmem:[%s14330_s13 + $0x1f2c] sm:$0xf]  ;;  %v12568_v48 = vor.u32 %v13892_v39, %v12565_v57 }
 0x42b   : > { %8423 = vmatpush.bf16.msrb.mxu1 %v12600_v8  ;;  %v12821_v44 = vld [vmem:[%s14330_s13 + $0x1f38] sm:$0xf0]  ;;  %v12696_v47 = vor.u32 %v13924_v49, %v12693_v45  ;;  %v13856_v1 = vld [vmem:[%s14330_s13 + $0x1c0c] sm:$0xf] }
 0x42c   : > { %8451 = vmatpush.bf16.msrb.mxu3 %v12856_v51  ;;  %v12421_v33 = vld [vmem:[%s14330_s13 + $0x1c18] sm:$0xf0]  ;;  %v13888_v61 = vld [vmem:[%s14330_s13 + $0x1d0c] sm:$0xf]  ;;  %v12824_v23 = vor.u32 %v13956_v43, %v12821_v44  ;;  %v8024_v62 = vpop.f32.mrf.mxu0 }
 0x42d   : > { %8410 = vmatpush.bf16.msrb.mxu0 %v12456_v3  ;;  %v12549_v52 = vld [vmem:[%s14330_s13 + $0x1d18] sm:$0xf0]  ;;  %v13920_v4 = vld [vmem:[%s14330_s13 + $0x1e0c] sm:$0xf]  ;;  %v12424_v9 = vor.u32 %v13856_v1, %v12421_v33  ;;  %v8039_v63 = vadd.f32 %v8038_v46, %v8024_v62 }
 0x42e   : > { %8438 = vmatpush.bf16.msrb.mxu2 %v12712_v36  ;;  %v12677_v37 = vld [vmem:[%s14330_s13 + $0x1e18] sm:$0xf0]  ;;  %v13952_v19 = vld [vmem:[%s14330_s13 + $0x1f0c] sm:$0xf]  ;;  %v12552_v59 = vor.u32 %v13888_v61, %v12549_v52  ;;  %v8092_v29 = vpop.f32.mrf.mxu1 }
 0x42f   : > { %8424 = vmatpush.bf16.msrb.mxu1 %v12584_v35  ;;  %v12805_v2 = vld [vmem:[%s14330_s13 + $0x1f18] sm:$0xf0]  ;;  %v12680_v17 = vor.u32 %v13920_v4, %v12677_v37  ;;  %v8106_v6 = vpop.f32.mrf.mxu2  ;;  %v8120_v16 = vpop.f32.mrf.mxu3  ;;  %v8053_v50 = vadd.f32 %v8052_v12, %v8039_v63 }
 0x430   : > { %8452 = vmatpush.bf16.msrb.mxu3 %v12840_v40  ;;  %v12808_v38 = vor.u32 %v13952_v19, %v12805_v2 }
 0x431   : > { %8411 = vmatpush.bf16.msrb.mxu0 %v12440_v18  ;;  %v8067_v3 = vadd.f32 %v8066_v21, %v8053_v50 }
 0x432   : > { %8439 = vmatpush.bf16.msrb.mxu2 %v12696_v47 }
 0x433   : > { %8425 = vmatpush.bf16.msrb.mxu1 %v12568_v48 }
 0x434   : > { %8453 = vmatpush.bf16.msrb.mxu3 %v12824_v23  ;;  %v8078_v58 = vpop.f32.mrf.mxu0 }
 0x435   : > { %8412 = vmatpush.bf16.msrb.mxu0 %v12424_v9 }
 0x436   : > { %8440 = vmatpush.bf16.msrb.mxu2 %v12680_v17  ;;  %v8094_v10 = vpop.f32.mrf.mxu1 }
 0x437   : > { %8426 = vmatpush.bf16.msrb.mxu1 %v12552_v59  ;;  %v8108_v13 = vpop.f32.mrf.mxu2 }
 0x438   : > { %8454 = vmatpush.bf16.msrb.mxu3 %v12808_v38  ;;  %8413 = vmatmul.bf16.vlgmr.msrb.gmra.mxu0 %v17331_v60  ;;  %v8122_v60 = vpop.f32.mrf.mxu3 }
 0x439   : > { %8441 = vmatmul.bf16.vlgmr.msrb.gmra.mxu2 %v17332_v54 }
 0x43a   : > { %8427 = vmatmul.bf16.vlgmr.msrb.gmra.mxu1 %v17333_v15 }
 0x43b   : > { %8455 = vmatmul.bf16.vlgmr.msrb.gmra.mxu3 %v17334_v26  ;;  %v8051_v26 = vadd.f32 %v8050_v11, %v8037_v55 }
 0x43c   : > { %v8080_v25 = vpop.f32.mrf.mxu0 }
 0x43d   : > { %v8065_v0 = vadd.f32 %v8064_v53, %v8051_v26  ;;  %v8081_v24 = vadd.f32 %v8080_v25, %v8067_v3 }
 0x43e   : > { %v8148_v15 = vpop.f32.mrf.mxu1 }
 0x43f   : > { %v8162_v54 = vpop.f32.mrf.mxu2  ;;  %v8079_v28 = vadd.f32 %v8078_v58, %v8065_v0  ;;  %v8095_v57 = vadd.f32 %v8094_v10, %v8081_v24 }
 0x440   : > { %v8176_v5 = vpop.f32.mrf.mxu3 }
 0x441   : > { %v8093_v7 = vadd.f32 %v8092_v29, %v8079_v28  ;;  %v8109_v45 = vadd.f32 %v8108_v13, %v8095_v57 }
 0x443   : > { %v8107_v35 = vadd.f32 %v8106_v6, %v8093_v7  ;;  %v8123_v47 = vadd.f32 %v8122_v60, %v8109_v45 }
 0x444   : > { %v8134_v20 = vpop.f32.mrf.mxu0 }
 0x445   : > { %v8121_v39 = vadd.f32 %v8120_v16, %v8107_v35 }
 0x446   : > { %v8150_v8 = vpop.f32.mrf.mxu1 }
 0x447   : > { %v8164_v56 = vpop.f32.mrf.mxu2  ;;  %v8135_v49 = vadd.f32 %v8134_v20, %v8121_v39 }
 0x448   : > { %v8178_v51 = vpop.f32.mrf.mxu3 }
 0x449   : > { %v8149_v44 = vadd.f32 %v8148_v15, %v8135_v49 }
 0x44b   : > { %v8163_v1 = vadd.f32 %v8162_v54, %v8149_v44 }
 0x44c   : > { %v8136_v42 = vpop.f32.mrf.mxu0 }
 0x44d   : > { %v8137_v61 = vadd.f32 %v8136_v42, %v8123_v47  ;;  %v8177_v23 = vadd.f32 %v8176_v5, %v8163_v1  ;;  %v14052_v1 = vld [vmem:[%s14340_s8] sm:$0xf] }
 0x44e   : > { %v8204_v14 = vpop.f32.mrf.mxu1 }
 0x44f   : > { %v8218_v34 = vpop.f32.mrf.mxu2  ;;  %v8151_v4 = vadd.f32 %v8150_v8, %v8137_v61 }
 0x450   : > { %v8232_v36 = vpop.f32.mrf.mxu3 }
 0x451   : > { %v8165_v2 = vadd.f32 %v8164_v56, %v8151_v4 }
 0x453   : > { %v8179_v38 = vadd.f32 %v8178_v51, %v8165_v2 }
 0x454   : > { %v8190_v31 = vpop.f32.mrf.mxu0 }
 0x455   : > { %v8191_v37 = vadd.f32 %v8190_v31, %v8177_v23 }
 0x456   : > { %v8206_v40 = vpop.f32.mrf.mxu1 }
 0x457   : > { %v8220_v43 = vpop.f32.mrf.mxu2  ;;  %v8205_v59 = vadd.f32 %v8204_v14, %v8191_v37 }
 0x458   : > { %v8234_v18 = vpop.f32.mrf.mxu3 }
 0x459   : > { %v8219_v30 = vadd.f32 %v8218_v34, %v8205_v59 }
 0x45b   : > { %v8233_v53 = vadd.f32 %v8232_v36, %v8219_v30 }
 0x45c   : > { %v8192_v27 = vpop.f32.mrf.mxu0 }
 0x45d   : > { %v8193_v41 = vadd.f32 %v8192_v27, %v8179_v38 }
 0x45e   : > { %v8260_v33 = vpop.f32.mrf.mxu1 }
 0x45f   : > { %v8274_v52 = vpop.f32.mrf.mxu2  ;;  %v8207_v12 = vadd.f32 %v8206_v40, %v8193_v41 }
 0x460   : > { %v8288_v19 = vpop.f32.mrf.mxu3 }
 0x461   : > { %v8221_v29 = vadd.f32 %v8220_v43, %v8207_v12 }
 0x463   : > { %v8235_v25 = vadd.f32 %v8234_v18, %v8221_v29 }
 0x464   : > { %v8246_v48 = vpop.f32.mrf.mxu0 }
 0x465   : > { %v8247_v21 = vadd.f32 %v8246_v48, %v8233_v53 }
 0x466   : > { %v8262_v17 = vpop.f32.mrf.mxu1 }
 0x467   : > { %v8276_v11 = vpop.f32.mrf.mxu2  ;;  %v8261_v6 = vadd.f32 %v8260_v33, %v8247_v21  ;;  %v8465_v33 = vperm.slane %v14052_v1, 2 }
 0x468   : > { %v8290_v62 = vpop.f32.mrf.mxu3 }
 0x469   : > { %v8275_v10 = vadd.f32 %v8274_v52, %v8261_v6  ;;  %v14053_v52 = vld [vmem:[%s16253_s23] sm:$0xf]  ;;  %v8477_v6 = vmul.f32 %v8465_v33, %v16954_v22  ;;  %v8538_v22 = vld [vmem:[%s16336_s10] sm:$0xff] (%p14282_p9) }
 0x46a   : > { %v8483_v4 = vperm.slane %v14053_v52, 2  ;;  %v8484_v41 = vperm.slane %v14053_v52, 3  ;;  %8539 = vst [vmem:[%s8525_s25] sm:$0xff] (%p14282_p9), %v8538_v22 }
 0x46b   : > { %v8289_v15 = vadd.f32 %v8288_v19, %v8275_v10  ;;  %v8473_v19 = vmul.f32 %v8465_v33, %v16930_v32 }
 0x46c   : > { %v8248_v9 = vpop.f32.mrf.mxu0 }
 0x46d   : > { %v8249_v60 = vadd.f32 %v8248_v9, %v8235_v25  ;;  %v8491_v53 = vadd.f32 %v8483_v4, %v8473_v19 }
 0x46f   : > { %v8263_v54 = vadd.f32 %v8262_v17, %v8249_v60  ;;  %v8466_v17 = vperm.slane %v14052_v1, 3  ;;  %v8499_v29 = vmax.f32 %v8491_v53, 0.0  ;;  %v8495_v60 = vadd.f32 %v8483_v4, %v8477_v6 }
 0x471   : > { %v8277_v26 = vadd.f32 %v8276_v11, %v8263_v54 }
 0x473   : > { %v8291_v63 = vadd.f32 %v8290_v62, %v8277_v26 }
 0x475   : > { %v8302_v46 = vpop.f32.mrf.mxu0 }
 0x476   : > { %v8303_v5 = vadd.f32 %v8302_v46, %v8289_v15 }
 0x477   : > { %v8316_v58 = vpop.f32.mrf.mxu1 }
 0x478   : > { %v8317_v8 = vadd.f32 %v8316_v58, %v8303_v5 }
 0x47c   : > { %v8330_v16 = vpop.f32.mrf.mxu2 }
 0x47d   : > { %v8304_v20 = vpop.f32.mrf.mxu0  ;;  %v8331_v28 = vadd.f32 %v8330_v16, %v8317_v8 }
 0x47e   : > { %v8344_v13 = vpop.f32.mrf.mxu3  ;;  %v8305_v31 = vadd.f32 %v8304_v20, %v8291_v63 }
 0x47f   : > { %v8318_v55 = vpop.f32.mrf.mxu1  ;;  %v8345_v14 = vadd.f32 %v8344_v13, %v8331_v28 }
 0x480   : > { %v8319_v7 = vadd.f32 %v8318_v55, %v8305_v31  ;;  %v8503_v55 = vmax.f32 %v8495_v60, 0.0 }
 0x484   : > { %v8332_v42 = vpop.f32.mrf.mxu2 }
 0x485   : > { %v8333_v35 = vadd.f32 %v8332_v42, %v8319_v7  ;;  %v8542_v42 = vld [vmem:[%s16336_s10 + $0x10] sm:$0xff] (%p14282_p9) }
 0x486   : > { %v8346_v0 = vpop.f32.mrf.mxu3  ;;  %8543 = vst [vmem:[%s8525_s25 + $0x20] sm:$0xff] (%p14282_p9), %v8542_v42 }
 0x487   : > { %v8347_v39 = vadd.f32 %v8346_v0, %v8333_v35 }
 0x495   : > { %v8358_v56 = vpop.f32.mrf.mxu0 }
 0x496   : > { %v8359_v34 = vadd.f32 %v8358_v56, %v8345_v14 }
 0x497   : > { %v8372_v51 = vpop.f32.mrf.mxu1 }
 0x498   : > { %v8373_v24 = vadd.f32 %v8372_v51, %v8359_v34 }
 0x49c   : > { %v8386_v50 = vpop.f32.mrf.mxu2 }
 0x49d   : > { %v8360_v36 = vpop.f32.mrf.mxu0  ;;  %v8387_v40 = vadd.f32 %v8386_v50, %v8373_v24 }
 0x49e   : > { %v8400_v3 = vpop.f32.mrf.mxu3  ;;  %v8361_v57 = vadd.f32 %v8360_v36, %v8347_v39 }
 0x49f   : > { %v8374_v27 = vpop.f32.mrf.mxu1  ;;  %v8401_v45 = vadd.f32 %v8400_v3, %v8387_v40 }
 0x4a0   : > { %v8375_v18 = vadd.f32 %v8374_v27, %v8361_v57 }
 0x4a4   : > { %v8388_v49 = vpop.f32.mrf.mxu2 }
 0x4a5   : > { %v8389_v61 = vadd.f32 %v8388_v49, %v8375_v18 }
 0x4a6   : > { %v8402_v43 = vpop.f32.mrf.mxu3 }
 0x4a7   : > { %v8403_v2 = vadd.f32 %v8402_v43, %v8389_v61 }
 0x4b5   : > { %v8414_v44 = vpop.f32.mrf.mxu0 }
 0x4b6   : > { %v8415_v48 = vadd.f32 %v8414_v44, %v8401_v45 }
 0x4b7   : > { %v8428_v47 = vpop.f32.mrf.mxu1 }
 0x4b8   : > { %v8429_v23 = vadd.f32 %v8428_v47, %v8415_v48 }
 0x4bc   : > { %v8442_v37 = vpop.f32.mrf.mxu2 }
 0x4bd   : > { %v8443_v9 = vadd.f32 %v8442_v37, %v8429_v23  ;;  %v8416_v38 = vpop.f32.mrf.mxu0 }
 0x4be   : > { %v8456_v59 = vpop.f32.mrf.mxu3  ;;  %v8417_v11 = vadd.f32 %v8416_v38, %v8403_v2 }
 0x4bf   : > { %v8457_v30 = vadd.f32 %v8456_v59, %v8443_v9  ;;  %v8430_v46 = vpop.f32.mrf.mxu1 }
 0x4c0   : > { %v8431_v21 = vadd.f32 %v8430_v46, %v8417_v11 }
 0x4c1   : > { %v8474_v62 = vmul.f32 %v8466_v17, %v8457_v30 }
 0x4c3   : > { %v8492_v12 = vadd.f32 %v8484_v41, %v8474_v62 }
 0x4c4   : > { %v8444_v58 = vpop.f32.mrf.mxu2 }
 0x4c5   : > { %v8500_v32 = vmax.f32 %v8492_v12, 0.0  ;;  %v8445_v16 = vadd.f32 %v8444_v58, %v8431_v21 }
 0x4c6   : > { %v8458_v25 = vpop.f32.mrf.mxu3 }
 0x4c7   : > { %v8506_v10 = vpack.c.bf16 %v8500_v32, %v8499_v29  ;;  %v8459_v13 = vadd.f32 %v8458_v25, %v8445_v16 }
 0x4c9   : > { %8510 = vst [vmem:[%s16336_s10 + $0x8] sm:$0xff] %v8506_v10  ;;  %v8478_v20 = vmul.f32 %v8466_v17, %v8459_v13 }
 0x4cb   : > { %v8496_v15 = vadd.f32 %v8484_v41, %v8478_v20 }
 0x4cd   : > { %v8504_v54 = vmax.f32 %v8496_v15, 0.0  ;;  %8519 = sbr.rel (!%p14282_p9) target bundleno = 1242 (0x4da), region = 52 }
 0x4cf   : > { %v8508_v5 = vpack.c.bf16 %v8504_v54, %v8503_v55 }
 0x4d0   : > { %v8540_v26 = vld [vmem:[%s16336_s10 + $0x8] sm:$0xff] (%p14282_p9) }
 0x4d1   : > { %8512 = vst [vmem:[%s16336_s10 + $0x18] sm:$0xff] %v8508_v5 }
 0x4d2   : > { %8541 = vst [vmem:[%s8525_s25 + $0x8] sm:$0xff] %v8540_v26 }
 0x4d8   : > { %v8544_v8 = vld [vmem:[%s16336_s10 + $0x18] sm:$0xff] }
 0x4d9   : > { %8545 = vst [vmem:[%s8525_s25 + $0x28] sm:$0xff] %v8544_v8 }
 0x4da PF: > { %s20_s20 = sadd.s32 1, %s14198_s20   ;;  %s17339_s18 = sld [smem:[#allocation11_spill]] }
 0x4db   : > { %p17_p1 = scmp.ge.s32.totalorder %s20_s20, 4   ;;  %s17340_s28 = sld [smem:[#allocation10_spill]] }
 0x4dc   : > { %s17341_s15 = smov %s14182_s16  ;;  %s17342_s16 = smov %s14186_s17 }
 0x4dd   :  { %19 = sbr.rel (!%p17_p1) target bundleno = 8 (0x8), region = 126 }
 0x4e0   : > { %s17343_s17 = smov %s17339_s18  ;;  %s17344_s18 = smov %s14194_s19 }
 0x4e1   : > { %s17345_s19 = smov %s17340_s28 }
 0x4e2   :  { %8561 = vsyncpa [#allocation3], 1 }
 0x4e3   :  { %8563 = vsyncpa [#allocation3 + $0x1], 1 }
 0x4e4   :  { %8564 = vsyncpa [#allocation5], 1 }
 0x4e5   :  { %8566 = vsyncpa [#allocation5 + $0x1], 1 }

</bundles_post_ra>
